<compile_context>
chip_gen: v7x
topology: tpu7x:2x2x1
jax: 0.10.0
libtpu: 0.0.40
codegen_flags: <defaults>
</compile_context>

<pallas_src>
import functools

import jax
import jax.numpy as jnp
from jax.experimental import pallas as pl
from jax.experimental.pallas import tpu as pltpu

SLOPE = 0.2  # LeakyReLU negative slope used by the module


def _round_up(v, m):
    return (v + m - 1) // m * m


# ---------------------------------------------------------------------------
# Pallas kernel: fused pe -> MLP -> modulation -> 1x1 conv for one M-tile.
# ---------------------------------------------------------------------------
def _make_meta_kernel(n_taps, c_in, out_pad, tm):
    def kernel(rp_ref, rc_ref, xp_ref, caci_ref, casi_ref, sa_ref,
               w10_ref, w11_ref, w12_ref, b1_ref, w2t_ref, b2_ref,
               cw_ref, cb_ref, o_ref):
        rp = rp_ref[...]                       # (TM, k*k) range patches
        rc = rc_ref[...]                       # (TM, 1)   patch-center range

        # positional encoding (exactly the torch math, per tap)
        pe0 = rp * caci_ref[...] - rc          # r * cos_azi*cos_inc - r_center
        pe1 = rp * casi_ref[...]               # r * cos_azi*sin_inc
        pe2 = rp * sa_ref[...]                 # r * sin_azi

        w10 = w10_ref[...]                     # (1, C)  Linear1 column 0
        w11 = w11_ref[...]
        w12 = w12_ref[...]
        b1 = b1_ref[...]
        w2t = w2t_ref[...]                     # (C, C)  Linear2 weight, transposed
        b2 = b2_ref[...]

        acc = jnp.zeros((tm, out_pad), jnp.float32)
        # static unroll over the k*k taps; each tap: tiny MLP + modulation + MXU
        for t in range(n_taps):
            a0 = pe0[:, t:t + 1]               # (TM, 1)
            a1 = pe1[:, t:t + 1]
            a2 = pe2[:, t:t + 1]
            h = a0 * w10 + a1 * w11 + a2 * w12 + b1          # Linear(3, C)
            h = jnp.where(h > 0, h, SLOPE * h)               # LeakyReLU(0.2)
            wts = jnp.dot(h, w2t,
                          preferred_element_type=jnp.float32) + b2   # Linear(C, C)
            mod = wts * xp_ref[t]                             # (TM, C) modulation
            acc = acc + jnp.dot(mod, cw_ref[t],
                                preferred_element_type=jnp.float32)  # 1x1 conv tap
        o_ref[...] = acc + cb_ref[...]
    return kernel


# ---------------------------------------------------------------------------
# Layout glue (wrapper side)
# ---------------------------------------------------------------------------
def _extract_patches(xp, k, s):
    """xp: (B, Cc, Wp, Hp) -> ((B, Cc, Wo, Ho, k*k), Wo, Ho).

    Tap index t = d4*k + d5 where d4 = offset along H, d5 = offset along W,
    matching r.unfold(3,k,s).unfold(2,k,s) in the PyTorch module.
    patches[..., wo, ho, t] = xp[..., wo*s + d5, ho*s + d4]
    """
    _, _, wp, hp = xp.shape
    wo = (wp - k) // s + 1
    ho = (hp - k) // s + 1
    cols = []
    for d4 in range(k):
        for d5 in range(k):
            cols.append(xp[:, :, d5:d5 + s * wo:s, d4:d4 + s * ho:s])
    return jnp.stack(cols, axis=-1), wo, ho


def _angle_tables(azi, inc, k):
    """(1, k*k) tables: cos_azi*cos_inc, cos_azi*sin_inc, sin_azi  (t = d4*k+d5)."""
    d4 = jnp.arange(k, dtype=jnp.float32)[:, None]   # H-window offset
    d5 = jnp.arange(k, dtype=jnp.float32)[None, :]   # W-window offset
    ca = jnp.cos(azi * (d5 - k // 2))
    sa = jnp.sin(azi * (d5 - k // 2))
    ci = jnp.cos(inc * (d4 - k // 2))
    si = jnp.sin(inc * (d4 - k // 2))
    caci = (ca * ci).reshape(1, k * k)
    casi = (ca * si).reshape(1, k * k)
    saf = jnp.broadcast_to(sa, (k, k)).reshape(1, k * k)
    return caci, casi, saf


def _pad_like_torch(x, r, p):
    # r: pad H with constant 100.0, then W circularly (same order as the module)
    r2 = jnp.pad(r, ((0, 0), (0, 0), (0, 0), (p, p)), constant_values=100.0)
    r2 = jnp.pad(r2, ((0, 0), (0, 0), (p, p), (0, 0)), mode="wrap")
    # x: pad H with zeros, then W circularly
    x2 = jnp.pad(x, ((0, 0), (0, 0), (0, 0), (p, p)))
    x2 = jnp.pad(x2, ((0, 0), (0, 0), (p, p), (0, 0)), mode="wrap")
    return x2, r2


# ---------------------------------------------------------------------------
# Forward pass
# ---------------------------------------------------------------------------
def meta_kernel_forward(x, r, params, azi, inc,
                        kernel_size=4, stride=2, padding=1):
    k, s, p = kernel_size, stride, padding
    B, C, _, _ = x.shape
    out_ch = params["conv_w"].shape[0]
    n_taps = k * k

    # ---- padding + patch extraction (layout glue) ----
    x2, r2 = _pad_like_torch(x, r, p)
    r_p, Wo, Ho = _extract_patches(r2, k, s)        # (B, 1, Wo, Ho, k*k)
    x_p, _, _ = _extract_patches(x2, k, s)          # (B, C, Wo, Ho, k*k)

    M = B * Wo * Ho
    r_center = r_p[:, :, :, :, (k // 2) * k + k // 2]          # (B, 1, Wo, Ho)

    rp2 = r_p[:, 0].reshape(M, n_taps)                         # (M, k*k)
    rc2 = r_center[:, 0].reshape(M, 1)                         # (M, 1)
    xp_tap = jnp.transpose(x_p, (4, 0, 2, 3, 1)).reshape(n_taps, M, C)  # (k*k, M, C)

    # ---- tile / lane friendly padding ----
    TM = 128 if M >= 128 else _round_up(M, 8)
    M_pad = _round_up(M, TM)
    OUT_PAD = _round_up(max(out_ch, 128), 128)       # lane-dense output stores
    if M_pad != M:
        rp2 = jnp.pad(rp2, ((0, M_pad - M), (0, 0)))
        rc2 = jnp.pad(rc2, ((0, M_pad - M), (0, 0)))
        xp_tap = jnp.pad(xp_tap, ((0, 0), (0, M_pad - M), (0, 0)))

    # ---- parameter prep (pure layout) ----
    w1, b1 = params["w1"], params["b1"]              # (C, 3), (C,)
    w2, b2 = params["w2"], params["b2"]              # (C, C), (C,)
    wc, cb = params["conv_w"], params["conv_b"]      # (out, C*k*k), (out,)

    w10 = w1[:, 0].reshape(1, C)
    w11 = w1[:, 1].reshape(1, C)
    w12 = w1[:, 2].reshape(1, C)
    b1r = b1.reshape(1, C)
    w2t = jnp.transpose(w2)                          # h @ W2^T
    b2r = b2.reshape(1, C)
    # conv weight reorganized per tap: cw_tap[t, c, o] = Wc[o, c*k*k + t]
    cw_tap = jnp.transpose(wc.reshape(out_ch, C, n_taps), (2, 1, 0))
    cw_tap = jnp.pad(cw_tap, ((0, 0), (0, 0), (0, OUT_PAD - out_ch)))
    cbp = jnp.pad(cb.reshape(1, out_ch), ((0, 0), (0, OUT_PAD - out_ch)))

    caci, casi, saf = _angle_tables(azi, inc, k)

    kernel = _make_meta_kernel(n_taps, C, OUT_PAD, TM)
    out = pl.pallas_call(
        kernel,
        out_shape=jax.ShapeDtypeStruct((M_pad, OUT_PAD), jnp.float32),
        grid=(M_pad // TM,),
        in_specs=[
            pl.BlockSpec((TM, n_taps), lambda i: (i, 0)),          # r patches
            pl.BlockSpec((TM, 1), lambda i: (i, 0)),               # r center
            pl.BlockSpec((n_taps, TM, C), lambda i: (0, i, 0)),    # x patches (tap-major)
            pl.BlockSpec((1, n_taps), lambda i: (0, 0)),           # cos_azi*cos_inc
            pl.BlockSpec((1, n_taps), lambda i: (0, 0)),           # cos_azi*sin_inc
            pl.BlockSpec((1, n_taps), lambda i: (0, 0)),           # sin_azi
            pl.BlockSpec((1, C), lambda i: (0, 0)),                # W1[:, 0]
            pl.BlockSpec((1, C), lambda i: (0, 0)),                # W1[:, 1]
            pl.BlockSpec((1, C), lambda i: (0, 0)),                # W1[:, 2]
            pl.BlockSpec((1, C), lambda i: (0, 0)),                # b1
            pl.BlockSpec((C, C), lambda i: (0, 0)),                # W2^T
            pl.BlockSpec((1, C), lambda i: (0, 0)),                # b2
            pl.BlockSpec((n_taps, C, OUT_PAD), lambda i: (0, 0, 0)),  # conv W (padded)
            pl.BlockSpec((1, OUT_PAD), lambda i: (0, 0)),          # conv bias (padded)
        ],
        out_specs=pl.BlockSpec((TM, OUT_PAD), lambda i: (i, 0)),
        compiler_params=pltpu.CompilerParams(
            dimension_semantics=("parallel",)),
    )(rp2, rc2, xp_tap, caci, casi, saf,
      w10, w11, w12, b1r, w2t, b2r, cw_tap, cbp)

    out = out[:M, :out_ch].reshape(B, Wo, Ho, out_ch)
    out = jnp.transpose(out, (0, 3, 1, 2))           # (B, out_ch, Wo, Ho)
    return out, r_center


# ---------------------------------------------------------------------------
# Pure-JAX reference (mirrors the PyTorch forward) for a sanity check.
# ---------------------------------------------------------------------------
def meta_kernel_reference(x, r, params, azi, inc, kernel_size=4, stride=2, padding=1):
    k, s, p = kernel_size, stride, padding
    _, C, _, _ = x.shape
    out_ch = params["conv_w"].shape[0]
    hp = jax.lax.Precision.HIGHEST

    x2, r2 = _pad_like_torch(x, r, p)
    r_p, _, _ = _extract_patches(r2, k, s)
    x_p, _, _ = _extract_patches(x2, k, s)
    r_c = r_p[:, :, :, :, (k // 2) * k + k // 2]                  # (B,1,Wo,Ho)
    caci, casi, saf = _angle_tables(azi, inc, k)
    caci, casi, saf = caci[0], casi[0], saf[0]

    pe0 = r_p[:, 0] * caci - r_c[:, 0][..., None]
    pe1 = r_p[:, 0] * casi
    pe2 = r_p[:, 0] * saf
    pe = jnp.stack([pe0, pe1, pe2], axis=-1)                      # (B,Wo,Ho,kk,3)

    h = jnp.einsum("bwhtd,cd->bwhtc", pe, params["w1"], precision=hp) + params["b1"]
    h = jnp.where(h > 0, h, SLOPE * h)
    wts = jnp.einsum("bwhtd,cd->bwhtc", h, params["w2"], precision=hp) + params["b2"]
    mod = wts * jnp.transpose(x_p, (0, 2, 3, 4, 1))               # (B,Wo,Ho,kk,C)
    wc3 = params["conv_w"].reshape(out_ch, C, k * k)
    out = jnp.einsum("bwhtc,oct->bowh", mod, wc3, precision=hp)
    out = out + params["conv_b"][None, :, None, None]
    return out, r_c


if __name__ == "__main__":
    key = jax.random.PRNGKey(0)
    kx, kr, k1, k2, k3, k4, k5, k6 = jax.random.split(key, 8)

    B, C, W, H = 2, 8, 16, 16
    out_ch = 16
    azi, inc = 0.1, 0.05
    ks, st, pd = 4, 2, 1

    x = jax.random.normal(kx, (B, C, W, H), jnp.float32)
    r = 1.0 + 9.0 * jax.random.uniform(kr, (B, 1, W, H), jnp.float32)

    params = dict(
        w1=0.2 * jax.random.normal(k1, (C, 3), jnp.float32),
        b1=0.05 * jax.random.normal(k2, (C,), jnp.float32),
        w2=0.2 * jax.random.normal(k3, (C, C), jnp.float32),
        b2=0.05 * jax.random.normal(k4, (C,), jnp.float32),
        conv_w=0.05 * jax.random.normal(k5, (out_ch, ks * ks * C), jnp.float32),
        conv_b=0.05 * jax.random.normal(k6, (out_ch,), jnp.float32),
    )

    fwd = jax.jit(functools.partial(meta_kernel_forward, azi=azi, inc=inc,
                                    kernel_size=ks, stride=st, padding=pd))
    out, r_center = fwd(x, r, params)
    jax.block_until_ready((out, r_center))

    assert out.shape == (B, out_ch, W // st, H // st), out.shape
    assert r_center.shape == (B, 1, W // st, H // st), r_center.shape

    ref_out, ref_rc = meta_kernel_reference(x, r, params, azi, inc, ks, st, pd)
    assert float(jnp.max(jnp.abs(out - ref_out))) < 1e-1
    assert float(jnp.max(jnp.abs(r_center - ref_rc))) < 1e-5
    print("KERNEL_OK")
</pallas_src>

<mosaic_0001>
module attributes {stable_mosaic.version = 11 : i64} {
  func.func @kernel(%arg0: i32, %arg1: memref<128x16xf32, #tpu.memory_space<vmem>>, %arg2: memref<128x1xf32, #tpu.memory_space<vmem>>, %arg3: memref<16x128x8xf32, #tpu.memory_space<vmem>>, %arg4: memref<1x16xf32, #tpu.memory_space<vmem>>, %arg5: memref<1x16xf32, #tpu.memory_space<vmem>>, %arg6: memref<1x16xf32, #tpu.memory_space<vmem>>, %arg7: memref<1x8xf32, #tpu.memory_space<vmem>>, %arg8: memref<1x8xf32, #tpu.memory_space<vmem>>, %arg9: memref<1x8xf32, #tpu.memory_space<vmem>>, %arg10: memref<1x8xf32, #tpu.memory_space<vmem>>, %arg11: memref<8x8xf32, #tpu.memory_space<vmem>>, %arg12: memref<1x8xf32, #tpu.memory_space<vmem>>, %arg13: memref<16x8x128xf32, #tpu.memory_space<vmem>>, %arg14: memref<1x128xf32, #tpu.memory_space<vmem>>, %arg15: memref<128x128xf32, #tpu.memory_space<vmem>>) attributes {dimension_semantics = [#tpu.dimension_semantics<parallel>], iteration_bounds = array<i64: 1>, scalar_prefetch = 0 : i64, scratch_operands = 0 : i64, tpu.core_type = #tpu.core_type<tc>, window_params = [{transform_indices = @transform_0, window_bounds = array<i64: 128, 16>}, {transform_indices = @transform_1, window_bounds = array<i64: 128, 1>}, {transform_indices = @transform_2, window_bounds = array<i64: 16, 128, 8>}, {pipeline_mode = #tpu.pipeline_mode<synchronous>, transform_indices = @transform_3, window_bounds = array<i64: 1, 16>}, {pipeline_mode = #tpu.pipeline_mode<synchronous>, transform_indices = @transform_4, window_bounds = array<i64: 1, 16>}, {pipeline_mode = #tpu.pipeline_mode<synchronous>, transform_indices = @transform_5, window_bounds = array<i64: 1, 16>}, {pipeline_mode = #tpu.pipeline_mode<synchronous>, transform_indices = @transform_6, window_bounds = array<i64: 1, 8>}, {pipeline_mode = #tpu.pipeline_mode<synchronous>, transform_indices = @transform_7, window_bounds = array<i64: 1, 8>}, {pipeline_mode = #tpu.pipeline_mode<synchronous>, transform_indices = @transform_8, window_bounds = array<i64: 1, 8>}, {pipeline_mode = #tpu.pipeline_mode<synchronous>, transform_indices = @transform_9, window_bounds = array<i64: 1, 8>}, {pipeline_mode = #tpu.pipeline_mode<synchronous>, transform_indices = @transform_10, window_bounds = array<i64: 8, 8>}, {pipeline_mode = #tpu.pipeline_mode<synchronous>, transform_indices = @transform_11, window_bounds = array<i64: 1, 8>}, {pipeline_mode = #tpu.pipeline_mode<synchronous>, transform_indices = @transform_12, window_bounds = array<i64: 16, 8, 128>}, {pipeline_mode = #tpu.pipeline_mode<synchronous>, transform_indices = @transform_13, window_bounds = array<i64: 1, 128>}, {transform_indices = @transform_14, window_bounds = array<i64: 128, 128>}]} {
    %c0 = arith.constant 0 : index
    %c0_0 = arith.constant 0 : index
    %0 = vector.load %arg1[%c0, %c0_0] : memref<128x16xf32, #tpu.memory_space<vmem>>, vector<128x16xf32>
    %c0_1 = arith.constant 0 : index
    %c0_2 = arith.constant 0 : index
    %1 = vector.load %arg2[%c0_1, %c0_2] : memref<128x1xf32, #tpu.memory_space<vmem>>, vector<128x1xf32>
    %c0_3 = arith.constant 0 : index
    %c0_4 = arith.constant 0 : index
    %2 = vector.load %arg4[%c0_3, %c0_4] : memref<1x16xf32, #tpu.memory_space<vmem>>, vector<1x16xf32>
    %3 = vector.broadcast %2 : vector<1x16xf32> to vector<128x16xf32>
    %4 = arith.mulf %0, %3 : vector<128x16xf32>
    %5 = vector.broadcast %1 : vector<128x1xf32> to vector<128x16xf32>
    %6 = arith.subf %4, %5 : vector<128x16xf32>
    %c0_5 = arith.constant 0 : index
    %c0_6 = arith.constant 0 : index
    %7 = vector.load %arg5[%c0_5, %c0_6] : memref<1x16xf32, #tpu.memory_space<vmem>>, vector<1x16xf32>
    %8 = vector.broadcast %7 : vector<1x16xf32> to vector<128x16xf32>
    %9 = arith.mulf %0, %8 : vector<128x16xf32>
    %c0_7 = arith.constant 0 : index
    %c0_8 = arith.constant 0 : index
    %10 = vector.load %arg6[%c0_7, %c0_8] : memref<1x16xf32, #tpu.memory_space<vmem>>, vector<1x16xf32>
    %11 = vector.broadcast %10 : vector<1x16xf32> to vector<128x16xf32>
    %12 = arith.mulf %0, %11 : vector<128x16xf32>
    %c0_9 = arith.constant 0 : index
    %c0_10 = arith.constant 0 : index
    %13 = vector.load %arg7[%c0_9, %c0_10] : memref<1x8xf32, #tpu.memory_space<vmem>>, vector<1x8xf32>
    %c0_11 = arith.constant 0 : index
    %c0_12 = arith.constant 0 : index
    %14 = vector.load %arg8[%c0_11, %c0_12] : memref<1x8xf32, #tpu.memory_space<vmem>>, vector<1x8xf32>
    %c0_13 = arith.constant 0 : index
    %c0_14 = arith.constant 0 : index
    %15 = vector.load %arg9[%c0_13, %c0_14] : memref<1x8xf32, #tpu.memory_space<vmem>>, vector<1x8xf32>
    %c0_15 = arith.constant 0 : index
    %c0_16 = arith.constant 0 : index
    %16 = vector.load %arg10[%c0_15, %c0_16] : memref<1x8xf32, #tpu.memory_space<vmem>>, vector<1x8xf32>
    %c0_17 = arith.constant 0 : index
    %c0_18 = arith.constant 0 : index
    %17 = vector.load %arg11[%c0_17, %c0_18] : memref<8x8xf32, #tpu.memory_space<vmem>>, vector<8x8xf32>
    %c0_19 = arith.constant 0 : index
    %c0_20 = arith.constant 0 : index
    %18 = vector.load %arg12[%c0_19, %c0_20] : memref<1x8xf32, #tpu.memory_space<vmem>>, vector<1x8xf32>
    %cst = arith.constant 0.000000e+00 : f32
    %19 = vector.broadcast %cst : f32 to vector<128x128xf32>
    %20 = vector.extract_strided_slice %6 {offsets = [0, 0], sizes = [128, 1], strides = [1, 1]} : vector<128x16xf32> to vector<128x1xf32>
    %21 = vector.extract_strided_slice %9 {offsets = [0, 0], sizes = [128, 1], strides = [1, 1]} : vector<128x16xf32> to vector<128x1xf32>
    %22 = vector.extract_strided_slice %12 {offsets = [0, 0], sizes = [128, 1], strides = [1, 1]} : vector<128x16xf32> to vector<128x1xf32>
    %23 = vector.broadcast %20 : vector<128x1xf32> to vector<128x8xf32>
    %24 = vector.broadcast %13 : vector<1x8xf32> to vector<128x8xf32>
    %25 = arith.mulf %23, %24 : vector<128x8xf32>
    %26 = vector.broadcast %21 : vector<128x1xf32> to vector<128x8xf32>
    %27 = vector.broadcast %14 : vector<1x8xf32> to vector<128x8xf32>
    %28 = arith.mulf %26, %27 : vector<128x8xf32>
    %29 = arith.addf %25, %28 : vector<128x8xf32>
    %30 = vector.broadcast %22 : vector<128x1xf32> to vector<128x8xf32>
    %31 = vector.broadcast %15 : vector<1x8xf32> to vector<128x8xf32>
    %32 = arith.mulf %30, %31 : vector<128x8xf32>
    %33 = arith.addf %29, %32 : vector<128x8xf32>
    %34 = vector.broadcast %16 : vector<1x8xf32> to vector<128x8xf32>
    %35 = arith.addf %33, %34 : vector<128x8xf32>
    %cst_21 = arith.constant 0.000000e+00 : f32
    %36 = vector.broadcast %cst_21 : f32 to vector<128x8xf32>
    %37 = arith.cmpf ogt, %35, %36 : vector<128x8xf32>
    %cst_22 = arith.constant 2.000000e-01 : f32
    %38 = vector.broadcast %cst_22 : f32 to vector<128x8xf32>
    %39 = arith.mulf %38, %35 : vector<128x8xf32>
    %40 = arith.select %37, %35, %39 : vector<128x8xi1>, vector<128x8xf32>
    %cst_23 = arith.constant dense<0.000000e+00> : vector<128x8xf32>
    %41 = tpu.matmul %40, %17, %cst_23 {dimension_numbers = #tpu.dot_dimension_numbers<[1], [0], [0], [1], [0, 0, 1, 1], [], []>} : vector<128x8xf32>, vector<8x8xf32>, vector<128x8xf32> -> vector<128x8xf32>
    %42 = vector.broadcast %18 : vector<1x8xf32> to vector<128x8xf32>
    %43 = arith.addf %41, %42 : vector<128x8xf32>
    %c0_24 = arith.constant 0 : index
    %c0_25 = arith.constant 0 : index
    %c0_26 = arith.constant 0 : index
    %44 = vector.load %arg3[%c0_24, %c0_25, %c0_26] : memref<16x128x8xf32, #tpu.memory_space<vmem>>, vector<1x128x8xf32>
    %45 = vector.shape_cast %44 : vector<1x128x8xf32> to vector<128x8xf32>
    %46 = arith.mulf %43, %45 : vector<128x8xf32>
    %c0_27 = arith.constant 0 : index
    %c0_28 = arith.constant 0 : index
    %c0_29 = arith.constant 0 : index
    %47 = vector.load %arg13[%c0_27, %c0_28, %c0_29] : memref<16x8x128xf32, #tpu.memory_space<vmem>>, vector<1x8x128xf32>
    %48 = vector.shape_cast %47 : vector<1x8x128xf32> to vector<8x128xf32>
    %cst_30 = arith.constant dense<0.000000e+00> : vector<128x128xf32>
    %49 = tpu.matmul %46, %48, %cst_30 {dimension_numbers = #tpu.dot_dimension_numbers<[1], [0], [0], [1], [0, 0, 1, 1], [], []>} : vector<128x8xf32>, vector<8x128xf32>, vector<128x128xf32> -> vector<128x128xf32>
    %50 = arith.addf %19, %49 : vector<128x128xf32>
    %51 = vector.extract_strided_slice %6 {offsets = [0, 1], sizes = [128, 1], strides = [1, 1]} : vector<128x16xf32> to vector<128x1xf32>
    %52 = vector.extract_strided_slice %9 {offsets = [0, 1], sizes = [128, 1], strides = [1, 1]} : vector<128x16xf32> to vector<128x1xf32>
    %53 = vector.extract_strided_slice %12 {offsets = [0, 1], sizes = [128, 1], strides = [1, 1]} : vector<128x16xf32> to vector<128x1xf32>
    %54 = vector.broadcast %51 : vector<128x1xf32> to vector<128x8xf32>
    %55 = vector.broadcast %13 : vector<1x8xf32> to vector<128x8xf32>
    %56 = arith.mulf %54, %55 : vector<128x8xf32>
    %57 = vector.broadcast %52 : vector<128x1xf32> to vector<128x8xf32>
    %58 = vector.broadcast %14 : vector<1x8xf32> to vector<128x8xf32>
    %59 = arith.mulf %57, %58 : vector<128x8xf32>
    %60 = arith.addf %56, %59 : vector<128x8xf32>
    %61 = vector.broadcast %53 : vector<128x1xf32> to vector<128x8xf32>
    %62 = vector.broadcast %15 : vector<1x8xf32> to vector<128x8xf32>
    %63 = arith.mulf %61, %62 : vector<128x8xf32>
    %64 = arith.addf %60, %63 : vector<128x8xf32>
    %65 = vector.broadcast %16 : vector<1x8xf32> to vector<128x8xf32>
    %66 = arith.addf %64, %65 : vector<128x8xf32>
    %cst_31 = arith.constant 0.000000e+00 : f32
    %67 = vector.broadcast %cst_31 : f32 to vector<128x8xf32>
    %68 = arith.cmpf ogt, %66, %67 : vector<128x8xf32>
    %cst_32 = arith.constant 2.000000e-01 : f32
    %69 = vector.broadcast %cst_32 : f32 to vector<128x8xf32>
    %70 = arith.mulf %69, %66 : vector<128x8xf32>
    %71 = arith.select %68, %66, %70 : vector<128x8xi1>, vector<128x8xf32>
    %cst_33 = arith.constant dense<0.000000e+00> : vector<128x8xf32>
    %72 = tpu.matmul %71, %17, %cst_33 {dimension_numbers = #tpu.dot_dimension_numbers<[1], [0], [0], [1], [0, 0, 1, 1], [], []>} : vector<128x8xf32>, vector<8x8xf32>, vector<128x8xf32> -> vector<128x8xf32>
    %73 = vector.broadcast %18 : vector<1x8xf32> to vector<128x8xf32>
    %74 = arith.addf %72, %73 : vector<128x8xf32>
    %c1 = arith.constant 1 : index
    %c0_34 = arith.constant 0 : index
    %c0_35 = arith.constant 0 : index
    %75 = vector.load %arg3[%c1, %c0_34, %c0_35] : memref<16x128x8xf32, #tpu.memory_space<vmem>>, vector<1x128x8xf32>
    %76 = vector.shape_cast %75 : vector<1x128x8xf32> to vector<128x8xf32>
    %77 = arith.mulf %74, %76 : vector<128x8xf32>
    %c1_36 = arith.constant 1 : index
    %c0_37 = arith.constant 0 : index
    %c0_38 = arith.constant 0 : index
    %78 = vector.load %arg13[%c1_36, %c0_37, %c0_38] : memref<16x8x128xf32, #tpu.memory_space<vmem>>, vector<1x8x128xf32>
    %79 = vector.shape_cast %78 : vector<1x8x128xf32> to vector<8x128xf32>
    %cst_39 = arith.constant dense<0.000000e+00> : vector<128x128xf32>
    %80 = tpu.matmul %77, %79, %cst_39 {dimension_numbers = #tpu.dot_dimension_numbers<[1], [0], [0], [1], [0, 0, 1, 1], [], []>} : vector<128x8xf32>, vector<8x128xf32>, vector<128x128xf32> -> vector<128x128xf32>
    %81 = arith.addf %50, %80 : vector<128x128xf32>
    %82 = vector.extract_strided_slice %6 {offsets = [0, 2], sizes = [128, 1], strides = [1, 1]} : vector<128x16xf32> to vector<128x1xf32>
    %83 = vector.extract_strided_slice %9 {offsets = [0, 2], sizes = [128, 1], strides = [1, 1]} : vector<128x16xf32> to vector<128x1xf32>
    %84 = vector.extract_strided_slice %12 {offsets = [0, 2], sizes = [128, 1], strides = [1, 1]} : vector<128x16xf32> to vector<128x1xf32>
    %85 = vector.broadcast %82 : vector<128x1xf32> to vector<128x8xf32>
    %86 = vector.broadcast %13 : vector<1x8xf32> to vector<128x8xf32>
    %87 = arith.mulf %85, %86 : vector<128x8xf32>
    %88 = vector.broadcast %83 : vector<128x1xf32> to vector<128x8xf32>
    %89 = vector.broadcast %14 : vector<1x8xf32> to vector<128x8xf32>
    %90 = arith.mulf %88, %89 : vector<128x8xf32>
    %91 = arith.addf %87, %90 : vector<128x8xf32>
    %92 = vector.broadcast %84 : vector<128x1xf32> to vector<128x8xf32>
    %93 = vector.broadcast %15 : vector<1x8xf32> to vector<128x8xf32>
    %94 = arith.mulf %92, %93 : vector<128x8xf32>
    %95 = arith.addf %91, %94 : vector<128x8xf32>
    %96 = vector.broadcast %16 : vector<1x8xf32> to vector<128x8xf32>
    %97 = arith.addf %95, %96 : vector<128x8xf32>
    %cst_40 = arith.constant 0.000000e+00 : f32
    %98 = vector.broadcast %cst_40 : f32 to vector<128x8xf32>
    %99 = arith.cmpf ogt, %97, %98 : vector<128x8xf32>
    %cst_41 = arith.constant 2.000000e-01 : f32
    %100 = vector.broadcast %cst_41 : f32 to vector<128x8xf32>
    %101 = arith.mulf %100, %97 : vector<128x8xf32>
    %102 = arith.select %99, %97, %101 : vector<128x8xi1>, vector<128x8xf32>
    %cst_42 = arith.constant dense<0.000000e+00> : vector<128x8xf32>
    %103 = tpu.matmul %102, %17, %cst_42 {dimension_numbers = #tpu.dot_dimension_numbers<[1], [0], [0], [1], [0, 0, 1, 1], [], []>} : vector<128x8xf32>, vector<8x8xf32>, vector<128x8xf32> -> vector<128x8xf32>
    %104 = vector.broadcast %18 : vector<1x8xf32> to vector<128x8xf32>
    %105 = arith.addf %103, %104 : vector<128x8xf32>
    %c2 = arith.constant 2 : index
    %c0_43 = arith.constant 0 : index
    %c0_44 = arith.constant 0 : index
    %106 = vector.load %arg3[%c2, %c0_43, %c0_44] : memref<16x128x8xf32, #tpu.memory_space<vmem>>, vector<1x128x8xf32>
    %107 = vector.shape_cast %106 : vector<1x128x8xf32> to vector<128x8xf32>
    %108 = arith.mulf %105, %107 : vector<128x8xf32>
    %c2_45 = arith.constant 2 : index
    %c0_46 = arith.constant 0 : index
    %c0_47 = arith.constant 0 : index
    %109 = vector.load %arg13[%c2_45, %c0_46, %c0_47] : memref<16x8x128xf32, #tpu.memory_space<vmem>>, vector<1x8x128xf32>
    %110 = vector.shape_cast %109 : vector<1x8x128xf32> to vector<8x128xf32>
    %cst_48 = arith.constant dense<0.000000e+00> : vector<128x128xf32>
    %111 = tpu.matmul %108, %110, %cst_48 {dimension_numbers = #tpu.dot_dimension_numbers<[1], [0], [0], [1], [0, 0, 1, 1], [], []>} : vector<128x8xf32>, vector<8x128xf32>, vector<128x128xf32> -> vector<128x128xf32>
    %112 = arith.addf %81, %111 : vector<128x128xf32>
    %113 = vector.extract_strided_slice %6 {offsets = [0, 3], sizes = [128, 1], strides = [1, 1]} : vector<128x16xf32> to vector<128x1xf32>
    %114 = vector.extract_strided_slice %9 {offsets = [0, 3], sizes = [128, 1], strides = [1, 1]} : vector<128x16xf32> to vector<128x1xf32>
    %115 = vector.extract_strided_slice %12 {offsets = [0, 3], sizes = [128, 1], strides = [1, 1]} : vector<128x16xf32> to vector<128x1xf32>
    %116 = vector.broadcast %113 : vector<128x1xf32> to vector<128x8xf32>
    %117 = vector.broadcast %13 : vector<1x8xf32> to vector<128x8xf32>
    %118 = arith.mulf %116, %117 : vector<128x8xf32>
    %119 = vector.broadcast %114 : vector<128x1xf32> to vector<128x8xf32>
    %120 = vector.broadcast %14 : vector<1x8xf32> to vector<128x8xf32>
    %121 = arith.mulf %119, %120 : vector<128x8xf32>
    %122 = arith.addf %118, %121 : vector<128x8xf32>
    %123 = vector.broadcast %115 : vector<128x1xf32> to vector<128x8xf32>
    %124 = vector.broadcast %15 : vector<1x8xf32> to vector<128x8xf32>
    %125 = arith.mulf %123, %124 : vector<128x8xf32>
    %126 = arith.addf %122, %125 : vector<128x8xf32>
    %127 = vector.broadcast %16 : vector<1x8xf32> to vector<128x8xf32>
    %128 = arith.addf %126, %127 : vector<128x8xf32>
    %cst_49 = arith.constant 0.000000e+00 : f32
    %129 = vector.broadcast %cst_49 : f32 to vector<128x8xf32>
    %130 = arith.cmpf ogt, %128, %129 : vector<128x8xf32>
    %cst_50 = arith.constant 2.000000e-01 : f32
    %131 = vector.broadcast %cst_50 : f32 to vector<128x8xf32>
    %132 = arith.mulf %131, %128 : vector<128x8xf32>
    %133 = arith.select %130, %128, %132 : vector<128x8xi1>, vector<128x8xf32>
    %cst_51 = arith.constant dense<0.000000e+00> : vector<128x8xf32>
    %134 = tpu.matmul %133, %17, %cst_51 {dimension_numbers = #tpu.dot_dimension_numbers<[1], [0], [0], [1], [0, 0, 1, 1], [], []>} : vector<128x8xf32>, vector<8x8xf32>, vector<128x8xf32> -> vector<128x8xf32>
    %135 = vector.broadcast %18 : vector<1x8xf32> to vector<128x8xf32>
    %136 = arith.addf %134, %135 : vector<128x8xf32>
    %c3 = arith.constant 3 : index
    %c0_52 = arith.constant 0 : index
    %c0_53 = arith.constant 0 : index
    %137 = vector.load %arg3[%c3, %c0_52, %c0_53] : memref<16x128x8xf32, #tpu.memory_space<vmem>>, vector<1x128x8xf32>
    %138 = vector.shape_cast %137 : vector<1x128x8xf32> to vector<128x8xf32>
    %139 = arith.mulf %136, %138 : vector<128x8xf32>
    %c3_54 = arith.constant 3 : index
    %c0_55 = arith.constant 0 : index
    %c0_56 = arith.constant 0 : index
    %140 = vector.load %arg13[%c3_54, %c0_55, %c0_56] : memref<16x8x128xf32, #tpu.memory_space<vmem>>, vector<1x8x128xf32>
    %141 = vector.shape_cast %140 : vector<1x8x128xf32> to vector<8x128xf32>
    %cst_57 = arith.constant dense<0.000000e+00> : vector<128x128xf32>
    %142 = tpu.matmul %139, %141, %cst_57 {dimension_numbers = #tpu.dot_dimension_numbers<[1], [0], [0], [1], [0, 0, 1, 1], [], []>} : vector<128x8xf32>, vector<8x128xf32>, vector<128x128xf32> -> vector<128x128xf32>
    %143 = arith.addf %112, %142 : vector<128x128xf32>
    %144 = vector.extract_strided_slice %6 {offsets = [0, 4], sizes = [128, 1], strides = [1, 1]} : vector<128x16xf32> to vector<128x1xf32>
    %145 = vector.extract_strided_slice %9 {offsets = [0, 4], sizes = [128, 1], strides = [1, 1]} : vector<128x16xf32> to vector<128x1xf32>
    %146 = vector.extract_strided_slice %12 {offsets = [0, 4], sizes = [128, 1], strides = [1, 1]} : vector<128x16xf32> to vector<128x1xf32>
    %147 = vector.broadcast %144 : vector<128x1xf32> to vector<128x8xf32>
    %148 = vector.broadcast %13 : vector<1x8xf32> to vector<128x8xf32>
    %149 = arith.mulf %147, %148 : vector<128x8xf32>
    %150 = vector.broadcast %145 : vector<128x1xf32> to vector<128x8xf32>
    %151 = vector.broadcast %14 : vector<1x8xf32> to vector<128x8xf32>
    %152 = arith.mulf %150, %151 : vector<128x8xf32>
    %153 = arith.addf %149, %152 : vector<128x8xf32>
    %154 = vector.broadcast %146 : vector<128x1xf32> to vector<128x8xf32>
    %155 = vector.broadcast %15 : vector<1x8xf32> to vector<128x8xf32>
    %156 = arith.mulf %154, %155 : vector<128x8xf32>
    %157 = arith.addf %153, %156 : vector<128x8xf32>
    %158 = vector.broadcast %16 : vector<1x8xf32> to vector<128x8xf32>
    %159 = arith.addf %157, %158 : vector<128x8xf32>
    %cst_58 = arith.constant 0.000000e+00 : f32
    %160 = vector.broadcast %cst_58 : f32 to vector<128x8xf32>
    %161 = arith.cmpf ogt, %159, %160 : vector<128x8xf32>
    %cst_59 = arith.constant 2.000000e-01 : f32
    %162 = vector.broadcast %cst_59 : f32 to vector<128x8xf32>
    %163 = arith.mulf %162, %159 : vector<128x8xf32>
    %164 = arith.select %161, %159, %163 : vector<128x8xi1>, vector<128x8xf32>
    %cst_60 = arith.constant dense<0.000000e+00> : vector<128x8xf32>
    %165 = tpu.matmul %164, %17, %cst_60 {dimension_numbers = #tpu.dot_dimension_numbers<[1], [0], [0], [1], [0, 0, 1, 1], [], []>} : vector<128x8xf32>, vector<8x8xf32>, vector<128x8xf32> -> vector<128x8xf32>
    %166 = vector.broadcast %18 : vector<1x8xf32> to vector<128x8xf32>
    %167 = arith.addf %165, %166 : vector<128x8xf32>
    %c4 = arith.constant 4 : index
    %c0_61 = arith.constant 0 : index
    %c0_62 = arith.constant 0 : index
    %168 = vector.load %arg3[%c4, %c0_61, %c0_62] : memref<16x128x8xf32, #tpu.memory_space<vmem>>, vector<1x128x8xf32>
    %169 = vector.shape_cast %168 : vector<1x128x8xf32> to vector<128x8xf32>
    %170 = arith.mulf %167, %169 : vector<128x8xf32>
    %c4_63 = arith.constant 4 : index
    %c0_64 = arith.constant 0 : index
    %c0_65 = arith.constant 0 : index
    %171 = vector.load %arg13[%c4_63, %c0_64, %c0_65] : memref<16x8x128xf32, #tpu.memory_space<vmem>>, vector<1x8x128xf32>
    %172 = vector.shape_cast %171 : vector<1x8x128xf32> to vector<8x128xf32>
    %cst_66 = arith.constant dense<0.000000e+00> : vector<128x128xf32>
    %173 = tpu.matmul %170, %172, %cst_66 {dimension_numbers = #tpu.dot_dimension_numbers<[1], [0], [0], [1], [0, 0, 1, 1], [], []>} : vector<128x8xf32>, vector<8x128xf32>, vector<128x128xf32> -> vector<128x128xf32>
    %174 = arith.addf %143, %173 : vector<128x128xf32>
    %175 = vector.extract_strided_slice %6 {offsets = [0, 5], sizes = [128, 1], strides = [1, 1]} : vector<128x16xf32> to vector<128x1xf32>
    %176 = vector.extract_strided_slice %9 {offsets = [0, 5], sizes = [128, 1], strides = [1, 1]} : vector<128x16xf32> to vector<128x1xf32>
    %177 = vector.extract_strided_slice %12 {offsets = [0, 5], sizes = [128, 1], strides = [1, 1]} : vector<128x16xf32> to vector<128x1xf32>
    %178 = vector.broadcast %175 : vector<128x1xf32> to vector<128x8xf32>
    %179 = vector.broadcast %13 : vector<1x8xf32> to vector<128x8xf32>
    %180 = arith.mulf %178, %179 : vector<128x8xf32>
    %181 = vector.broadcast %176 : vector<128x1xf32> to vector<128x8xf32>
    %182 = vector.broadcast %14 : vector<1x8xf32> to vector<128x8xf32>
    %183 = arith.mulf %181, %182 : vector<128x8xf32>
    %184 = arith.addf %180, %183 : vector<128x8xf32>
    %185 = vector.broadcast %177 : vector<128x1xf32> to vector<128x8xf32>
    %186 = vector.broadcast %15 : vector<1x8xf32> to vector<128x8xf32>
    %187 = arith.mulf %185, %186 : vector<128x8xf32>
    %188 = arith.addf %184, %187 : vector<128x8xf32>
    %189 = vector.broadcast %16 : vector<1x8xf32> to vector<128x8xf32>
    %190 = arith.addf %188, %189 : vector<128x8xf32>
    %cst_67 = arith.constant 0.000000e+00 : f32
    %191 = vector.broadcast %cst_67 : f32 to vector<128x8xf32>
    %192 = arith.cmpf ogt, %190, %191 : vector<128x8xf32>
    %cst_68 = arith.constant 2.000000e-01 : f32
    %193 = vector.broadcast %cst_68 : f32 to vector<128x8xf32>
    %194 = arith.mulf %193, %190 : vector<128x8xf32>
    %195 = arith.select %192, %190, %194 : vector<128x8xi1>, vector<128x8xf32>
    %cst_69 = arith.constant dense<0.000000e+00> : vector<128x8xf32>
    %196 = tpu.matmul %195, %17, %cst_69 {dimension_numbers = #tpu.dot_dimension_numbers<[1], [0], [0], [1], [0, 0, 1, 1], [], []>} : vector<128x8xf32>, vector<8x8xf32>, vector<128x8xf32> -> vector<128x8xf32>
    %197 = vector.broadcast %18 : vector<1x8xf32> to vector<128x8xf32>
    %198 = arith.addf %196, %197 : vector<128x8xf32>
    %c5 = arith.constant 5 : index
    %c0_70 = arith.constant 0 : index
    %c0_71 = arith.constant 0 : index
    %199 = vector.load %arg3[%c5, %c0_70, %c0_71] : memref<16x128x8xf32, #tpu.memory_space<vmem>>, vector<1x128x8xf32>
    %200 = vector.shape_cast %199 : vector<1x128x8xf32> to vector<128x8xf32>
    %201 = arith.mulf %198, %200 : vector<128x8xf32>
    %c5_72 = arith.constant 5 : index
    %c0_73 = arith.constant 0 : index
    %c0_74 = arith.constant 0 : index
    %202 = vector.load %arg13[%c5_72, %c0_73, %c0_74] : memref<16x8x128xf32, #tpu.memory_space<vmem>>, vector<1x8x128xf32>
    %203 = vector.shape_cast %202 : vector<1x8x128xf32> to vector<8x128xf32>
    %cst_75 = arith.constant dense<0.000000e+00> : vector<128x128xf32>
    %204 = tpu.matmul %201, %203, %cst_75 {dimension_numbers = #tpu.dot_dimension_numbers<[1], [0], [0], [1], [0, 0, 1, 1], [], []>} : vector<128x8xf32>, vector<8x128xf32>, vector<128x128xf32> -> vector<128x128xf32>
    %205 = arith.addf %174, %204 : vector<128x128xf32>
    %206 = vector.extract_strided_slice %6 {offsets = [0, 6], sizes = [128, 1], strides = [1, 1]} : vector<128x16xf32> to vector<128x1xf32>
    %207 = vector.extract_strided_slice %9 {offsets = [0, 6], sizes = [128, 1], strides = [1, 1]} : vector<128x16xf32> to vector<128x1xf32>
    %208 = vector.extract_strided_slice %12 {offsets = [0, 6], sizes = [128, 1], strides = [1, 1]} : vector<128x16xf32> to vector<128x1xf32>
    %209 = vector.broadcast %206 : vector<128x1xf32> to vector<128x8xf32>
    %210 = vector.broadcast %13 : vector<1x8xf32> to vector<128x8xf32>
    %211 = arith.mulf %209, %210 : vector<128x8xf32>
    %212 = vector.broadcast %207 : vector<128x1xf32> to vector<128x8xf32>
    %213 = vector.broadcast %14 : vector<1x8xf32> to vector<128x8xf32>
    %214 = arith.mulf %212, %213 : vector<128x8xf32>
    %215 = arith.addf %211, %214 : vector<128x8xf32>
    %216 = vector.broadcast %208 : vector<128x1xf32> to vector<128x8xf32>
    %217 = vector.broadcast %15 : vector<1x8xf32> to vector<128x8xf32>
    %218 = arith.mulf %216, %217 : vector<128x8xf32>
    %219 = arith.addf %215, %218 : vector<128x8xf32>
    %220 = vector.broadcast %16 : vector<1x8xf32> to vector<128x8xf32>
    %221 = arith.addf %219, %220 : vector<128x8xf32>
    %cst_76 = arith.constant 0.000000e+00 : f32
    %222 = vector.broadcast %cst_76 : f32 to vector<128x8xf32>
    %223 = arith.cmpf ogt, %221, %222 : vector<128x8xf32>
    %cst_77 = arith.constant 2.000000e-01 : f32
    %224 = vector.broadcast %cst_77 : f32 to vector<128x8xf32>
    %225 = arith.mulf %224, %221 : vector<128x8xf32>
    %226 = arith.select %223, %221, %225 : vector<128x8xi1>, vector<128x8xf32>
    %cst_78 = arith.constant dense<0.000000e+00> : vector<128x8xf32>
    %227 = tpu.matmul %226, %17, %cst_78 {dimension_numbers = #tpu.dot_dimension_numbers<[1], [0], [0], [1], [0, 0, 1, 1], [], []>} : vector<128x8xf32>, vector<8x8xf32>, vector<128x8xf32> -> vector<128x8xf32>
    %228 = vector.broadcast %18 : vector<1x8xf32> to vector<128x8xf32>
    %229 = arith.addf %227, %228 : vector<128x8xf32>
    %c6 = arith.constant 6 : index
    %c0_79 = arith.constant 0 : index
    %c0_80 = arith.constant 0 : index
    %230 = vector.load %arg3[%c6, %c0_79, %c0_80] : memref<16x128x8xf32, #tpu.memory_space<vmem>>, vector<1x128x8xf32>
    %231 = vector.shape_cast %230 : vector<1x128x8xf32> to vector<128x8xf32>
    %232 = arith.mulf %229, %231 : vector<128x8xf32>
    %c6_81 = arith.constant 6 : index
    %c0_82 = arith.constant 0 : index
    %c0_83 = arith.constant 0 : index
    %233 = vector.load %arg13[%c6_81, %c0_82, %c0_83] : memref<16x8x128xf32, #tpu.memory_space<vmem>>, vector<1x8x128xf32>
    %234 = vector.shape_cast %233 : vector<1x8x128xf32> to vector<8x128xf32>
    %cst_84 = arith.constant dense<0.000000e+00> : vector<128x128xf32>
    %235 = tpu.matmul %232, %234, %cst_84 {dimension_numbers = #tpu.dot_dimension_numbers<[1], [0], [0], [1], [0, 0, 1, 1], [], []>} : vector<128x8xf32>, vector<8x128xf32>, vector<128x128xf32> -> vector<128x128xf32>
    %236 = arith.addf %205, %235 : vector<128x128xf32>
    %237 = vector.extract_strided_slice %6 {offsets = [0, 7], sizes = [128, 1], strides = [1, 1]} : vector<128x16xf32> to vector<128x1xf32>
    %238 = vector.extract_strided_slice %9 {offsets = [0, 7], sizes = [128, 1], strides = [1, 1]} : vector<128x16xf32> to vector<128x1xf32>
    %239 = vector.extract_strided_slice %12 {offsets = [0, 7], sizes = [128, 1], strides = [1, 1]} : vector<128x16xf32> to vector<128x1xf32>
    %240 = vector.broadcast %237 : vector<128x1xf32> to vector<128x8xf32>
    %241 = vector.broadcast %13 : vector<1x8xf32> to vector<128x8xf32>
    %242 = arith.mulf %240, %241 : vector<128x8xf32>
    %243 = vector.broadcast %238 : vector<128x1xf32> to vector<128x8xf32>
    %244 = vector.broadcast %14 : vector<1x8xf32> to vector<128x8xf32>
    %245 = arith.mulf %243, %244 : vector<128x8xf32>
    %246 = arith.addf %242, %245 : vector<128x8xf32>
    %247 = vector.broadcast %239 : vector<128x1xf32> to vector<128x8xf32>
    %248 = vector.broadcast %15 : vector<1x8xf32> to vector<128x8xf32>
    %249 = arith.mulf %247, %248 : vector<128x8xf32>
    %250 = arith.addf %246, %249 : vector<128x8xf32>
    %251 = vector.broadcast %16 : vector<1x8xf32> to vector<128x8xf32>
    %252 = arith.addf %250, %251 : vector<128x8xf32>
    %cst_85 = arith.constant 0.000000e+00 : f32
    %253 = vector.broadcast %cst_85 : f32 to vector<128x8xf32>
    %254 = arith.cmpf ogt, %252, %253 : vector<128x8xf32>
    %cst_86 = arith.constant 2.000000e-01 : f32
    %255 = vector.broadcast %cst_86 : f32 to vector<128x8xf32>
    %256 = arith.mulf %255, %252 : vector<128x8xf32>
    %257 = arith.select %254, %252, %256 : vector<128x8xi1>, vector<128x8xf32>
    %cst_87 = arith.constant dense<0.000000e+00> : vector<128x8xf32>
    %258 = tpu.matmul %257, %17, %cst_87 {dimension_numbers = #tpu.dot_dimension_numbers<[1], [0], [0], [1], [0, 0, 1, 1], [], []>} : vector<128x8xf32>, vector<8x8xf32>, vector<128x8xf32> -> vector<128x8xf32>
    %259 = vector.broadcast %18 : vector<1x8xf32> to vector<128x8xf32>
    %260 = arith.addf %258, %259 : vector<128x8xf32>
    %c7 = arith.constant 7 : index
    %c0_88 = arith.constant 0 : index
    %c0_89 = arith.constant 0 : index
    %261 = vector.load %arg3[%c7, %c0_88, %c0_89] : memref<16x128x8xf32, #tpu.memory_space<vmem>>, vector<1x128x8xf32>
    %262 = vector.shape_cast %261 : vector<1x128x8xf32> to vector<128x8xf32>
    %263 = arith.mulf %260, %262 : vector<128x8xf32>
    %c7_90 = arith.constant 7 : index
    %c0_91 = arith.constant 0 : index
    %c0_92 = arith.constant 0 : index
    %264 = vector.load %arg13[%c7_90, %c0_91, %c0_92] : memref<16x8x128xf32, #tpu.memory_space<vmem>>, vector<1x8x128xf32>
    %265 = vector.shape_cast %264 : vector<1x8x128xf32> to vector<8x128xf32>
    %cst_93 = arith.constant dense<0.000000e+00> : vector<128x128xf32>
    %266 = tpu.matmul %263, %265, %cst_93 {dimension_numbers = #tpu.dot_dimension_numbers<[1], [0], [0], [1], [0, 0, 1, 1], [], []>} : vector<128x8xf32>, vector<8x128xf32>, vector<128x128xf32> -> vector<128x128xf32>
    %267 = arith.addf %236, %266 : vector<128x128xf32>
    %268 = vector.extract_strided_slice %6 {offsets = [0, 8], sizes = [128, 1], strides = [1, 1]} : vector<128x16xf32> to vector<128x1xf32>
    %269 = vector.extract_strided_slice %9 {offsets = [0, 8], sizes = [128, 1], strides = [1, 1]} : vector<128x16xf32> to vector<128x1xf32>
    %270 = vector.extract_strided_slice %12 {offsets = [0, 8], sizes = [128, 1], strides = [1, 1]} : vector<128x16xf32> to vector<128x1xf32>
    %271 = vector.broadcast %268 : vector<128x1xf32> to vector<128x8xf32>
    %272 = vector.broadcast %13 : vector<1x8xf32> to vector<128x8xf32>
    %273 = arith.mulf %271, %272 : vector<128x8xf32>
    %274 = vector.broadcast %269 : vector<128x1xf32> to vector<128x8xf32>
    %275 = vector.broadcast %14 : vector<1x8xf32> to vector<128x8xf32>
    %276 = arith.mulf %274, %275 : vector<128x8xf32>
    %277 = arith.addf %273, %276 : vector<128x8xf32>
    %278 = vector.broadcast %270 : vector<128x1xf32> to vector<128x8xf32>
    %279 = vector.broadcast %15 : vector<1x8xf32> to vector<128x8xf32>
    %280 = arith.mulf %278, %279 : vector<128x8xf32>
    %281 = arith.addf %277, %280 : vector<128x8xf32>
    %282 = vector.broadcast %16 : vector<1x8xf32> to vector<128x8xf32>
    %283 = arith.addf %281, %282 : vector<128x8xf32>
    %cst_94 = arith.constant 0.000000e+00 : f32
    %284 = vector.broadcast %cst_94 : f32 to vector<128x8xf32>
    %285 = arith.cmpf ogt, %283, %284 : vector<128x8xf32>
    %cst_95 = arith.constant 2.000000e-01 : f32
    %286 = vector.broadcast %cst_95 : f32 to vector<128x8xf32>
    %287 = arith.mulf %286, %283 : vector<128x8xf32>
    %288 = arith.select %285, %283, %287 : vector<128x8xi1>, vector<128x8xf32>
    %cst_96 = arith.constant dense<0.000000e+00> : vector<128x8xf32>
    %289 = tpu.matmul %288, %17, %cst_96 {dimension_numbers = #tpu.dot_dimension_numbers<[1], [0], [0], [1], [0, 0, 1, 1], [], []>} : vector<128x8xf32>, vector<8x8xf32>, vector<128x8xf32> -> vector<128x8xf32>
    %290 = vector.broadcast %18 : vector<1x8xf32> to vector<128x8xf32>
    %291 = arith.addf %289, %290 : vector<128x8xf32>
    %c8 = arith.constant 8 : index
    %c0_97 = arith.constant 0 : index
    %c0_98 = arith.constant 0 : index
    %292 = vector.load %arg3[%c8, %c0_97, %c0_98] : memref<16x128x8xf32, #tpu.memory_space<vmem>>, vector<1x128x8xf32>
    %293 = vector.shape_cast %292 : vector<1x128x8xf32> to vector<128x8xf32>
    %294 = arith.mulf %291, %293 : vector<128x8xf32>
    %c8_99 = arith.constant 8 : index
    %c0_100 = arith.constant 0 : index
    %c0_101 = arith.constant 0 : index
    %295 = vector.load %arg13[%c8_99, %c0_100, %c0_101] : memref<16x8x128xf32, #tpu.memory_space<vmem>>, vector<1x8x128xf32>
    %296 = vector.shape_cast %295 : vector<1x8x128xf32> to vector<8x128xf32>
    %cst_102 = arith.constant dense<0.000000e+00> : vector<128x128xf32>
    %297 = tpu.matmul %294, %296, %cst_102 {dimension_numbers = #tpu.dot_dimension_numbers<[1], [0], [0], [1], [0, 0, 1, 1], [], []>} : vector<128x8xf32>, vector<8x128xf32>, vector<128x128xf32> -> vector<128x128xf32>
    %298 = arith.addf %267, %297 : vector<128x128xf32>
    %299 = vector.extract_strided_slice %6 {offsets = [0, 9], sizes = [128, 1], strides = [1, 1]} : vector<128x16xf32> to vector<128x1xf32>
    %300 = vector.extract_strided_slice %9 {offsets = [0, 9], sizes = [128, 1], strides = [1, 1]} : vector<128x16xf32> to vector<128x1xf32>
    %301 = vector.extract_strided_slice %12 {offsets = [0, 9], sizes = [128, 1], strides = [1, 1]} : vector<128x16xf32> to vector<128x1xf32>
    %302 = vector.broadcast %299 : vector<128x1xf32> to vector<128x8xf32>
    %303 = vector.broadcast %13 : vector<1x8xf32> to vector<128x8xf32>
    %304 = arith.mulf %302, %303 : vector<128x8xf32>
    %305 = vector.broadcast %300 : vector<128x1xf32> to vector<128x8xf32>
    %306 = vector.broadcast %14 : vector<1x8xf32> to vector<128x8xf32>
    %307 = arith.mulf %305, %306 : vector<128x8xf32>
    %308 = arith.addf %304, %307 : vector<128x8xf32>
    %309 = vector.broadcast %301 : vector<128x1xf32> to vector<128x8xf32>
    %310 = vector.broadcast %15 : vector<1x8xf32> to vector<128x8xf32>
    %311 = arith.mulf %309, %310 : vector<128x8xf32>
    %312 = arith.addf %308, %311 : vector<128x8xf32>
    %313 = vector.broadcast %16 : vector<1x8xf32> to vector<128x8xf32>
    %314 = arith.addf %312, %313 : vector<128x8xf32>
    %cst_103 = arith.constant 0.000000e+00 : f32
    %315 = vector.broadcast %cst_103 : f32 to vector<128x8xf32>
    %316 = arith.cmpf ogt, %314, %315 : vector<128x8xf32>
    %cst_104 = arith.constant 2.000000e-01 : f32
    %317 = vector.broadcast %cst_104 : f32 to vector<128x8xf32>
    %318 = arith.mulf %317, %314 : vector<128x8xf32>
    %319 = arith.select %316, %314, %318 : vector<128x8xi1>, vector<128x8xf32>
    %cst_105 = arith.constant dense<0.000000e+00> : vector<128x8xf32>
    %320 = tpu.matmul %319, %17, %cst_105 {dimension_numbers = #tpu.dot_dimension_numbers<[1], [0], [0], [1], [0, 0, 1, 1], [], []>} : vector<128x8xf32>, vector<8x8xf32>, vector<128x8xf32> -> vector<128x8xf32>
    %321 = vector.broadcast %18 : vector<1x8xf32> to vector<128x8xf32>
    %322 = arith.addf %320, %321 : vector<128x8xf32>
    %c9 = arith.constant 9 : index
    %c0_106 = arith.constant 0 : index
    %c0_107 = arith.constant 0 : index
    %323 = vector.load %arg3[%c9, %c0_106, %c0_107] : memref<16x128x8xf32, #tpu.memory_space<vmem>>, vector<1x128x8xf32>
    %324 = vector.shape_cast %323 : vector<1x128x8xf32> to vector<128x8xf32>
    %325 = arith.mulf %322, %324 : vector<128x8xf32>
    %c9_108 = arith.constant 9 : index
    %c0_109 = arith.constant 0 : index
    %c0_110 = arith.constant 0 : index
    %326 = vector.load %arg13[%c9_108, %c0_109, %c0_110] : memref<16x8x128xf32, #tpu.memory_space<vmem>>, vector<1x8x128xf32>
    %327 = vector.shape_cast %326 : vector<1x8x128xf32> to vector<8x128xf32>
    %cst_111 = arith.constant dense<0.000000e+00> : vector<128x128xf32>
    %328 = tpu.matmul %325, %327, %cst_111 {dimension_numbers = #tpu.dot_dimension_numbers<[1], [0], [0], [1], [0, 0, 1, 1], [], []>} : vector<128x8xf32>, vector<8x128xf32>, vector<128x128xf32> -> vector<128x128xf32>
    %329 = arith.addf %298, %328 : vector<128x128xf32>
    %330 = vector.extract_strided_slice %6 {offsets = [0, 10], sizes = [128, 1], strides = [1, 1]} : vector<128x16xf32> to vector<128x1xf32>
    %331 = vector.extract_strided_slice %9 {offsets = [0, 10], sizes = [128, 1], strides = [1, 1]} : vector<128x16xf32> to vector<128x1xf32>
    %332 = vector.extract_strided_slice %12 {offsets = [0, 10], sizes = [128, 1], strides = [1, 1]} : vector<128x16xf32> to vector<128x1xf32>
    %333 = vector.broadcast %330 : vector<128x1xf32> to vector<128x8xf32>
    %334 = vector.broadcast %13 : vector<1x8xf32> to vector<128x8xf32>
    %335 = arith.mulf %333, %334 : vector<128x8xf32>
    %336 = vector.broadcast %331 : vector<128x1xf32> to vector<128x8xf32>
    %337 = vector.broadcast %14 : vector<1x8xf32> to vector<128x8xf32>
    %338 = arith.mulf %336, %337 : vector<128x8xf32>
    %339 = arith.addf %335, %338 : vector<128x8xf32>
    %340 = vector.broadcast %332 : vector<128x1xf32> to vector<128x8xf32>
    %341 = vector.broadcast %15 : vector<1x8xf32> to vector<128x8xf32>
    %342 = arith.mulf %340, %341 : vector<128x8xf32>
    %343 = arith.addf %339, %342 : vector<128x8xf32>
    %344 = vector.broadcast %16 : vector<1x8xf32> to vector<128x8xf32>
    %345 = arith.addf %343, %344 : vector<128x8xf32>
    %cst_112 = arith.constant 0.000000e+00 : f32
    %346 = vector.broadcast %cst_112 : f32 to vector<128x8xf32>
    %347 = arith.cmpf ogt, %345, %346 : vector<128x8xf32>
    %cst_113 = arith.constant 2.000000e-01 : f32
    %348 = vector.broadcast %cst_113 : f32 to vector<128x8xf32>
    %349 = arith.mulf %348, %345 : vector<128x8xf32>
    %350 = arith.select %347, %345, %349 : vector<128x8xi1>, vector<128x8xf32>
    %cst_114 = arith.constant dense<0.000000e+00> : vector<128x8xf32>
    %351 = tpu.matmul %350, %17, %cst_114 {dimension_numbers = #tpu.dot_dimension_numbers<[1], [0], [0], [1], [0, 0, 1, 1], [], []>} : vector<128x8xf32>, vector<8x8xf32>, vector<128x8xf32> -> vector<128x8xf32>
    %352 = vector.broadcast %18 : vector<1x8xf32> to vector<128x8xf32>
    %353 = arith.addf %351, %352 : vector<128x8xf32>
    %c10 = arith.constant 10 : index
    %c0_115 = arith.constant 0 : index
    %c0_116 = arith.constant 0 : index
    %354 = vector.load %arg3[%c10, %c0_115, %c0_116] : memref<16x128x8xf32, #tpu.memory_space<vmem>>, vector<1x128x8xf32>
    %355 = vector.shape_cast %354 : vector<1x128x8xf32> to vector<128x8xf32>
    %356 = arith.mulf %353, %355 : vector<128x8xf32>
    %c10_117 = arith.constant 10 : index
    %c0_118 = arith.constant 0 : index
    %c0_119 = arith.constant 0 : index
    %357 = vector.load %arg13[%c10_117, %c0_118, %c0_119] : memref<16x8x128xf32, #tpu.memory_space<vmem>>, vector<1x8x128xf32>
    %358 = vector.shape_cast %357 : vector<1x8x128xf32> to vector<8x128xf32>
    %cst_120 = arith.constant dense<0.000000e+00> : vector<128x128xf32>
    %359 = tpu.matmul %356, %358, %cst_120 {dimension_numbers = #tpu.dot_dimension_numbers<[1], [0], [0], [1], [0, 0, 1, 1], [], []>} : vector<128x8xf32>, vector<8x128xf32>, vector<128x128xf32> -> vector<128x128xf32>
    %360 = arith.addf %329, %359 : vector<128x128xf32>
    %361 = vector.extract_strided_slice %6 {offsets = [0, 11], sizes = [128, 1], strides = [1, 1]} : vector<128x16xf32> to vector<128x1xf32>
    %362 = vector.extract_strided_slice %9 {offsets = [0, 11], sizes = [128, 1], strides = [1, 1]} : vector<128x16xf32> to vector<128x1xf32>
    %363 = vector.extract_strided_slice %12 {offsets = [0, 11], sizes = [128, 1], strides = [1, 1]} : vector<128x16xf32> to vector<128x1xf32>
    %364 = vector.broadcast %361 : vector<128x1xf32> to vector<128x8xf32>
    %365 = vector.broadcast %13 : vector<1x8xf32> to vector<128x8xf32>
    %366 = arith.mulf %364, %365 : vector<128x8xf32>
    %367 = vector.broadcast %362 : vector<128x1xf32> to vector<128x8xf32>
    %368 = vector.broadcast %14 : vector<1x8xf32> to vector<128x8xf32>
    %369 = arith.mulf %367, %368 : vector<128x8xf32>
    %370 = arith.addf %366, %369 : vector<128x8xf32>
    %371 = vector.broadcast %363 : vector<128x1xf32> to vector<128x8xf32>
    %372 = vector.broadcast %15 : vector<1x8xf32> to vector<128x8xf32>
    %373 = arith.mulf %371, %372 : vector<128x8xf32>
    %374 = arith.addf %370, %373 : vector<128x8xf32>
    %375 = vector.broadcast %16 : vector<1x8xf32> to vector<128x8xf32>
    %376 = arith.addf %374, %375 : vector<128x8xf32>
    %cst_121 = arith.constant 0.000000e+00 : f32
    %377 = vector.broadcast %cst_121 : f32 to vector<128x8xf32>
    %378 = arith.cmpf ogt, %376, %377 : vector<128x8xf32>
    %cst_122 = arith.constant 2.000000e-01 : f32
    %379 = vector.broadcast %cst_122 : f32 to vector<128x8xf32>
    %380 = arith.mulf %379, %376 : vector<128x8xf32>
    %381 = arith.select %378, %376, %380 : vector<128x8xi1>, vector<128x8xf32>
    %cst_123 = arith.constant dense<0.000000e+00> : vector<128x8xf32>
    %382 = tpu.matmul %381, %17, %cst_123 {dimension_numbers = #tpu.dot_dimension_numbers<[1], [0], [0], [1], [0, 0, 1, 1], [], []>} : vector<128x8xf32>, vector<8x8xf32>, vector<128x8xf32> -> vector<128x8xf32>
    %383 = vector.broadcast %18 : vector<1x8xf32> to vector<128x8xf32>
    %384 = arith.addf %382, %383 : vector<128x8xf32>
    %c11 = arith.constant 11 : index
    %c0_124 = arith.constant 0 : index
    %c0_125 = arith.constant 0 : index
    %385 = vector.load %arg3[%c11, %c0_124, %c0_125] : memref<16x128x8xf32, #tpu.memory_space<vmem>>, vector<1x128x8xf32>
    %386 = vector.shape_cast %385 : vector<1x128x8xf32> to vector<128x8xf32>
    %387 = arith.mulf %384, %386 : vector<128x8xf32>
    %c11_126 = arith.constant 11 : index
    %c0_127 = arith.constant 0 : index
    %c0_128 = arith.constant 0 : index
    %388 = vector.load %arg13[%c11_126, %c0_127, %c0_128] : memref<16x8x128xf32, #tpu.memory_space<vmem>>, vector<1x8x128xf32>
    %389 = vector.shape_cast %388 : vector<1x8x128xf32> to vector<8x128xf32>
    %cst_129 = arith.constant dense<0.000000e+00> : vector<128x128xf32>
    %390 = tpu.matmul %387, %389, %cst_129 {dimension_numbers = #tpu.dot_dimension_numbers<[1], [0], [0], [1], [0, 0, 1, 1], [], []>} : vector<128x8xf32>, vector<8x128xf32>, vector<128x128xf32> -> vector<128x128xf32>
    %391 = arith.addf %360, %390 : vector<128x128xf32>
    %392 = vector.extract_strided_slice %6 {offsets = [0, 12], sizes = [128, 1], strides = [1, 1]} : vector<128x16xf32> to vector<128x1xf32>
    %393 = vector.extract_strided_slice %9 {offsets = [0, 12], sizes = [128, 1], strides = [1, 1]} : vector<128x16xf32> to vector<128x1xf32>
    %394 = vector.extract_strided_slice %12 {offsets = [0, 12], sizes = [128, 1], strides = [1, 1]} : vector<128x16xf32> to vector<128x1xf32>
    %395 = vector.broadcast %392 : vector<128x1xf32> to vector<128x8xf32>
    %396 = vector.broadcast %13 : vector<1x8xf32> to vector<128x8xf32>
    %397 = arith.mulf %395, %396 : vector<128x8xf32>
    %398 = vector.broadcast %393 : vector<128x1xf32> to vector<128x8xf32>
    %399 = vector.broadcast %14 : vector<1x8xf32> to vector<128x8xf32>
    %400 = arith.mulf %398, %399 : vector<128x8xf32>
    %401 = arith.addf %397, %400 : vector<128x8xf32>
    %402 = vector.broadcast %394 : vector<128x1xf32> to vector<128x8xf32>
    %403 = vector.broadcast %15 : vector<1x8xf32> to vector<128x8xf32>
    %404 = arith.mulf %402, %403 : vector<128x8xf32>
    %405 = arith.addf %401, %404 : vector<128x8xf32>
    %406 = vector.broadcast %16 : vector<1x8xf32> to vector<128x8xf32>
    %407 = arith.addf %405, %406 : vector<128x8xf32>
    %cst_130 = arith.constant 0.000000e+00 : f32
    %408 = vector.broadcast %cst_130 : f32 to vector<128x8xf32>
    %409 = arith.cmpf ogt, %407, %408 : vector<128x8xf32>
    %cst_131 = arith.constant 2.000000e-01 : f32
    %410 = vector.broadcast %cst_131 : f32 to vector<128x8xf32>
    %411 = arith.mulf %410, %407 : vector<128x8xf32>
    %412 = arith.select %409, %407, %411 : vector<128x8xi1>, vector<128x8xf32>
    %cst_132 = arith.constant dense<0.000000e+00> : vector<128x8xf32>
    %413 = tpu.matmul %412, %17, %cst_132 {dimension_numbers = #tpu.dot_dimension_numbers<[1], [0], [0], [1], [0, 0, 1, 1], [], []>} : vector<128x8xf32>, vector<8x8xf32>, vector<128x8xf32> -> vector<128x8xf32>
    %414 = vector.broadcast %18 : vector<1x8xf32> to vector<128x8xf32>
    %415 = arith.addf %413, %414 : vector<128x8xf32>
    %c12 = arith.constant 12 : index
    %c0_133 = arith.constant 0 : index
    %c0_134 = arith.constant 0 : index
    %416 = vector.load %arg3[%c12, %c0_133, %c0_134] : memref<16x128x8xf32, #tpu.memory_space<vmem>>, vector<1x128x8xf32>
    %417 = vector.shape_cast %416 : vector<1x128x8xf32> to vector<128x8xf32>
    %418 = arith.mulf %415, %417 : vector<128x8xf32>
    %c12_135 = arith.constant 12 : index
    %c0_136 = arith.constant 0 : index
    %c0_137 = arith.constant 0 : index
    %419 = vector.load %arg13[%c12_135, %c0_136, %c0_137] : memref<16x8x128xf32, #tpu.memory_space<vmem>>, vector<1x8x128xf32>
    %420 = vector.shape_cast %419 : vector<1x8x128xf32> to vector<8x128xf32>
    %cst_138 = arith.constant dense<0.000000e+00> : vector<128x128xf32>
    %421 = tpu.matmul %418, %420, %cst_138 {dimension_numbers = #tpu.dot_dimension_numbers<[1], [0], [0], [1], [0, 0, 1, 1], [], []>} : vector<128x8xf32>, vector<8x128xf32>, vector<128x128xf32> -> vector<128x128xf32>
    %422 = arith.addf %391, %421 : vector<128x128xf32>
    %423 = vector.extract_strided_slice %6 {offsets = [0, 13], sizes = [128, 1], strides = [1, 1]} : vector<128x16xf32> to vector<128x1xf32>
    %424 = vector.extract_strided_slice %9 {offsets = [0, 13], sizes = [128, 1], strides = [1, 1]} : vector<128x16xf32> to vector<128x1xf32>
    %425 = vector.extract_strided_slice %12 {offsets = [0, 13], sizes = [128, 1], strides = [1, 1]} : vector<128x16xf32> to vector<128x1xf32>
    %426 = vector.broadcast %423 : vector<128x1xf32> to vector<128x8xf32>
    %427 = vector.broadcast %13 : vector<1x8xf32> to vector<128x8xf32>
    %428 = arith.mulf %426, %427 : vector<128x8xf32>
    %429 = vector.broadcast %424 : vector<128x1xf32> to vector<128x8xf32>
    %430 = vector.broadcast %14 : vector<1x8xf32> to vector<128x8xf32>
    %431 = arith.mulf %429, %430 : vector<128x8xf32>
    %432 = arith.addf %428, %431 : vector<128x8xf32>
    %433 = vector.broadcast %425 : vector<128x1xf32> to vector<128x8xf32>
    %434 = vector.broadcast %15 : vector<1x8xf32> to vector<128x8xf32>
    %435 = arith.mulf %433, %434 : vector<128x8xf32>
    %436 = arith.addf %432, %435 : vector<128x8xf32>
    %437 = vector.broadcast %16 : vector<1x8xf32> to vector<128x8xf32>
    %438 = arith.addf %436, %437 : vector<128x8xf32>
    %cst_139 = arith.constant 0.000000e+00 : f32
    %439 = vector.broadcast %cst_139 : f32 to vector<128x8xf32>
    %440 = arith.cmpf ogt, %438, %439 : vector<128x8xf32>
    %cst_140 = arith.constant 2.000000e-01 : f32
    %441 = vector.broadcast %cst_140 : f32 to vector<128x8xf32>
    %442 = arith.mulf %441, %438 : vector<128x8xf32>
    %443 = arith.select %440, %438, %442 : vector<128x8xi1>, vector<128x8xf32>
    %cst_141 = arith.constant dense<0.000000e+00> : vector<128x8xf32>
    %444 = tpu.matmul %443, %17, %cst_141 {dimension_numbers = #tpu.dot_dimension_numbers<[1], [0], [0], [1], [0, 0, 1, 1], [], []>} : vector<128x8xf32>, vector<8x8xf32>, vector<128x8xf32> -> vector<128x8xf32>
    %445 = vector.broadcast %18 : vector<1x8xf32> to vector<128x8xf32>
    %446 = arith.addf %444, %445 : vector<128x8xf32>
    %c13 = arith.constant 13 : index
    %c0_142 = arith.constant 0 : index
    %c0_143 = arith.constant 0 : index
    %447 = vector.load %arg3[%c13, %c0_142, %c0_143] : memref<16x128x8xf32, #tpu.memory_space<vmem>>, vector<1x128x8xf32>
    %448 = vector.shape_cast %447 : vector<1x128x8xf32> to vector<128x8xf32>
    %449 = arith.mulf %446, %448 : vector<128x8xf32>
    %c13_144 = arith.constant 13 : index
    %c0_145 = arith.constant 0 : index
    %c0_146 = arith.constant 0 : index
    %450 = vector.load %arg13[%c13_144, %c0_145, %c0_146] : memref<16x8x128xf32, #tpu.memory_space<vmem>>, vector<1x8x128xf32>
    %451 = vector.shape_cast %450 : vector<1x8x128xf32> to vector<8x128xf32>
    %cst_147 = arith.constant dense<0.000000e+00> : vector<128x128xf32>
    %452 = tpu.matmul %449, %451, %cst_147 {dimension_numbers = #tpu.dot_dimension_numbers<[1], [0], [0], [1], [0, 0, 1, 1], [], []>} : vector<128x8xf32>, vector<8x128xf32>, vector<128x128xf32> -> vector<128x128xf32>
    %453 = arith.addf %422, %452 : vector<128x128xf32>
    %454 = vector.extract_strided_slice %6 {offsets = [0, 14], sizes = [128, 1], strides = [1, 1]} : vector<128x16xf32> to vector<128x1xf32>
    %455 = vector.extract_strided_slice %9 {offsets = [0, 14], sizes = [128, 1], strides = [1, 1]} : vector<128x16xf32> to vector<128x1xf32>
    %456 = vector.extract_strided_slice %12 {offsets = [0, 14], sizes = [128, 1], strides = [1, 1]} : vector<128x16xf32> to vector<128x1xf32>
    %457 = vector.broadcast %454 : vector<128x1xf32> to vector<128x8xf32>
    %458 = vector.broadcast %13 : vector<1x8xf32> to vector<128x8xf32>
    %459 = arith.mulf %457, %458 : vector<128x8xf32>
    %460 = vector.broadcast %455 : vector<128x1xf32> to vector<128x8xf32>
    %461 = vector.broadcast %14 : vector<1x8xf32> to vector<128x8xf32>
    %462 = arith.mulf %460, %461 : vector<128x8xf32>
    %463 = arith.addf %459, %462 : vector<128x8xf32>
    %464 = vector.broadcast %456 : vector<128x1xf32> to vector<128x8xf32>
    %465 = vector.broadcast %15 : vector<1x8xf32> to vector<128x8xf32>
    %466 = arith.mulf %464, %465 : vector<128x8xf32>
    %467 = arith.addf %463, %466 : vector<128x8xf32>
    %468 = vector.broadcast %16 : vector<1x8xf32> to vector<128x8xf32>
    %469 = arith.addf %467, %468 : vector<128x8xf32>
    %cst_148 = arith.constant 0.000000e+00 : f32
    %470 = vector.broadcast %cst_148 : f32 to vector<128x8xf32>
    %471 = arith.cmpf ogt, %469, %470 : vector<128x8xf32>
    %cst_149 = arith.constant 2.000000e-01 : f32
    %472 = vector.broadcast %cst_149 : f32 to vector<128x8xf32>
    %473 = arith.mulf %472, %469 : vector<128x8xf32>
    %474 = arith.select %471, %469, %473 : vector<128x8xi1>, vector<128x8xf32>
    %cst_150 = arith.constant dense<0.000000e+00> : vector<128x8xf32>
    %475 = tpu.matmul %474, %17, %cst_150 {dimension_numbers = #tpu.dot_dimension_numbers<[1], [0], [0], [1], [0, 0, 1, 1], [], []>} : vector<128x8xf32>, vector<8x8xf32>, vector<128x8xf32> -> vector<128x8xf32>
    %476 = vector.broadcast %18 : vector<1x8xf32> to vector<128x8xf32>
    %477 = arith.addf %475, %476 : vector<128x8xf32>
    %c14 = arith.constant 14 : index
    %c0_151 = arith.constant 0 : index
    %c0_152 = arith.constant 0 : index
    %478 = vector.load %arg3[%c14, %c0_151, %c0_152] : memref<16x128x8xf32, #tpu.memory_space<vmem>>, vector<1x128x8xf32>
    %479 = vector.shape_cast %478 : vector<1x128x8xf32> to vector<128x8xf32>
    %480 = arith.mulf %477, %479 : vector<128x8xf32>
    %c14_153 = arith.constant 14 : index
    %c0_154 = arith.constant 0 : index
    %c0_155 = arith.constant 0 : index
    %481 = vector.load %arg13[%c14_153, %c0_154, %c0_155] : memref<16x8x128xf32, #tpu.memory_space<vmem>>, vector<1x8x128xf32>
    %482 = vector.shape_cast %481 : vector<1x8x128xf32> to vector<8x128xf32>
    %cst_156 = arith.constant dense<0.000000e+00> : vector<128x128xf32>
    %483 = tpu.matmul %480, %482, %cst_156 {dimension_numbers = #tpu.dot_dimension_numbers<[1], [0], [0], [1], [0, 0, 1, 1], [], []>} : vector<128x8xf32>, vector<8x128xf32>, vector<128x128xf32> -> vector<128x128xf32>
    %484 = arith.addf %453, %483 : vector<128x128xf32>
    %485 = vector.extract_strided_slice %6 {offsets = [0, 15], sizes = [128, 1], strides = [1, 1]} : vector<128x16xf32> to vector<128x1xf32>
    %486 = vector.extract_strided_slice %9 {offsets = [0, 15], sizes = [128, 1], strides = [1, 1]} : vector<128x16xf32> to vector<128x1xf32>
    %487 = vector.extract_strided_slice %12 {offsets = [0, 15], sizes = [128, 1], strides = [1, 1]} : vector<128x16xf32> to vector<128x1xf32>
    %488 = vector.broadcast %485 : vector<128x1xf32> to vector<128x8xf32>
    %489 = vector.broadcast %13 : vector<1x8xf32> to vector<128x8xf32>
    %490 = arith.mulf %488, %489 : vector<128x8xf32>
    %491 = vector.broadcast %486 : vector<128x1xf32> to vector<128x8xf32>
    %492 = vector.broadcast %14 : vector<1x8xf32> to vector<128x8xf32>
    %493 = arith.mulf %491, %492 : vector<128x8xf32>
    %494 = arith.addf %490, %493 : vector<128x8xf32>
    %495 = vector.broadcast %487 : vector<128x1xf32> to vector<128x8xf32>
    %496 = vector.broadcast %15 : vector<1x8xf32> to vector<128x8xf32>
    %497 = arith.mulf %495, %496 : vector<128x8xf32>
    %498 = arith.addf %494, %497 : vector<128x8xf32>
    %499 = vector.broadcast %16 : vector<1x8xf32> to vector<128x8xf32>
    %500 = arith.addf %498, %499 : vector<128x8xf32>
    %cst_157 = arith.constant 0.000000e+00 : f32
    %501 = vector.broadcast %cst_157 : f32 to vector<128x8xf32>
    %502 = arith.cmpf ogt, %500, %501 : vector<128x8xf32>
    %cst_158 = arith.constant 2.000000e-01 : f32
    %503 = vector.broadcast %cst_158 : f32 to vector<128x8xf32>
    %504 = arith.mulf %503, %500 : vector<128x8xf32>
    %505 = arith.select %502, %500, %504 : vector<128x8xi1>, vector<128x8xf32>
    %cst_159 = arith.constant dense<0.000000e+00> : vector<128x8xf32>
    %506 = tpu.matmul %505, %17, %cst_159 {dimension_numbers = #tpu.dot_dimension_numbers<[1], [0], [0], [1], [0, 0, 1, 1], [], []>} : vector<128x8xf32>, vector<8x8xf32>, vector<128x8xf32> -> vector<128x8xf32>
    %507 = vector.broadcast %18 : vector<1x8xf32> to vector<128x8xf32>
    %508 = arith.addf %506, %507 : vector<128x8xf32>
    %c15 = arith.constant 15 : index
    %c0_160 = arith.constant 0 : index
    %c0_161 = arith.constant 0 : index
    %509 = vector.load %arg3[%c15, %c0_160, %c0_161] : memref<16x128x8xf32, #tpu.memory_space<vmem>>, vector<1x128x8xf32>
    %510 = vector.shape_cast %509 : vector<1x128x8xf32> to vector<128x8xf32>
    %511 = arith.mulf %508, %510 : vector<128x8xf32>
    %c15_162 = arith.constant 15 : index
    %c0_163 = arith.constant 0 : index
    %c0_164 = arith.constant 0 : index
    %512 = vector.load %arg13[%c15_162, %c0_163, %c0_164] : memref<16x8x128xf32, #tpu.memory_space<vmem>>, vector<1x8x128xf32>
    %513 = vector.shape_cast %512 : vector<1x8x128xf32> to vector<8x128xf32>
    %cst_165 = arith.constant dense<0.000000e+00> : vector<128x128xf32>
    %514 = tpu.matmul %511, %513, %cst_165 {dimension_numbers = #tpu.dot_dimension_numbers<[1], [0], [0], [1], [0, 0, 1, 1], [], []>} : vector<128x8xf32>, vector<8x128xf32>, vector<128x128xf32> -> vector<128x128xf32>
    %515 = arith.addf %484, %514 : vector<128x128xf32>
    %c0_166 = arith.constant 0 : index
    %c0_167 = arith.constant 0 : index
    %516 = vector.load %arg14[%c0_166, %c0_167] : memref<1x128xf32, #tpu.memory_space<vmem>>, vector<1x128xf32>
    %517 = vector.broadcast %516 : vector<1x128xf32> to vector<128x128xf32>
    %518 = arith.addf %515, %517 : vector<128x128xf32>
    %c0_168 = arith.constant 0 : index
    %c0_169 = arith.constant 0 : index
    %519 = vector.load %arg15[%c0_168, %c0_169] : memref<128x128xf32, #tpu.memory_space<vmem>>, vector<128x128xf32>
    tpu.vector_store %arg15[%c0_168, %c0_169], %518 {strides = array<i32>} : memref<128x128xf32, #tpu.memory_space<vmem>>, vector<128x128xf32>,
    return
  }
  func.func @transform_0(%arg0: i32) -> (i32, i32) {
    %c0_i32 = arith.constant 0 : i32
    %c0_i32_0 = arith.constant 0 : i32
    return %arg0, %c0_i32 : i32, i32
  }
  func.func @transform_1(%arg0: i32) -> (i32, i32) {
    %c0_i32 = arith.constant 0 : i32
    %c0_i32_0 = arith.constant 0 : i32
    return %arg0, %c0_i32 : i32, i32
  }
  func.func @transform_2(%arg0: i32) -> (i32, i32, i32) {
    %c0_i32 = arith.constant 0 : i32
    %c0_i32_0 = arith.constant 0 : i32
    %c0_i32_1 = arith.constant 0 : i32
    return %c0_i32, %arg0, %c0_i32_0 : i32, i32, i32
  }
  func.func @transform_3(%arg0: i32) -> (i32, i32) {
    %c0_i32 = arith.constant 0 : i32
    %c0_i32_0 = arith.constant 0 : i32
    %c0_i32_1 = arith.constant 0 : i32
    return %c0_i32, %c0_i32_0 : i32, i32
  }
  func.func @transform_4(%arg0: i32) -> (i32, i32) {
    %c0_i32 = arith.constant 0 : i32
    %c0_i32_0 = arith.constant 0 : i32
    %c0_i32_1 = arith.constant 0 : i32
    return %c0_i32, %c0_i32_0 : i32, i32
  }
  func.func @transform_5(%arg0: i32) -> (i32, i32) {
    %c0_i32 = arith.constant 0 : i32
    %c0_i32_0 = arith.constant 0 : i32
    %c0_i32_1 = arith.constant 0 : i32
    return %c0_i32, %c0_i32_0 : i32, i32
  }
  func.func @transform_6(%arg0: i32) -> (i32, i32) {
    %c0_i32 = arith.constant 0 : i32
    %c0_i32_0 = arith.constant 0 : i32
    %c0_i32_1 = arith.constant 0 : i32
    return %c0_i32, %c0_i32_0 : i32, i32
  }
  func.func @transform_7(%arg0: i32) -> (i32, i32) {
    %c0_i32 = arith.constant 0 : i32
    %c0_i32_0 = arith.constant 0 : i32
    %c0_i32_1 = arith.constant 0 : i32
    return %c0_i32, %c0_i32_0 : i32, i32
  }
  func.func @transform_8(%arg0: i32) -> (i32, i32) {
    %c0_i32 = arith.constant 0 : i32
    %c0_i32_0 = arith.constant 0 : i32
    %c0_i32_1 = arith.constant 0 : i32
    return %c0_i32, %c0_i32_0 : i32, i32
  }
  func.func @transform_9(%arg0: i32) -> (i32, i32) {
    %c0_i32 = arith.constant 0 : i32
    %c0_i32_0 = arith.constant 0 : i32
    %c0_i32_1 = arith.constant 0 : i32
    return %c0_i32, %c0_i32_0 : i32, i32
  }
  func.func @transform_10(%arg0: i32) -> (i32, i32) {
    %c0_i32 = arith.constant 0 : i32
    %c0_i32_0 = arith.constant 0 : i32
    %c0_i32_1 = arith.constant 0 : i32
    return %c0_i32, %c0_i32_0 : i32, i32
  }
  func.func @transform_11(%arg0: i32) -> (i32, i32) {
    %c0_i32 = arith.constant 0 : i32
    %c0_i32_0 = arith.constant 0 : i32
    %c0_i32_1 = arith.constant 0 : i32
    return %c0_i32, %c0_i32_0 : i32, i32
  }
  func.func @transform_12(%arg0: i32) -> (i32, i32, i32) {
    %c0_i32 = arith.constant 0 : i32
    %c0_i32_0 = arith.constant 0 : i32
    %c0_i32_1 = arith.constant 0 : i32
    %c0_i32_2 = arith.constant 0 : i32
    return %c0_i32, %c0_i32_0, %c0_i32_1 : i32, i32, i32
  }
  func.func @transform_13(%arg0: i32) -> (i32, i32) {
    %c0_i32 = arith.constant 0 : i32
    %c0_i32_0 = arith.constant 0 : i32
    %c0_i32_1 = arith.constant 0 : i32
    return %c0_i32, %c0_i32_0 : i32, i32
  }
  func.func @transform_14(%arg0: i32) -> (i32, i32) {
    %c0_i32 = arith.constant 0 : i32
    %c0_i32_0 = arith.constant 0 : i32
    return %arg0, %c0_i32 : i32, i32
  }
}

</mosaic_0001>

<bundles_post_ra>
// kernel: meta_kernel_forward.1
= control target key start
LH: loop header
LB: loop body
LE: loop exit
PB: predicated region body
PF: predicated region fallthrough
CT: control target
= control target key end

     0   :  { %v15236_v2 = vmov 0   ;;  %s21081_s0 = inlined_call_operand.vmem [shape: f32[128,16], index: 0, kind: input, shape index: {}]   ;;  %s21082_s1 = inlined_call_operand.vmem [shape: f32[128,1], index: 1, kind: input, shape index: {}]   ;;  %s21083_s2 = inlined_call_operand.vmem [shape: f32[16,128,8], index: 2, kind: input, shape index: {}]   ;;  %s21084_s3 = inlined_call_operand.vmem [shape: f32[1,16], index: 3, kind: input, shape index: {}]   ;;  %s21085_s4 = inlined_call_operand.vmem [shape: f32[1,16], index: 4, kind: input, shape index: {}]   ;;  %s21086_s5 = inlined_call_operand.vmem [shape: f32[1,16], index: 5, kind: input, shape index: {}]   ;;  %s21087_s6 = inlined_call_operand.vmem [shape: f32[1,8], index: 6, kind: input, shape index: {}]   ;;  %s21088_s7 = inlined_call_operand.vmem [shape: f32[1,8], index: 7, kind: input, shape index: {}]   ;;  %s21089_s8 = inlined_call_operand.vmem [shape: f32[1,8], index: 8, kind: input, shape index: {}]   ;;  %s21090_s9 = inlined_call_operand.vmem [shape: f32[1,8], index: 9, kind: input, shape index: {}]   ;;  %s21091_s10 = inlined_call_operand.vmem [shape: f32[8,8], index: 10, kind: input, shape index: {}]   ;;  %s21092_s11 = inlined_call_operand.vmem [shape: f32[1,8], index: 11, kind: input, shape index: {}]   ;;  %s21093_s12 = inlined_call_operand.vmem [shape: f32[16,8,128], index: 12, kind: input, shape index: {}]   ;;  %s21094_s13 = inlined_call_operand.vmem [shape: f32[1,128], index: 13, kind: input, shape index: {}]   ;;  %s21095_s14 = inlined_call_operand.hbm [shape: f32[128,128], index: 14, kind: output, shape index: {}]  }
   0x1   :  { %v66_v0 = vld [vmem:[%s21082_s1 + $0x10] sm:$0xff]  ;;  %v64_v1 = vld [vmem:[%s21082_s1] sm:$0xff]  ;;  %15131 = vset.pattern.permute.xlu1 %v15236_v2  ;;  %15130 = vset.pattern.permute.xlu0 %v15236_v2  ;;  %v67_v3 = vld [vmem:[%s21082_s1 + $0x18] sm:$0xff] }
   0x2   :  { %115 = vperm.xlu1 %15131, %v66_v0   ;;  %105 = vperm.xlu0 %15130, %v64_v1   ;;  %v65_v4 = vld [vmem:[%s21082_s1 + $0x8] sm:$0xff]  ;;  %v68_v6 = vld [vmem:[%s21082_s1 + $0x20] sm:$0xff]  ;;  %v71_v7 = vld [vmem:[%s21082_s1 + $0x38] sm:$0xff] }
   0x3   :  { %v69_v5 = vld [vmem:[%s21082_s1 + $0x28] sm:$0xff]  ;;  %v70_v8 = vld [vmem:[%s21082_s1 + $0x30] sm:$0xff] }
   0x6   :  { %120 = vperm.xlu1 %15131, %v67_v3   ;;  %110 = vperm.xlu0 %15130, %v65_v4  }
   0xa   :  { %130 = vperm.xlu1 %15131, %v69_v5   ;;  %125 = vperm.xlu0 %15130, %v68_v6  }
   0xb   :  { %19 = vsyncpa [#allocation3], 0  ;;  %v73_v9 = vld [vmem:[%s21082_s1 + $0x48] sm:$0xff]  ;;  %v72_v10 = vld [vmem:[%s21082_s1 + $0x40] sm:$0xff]  ;;  %vm665_vm0 = vcmask 64512  }
   0xc   :  { %v75_v11 = vld [vmem:[%s21082_s1 + $0x58] sm:$0xff]  ;;  %v74_v12 = vld [vmem:[%s21082_s1 + $0x50] sm:$0xff]  ;;  %v77_v13 = vld [vmem:[%s21082_s1 + $0x68] sm:$0xff] }
   0xd   :  { %v76_v14 = vld [vmem:[%s21082_s1 + $0x60] sm:$0xff]  ;;  %v79_v15 = vld [vmem:[%s21082_s1 + $0x78] sm:$0xff]  ;;  %v78_v16 = vld [vmem:[%s21082_s1 + $0x70] sm:$0xff] }
   0xe   :  { %140 = vperm.xlu1 %15131, %v71_v7   ;;  %135 = vperm.xlu0 %15130, %v70_v8   ;;  %v15381_v17 = vld [vmem:[%s21081_s0 + $0x8] sm:$0xff]  ;;  %v12720_v18 = vld [vmem:[%s21085_s4] ss:$0 sm:$0xff]  ;;  %v15400_v22 = vld [vmem:[%s21081_s0 + $0x18] sm:$0xff] }
   0xf   :  { %v15389_v19 = vld [vmem:[%s21081_s0] sm:$0xff]  ;;  %v15392_v20 = vmul.f32 %v12720_v18, %v15381_v17  ;;  %v15405_v23 = vld [vmem:[%s21081_s0 + $0x10] sm:$0xff]  ;;  %v15410_v24 = vmul.f32 %v12720_v18, %v15400_v22  ;;  %v15418_v26 = vld [vmem:[%s21081_s0 + $0x28] sm:$0xff] }
  0x10   :  { %v15395_v21 = vmul.f32 %v12720_v18, %v15389_v19  ;;  %v15413_v25 = vmul.f32 %v12720_v18, %v15405_v23  ;;  %v15423_v27 = vld [vmem:[%s21081_s0 + $0x20] sm:$0xff]  ;;  %v15428_v28 = vmul.f32 %v12720_v18, %v15418_v26  ;;  %v15436_v30 = vld [vmem:[%s21081_s0 + $0x38] sm:$0xff]  ;;  %v15441_v31 = vld [vmem:[%s21081_s0 + $0x30] sm:$0xff] }
  0x11   :  { %21357 = vst [vmem:[#allocation5_spill] sm:$0xff] %v15392_v20  ;;  %21359 = vst [vmem:[#allocation7_spill] sm:$0xff] %v15410_v24  ;;  %v15431_v29 = vmul.f32 %v12720_v18, %v15423_v27  ;;  %v15446_v32 = vmul.f32 %v12720_v18, %v15436_v30  ;;  %v15449_v33 = vmul.f32 %v12720_v18, %v15441_v31  ;;  %v15454_v34 = vld [vmem:[%s21081_s0 + $0x48] sm:$0xff]  ;;  %v15459_v35 = vld [vmem:[%s21081_s0 + $0x40] sm:$0xff] }
  0x12   :  { %150 = vperm.xlu1 %15131, %v73_v9   ;;  %145 = vperm.xlu0 %15130, %v72_v10   ;;  %21358 = vst [vmem:[#allocation6_spill] sm:$0xff] %v15395_v21  ;;  %21360 = vst [vmem:[#allocation8_spill] sm:$0xff] %v15413_v25  ;;  %v15464_v36 = vmul.f32 %v12720_v18, %v15454_v34  ;;  %v15467_v37 = vmul.f32 %v12720_v18, %v15459_v35  ;;  %v15472_v38 = vld [vmem:[%s21081_s0 + $0x58] sm:$0xff]  ;;  %v15477_v39 = vld [vmem:[%s21081_s0 + $0x50] sm:$0xff] }
  0x13   :  { %21361 = vst [vmem:[#allocation9_spill] sm:$0xff] %v15428_v28  ;;  %21362 = vst [vmem:[#allocation10_spill] sm:$0xff] %v15431_v29  ;;  %v15482_v40 = vmul.f32 %v12720_v18, %v15472_v38  ;;  %v15485_v41 = vmul.f32 %v12720_v18, %v15477_v39  ;;  %v15490_v42 = vld [vmem:[%s21081_s0 + $0x68] sm:$0xff]  ;;  %v15495_v43 = vld [vmem:[%s21081_s0 + $0x60] sm:$0xff] }
  0x14   :  { %21363 = vst [vmem:[#allocation11_spill] sm:$0xff] %v15446_v32  ;;  %21364 = vst [vmem:[#allocation12_spill] sm:$0xff] %v15449_v33  ;;  %v15500_v44 = vmul.f32 %v12720_v18, %v15490_v42  ;;  %v15503_v45 = vmul.f32 %v12720_v18, %v15495_v43  ;;  %v15508_v46 = vld [vmem:[%s21081_s0 + $0x78] sm:$0xff]  ;;  %v15513_v47 = vld [vmem:[%s21081_s0 + $0x70] sm:$0xff] }
  0x15   :  { %21365 = vst [vmem:[#allocation13_spill] sm:$0xff] %v15464_v36  ;;  %21366 = vst [vmem:[#allocation14_spill] sm:$0xff] %v15467_v37  ;;  %v15518_v48 = vmul.f32 %v12720_v18, %v15508_v46  ;;  %v15521_v49 = vmul.f32 %v12720_v18, %v15513_v47  ;;  %v12721_v50 = vld [vmem:[%s21086_s5] ss:$0 sm:$0xff] }
  0x16   :  { %160 = vperm.xlu1 %15131, %v75_v11   ;;  %155 = vperm.xlu0 %15130, %v74_v12   ;;  %21367 = vst [vmem:[#allocation15_spill] sm:$0xff] %v15482_v40  ;;  %21368 = vst [vmem:[#allocation16_spill] sm:$0xff] %v15485_v41  ;;  %v15529_v51 = vmul.f32 %v12721_v50, %v15381_v17  ;;  %v15532_v52 = vmul.f32 %v12721_v50, %v15389_v19  ;;  %v12719_v3 = vld [vmem:[%s21084_s3] ss:$0 sm:$0xff] }
  0x17   :  { %21369 = vst [vmem:[#allocation17_spill] sm:$0xff] %v15500_v44  ;;  %21370 = vst [vmem:[#allocation18_spill] sm:$0xff] %v15503_v45  ;;  %v15537_v53 = vmul.f32 %v12721_v50, %v15400_v22  ;;  %v15540_v54 = vmul.f32 %v12721_v50, %v15405_v23  ;;  %v15545_v55 = vmul.f32 %v12721_v50, %v15418_v26 }
  0x18   :  { %21371 = vst [vmem:[#allocation19_spill] sm:$0xff] %v15518_v48  ;;  %21372 = vst [vmem:[#allocation20_spill] sm:$0xff] %v15521_v49  ;;  %v15548_v56 = vmul.f32 %v12721_v50, %v15423_v27  ;;  %v15553_v57 = vmul.f32 %v12721_v50, %v15436_v30  ;;  %v15556_v58 = vmul.f32 %v12721_v50, %v15441_v31 }
  0x19   :  { %21373 = vst [vmem:[#allocation21_spill] sm:$0xff] %v15529_v51  ;;  %21374 = vst [vmem:[#allocation22_spill] sm:$0xff] %v15532_v52  ;;  %v15561_v59 = vmul.f32 %v12721_v50, %v15454_v34  ;;  %v15564_v60 = vmul.f32 %v12721_v50, %v15459_v35  ;;  %v15569_v61 = vmul.f32 %v12721_v50, %v15472_v38 }
  0x1a   :  { %170 = vperm.xlu1 %15131, %v77_v13   ;;  %165 = vperm.xlu0 %15130, %v76_v14   ;;  %21375 = vst [vmem:[#allocation23_spill] sm:$0xff] %v15537_v53  ;;  %21376 = vst [vmem:[#allocation24_spill] sm:$0xff] %v15540_v54  ;;  %v15572_v62 = vmul.f32 %v12721_v50, %v15477_v39  ;;  %v15577_v63 = vmul.f32 %v12721_v50, %v15490_v42 }
  0x1b   :  { %21377 = vst [vmem:[#allocation25_spill] sm:$0xff] %v15545_v55  ;;  %21378 = vst [vmem:[#allocation26_spill] sm:$0xff] %v15548_v56  ;;  %v15580_v0 = vmul.f32 %v12721_v50, %v15495_v43  ;;  %v15585_v1 = vmul.f32 %v12721_v50, %v15508_v46  ;;  %v15588_v2 = vmul.f32 %v12721_v50, %v15513_v47 }
  0x1c   :  { %21379 = vst [vmem:[#allocation27_spill] sm:$0xff] %v15553_v57  ;;  %21380 = vst [vmem:[#allocation28_spill] sm:$0xff] %v15556_v58  ;;  %v87_v4 = vmul.f32 %v12719_v3, %v15389_v19  ;;  %v89_v5 = vmul.f32 %v12719_v3, %v15405_v23  ;;  %v88_v9 = vmul.f32 %v12719_v3, %v15381_v17 }
  0x1d   :  { %21381 = vst [vmem:[#allocation29_spill] sm:$0xff] %v15561_v59  ;;  %21382 = vst [vmem:[#allocation30_spill] sm:$0xff] %v15564_v60  ;;  %v90_v13 = vmul.f32 %v12719_v3, %v15400_v22  ;;  %v92_v17 = vmul.f32 %v12719_v3, %v15418_v26  ;;  %v93_v50 = vmul.f32 %v12719_v3, %v15441_v31 }
  0x1e   :  { %180 = vperm.xlu1 %15131, %v79_v15   ;;  %175 = vperm.xlu0 %15130, %v78_v16   ;;  %21383 = vst [vmem:[#allocation31_spill] sm:$0xff] %v15569_v61  ;;  %21384 = vst [vmem:[#allocation32_spill] sm:$0xff] %v15572_v62  ;;  %v91_v15 = vmul.f32 %v12719_v3, %v15423_v27 }
  0x1f   :  { %21385 = vst [vmem:[#allocation33_spill] sm:$0xff] %v15577_v63  ;;  %21386 = vst [vmem:[#allocation34_spill] sm:$0xff] %v15580_v0 }
  0x20   :  { %21387 = vst [vmem:[#allocation35_spill] sm:$0xff] %v15585_v1  ;;  %21388 = vst [vmem:[#allocation36_spill] sm:$0xff] %v15588_v2 }
  0x22   :  { %360 = vperm.xlu1 %15131, %v15392_v20   ;;  %355 = vperm.xlu0 %15130, %v15395_v21  }
  0x26   :  { %370 = vperm.xlu1 %15131, %v15410_v24   ;;  %365 = vperm.xlu0 %15130, %v15413_v25  }
  0x2a   :  { %380 = vperm.xlu1 %15131, %v15428_v28   ;;  %375 = vperm.xlu0 %15130, %v15431_v29  }
  0x2e   :  { %390 = vperm.xlu1 %15131, %v15446_v32   ;;  %385 = vperm.xlu0 %15130, %v15449_v33  }
  0x32   :  { %400 = vperm.xlu1 %15131, %v15464_v36   ;;  %395 = vperm.xlu0 %15130, %v15467_v37  }
  0x36   :  { %410 = vperm.xlu1 %15131, %v15482_v40   ;;  %405 = vperm.xlu0 %15130, %v15485_v41  }
  0x3a   :  { %420 = vperm.xlu1 %15131, %v15500_v44   ;;  %415 = vperm.xlu0 %15130, %v15503_v45  }
  0x3e   :  { %430 = vperm.xlu1 %15131, %v15518_v48   ;;  %425 = vperm.xlu0 %15130, %v15521_v49  }
  0x42   :  { %478 = vperm.xlu1 %15131, %v15529_v51   ;;  %473 = vperm.xlu0 %15130, %v15532_v52  }
  0x46   :  { %488 = vperm.xlu1 %15131, %v15537_v53   ;;  %483 = vperm.xlu0 %15130, %v15540_v54  }
  0x4a   :  { %498 = vperm.xlu1 %15131, %v15545_v55   ;;  %493 = vperm.xlu0 %15130, %v15548_v56  }
  0x4e   :  { %508 = vperm.xlu1 %15131, %v15553_v57   ;;  %503 = vperm.xlu0 %15130, %v15556_v58  }
  0x52   :  { %518 = vperm.xlu1 %15131, %v15561_v59   ;;  %513 = vperm.xlu0 %15130, %v15564_v60  }
  0x56   :  { %528 = vperm.xlu1 %15131, %v15569_v61   ;;  %523 = vperm.xlu0 %15130, %v15572_v62  }
  0x5a   :  { %538 = vperm.xlu1 %15131, %v15577_v63   ;;  %533 = vperm.xlu0 %15130, %v15580_v0  }
  0x5e   :  { %548 = vperm.xlu1 %15131, %v15585_v1   ;;  %543 = vperm.xlu0 %15130, %v15588_v2  }
  0x81   :  { %v116_v6 = vpop.permute.xlu1 %115  ;;  %v106_v7 = vpop.permute.xlu0 %105 }
  0x82   :  { %v15597_v8 = vsub.f32 %v87_v4, %v106_v7  ;;  %v15600_v10 = vsub.f32 %v89_v5, %v116_v6  ;;  %v94_v5 = vmul.f32 %v12719_v3, %v15436_v30  ;;  %v95_v7 = vmul.f32 %v12719_v3, %v15459_v35 }
  0x84   :  { %21389 = vst [vmem:[#allocation37_spill] sm:$0xff] %v15597_v8  ;;  %21390 = vst [vmem:[#allocation38_spill] sm:$0xff] %v15600_v10  ;;  %253 = vperm.xlu0 %15130, %v15597_v8  }
  0x85   :  { %v121_v11 = vpop.permute.xlu1 %120  ;;  %v111_v12 = vpop.permute.xlu0 %110 }
  0x86   :  { %v15604_v14 = vsub.f32 %v88_v9, %v111_v12  ;;  %v15609_v19 = vsub.f32 %v90_v13, %v121_v11  ;;  %v15628_v9 = vld [vmem:[%s21091_s10] sm:$0xff]  ;;  %v96_v12 = vmul.f32 %v12719_v3, %v15454_v34  ;;  %v97_v13 = vmul.f32 %v12719_v3, %v15477_v39 }
  0x87   :  { %14039 = vmatprep.subr.mxu1 %v15628_v9  ;;  %v98_v34 = vmul.f32 %v12719_v3, %v15472_v38  ;;  %v99_v39 = vmul.f32 %v12719_v3, %v15495_v43 }
  0x88   :  { %21391 = vst [vmem:[#allocation39_spill] sm:$0xff] %v15604_v14  ;;  %258 = vperm.xlu1 %15131, %v15604_v14   ;;  %263 = vperm.xlu0 %15130, %v15600_v10   ;;  %21392 = vst [vmem:[#allocation40_spill] sm:$0xff] %v15609_v19 }
  0x89   :  { %v131_v16 = vpop.permute.xlu1 %130  ;;  %v126_v18 = vpop.permute.xlu0 %125  ;;  %14040 = vmatpush3.msra.mxu1 %v15628_v9 }
  0x8a   :  { %v15612_v23 = vsub.f32 %v91_v15, %v126_v18  ;;  %v15617_v4 = vsub.f32 %v92_v17, %v131_v16  ;;  %14065 = vmatprep.subr.mxu1 %v15628_v9 }
  0x8c   :  { %21393 = vst [vmem:[#allocation41_spill] sm:$0xff] %v15612_v23  ;;  %268 = vperm.xlu1 %15131, %v15609_v19   ;;  %273 = vperm.xlu0 %15130, %v15612_v23   ;;  %21394 = vst [vmem:[#allocation42_spill] sm:$0xff] %v15617_v4 }
  0x8d   :  { %v141_v22 = vpop.permute.xlu1 %140  ;;  %v136_v27 = vpop.permute.xlu0 %135 }
  0x8e   :  { %v15620_v6 = vsub.f32 %v93_v50, %v136_v27  ;;  %v15630_v11 = vsub.f32 %v94_v5, %v141_v22  ;;  %v100_v27 = vmul.f32 %v12719_v3, %v15490_v42 }
  0x90   :  { %21395 = vst [vmem:[#allocation43_spill] sm:$0xff] %v15620_v6  ;;  %278 = vperm.xlu1 %15131, %v15617_v4   ;;  %283 = vperm.xlu0 %15130, %v15620_v6   ;;  %21396 = vst [vmem:[#allocation44_spill] sm:$0xff] %v15630_v11 }
  0x91   :  { %v151_v26 = vpop.permute.xlu1 %150  ;;  %v146_v31 = vpop.permute.xlu0 %145 }
  0x92   :  { %v15633_v30 = vsub.f32 %v95_v7, %v146_v31  ;;  %v15641_v16 = vsub.f32 %v96_v12, %v151_v26  ;;  %v101_v7 = vmul.f32 %v12719_v3, %v15513_v47  ;;  %v102_v26 = vmul.f32 %v12719_v3, %v15508_v46 }
  0x93   :  { %v15237_v47 = vmov 1  }
  0x94   :  { %21397 = vst [vmem:[#allocation45_spill] sm:$0xff] %v15633_v30  ;;  %288 = vperm.xlu1 %15131, %v15630_v11   ;;  %293 = vperm.xlu0 %15130, %v15633_v30   ;;  %21398 = vst [vmem:[#allocation46_spill] sm:$0xff] %v15641_v16 }
  0x95   :  { %v161_v35 = vpop.permute.xlu1 %160  ;;  %v156_v15 = vpop.permute.xlu0 %155 }
  0x96   :  { %v15644_v18 = vsub.f32 %v97_v13, %v156_v15  ;;  %v15649_v22 = vsub.f32 %v98_v34, %v161_v35 }
  0x98   :  { %21399 = vst [vmem:[#allocation47_spill] sm:$0xff] %v15644_v18  ;;  %298 = vperm.xlu1 %15131, %v15641_v16   ;;  %303 = vperm.xlu0 %15130, %v15644_v18   ;;  %21400 = vst [vmem:[#allocation48_spill] sm:$0xff] %v15649_v22 }
  0x99   :  { %v171_v17 = vpop.permute.xlu1 %170  ;;  %v166_v50 = vpop.permute.xlu0 %165 }
  0x9a   :  { %v15652_v5 = vsub.f32 %v99_v39, %v166_v50  ;;  %v15657_v43 = vsub.f32 %v100_v27, %v171_v17 }
  0x9c   :  { %21401 = vst [vmem:[#allocation49_spill] sm:$0xff] %v15652_v5  ;;  %308 = vperm.xlu1 %15131, %v15649_v22   ;;  %313 = vperm.xlu0 %15130, %v15652_v5   ;;  %21402 = vst [vmem:[#allocation50_spill] sm:$0xff] %v15657_v43 }
  0x9d   :  { %v176_v38 = vpop.permute.xlu0 %175  ;;  %v181_v12 = vpop.permute.xlu1 %180 }
  0x9e   :  { %v15660_v31 = vsub.f32 %v101_v7, %v176_v38  ;;  %v15664_v42 = vsub.f32 %v102_v26, %v181_v12 }
  0xa0   :  { %21403 = vst [vmem:[#allocation51_spill] sm:$0xff] %v15660_v31  ;;  %318 = vperm.xlu1 %15131, %v15657_v43   ;;  %323 = vperm.xlu0 %15130, %v15660_v31   ;;  %21404 = vst [vmem:[#allocation52_spill] sm:$0xff] %v15664_v42 }
  0xa1   :  { %v15667_v13 = vpop.permute.xlu0 %355  ;;  %v15670_v35 = vpop.permute.xlu1 %360 }
  0xa4   :  { %328 = vperm.xlu1 %15131, %v15664_v42   ;;  %15132 = vset.pattern.permute.xlu0 %v15237_v47 }
  0xa5   :  { %893 = vperm.xlu0 %15132, %v15597_v8   ;;  %v15674_v46 = vpop.permute.xlu0 %365  ;;  %v15678_v3 = vpop.permute.xlu1 %370 }
  0xa8   :  { %15133 = vset.pattern.permute.xlu1 %v15237_v47 }
  0xa9   :  { %897 = vperm.xlu1 %15133, %v15604_v14   ;;  %905 = vperm.xlu0 %15132, %v15609_v19   ;;  %v15680_v15 = vpop.permute.xlu0 %375  ;;  %v15684_v34 = vpop.permute.xlu1 %380 }
  0xad   :  { %901 = vperm.xlu1 %15133, %v15600_v10   ;;  %913 = vperm.xlu0 %15132, %v15617_v4   ;;  %v15688_v39 = vpop.permute.xlu0 %385  ;;  %v15692_v17 = vpop.permute.xlu1 %390 }
  0xb1   :  { %909 = vperm.xlu1 %15133, %v15612_v23   ;;  %921 = vperm.xlu0 %15132, %v15630_v11   ;;  %v15694_v50 = vpop.permute.xlu0 %395  ;;  %v15698_v27 = vpop.permute.xlu1 %400 }
  0xb5   :  { %917 = vperm.xlu1 %15133, %v15620_v6   ;;  %929 = vperm.xlu0 %15132, %v15641_v16   ;;  %v15702_v7 = vpop.permute.xlu0 %405  ;;  %v15706_v38 = vpop.permute.xlu1 %410 }
  0xb9   :  { %925 = vperm.xlu1 %15133, %v15633_v30   ;;  %937 = vperm.xlu0 %15132, %v15649_v22   ;;  %v15708_v26 = vpop.permute.xlu0 %415  ;;  %v15712_v12 = vpop.permute.xlu1 %420 }
  0xbd   :  { %933 = vperm.xlu1 %15133, %v15644_v18   ;;  %945 = vperm.xlu0 %15132, %v15657_v43   ;;  %v15716_v47 = vpop.permute.xlu0 %425 }
  0xc1   :  { %941 = vperm.xlu1 %15133, %v15652_v5   ;;  %953 = vperm.xlu0 %15132, %v15664_v42   ;;  %v474_v42 = vpop.permute.xlu0 %473 }
  0xc5   :  { %949 = vperm.xlu1 %15133, %v15660_v31   ;;  %977 = vperm.xlu0 %15132, %v15392_v20   ;;  %v15720_v20 = vpop.permute.xlu1 %430 }
  0xc9   :  { %973 = vperm.xlu1 %15133, %v15395_v21   ;;  %985 = vperm.xlu0 %15132, %v15410_v24   ;;  %v15724_v24 = vpop.permute.xlu1 %478 }
  0xcd   :  { %981 = vperm.xlu1 %15133, %v15413_v25   ;;  %993 = vperm.xlu0 %15132, %v15428_v28   ;;  %v15728_v28 = vpop.permute.xlu0 %483 }
  0xd1   :  { %989 = vperm.xlu1 %15133, %v15431_v29   ;;  %1001 = vperm.xlu0 %15132, %v15446_v32   ;;  %v15732_v32 = vpop.permute.xlu1 %488  ;;  %v15734_v29 = vpop.permute.xlu0 %493 }
  0xd5   :  { %997 = vperm.xlu1 %15133, %v15449_v33   ;;  %1009 = vperm.xlu0 %15132, %v15464_v36   ;;  %v15738_v36 = vpop.permute.xlu1 %498 }
  0xd9   :  { %1005 = vperm.xlu1 %15133, %v15467_v37   ;;  %1017 = vperm.xlu0 %15132, %v15482_v40   ;;  %v15742_v40 = vpop.permute.xlu0 %503 }
  0xdd   :  { %1013 = vperm.xlu1 %15133, %v15485_v41   ;;  %1025 = vperm.xlu0 %15132, %v15500_v44   ;;  %v15746_v44 = vpop.permute.xlu1 %508  ;;  %v15748_v41 = vpop.permute.xlu0 %513 }
  0xe1   :  { %1021 = vperm.xlu1 %15133, %v15503_v45   ;;  %1033 = vperm.xlu0 %15132, %v15518_v48   ;;  %v15752_v48 = vpop.permute.xlu1 %518 }
  0xe5   :  { %1029 = vperm.xlu1 %15133, %v15521_v49   ;;  %1073 = vperm.xlu0 %15132, %v15529_v51   ;;  %v15756_v51 = vpop.permute.xlu0 %523 }
  0xe9   :  { %1069 = vperm.xlu1 %15133, %v15532_v52   ;;  %1081 = vperm.xlu0 %15132, %v15537_v53   ;;  %v15760_v53 = vpop.permute.xlu1 %528  ;;  %v15762_v52 = vpop.permute.xlu0 %533 }
  0xed   :  { %1077 = vperm.xlu1 %15133, %v15540_v54   ;;  %1089 = vperm.xlu0 %15132, %v15545_v55   ;;  %v15766_v55 = vpop.permute.xlu1 %538 }
  0xf1   :  { %1085 = vperm.xlu1 %15133, %v15548_v56   ;;  %1097 = vperm.xlu0 %15132, %v15553_v57   ;;  %v15770_v57 = vpop.permute.xlu0 %543  ;;  %v15238_v56 = vmov 2  }
  0xf5   :  { %1093 = vperm.xlu1 %15133, %v15556_v58   ;;  %1105 = vperm.xlu0 %15132, %v15561_v59   ;;  %v15775_v59 = vld [vmem:[%s21088_s7] ss:$0 sm:$0xff] }
  0xf6   :  { %v439_v58 = vmul.f32 %v15775_v59, %v15667_v13  ;;  %v442_v54 = vmul.f32 %v15775_v59, %v15678_v3  ;;  %v441_v49 = vmul.f32 %v15775_v59, %v15674_v46  ;;  %v443_v13 = vmul.f32 %v15775_v59, %v15680_v15 }
  0xf7   :  { %v445_v3 = vmul.f32 %v15775_v59, %v15688_v39  ;;  %v15820_v46 = vmul.f32 %v15775_v59, %v15698_v27  ;;  %v15830_v39 = vmul.f32 %v15775_v59, %v15706_v38  ;;  %v15841_v38 = vmul.f32 %v15775_v59, %v15702_v7 }
  0xf9   :  { %1101 = vperm.xlu1 %15133, %v15564_v60   ;;  %1113 = vperm.xlu0 %15132, %v15569_v61   ;;  %v15782_v61 = vld [vmem:[%s21087_s6] ss:$0 sm:$0xff] }
  0xfd   :  { %1109 = vperm.xlu1 %15133, %v15572_v62   ;;  %1121 = vperm.xlu0 %15132, %v15577_v63   ;;  %v15787_v63 = vld [vmem:[%s21089_s8] ss:$0 sm:$0xff]  ;;  %v15789_v62 = vpop.permute.xlu1 %548 }
  0xfe   :  { %v557_v45 = vmul.f32 %v15787_v63, %v474_v42  ;;  %v15816_v42 = vld [vmem:[%s21090_s9] ss:$0 sm:$0xff]  ;;  %v559_v27 = vmul.f32 %v15787_v63, %v15728_v28  ;;  %v15849_v28 = vmul.f32 %v15775_v59, %v15708_v26 }
 0x101   :  { %1117 = vperm.xlu1 %15133, %v15580_v0   ;;  %1129 = vperm.xlu0 %15132, %v15585_v1   ;;  %v440_v1 = vmul.f32 %v15775_v59, %v15670_v35  ;;  %v15809_v35 = vmul.f32 %v15775_v59, %v15692_v17 }
 0x103   :  { %v254_v60 = vpop.permute.xlu0 %253 }
 0x104   :  { %v337_v0 = vmul.f32 %v15782_v61, %v254_v60  ;;  %v444_v60 = vmul.f32 %v15775_v59, %v15684_v34 }
 0x105   :  { %1125 = vperm.xlu1 %15133, %v15588_v2   ;;  %15135 = vset.pattern.permute.xlu0 %v15238_v56  ;;  %v558_v2 = vmul.f32 %v15787_v63, %v15724_v24  ;;  %v15845_v24 = vmul.f32 %v15775_v59, %v15712_v12  ;;  %v560_v12 = vmul.f32 %v15787_v63, %v15732_v32 }
 0x106   :  { %v455_v37 = vadd.f32 %v439_v58, %v337_v0  ;;  %1847 = vperm.xlu0 %15135, %v15604_v14   ;;  %v15826_v14 = vmul.f32 %v15775_v59, %v15694_v50  ;;  %v563_v32 = vmul.f32 %v15787_v63, %v15742_v40 }
 0x107   :  { %v259_v58 = vpop.permute.xlu1 %258  ;;  %v264_v0 = vpop.permute.xlu0 %263 }
 0x108   :  { %v573_v34 = vadd.f32 %v557_v45, %v455_v37  ;;  %v338_v15 = vmul.f32 %v15782_v61, %v259_v58  ;;  %v339_v17 = vmul.f32 %v15782_v61, %v264_v0 }
 0x109   :  { %15134 = vset.pattern.permute.xlu1 %v15238_v56 }
 0x10a   :  { %v456_v37 = vadd.f32 %v440_v1, %v338_v15  ;;  %v457_v45 = vadd.f32 %v441_v49, %v339_v17  ;;  %1843 = vperm.xlu1 %15134, %v15597_v8   ;;  %1859 = vperm.xlu0 %15135, %v15612_v23   ;;  %v595_v50 = vadd.f32 %v15816_v42, %v573_v34 }
 0x10b   :  { %v15853_v49 = vmul.f32 %v15775_v59, %v15716_v47  ;;  %v269_v56 = vpop.permute.xlu1 %268  ;;  %v274_v1 = vpop.permute.xlu0 %273  ;;  %v561_v15 = vmul.f32 %v15787_v63, %v15734_v29 }
 0x10c   :  { %v574_v58 = vadd.f32 %v558_v2, %v456_v37  ;;  %v575_v0 = vadd.f32 %v559_v27, %v457_v45  ;;  %v340_v34 = vmul.f32 %v15782_v61, %v269_v56  ;;  %v341_v7 = vmul.f32 %v15782_v61, %v274_v1 }
 0x10d   :  { %vm611_vm1 = vcmp.gt.f32.partialorder %v595_v50, 0.0  ;;  %v627_v26 = vmul.f32 0.2, %v595_v50  ;;  %v562_v2 = vmul.f32 %v15787_v63, %v15738_v36  ;;  %v564_v27 = vmul.f32 %v15787_v63, %v15746_v44 }
 0x10e   :  { %v596_v17 = vadd.f32 %v15816_v42, %v574_v58  ;;  %v597_v47 = vadd.f32 %v15816_v42, %v575_v0  ;;  %v458_v23 = vadd.f32 %v442_v54, %v340_v34  ;;  %v459_v8 = vadd.f32 %v443_v13, %v341_v7  ;;  %1851 = vperm.xlu1 %15134, %v15600_v10  }
 0x10f   :  { %1867 = vperm.xlu0 %15135, %v15620_v6   ;;  %v279_v29 = vpop.permute.xlu1 %278  ;;  %v643_v37 = vsel %vm611_vm1, %v595_v50, %v627_v26  ;;  %v284_v45 = vpop.permute.xlu0 %283 }
 0x110   :  { %v576_v56 = vadd.f32 %v560_v12, %v458_v23  ;;  %v577_v1 = vadd.f32 %v561_v15, %v459_v8  ;;  %v342_v54 = vmul.f32 %v15782_v61, %v279_v29  ;;  %14041 = vmatprep.mubr.msk.f32.mxu1 %vm665_vm0, %v643_v37  ;;  %v343_v13 = vmul.f32 %v15782_v61, %v284_v45 }
 0x111   :  { %vm612_vm2 = vcmp.gt.f32.partialorder %v596_v17, 0.0  ;;  %v628_v36 = vmul.f32 0.2, %v596_v17  ;;  %vm613_vm3 = vcmp.gt.f32.partialorder %v597_v47, 0.0  ;;  %v629_v44 = vmul.f32 0.2, %v597_v47 }
 0x112   :  { %v598_v58 = vadd.f32 %v15816_v42, %v576_v56  ;;  %v599_v40 = vadd.f32 %v15816_v42, %v577_v1  ;;  %v460_v0 = vadd.f32 %v444_v60, %v342_v54  ;;  %v461_v34 = vadd.f32 %v445_v3, %v343_v13  ;;  %1855 = vperm.xlu1 %15134, %v15609_v19  }
 0x113   :  { %v566_v8 = vmul.f32 %v15787_v63, %v15752_v48  ;;  %v565_v23 = vmul.f32 %v15787_v63, %v15748_v41  ;;  %1875 = vperm.xlu0 %15135, %v15633_v30   ;;  %v289_v50 = vpop.permute.xlu1 %288  ;;  %v644_v7 = vsel %vm612_vm2, %v596_v17, %v628_v36  ;;  %v294_v12 = vpop.permute.xlu0 %293  ;;  %v645_v15 = vsel %vm613_vm3, %v597_v47, %v629_v44 }
 0x114   :  { %v578_v26 = vadd.f32 %v562_v2, %v460_v0  ;;  %v579_v29 = vadd.f32 %v563_v32, %v461_v34  ;;  %v344_v37 = vmul.f32 %v15782_v61, %v289_v50  ;;  %14042 = vmatmul.mubr.msk.f32.vlgmr.msra.gmra.mrb[0].mxu1 %vm665_vm0, %v644_v7  ;;  %v345_v60 = vmul.f32 %v15782_v61, %v294_v12 }
 0x115   :  { %14044 = vmatprep.mubr.msk.f32.mxu1 %vm665_vm0, %v645_v15  ;;  %vm614_vm4 = vcmp.gt.f32.partialorder %v598_v58, 0.0  ;;  %v630_v48 = vmul.f32 0.2, %v598_v58  ;;  %vm615_vm5 = vcmp.gt.f32.partialorder %v599_v40, 0.0  ;;  %v631_v41 = vmul.f32 0.2, %v599_v40  ;;  %14066 = vmatpush3.msra.mxu1 %v15628_v9 }
 0x116   :  { %v600_v3 = vadd.f32 %v15816_v42, %v578_v26  ;;  %v601_v17 = vadd.f32 %v15816_v42, %v579_v29  ;;  %v462_v47 = vadd.f32 %v15809_v35, %v344_v37  ;;  %v463_v2 = vadd.f32 %v15826_v14, %v345_v60  ;;  %1863 = vperm.xlu1 %15134, %v15617_v4  }
 0x117   :  { %v567_v32 = vmul.f32 %v15787_v63, %v15756_v51  ;;  %1883 = vperm.xlu0 %15135, %v15644_v18   ;;  %v299_v45 = vpop.permute.xlu1 %298  ;;  %v646_v56 = vsel %vm614_vm4, %v598_v58, %v630_v48  ;;  %v304_v1 = vpop.permute.xlu0 %303  ;;  %v647_v54 = vsel %vm615_vm5, %v599_v40, %v631_v41  ;;  %14143 = vmatprep.subr.mxu1 %v15628_v9 }
 0x118   :  { %v580_v13 = vadd.f32 %v564_v27, %v462_v47  ;;  %v581_v36 = vadd.f32 %v565_v23, %v463_v2  ;;  %v346_v44 = vmul.f32 %v15782_v61, %v299_v45  ;;  %14045 = vmatmul.mubr.msk.f32.gmra.mrb[2].mxu1 %vm665_vm0, %v646_v56  ;;  %v347_v14 = vmul.f32 %v15782_v61, %v304_v1 }
 0x119   :  { %14047 = vmatprep.mubr.msk.f32.mxu1 %vm665_vm0, %v647_v54  ;;  %vm616_vm6 = vcmp.gt.f32.partialorder %v600_v3, 0.0  ;;  %v632_v51 = vmul.f32 0.2, %v600_v3  ;;  %vm617_vm7 = vcmp.gt.f32.partialorder %v601_v17, 0.0  ;;  %v633_v35 = vmul.f32 0.2, %v601_v17 }
 0x11a   :  { %v602_v58 = vadd.f32 %v15816_v42, %v580_v13  ;;  %v603_v40 = vadd.f32 %v15816_v42, %v581_v36  ;;  %v464_v0 = vadd.f32 %v15820_v46, %v346_v44  ;;  %v465_v27 = vadd.f32 %v15841_v38, %v347_v14  ;;  %1871 = vperm.xlu1 %15134, %v15630_v11  }
 0x11b   :  { %v568_v34 = vmul.f32 %v15787_v63, %v15760_v53  ;;  %v569_v23 = vmul.f32 %v15787_v63, %v15762_v52  ;;  %1891 = vperm.xlu0 %15135, %v15652_v5   ;;  %v309_v50 = vpop.permute.xlu1 %308  ;;  %v648_v7 = vsel %vm616_vm6, %v600_v3, %v632_v51  ;;  %v314_v12 = vpop.permute.xlu0 %313  ;;  %v649_v15 = vsel %vm617_vm7, %v601_v17, %v633_v35 }
 0x11c   :  { %v582_v26 = vadd.f32 %v566_v8, %v464_v0  ;;  %v583_v29 = vadd.f32 %v567_v32, %v465_v27  ;;  %v348_v46 = vmul.f32 %v15782_v61, %v309_v50  ;;  %14048 = vmatmul.mubr.msk.f32.gmra.mrb[4].mxu1 %vm665_vm0, %v648_v7  ;;  %v349_v38 = vmul.f32 %v15782_v61, %v314_v12 }
 0x11d   :  { %14050 = vmatprep.mubr.msk.f32.mxu1 %vm665_vm0, %v649_v15  ;;  %vm618_vm8 = vcmp.gt.f32.partialorder %v602_v58, 0.0  ;;  %v634_v53 = vmul.f32 0.2, %v602_v58  ;;  %vm619_vm9 = vcmp.gt.f32.partialorder %v603_v40, 0.0  ;;  %v635_v52 = vmul.f32 0.2, %v603_v40 }
 0x11e   :  { %v604_v37 = vadd.f32 %v15816_v42, %v582_v26  ;;  %v605_v60 = vadd.f32 %v15816_v42, %v583_v29  ;;  %v466_v48 = vadd.f32 %v15830_v39, %v348_v46  ;;  %v467_v8 = vadd.f32 %v15849_v28, %v349_v38  ;;  %1879 = vperm.xlu1 %15134, %v15641_v16  }
 0x11f   :  { %v570_v41 = vmul.f32 %v15787_v63, %v15766_v55  ;;  %v571_v3 = vmul.f32 %v15787_v63, %v15770_v57  ;;  %1899 = vperm.xlu0 %15135, %v15660_v31   ;;  %v319_v17 = vpop.permute.xlu1 %318  ;;  %v650_v47 = vsel %vm618_vm8, %v602_v58, %v634_v53  ;;  %v324_v2 = vpop.permute.xlu0 %323  ;;  %v651_v32 = vsel %vm619_vm9, %v603_v40, %v635_v52  ;;  %v21405_v53 = vld [vmem:[#allocation52_spill] sm:$0xff] }
 0x120   :  { %v584_v45 = vadd.f32 %v568_v34, %v466_v48  ;;  %v585_v56 = vadd.f32 %v569_v23, %v467_v8  ;;  %v350_v39 = vmul.f32 %v15782_v61, %v319_v17  ;;  %14051 = vmatmul.mubr.msk.f32.gmra.mrb[6].mxu1 %vm665_vm0, %v650_v47  ;;  %v351_v28 = vmul.f32 %v15782_v61, %v324_v2 }
 0x121   :  { %14053 = vmatprep.mubr.msk.f32.mxu1 %vm665_vm0, %v651_v32  ;;  %vm620_vm10 = vcmp.gt.f32.partialorder %v604_v37, 0.0  ;;  %v636_v55 = vmul.f32 0.2, %v604_v37  ;;  %vm621_vm11 = vcmp.gt.f32.partialorder %v605_v60, 0.0  ;;  %v637_v57 = vmul.f32 0.2, %v605_v60 }
 0x122   :  { %v606_v1 = vadd.f32 %v15816_v42, %v584_v45  ;;  %v607_v54 = vadd.f32 %v15816_v42, %v585_v56  ;;  %v468_v13 = vadd.f32 %v15845_v24, %v350_v39  ;;  %v469_v36 = vadd.f32 %v15853_v49, %v351_v28  ;;  %1887 = vperm.xlu1 %15134, %v15649_v22   ;;  %v21408_v32 = vld [vmem:[#allocation7_spill] sm:$0xff]  ;;  %v21409_v45 = vld [vmem:[#allocation14_spill] sm:$0xff]  ;;  %v21410_v28 = vld [vmem:[#allocation9_spill] sm:$0xff] }
 0x123   :  { %v454_v44 = vmul.f32 %v15775_v59, %v15720_v20  ;;  %1923 = vperm.xlu0 %15135, %v15395_v21   ;;  %v329_v14 = vpop.permute.xlu1 %328  ;;  %v652_v51 = vsel %vm620_vm10, %v604_v37, %v636_v55  ;;  %v653_v35 = vsel %vm621_vm11, %v605_v60, %v637_v57  ;;  %v572_v20 = vmul.f32 %v15787_v63, %v15789_v62  ;;  %v21406_v37 = vld [vmem:[#allocation10_spill] sm:$0xff]  ;;  %v21411_v55 = vld [vmem:[#allocation16_spill] sm:$0xff]  ;;  %v21434_v21 = vld [vmem:[#allocation33_spill] sm:$0xff] }
 0x124   :  { %v586_v58 = vadd.f32 %v570_v41, %v468_v13  ;;  %v587_v40 = vadd.f32 %v571_v3, %v469_v36  ;;  %v352_v0 = vmul.f32 %v15782_v61, %v329_v14  ;;  %14054 = vmatmul.mubr.msk.f32.gmra.mrb[8].mxu1 %vm665_vm0, %v652_v51  ;;  %v15938_v27 = vpop.permute.xlu0 %893  ;;  %vm622_vm12 = vcmp.gt.f32.partialorder %v606_v1, 0.0  ;;  %v21407_v3 = vld [vmem:[#allocation5_spill] sm:$0xff]  ;;  %v21413_v13 = vld [vmem:[#allocation18_spill] sm:$0xff]  ;;  %v21415_v51 = vld [vmem:[#allocation20_spill] sm:$0xff] }
 0x125   :  { %14056 = vmatprep.mubr.msk.f32.mxu1 %vm665_vm0, %v653_v35  ;;  %v638_v24 = vmul.f32 0.2, %v606_v1  ;;  %vm623_vm13 = vcmp.gt.f32.partialorder %v607_v54, 0.0  ;;  %v639_v49 = vmul.f32 0.2, %v607_v54  ;;  %v21414_v14 = vld [vmem:[#allocation13_spill] sm:$0xff] }
 0x126   :  { %v608_v34 = vadd.f32 %v15816_v42, %v586_v58  ;;  %v609_v23 = vadd.f32 %v15816_v42, %v587_v40  ;;  %v470_v50 = vadd.f32 %v454_v44, %v352_v0  ;;  %1895 = vperm.xlu1 %15134, %v15657_v43   ;;  %v21416_v40 = vld [vmem:[#allocation15_spill] sm:$0xff]  ;;  %v21417_v0 = vld [vmem:[#allocation22_spill] sm:$0xff] }
 0x127   :  { %1931 = vperm.xlu0 %15135, %v15413_v25   ;;  %v654_v7 = vsel %vm622_vm12, %v606_v1, %v638_v24  ;;  %v655_v12 = vsel %vm623_vm13, %v607_v54, %v639_v49  ;;  %v21412_v54 = vld [vmem:[#allocation11_spill] sm:$0xff] }
 0x128   :  { %v588_v15 = vadd.f32 %v572_v20, %v470_v50  ;;  %14057 = vmatmul.mubr.msk.f32.gmra.mrb[10].mxu1 %vm665_vm0, %v654_v7  ;;  %v15948_v26 = vpop.permute.xlu1 %897  ;;  %v15950_v29 = vpop.permute.xlu0 %905  ;;  %vm624_vm14 = vcmp.gt.f32.partialorder %v608_v34, 0.0  ;;  %v640_v62 = vmul.f32 0.2, %v608_v34  ;;  %vm625_vm15 = vcmp.gt.f32.partialorder %v609_v23, 0.0  ;;  %v21418_v20 = vld [vmem:[#allocation17_spill] sm:$0xff]  ;;  %v21420_v7 = vld [vmem:[#allocation19_spill] sm:$0xff] }
 0x129   :  { %14059 = vmatprep.mubr.msk.f32.mxu1 %vm665_vm0, %v655_v12  ;;  %v641_v46 = vmul.f32 0.2, %v609_v23  ;;  %v21421_v12 = vld [vmem:[#allocation26_spill] sm:$0xff] }
 0x12a   :  { %v610_v38 = vadd.f32 %v15816_v42, %v588_v15  ;;  %1903 = vperm.xlu1 %15134, %v21405_v53   ;;  %v656_v52 = vsel %vm624_vm14, %v608_v34, %v640_v62  ;;  %v21419_v34 = vld [vmem:[#allocation24_spill] sm:$0xff] }
 0x12b   :  { %1939 = vperm.xlu0 %15135, %v21406_v37   ;;  %v657_v60 = vsel %vm625_vm15, %v609_v23, %v641_v46  ;;  %v21422_v46 = vld [vmem:[#allocation21_spill] sm:$0xff] }
 0x12c   :  { %14060 = vmatmul.mubr.msk.f32.gmra.mrb[12].mxu1 %vm665_vm0, %v656_v52  ;;  %v15957_v48 = vpop.permute.xlu1 %901  ;;  %v15959_v8 = vpop.permute.xlu0 %913  ;;  %vm626_vm1 = vcmp.gt.f32.partialorder %v610_v38, 0.0  ;;  %v642_v41 = vmul.f32 0.2, %v610_v38 }
 0x12d   :  { %14062 = vmatprep.mubr.msk.f32.mxu1 %vm665_vm0, %v657_v60 }
 0x12e   :  { %1927 = vperm.xlu1 %15134, %v21407_v3   ;;  %v658_v17 = vsel %vm626_vm1, %v610_v38, %v642_v41  ;;  %v21423_v38 = vld [vmem:[#allocation28_spill] sm:$0xff]  ;;  %v21424_v41 = vld [vmem:[#allocation23_spill] sm:$0xff] }
 0x12f   :  { %1947 = vperm.xlu0 %15135, %v15449_v33   ;;  %v21432_v33 = vld [vmem:[#allocation31_spill] sm:$0xff] }
 0x130   :  { %14063 = vmatmul.mubr.msk.f32.gmra.mrb[14].mxu1 %vm665_vm0, %v658_v17  ;;  %v15965_v47 = vpop.permute.xlu1 %909  ;;  %v15967_v2 = vpop.permute.xlu0 %921  ;;  %v21425_v17 = vld [vmem:[#allocation30_spill] sm:$0xff] }
 0x132   :  { %1935 = vperm.xlu1 %15134, %v21408_v32  }
 0x133   :  { %1955 = vperm.xlu0 %15135, %v21409_v45  }
 0x134   :  { %v15971_v56 = vpop.permute.xlu1 %917  ;;  %v15973_v39 = vpop.permute.xlu0 %929 }
 0x136   :  { %1943 = vperm.xlu1 %15134, %v21410_v28  }
 0x137   :  { %1963 = vperm.xlu0 %15135, %v21411_v55  }
 0x138   :  { %v15977_v57 = vpop.permute.xlu1 %925  ;;  %v15979_v1 = vpop.permute.xlu0 %937 }
 0x13a   :  { %1951 = vperm.xlu1 %15134, %v21412_v54   ;;  %v958_v54 = vmul.f32 %v15782_v61, %v15957_v48 }
 0x13b   :  { %1971 = vperm.xlu0 %15135, %v21413_v13   ;;  %v21427_v13 = vld [vmem:[#allocation32_spill] sm:$0xff] }
 0x13c   :  { %v15983_v36 = vpop.permute.xlu1 %933  ;;  %v15985_v44 = vpop.permute.xlu0 %945 }
 0x13e   :  { %1959 = vperm.xlu1 %15134, %v21414_v14  }
 0x13f   :  { %1979 = vperm.xlu0 %15135, %v21415_v51   ;;  %v21426_v51 = vld [vmem:[#allocation25_spill] sm:$0xff] }
 0x140   :  { %v15989_v35 = vpop.permute.xlu1 %941  ;;  %v15991_v58 = vpop.permute.xlu0 %953 }
 0x142   :  { %1967 = vperm.xlu1 %15134, %v21416_v40   ;;  %v956_v40 = vmul.f32 %v15782_v61, %v15938_v27  ;;  %v961_v27 = vmul.f32 %v15782_v61, %v15959_v8  ;;  %v964_v8 = vmul.f32 %v15782_v61, %v15977_v57 }
 0x143   :  { %2019 = vperm.xlu0 %15135, %v21417_v0  }
 0x144   :  { %v15995_v24 = vpop.permute.xlu1 %949  ;;  %v978_v49 = vpop.permute.xlu0 %977 }
 0x146   :  { %1975 = vperm.xlu1 %15134, %v21418_v20  }
 0x147   :  { %2027 = vperm.xlu0 %15135, %v21419_v34  }
 0x148   :  { %v974_v23 = vpop.permute.xlu1 %973  ;;  %v986_v50 = vpop.permute.xlu0 %985 }
 0x14a   :  { %1983 = vperm.xlu1 %15134, %v21420_v7   ;;  %v21428_v7 = vld [vmem:[#allocation27_spill] sm:$0xff] }
 0x14b   :  { %2035 = vperm.xlu0 %15135, %v21421_v12  }
 0x14c   :  { %v982_v15 = vpop.permute.xlu1 %981  ;;  %v994_v62 = vpop.permute.xlu0 %993 }
 0x14e   :  { %2023 = vperm.xlu1 %15134, %v21422_v46   ;;  %v21429_v46 = vld [vmem:[#allocation34_spill] sm:$0xff] }
 0x14f   :  { %2043 = vperm.xlu0 %15135, %v21423_v38  }
 0x150   :  { %v990_v52 = vpop.permute.xlu1 %989  ;;  %v1002_v60 = vpop.permute.xlu0 %1001 }
 0x152   :  { %2031 = vperm.xlu1 %15134, %v21424_v41   ;;  %v21430_v41 = vld [vmem:[#allocation29_spill] sm:$0xff] }
 0x153   :  { %2051 = vperm.xlu0 %15135, %v21425_v17   ;;  %v21431_v17 = vld [vmem:[#allocation36_spill] sm:$0xff] }
 0x154   :  { %v998_v0 = vpop.permute.xlu1 %997  ;;  %v1010_v34 = vpop.permute.xlu0 %1009 }
 0x156   :  { %2039 = vperm.xlu1 %15134, %v21426_v51  }
 0x157   :  { %2059 = vperm.xlu0 %15135, %v21427_v13   ;;  %v1037_v13 = vmul.f32 %v15775_v59, %v978_v49  ;;  %v1036_v49 = vmul.f32 %v15775_v59, %v974_v23  ;;  %v1038_v23 = vmul.f32 %v15775_v59, %v982_v15 }
 0x158   :  { %v16007_v55 = vpop.permute.xlu1 %1005  ;;  %v16009_v12 = vpop.permute.xlu0 %1017 }
 0x15a   :  { %2047 = vperm.xlu1 %15134, %v21428_v7   ;;  %v957_v7 = vmul.f32 %v15782_v61, %v15948_v26 }
 0x15b   :  { %2067 = vperm.xlu0 %15135, %v21429_v46   ;;  %v15239_v46 = vmov 3  }
 0x15c   :  { %v16013_v38 = vpop.permute.xlu1 %1013  ;;  %v16015_v45 = vpop.permute.xlu0 %1025  ;;  %v1053_v25 = vadd.f32 %v1037_v13, %v957_v7  ;;  %v962_v13 = vmul.f32 %v15782_v61, %v15971_v56  ;;  %v1052_v7 = vadd.f32 %v1036_v49, %v956_v40  ;;  %v1054_v40 = vadd.f32 %v1038_v23, %v958_v54 }
 0x15e   :  { %2055 = vperm.xlu1 %15134, %v21430_v41   ;;  %v959_v41 = vmul.f32 %v15782_v61, %v15950_v29  ;;  %v960_v29 = vmul.f32 %v15782_v61, %v15965_v47  ;;  %v16055_v47 = vmul.f32 %v15782_v61, %v15979_v1  ;;  %v16067_v1 = vmul.f32 %v15782_v61, %v15985_v44 }
 0x15f   :  { %2075 = vperm.xlu0 %15135, %v21431_v17   ;;  %v21433_v17 = vld [vmem:[#allocation37_spill] sm:$0xff]  ;;  %v1043_v44 = vmul.f32 %v15775_v59, %v1002_v60 }
 0x160   :  { %v16019_v20 = vpop.permute.xlu1 %1021  ;;  %v16021_v51 = vpop.permute.xlu0 %1033 }
 0x162   :  { %2063 = vperm.xlu1 %15134, %v21432_v33   ;;  %v1039_v33 = vmul.f32 %v15775_v59, %v986_v50  ;;  %v1041_v50 = vmul.f32 %v15775_v59, %v994_v62  ;;  %v1040_v62 = vmul.f32 %v15775_v59, %v990_v52 }
 0x163   :  { %15136 = vset.pattern.permute.xlu0 %v15239_v46 }
 0x164   :  { %2616 = vperm.xlu0 %15136, %v21433_v17   ;;  %v16032_v37 = vpop.permute.xlu1 %1029  ;;  %v1074_v14 = vpop.permute.xlu0 %1073  ;;  %v963_v17 = vmul.f32 %v15782_v61, %v15967_v2  ;;  %v16059_v2 = vmul.f32 %v15782_v61, %v15983_v36  ;;  %v1055_v15 = vadd.f32 %v1039_v33, %v959_v41  ;;  %v16071_v36 = vmul.f32 %v15782_v61, %v15989_v35 }
 0x165   :  { %v1133_v26 = vmul.f32 %v15787_v63, %v1074_v14  ;;  %v965_v14 = vmul.f32 %v15782_v61, %v15973_v39  ;;  %v16078_v33 = vmul.f32 %v15782_v61, %v15991_v58  ;;  %v1045_v35 = vmul.f32 %v15775_v59, %v1010_v34 }
 0x166   :  { %2071 = vperm.xlu1 %15134, %v21434_v21   ;;  %v1056_v60 = vadd.f32 %v1040_v62, %v960_v29 }
 0x167   :  { %v1149_v48 = vadd.f32 %v1133_v26, %v1053_v25 }
 0x168   :  { %2628 = vperm.xlu0 %15136, %v15609_v19   ;;  %v1070_v56 = vpop.permute.xlu1 %1069  ;;  %v1082_v39 = vpop.permute.xlu0 %1081  ;;  %v21435_v19 = vld [vmem:[#allocation35_spill] sm:$0xff] }
 0x169   :  { %v1132_v25 = vmul.f32 %v15787_v63, %v1070_v56  ;;  %v1135_v57 = vmul.f32 %v15787_v63, %v1082_v39  ;;  %v1165_v26 = vadd.f32 %v15816_v42, %v1149_v48  ;;  %v1057_v56 = vadd.f32 %v1041_v50, %v961_v27  ;;  %v21436_v50 = vld [vmem:[#allocation39_spill] sm:$0xff] }
 0x16a   :  { %2079 = vperm.xlu1 %15134, %v21435_v19   ;;  %v1042_v39 = vmul.f32 %v15775_v59, %v998_v0  ;;  %v16090_v27 = vmul.f32 %v15782_v61, %v15995_v24 }
 0x16b   :  { %v1148_v41 = vadd.f32 %v1132_v25, %v1052_v7  ;;  %v1151_v49 = vadd.f32 %v1135_v57, %v1055_v15  ;;  %vm1181_vm2 = vcmp.gt.f32.partialorder %v1165_v26, 0.0  ;;  %v1197_v0 = vmul.f32 0.2, %v1165_v26 }
 0x16c   :  { %2636 = vperm.xlu0 %15136, %v15617_v4   ;;  %v1078_v52 = vpop.permute.xlu1 %1077  ;;  %v1090_v48 = vpop.permute.xlu0 %1089  ;;  %v1059_v15 = vadd.f32 %v1043_v44, %v963_v17  ;;  %v1058_v25 = vadd.f32 %v1042_v39, %v962_v13  ;;  %v1061_v57 = vadd.f32 %v1045_v35, %v965_v14  ;;  %v1047_v39 = vmul.f32 %v15775_v59, %v16009_v12 }
 0x16d   :  { %v1164_v19 = vadd.f32 %v15816_v42, %v1148_v41  ;;  %v1167_v21 = vadd.f32 %v15816_v42, %v1151_v49  ;;  %v1134_v58 = vmul.f32 %v15787_v63, %v1078_v52  ;;  %v1137_v54 = vmul.f32 %v15787_v63, %v1090_v48 }
 0x16e   :  { %15137 = vset.pattern.permute.xlu1 %v15239_v46  ;;  %v1044_v41 = vmul.f32 %v15775_v59, %v16007_v55  ;;  %v1213_v17 = vsel %vm1181_vm2, %v1165_v26, %v1197_v0  ;;  %v1046_v35 = vmul.f32 %v15775_v59, %v16013_v38 }
 0x16f   :  { %v1150_v34 = vadd.f32 %v1134_v58, %v1054_v40  ;;  %v1153_v23 = vadd.f32 %v1137_v54, %v1057_v56  ;;  %2620 = vperm.xlu1 %15137, %v21436_v50   ;;  %vm1180_vm3 = vcmp.gt.f32.partialorder %v1164_v19, 0.0  ;;  %v1196_v7 = vmul.f32 0.2, %v1164_v19 }
 0x170   :  { %2644 = vperm.xlu0 %15136, %v15630_v11   ;;  %v1086_v61 = vpop.permute.xlu1 %1085  ;;  %v1098_v24 = vpop.permute.xlu0 %1097  ;;  %v1199_v40 = vmul.f32 0.2, %v1167_v21  ;;  %vm1183_vm4 = vcmp.gt.f32.partialorder %v1167_v21, 0.0  ;;  %v1060_v44 = vadd.f32 %v1044_v41, %v964_v8 }
 0x171   :  { %v1166_v29 = vadd.f32 %v15816_v42, %v1150_v34  ;;  %v1136_v46 = vmul.f32 %v15787_v63, %v1086_v61  ;;  %v1139_v62 = vmul.f32 %v15787_v63, %v1098_v24  ;;  %v1169_v49 = vadd.f32 %v15816_v42, %v1153_v23  ;;  %v21437_v34 = vld [vmem:[#allocation41_spill] sm:$0xff] }
 0x172   :  { %v1212_v56 = vsel %vm1180_vm3, %v1164_v19, %v1196_v7  ;;  %v1215_v8 = vsel %vm1183_vm4, %v1167_v21, %v1199_v40  ;;  %v1063_v7 = vadd.f32 %v1047_v39, %v16055_v47  ;;  %v1062_v21 = vadd.f32 %v1046_v35, %v16059_v2 }
 0x173   :  { %v1152_v13 = vadd.f32 %v1136_v46, %v1056_v60  ;;  %v1155_v14 = vadd.f32 %v1139_v62, %v1059_v15  ;;  %14067 = vmatprep.mubr.msk.f32.mxu1 %vm665_vm0, %v1212_v56  ;;  %2624 = vperm.xlu1 %15137, %v15600_v10   ;;  %vm1182_vm5 = vcmp.gt.f32.partialorder %v1166_v29, 0.0  ;;  %v1198_v55 = vmul.f32 0.2, %v1166_v29 }
 0x174   :  { %2652 = vperm.xlu0 %15136, %v15641_v16   ;;  %14068 = vmatmul.mubr.msk.f32.vlgmr.msra.gmra.mrb[16].mxu1 %vm665_vm0, %v1213_v17  ;;  %v1094_v19 = vpop.permute.xlu1 %1093  ;;  %v1106_v26 = vpop.permute.xlu0 %1105  ;;  %vm1185_vm6 = vcmp.gt.f32.partialorder %v1169_v49, 0.0  ;;  %v1201_v38 = vmul.f32 0.2, %v1169_v49  ;;  %v1049_v15 = vmul.f32 %v15775_v59, %v16015_v45  ;;  %v1048_v56 = vmul.f32 %v15775_v59, %v16019_v20 }
 0x175   :  { %v1168_v52 = vadd.f32 %v15816_v42, %v1152_v13  ;;  %v1138_v48 = vmul.f32 %v15787_v63, %v1094_v19  ;;  %v1141_v58 = vmul.f32 %v15787_v63, %v1106_v26  ;;  %14144 = vmatpush3.msra.mxu1 %v15628_v9  ;;  %v1171_v12 = vadd.f32 %v15816_v42, %v1155_v14 }
 0x176   :  { %v1214_v54 = vsel %vm1182_vm5, %v1166_v29, %v1198_v55  ;;  %14195 = vmatprep.subr.mxu1 %v15628_v9  ;;  %v1217_v2 = vsel %vm1185_vm6, %v1169_v49, %v1201_v38  ;;  %v1065_v40 = vadd.f32 %v1049_v15, %v16067_v1  ;;  %v1051_v17 = vmul.f32 %v15775_v59, %v16021_v51 }
 0x177   :  { %v1154_v60 = vadd.f32 %v1138_v48, %v1058_v25  ;;  %v1157_v0 = vadd.f32 %v1141_v58, %v1061_v57  ;;  %14070 = vmatprep.mubr.msk.f32.mxu1 %vm665_vm0, %v1214_v54  ;;  %2632 = vperm.xlu1 %15137, %v21437_v34   ;;  %vm1184_vm7 = vcmp.gt.f32.partialorder %v1168_v52, 0.0  ;;  %v1200_v23 = vmul.f32 0.2, %v1168_v52 }
 0x178   :  { %2660 = vperm.xlu0 %15136, %v15649_v22   ;;  %14071 = vmatmul.mubr.msk.f32.gmra.mrb[18].mxu1 %vm665_vm0, %v1215_v8  ;;  %v1102_v9 = vpop.permute.xlu1 %1101  ;;  %v1114_v25 = vpop.permute.xlu0 %1113  ;;  %vm1187_vm8 = vcmp.gt.f32.partialorder %v1171_v12, 0.0  ;;  %v1203_v29 = vmul.f32 0.2, %v1171_v12  ;;  %v1067_v48 = vadd.f32 %v1051_v17, %v16078_v33  ;;  %v1050_v58 = vmul.f32 %v15775_v59, %v16032_v37 }
 0x179   :  { %v1170_v57 = vadd.f32 %v15816_v42, %v1154_v60  ;;  %v1173_v41 = vadd.f32 %v15816_v42, %v1157_v0  ;;  %v1140_v61 = vmul.f32 %v15787_v63, %v1102_v9  ;;  %v1143_v24 = vmul.f32 %v15787_v63, %v1114_v25 }
 0x17a   :  { %v1216_v47 = vsel %vm1184_vm7, %v1168_v52, %v1200_v23  ;;  %v1219_v20 = vsel %vm1187_vm8, %v1171_v12, %v1203_v29  ;;  %v1064_v52 = vadd.f32 %v1048_v56, %v16071_v36  ;;  %v1066_v15 = vadd.f32 %v1050_v58, %v16090_v27  ;;  %v21444_v58 = vld [vmem:[#allocation12_spill] sm:$0xff] }
 0x17b   :  { %v1156_v45 = vadd.f32 %v1140_v61, %v1060_v44  ;;  %v1159_v46 = vadd.f32 %v1143_v24, %v1063_v7  ;;  %14073 = vmatprep.mubr.msk.f32.mxu1 %vm665_vm0, %v1216_v47  ;;  %2640 = vperm.xlu1 %15137, %v15620_v6   ;;  %vm1186_vm9 = vcmp.gt.f32.partialorder %v1170_v57, 0.0  ;;  %v1202_v62 = vmul.f32 0.2, %v1170_v57 }
 0x17c   :  { %2668 = vperm.xlu0 %15136, %v15657_v43   ;;  %14074 = vmatmul.mubr.msk.f32.gmra.mrb[20].mxu1 %vm665_vm0, %v1217_v2  ;;  %v1110_v49 = vpop.permute.xlu1 %1109  ;;  %v1122_v13 = vpop.permute.xlu0 %1121  ;;  %v1205_v39 = vmul.f32 0.2, %v1173_v41  ;;  %vm1189_vm10 = vcmp.gt.f32.partialorder %v1173_v41, 0.0 }
 0x17d   :  { %v1172_v14 = vadd.f32 %v15816_v42, %v1156_v45  ;;  %v1142_v55 = vmul.f32 %v15787_v63, %v1110_v49  ;;  %v1145_v44 = vmul.f32 %v15787_v63, %v1122_v13  ;;  %v1175_v1 = vadd.f32 %v15816_v42, %v1159_v46  ;;  %v21438_v13 = vld [vmem:[#allocation6_spill] sm:$0xff] }
 0x17e   :  { %v1218_v35 = vsel %vm1186_vm9, %v1170_v57, %v1202_v62  ;;  %v1221_v0 = vsel %vm1189_vm10, %v1173_v41, %v1205_v39 }
 0x17f   :  { %v1158_v51 = vadd.f32 %v1142_v55, %v1062_v21  ;;  %v1161_v19 = vadd.f32 %v1145_v44, %v1065_v40  ;;  %14076 = vmatprep.mubr.msk.f32.mxu1 %vm665_vm0, %v1218_v35  ;;  %2648 = vperm.xlu1 %15137, %v15633_v30   ;;  %vm1188_vm11 = vcmp.gt.f32.partialorder %v1172_v14, 0.0  ;;  %v1204_v26 = vmul.f32 0.2, %v1172_v14  ;;  %v21439_v55 = vld [vmem:[#allocation11_spill] sm:$0xff]  ;;  %v21441_v35 = vld [vmem:[#allocation13_spill] sm:$0xff] }
 0x180   :  { %2676 = vperm.xlu0 %15136, %v21405_v53   ;;  %14077 = vmatmul.mubr.msk.f32.gmra.mrb[22].mxu1 %vm665_vm0, %v1219_v20  ;;  %v1118_v8 = vpop.permute.xlu1 %1117  ;;  %v1130_v12 = vpop.permute.xlu0 %1129  ;;  %vm1191_vm12 = vcmp.gt.f32.partialorder %v1175_v1, 0.0  ;;  %v1207_v23 = vmul.f32 0.2, %v1175_v1 }
 0x181   :  { %v1174_v54 = vadd.f32 %v15816_v42, %v1158_v51  ;;  %v1144_v38 = vmul.f32 %v15787_v63, %v1118_v8  ;;  %v1147_v60 = vmul.f32 %v15787_v63, %v1130_v12  ;;  %v1177_v36 = vadd.f32 %v15816_v42, %v1161_v19  ;;  %v21442_v19 = vld [vmem:[#allocation10_spill] sm:$0xff]  ;;  %v21445_v8 = vld [vmem:[#allocation17_spill] sm:$0xff] }
 0x182   :  { %v1220_v33 = vsel %vm1188_vm11, %v1172_v14, %v1204_v26  ;;  %v1223_v61 = vsel %vm1191_vm12, %v1175_v1, %v1207_v23  ;;  %v21440_v1 = vld [vmem:[#allocation8_spill] sm:$0xff]  ;;  %v21443_v26 = vld [vmem:[#allocation15_spill] sm:$0xff]  ;;  %v21449_v23 = vld [vmem:[#allocation21_spill] sm:$0xff] }
 0x183   :  { %v1160_v59 = vadd.f32 %v1144_v38, %v1064_v52  ;;  %v1163_v37 = vadd.f32 %v1147_v60, %v1067_v48  ;;  %14079 = vmatprep.mubr.msk.f32.mxu1 %vm665_vm0, %v1220_v33  ;;  %2656 = vperm.xlu1 %15137, %v15644_v18   ;;  %vm1190_vm13 = vcmp.gt.f32.partialorder %v1174_v54, 0.0  ;;  %v1206_v7 = vmul.f32 0.2, %v1174_v54  ;;  %v21446_v38 = vld [vmem:[#allocation14_spill] sm:$0xff]  ;;  %v21447_v60 = vld [vmem:[#allocation19_spill] sm:$0xff]  ;;  %v21448_v33 = vld [vmem:[#allocation16_spill] sm:$0xff] }
 0x184   :  { %2700 = vperm.xlu0 %15136, %v21407_v3   ;;  %14080 = vmatmul.mubr.msk.f32.gmra.mrb[24].mxu1 %vm665_vm0, %v1221_v0  ;;  %v1126_v21 = vpop.permute.xlu1 %1125  ;;  %v1209_v24 = vmul.f32 0.2, %v1177_v36  ;;  %vm1193_vm15 = vcmp.gt.f32.partialorder %v1177_v36, 0.0 }
 0x185   :  { %v1176_v9 = vadd.f32 %v15816_v42, %v1160_v59  ;;  %v1146_v25 = vmul.f32 %v15787_v63, %v1126_v21  ;;  %v16163_v57 = vpop.permute.xlu0 %1847  ;;  %v1222_v41 = vsel %vm1190_vm13, %v1174_v54, %v1206_v7  ;;  %v1179_v47 = vadd.f32 %v15816_v42, %v1163_v37  ;;  %v21450_v7 = vld [vmem:[#allocation18_spill] sm:$0xff]  ;;  %v21451_v21 = vld [vmem:[#allocation23_spill] sm:$0xff] }
 0x186   :  { %14082 = vmatprep.mubr.msk.f32.mxu1 %vm665_vm0, %v1222_v41  ;;  %v1225_v62 = vsel %vm1193_vm15, %v1177_v36, %v1209_v24  ;;  %v21453_v41 = vld [vmem:[#allocation25_spill] sm:$0xff] }
 0x187   :  { %v1162_v2 = vadd.f32 %v1146_v25, %v1066_v15  ;;  %2664 = vperm.xlu1 %15137, %v15652_v5   ;;  %vm1192_vm14 = vcmp.gt.f32.partialorder %v1176_v9, 0.0  ;;  %v1208_v29 = vmul.f32 0.2, %v1176_v9  ;;  %v1211_v56 = vmul.f32 0.2, %v1179_v47  ;;  %v21452_v25 = vld [vmem:[#allocation20_spill] sm:$0xff] }
 0x188   :  { %2708 = vperm.xlu0 %15136, %v21408_v32   ;;  %14083 = vmatmul.mubr.msk.f32.gmra.mrb[26].mxu1 %vm665_vm0, %v1223_v61  ;;  %vm1195_vm2 = vcmp.gt.f32.partialorder %v1179_v47, 0.0 }
 0x189   :  { %v1178_v63 = vadd.f32 %v15816_v42, %v1162_v2  ;;  %v16172_v27 = vpop.permute.xlu1 %1843  ;;  %v16174_v45 = vpop.permute.xlu0 %1859  ;;  %v1224_v46 = vsel %vm1192_vm14, %v1176_v9, %v1208_v29  ;;  %v1227_v14 = vsel %vm1195_vm2, %v1179_v47, %v1211_v56  ;;  %v21454_v47 = vld [vmem:[#allocation22_spill] sm:$0xff]  ;;  %v21455_v2 = vld [vmem:[#allocation27_spill] sm:$0xff] }
 0x18a   :  { %14085 = vmatprep.mubr.msk.f32.mxu1 %vm665_vm0, %v1224_v46  ;;  %v21456_v46 = vld [vmem:[#allocation24_spill] sm:$0xff] }
 0x18b   :  { %2672 = vperm.xlu1 %15137, %v15660_v31   ;;  %vm1194_vm1 = vcmp.gt.f32.partialorder %v1178_v63, 0.0  ;;  %v1210_v40 = vmul.f32 0.2, %v1178_v63 }
 0x18c   :  { %2716 = vperm.xlu0 %15136, %v21410_v28   ;;  %14086 = vmatmul.mubr.msk.f32.gmra.mrb[28].mxu1 %vm665_vm0, %v1225_v62  ;;  %v21457_v62 = vld [vmem:[#allocation29_spill] sm:$0xff] }
 0x18d   :  { %v16180_v17 = vpop.permute.xlu1 %1851  ;;  %v1226_v42 = vsel %vm1194_vm1, %v1178_v63, %v1210_v40 }
 0x18e   :  { %v16182_v49 = vpop.permute.xlu0 %1867  ;;  %14088 = vmatprep.mubr.msk.f32.mxu1 %vm665_vm0, %v1226_v42  ;;  %v21458_v42 = vld [vmem:[#allocation26_spill] sm:$0xff] }
 0x18f   :  { %2696 = vperm.xlu1 %15137, %v21438_v13  }
 0x190   :  { %2724 = vperm.xlu0 %15136, %v21439_v55   ;;  %14089 = vmatmul.mubr.msk.f32.gmra.mrb[30].mxu1 %vm665_vm0, %v1227_v14  ;;  %v21459_v14 = vld [vmem:[#allocation31_spill] sm:$0xff]  ;;  %v15240_v55 = vmov 4  }
 0x191   :  { %v16188_v44 = vpop.permute.xlu1 %1855 }
 0x192   :  { %v16190_v39 = vpop.permute.xlu0 %1875 }
 0x193   :  { %2704 = vperm.xlu1 %15137, %v21440_v1  }
 0x194   :  { %2732 = vperm.xlu0 %15136, %v21441_v35  }
 0x195   :  { %v16194_v20 = vpop.permute.xlu1 %1863 }
 0x196   :  { %v16196_v51 = vpop.permute.xlu0 %1883 }
 0x197   :  { %2712 = vperm.xlu1 %15137, %v21442_v19  }
 0x198   :  { %2740 = vperm.xlu0 %15136, %v21443_v26   ;;  %v21463_v26 = vld [vmem:[#allocation35_spill] sm:$0xff] }
 0x199   :  { %v16200_v52 = vpop.permute.xlu1 %1871 }
 0x19a   :  { %v16202_v48 = vpop.permute.xlu0 %1891 }
 0x19b   :  { %2720 = vperm.xlu1 %15137, %v21444_v58  }
 0x19c   :  { %2748 = vperm.xlu0 %15136, %v21445_v8  }
 0x19d   :  { %v16206_v12 = vpop.permute.xlu1 %1879 }
 0x19e   :  { %v16208_v54 = vpop.permute.xlu0 %1899 }
 0x19f   :  { %2728 = vperm.xlu1 %15137, %v21446_v38  }
 0x1a0   :  { %2756 = vperm.xlu0 %15136, %v21447_v60  }
 0x1a1   :  { %v16212_v0 = vpop.permute.xlu1 %1887 }
 0x1a2   :  { %v1924_v36 = vpop.permute.xlu0 %1923 }
 0x1a3   :  { %2736 = vperm.xlu1 %15137, %v21448_v33  }
 0x1a4   :  { %2796 = vperm.xlu0 %15136, %v21449_v23   ;;  %v21461_v23 = vld [vmem:[#allocation33_spill] sm:$0xff] }
 0x1a5   :  { %v16216_v59 = vpop.permute.xlu1 %1895 }
 0x1a6   :  { %v1932_v37 = vpop.permute.xlu0 %1931 }
 0x1a7   :  { %2744 = vperm.xlu1 %15137, %v21450_v7  }
 0x1a8   :  { %2804 = vperm.xlu0 %15136, %v21451_v21  }
 0x1a9   :  { %v16220_v15 = vpop.permute.xlu1 %1903 }
 0x1aa   :  { %v1940_v9 = vpop.permute.xlu0 %1939 }
 0x1ab   :  { %2752 = vperm.xlu1 %15137, %v21452_v25  }
 0x1ac   :  { %2812 = vperm.xlu0 %15136, %v21453_v41  }
 0x1ad   :  { %v1928_v61 = vpop.permute.xlu1 %1927 }
 0x1ae   :  { %v1948_v24 = vpop.permute.xlu0 %1947 }
 0x1af   :  { %2792 = vperm.xlu1 %15137, %v21454_v47  }
 0x1b0   :  { %2820 = vperm.xlu0 %15136, %v21455_v2   ;;  %v21460_v2 = vld [vmem:[#allocation28_spill] sm:$0xff] }
 0x1b1   :  { %v16226_v29 = vpop.permute.xlu1 %1935 }
 0x1b2   :  { %v16228_v63 = vpop.permute.xlu0 %1955 }
 0x1b3   :  { %2800 = vperm.xlu1 %15137, %v21456_v46  }
 0x1b4   :  { %2828 = vperm.xlu0 %15136, %v21457_v62   ;;  %v16251_v62 = vld [vmem:[%s21088_s7] ss:$0 sm:$0xff] }
 0x1b5   :  { %v16232_v40 = vpop.permute.xlu1 %1943  ;;  %v1988_v25 = vmul.f32 %v16251_v62, %v1932_v37  ;;  %v1987_v32 = vmul.f32 %v16251_v62, %v1928_v61  ;;  %v1992_v61 = vmul.f32 %v16251_v62, %v1948_v24  ;;  %v1989_v24 = vmul.f32 %v16251_v62, %v16226_v29 }
 0x1b6   :  { %v16234_v56 = vpop.permute.xlu0 %1963 }
 0x1b7   :  { %2808 = vperm.xlu1 %15137, %v21458_v42   ;;  %v1986_v42 = vmul.f32 %v16251_v62, %v1924_v36  ;;  %v16268_v36 = vld [vmem:[%s21089_s8] ss:$0 sm:$0xff] }
 0x1b8   :  { %2836 = vperm.xlu0 %15136, %v21459_v14   ;;  %v21462_v14 = vld [vmem:[#allocation30_spill] sm:$0xff] }
 0x1b9   :  { %v16238_v41 = vpop.permute.xlu1 %1951 }
 0x1ba   :  { %v16240_v21 = vpop.permute.xlu0 %1971 }
 0x1bb   :  { %2816 = vperm.xlu1 %15137, %v21460_v2   ;;  %v16259_v2 = vld [vmem:[%s21087_s6] ss:$0 sm:$0xff] }
 0x1bc   :  { %2844 = vperm.xlu0 %15136, %v21461_v23   ;;  %v1906_v23 = vmul.f32 %v16259_v2, %v16172_v27 }
 0x1bd   :  { %v16244_v60 = vpop.permute.xlu1 %1959 }
 0x1be   :  { %v16246_v8 = vpop.permute.xlu0 %1979  ;;  %v2002_v47 = vadd.f32 %v1986_v42, %v1906_v23  ;;  %v1908_v23 = vmul.f32 %v16259_v2, %v16180_v17  ;;  %v1990_v42 = vmul.f32 %v16251_v62, %v1940_v9 }
 0x1bf   :  { %2824 = vperm.xlu1 %15137, %v21462_v14  }
 0x1c0   :  { %2852 = vperm.xlu0 %15136, %v21463_v26   ;;  %v21464_v26 = vld [vmem:[#allocation32_spill] sm:$0xff] }
 0x1c1   :  { %v16263_v46 = vpop.permute.xlu1 %1967 }
 0x1c2   :  { %v2020_v35 = vpop.permute.xlu0 %2019 }
 0x1c3   :  { %v2082_v14 = vmul.f32 %v16268_v36, %v2020_v35  ;;  %2832 = vperm.xlu1 %15137, %v21464_v26   ;;  %v16282_v35 = vld [vmem:[%s21090_s9] ss:$0 sm:$0xff] }
 0x1c4   :  { %15139 = vset.pattern.permute.xlu0 %v15240_v55 }
 0x1c5   :  { %v2098_v28 = vadd.f32 %v2082_v14, %v2002_v47  ;;  %3393 = vperm.xlu0 %15139, %v21436_v50   ;;  %v16274_v27 = vpop.permute.xlu1 %1975  ;;  %v21465_v47 = vld [vmem:[#allocation34_spill] sm:$0xff]  ;;  %v1910_v14 = vmul.f32 %v16259_v2, %v16174_v45  ;;  %v2004_v50 = vadd.f32 %v1988_v25, %v1908_v23  ;;  %v1907_v25 = vmul.f32 %v16259_v2, %v16163_v57 }
 0x1c6   :  { %v2028_v7 = vpop.permute.xlu0 %2027  ;;  %v12775_v45 = vld [vmem:[%s21093_s12 + $0x8] sm:$0xff]  ;;  %v1912_v23 = vmul.f32 %v16259_v2, %v16182_v49  ;;  %v1911_v57 = vmul.f32 %v16259_v2, %v16194_v20  ;;  %v16324_v20 = vmul.f32 %v16259_v2, %v16202_v48 }
 0x1c7   :  { %v2114_v26 = vadd.f32 %v16282_v35, %v2098_v28  ;;  %v2084_v37 = vmul.f32 %v16268_v36, %v2028_v7  ;;  %2840 = vperm.xlu1 %15137, %v21465_v47   ;;  %v2006_v3 = vadd.f32 %v1990_v42, %v1910_v14  ;;  %v21466_v7 = vld [vmem:[#allocation36_spill] sm:$0xff]  ;;  %14091 = vmatprep.subr.mxu0 %v12775_v45 }
 0x1c8   :  { %14092 = vmatpush3.msra.mxu0 %v12775_v45  ;;  %v2003_v49 = vadd.f32 %v1987_v32, %v1907_v25  ;;  %v1913_v32 = vmul.f32 %v16259_v2, %v16200_v52  ;;  %v2008_v29 = vadd.f32 %v1992_v61, %v1912_v23 }
 0x1c9   :  { %3405 = vperm.xlu0 %15139, %v21437_v34   ;;  %v16290_v17 = vpop.permute.xlu1 %1983  ;;  %vm2130_vm3 = vcmp.gt.f32.partialorder %v2114_v26, 0.0  ;;  %v2146_v9 = vmul.f32 0.2, %v2114_v26  ;;  %v2100_v38 = vadd.f32 %v2084_v37, %v2004_v50  ;;  %v1909_v50 = vmul.f32 %v16259_v2, %v16188_v44 }
 0x1ca   :  { %v2036_v33 = vpop.permute.xlu0 %2035  ;;  %v1916_v44 = vmul.f32 %v16259_v2, %v16196_v51  ;;  %v16329_v51 = vmul.f32 %v16259_v2, %v16206_v12 }
 0x1cb   :  { %v2086_v28 = vmul.f32 %v16268_v36, %v2036_v33  ;;  %2848 = vperm.xlu1 %15137, %v21466_v7   ;;  %v2162_v47 = vsel %vm2130_vm3, %v2114_v26, %v2146_v9  ;;  %v1914_v26 = vmul.f32 %v16259_v2, %v16190_v39  ;;  %v2116_v39 = vadd.f32 %v16282_v35, %v2100_v38 }
 0x1cc   :  { %14145 = vmatprep.mubr.msk.f32.mxu1 %vm665_vm0, %v2162_v47  ;;  %v16333_v38 = vmul.f32 %v16259_v2, %v16208_v54  ;;  %v1996_v54 = vmul.f32 %v16251_v62, %v16234_v56 }
 0x1cd   :  { %v2102_v33 = vadd.f32 %v2086_v28, %v2006_v3  ;;  %3413 = vperm.xlu0 %15139, %v15620_v6   ;;  %v2024_v42 = vpop.permute.xlu1 %2023  ;;  %v1994_v3 = vmul.f32 %v16251_v62, %v16228_v63  ;;  %v21467_v28 = vld [vmem:[#allocation37_spill] sm:$0xff]  ;;  %v2005_v63 = vadd.f32 %v1989_v24, %v1909_v50  ;;  %vm2132_vm5 = vcmp.gt.f32.partialorder %v2116_v39, 0.0 }
 0x1ce   :  { %v2083_v37 = vmul.f32 %v16268_v36, %v2024_v42  ;;  %v2044_v47 = vpop.permute.xlu0 %2043  ;;  %v1993_v24 = vmul.f32 %v16251_v62, %v16238_v41 }
 0x1cf   :  { %v2088_v14 = vmul.f32 %v16268_v36, %v2044_v47  ;;  %15138 = vset.pattern.permute.xlu1 %v15240_v55  ;;  %v1991_v55 = vmul.f32 %v16251_v62, %v16232_v40  ;;  %v2118_v52 = vadd.f32 %v16282_v35, %v2102_v33  ;;  %v2010_v61 = vadd.f32 %v1994_v3, %v1914_v26 }
 0x1d0   :  { %v2099_v9 = vadd.f32 %v2083_v37, %v2003_v49  ;;  %3389 = vperm.xlu1 %15138, %v21467_v28   ;;  %v2148_v49 = vmul.f32 0.2, %v2116_v39 }
 0x1d1   :  { %3421 = vperm.xlu0 %15139, %v15633_v30   ;;  %v2032_v48 = vpop.permute.xlu1 %2031  ;;  %v2104_v25 = vadd.f32 %v2088_v14, %v2008_v29  ;;  %v2007_v50 = vadd.f32 %v1991_v55, %v1911_v57  ;;  %vm2134_vm6 = vcmp.gt.f32.partialorder %v2118_v52, 0.0  ;;  %v2150_v26 = vmul.f32 0.2, %v2118_v52 }
 0x1d2   :  { %v2115_v45 = vadd.f32 %v16282_v35, %v2099_v9  ;;  %v2085_v23 = vmul.f32 %v16268_v36, %v2032_v48  ;;  %v2052_v12 = vpop.permute.xlu0 %2051  ;;  %v2012_v9 = vadd.f32 %v1996_v54, %v1916_v44  ;;  %v2164_v41 = vsel %vm2132_vm5, %v2116_v39, %v2148_v49 }
 0x1d3   :  { %v2090_v42 = vmul.f32 %v16268_v36, %v2052_v12  ;;  %v2120_v56 = vadd.f32 %v16282_v35, %v2104_v25  ;;  %v1998_v55 = vmul.f32 %v16251_v62, %v16240_v21  ;;  %v2009_v12 = vadd.f32 %v1993_v24, %v1913_v32  ;;  %v16365_v21 = vld [vmem:[%s21091_s10] sm:$0xff] }
 0x1d4   :  { %vm2131_vm4 = vcmp.gt.f32.partialorder %v2115_v45, 0.0  ;;  %v2147_v40 = vmul.f32 0.2, %v2115_v45  ;;  %v2101_v33 = vadd.f32 %v2085_v23, %v2005_v63  ;;  %3397 = vperm.xlu1 %15138, %v15600_v10   ;;  %v21468_v23 = vld [vmem:[#allocation40_spill] sm:$0xff]  ;;  %v1995_v44 = vmul.f32 %v16251_v62, %v16244_v60 }
 0x1d5   :  { %3429 = vperm.xlu0 %15139, %v15644_v18   ;;  %v2040_v37 = vpop.permute.xlu1 %2039  ;;  %v2106_v48 = vadd.f32 %v2090_v42, %v2010_v61  ;;  %v2166_v61 = vsel %vm2134_vm6, %v2118_v52, %v2150_v26  ;;  %v2152_v49 = vmul.f32 0.2, %v2120_v56  ;;  %vm2136_vm8 = vcmp.gt.f32.partialorder %v2120_v56, 0.0 }
 0x1d6   :  { %v2117_v47 = vadd.f32 %v16282_v35, %v2101_v33  ;;  %v2087_v3 = vmul.f32 %v16268_v36, %v2040_v37  ;;  %v2060_v14 = vpop.permute.xlu0 %2059  ;;  %v2163_v29 = vsel %vm2131_vm4, %v2115_v45, %v2147_v40  ;;  %v1917_v33 = vmul.f32 %v16259_v2, %v16212_v0 }
 0x1d7   :  { %v2092_v57 = vmul.f32 %v16268_v36, %v2060_v14  ;;  %14146 = vmatmul.mubr.msk.f32.vlgmr.msra.gmra.mrb[32].mxu1 %vm665_vm0, %v2163_v29  ;;  %v2122_v60 = vadd.f32 %v16282_v35, %v2106_v48  ;;  %v2014_v37 = vadd.f32 %v1998_v55, %v16324_v20  ;;  %v2011_v26 = vadd.f32 %v1995_v44, %v16329_v51 }
 0x1d8   :  { %v2103_v63 = vadd.f32 %v2087_v3, %v2007_v50  ;;  %3401 = vperm.xlu1 %15138, %v21468_v23   ;;  %14148 = vmatprep.mubr.msk.f32.mxu1 %vm665_vm0, %v2164_v41  ;;  %vm2133_vm7 = vcmp.gt.f32.partialorder %v2117_v47, 0.0  ;;  %v2149_v25 = vmul.f32 0.2, %v2117_v47  ;;  %v1997_v3 = vmul.f32 %v16251_v62, %v16263_v46 }
 0x1d9   :  { %3437 = vperm.xlu0 %15139, %v15652_v5   ;;  %v2048_v45 = vpop.permute.xlu1 %2047  ;;  %14196 = vmatpush3.msra.mxu1 %v16365_v21  ;;  %v2108_v40 = vadd.f32 %v2092_v57, %v2012_v9  ;;  %v2168_v57 = vsel %vm2136_vm8, %v2120_v56, %v2152_v49  ;;  %vm2138_vm10 = vcmp.gt.f32.partialorder %v2122_v60, 0.0 }
 0x1da   :  { %v2119_v39 = vadd.f32 %v16282_v35, %v2103_v63  ;;  %v2089_v54 = vmul.f32 %v16268_v36, %v2048_v45  ;;  %v2068_v32 = vpop.permute.xlu0 %2067  ;;  %v2165_v42 = vsel %vm2133_vm7, %v2117_v47, %v2149_v25  ;;  %14247 = vmatprep.subr.mxu1 %v16365_v21  ;;  %v2000_v47 = vmul.f32 %v16251_v62, %v16246_v8 }
 0x1db   :  { %v2094_v52 = vmul.f32 %v16268_v36, %v2068_v32  ;;  %14149 = vmatmul.mubr.msk.f32.gmra.mrb[34].mxu1 %vm665_vm0, %v2165_v42  ;;  %v2124_v20 = vadd.f32 %v16282_v35, %v2108_v40  ;;  %v2154_v8 = vmul.f32 0.2, %v2122_v60  ;;  %v1919_v63 = vmul.f32 %v16259_v2, %v16216_v59 }
 0x1dc   :  { %v2105_v50 = vadd.f32 %v2089_v54, %v2009_v12  ;;  %3409 = vperm.xlu1 %15138, %v15617_v4   ;;  %14151 = vmatprep.mubr.msk.f32.mxu1 %vm665_vm0, %v2166_v61  ;;  %vm2135_vm9 = vcmp.gt.f32.partialorder %v2119_v39, 0.0  ;;  %v2151_v24 = vmul.f32 0.2, %v2119_v39  ;;  %v2016_v56 = vadd.f32 %v2000_v47, %v16333_v38 }
 0x1dd   :  { %3445 = vperm.xlu0 %15139, %v15660_v31   ;;  %v2056_v0 = vpop.permute.xlu1 %2055  ;;  %v2110_v51 = vadd.f32 %v2094_v52, %v2014_v37  ;;  %v1999_v25 = vmul.f32 %v16251_v62, %v16274_v27  ;;  %v2013_v44 = vadd.f32 %v1997_v3, %v1917_v33  ;;  %v2170_v59 = vsel %vm2138_vm10, %v2122_v60, %v2154_v8 }
 0x1de   :  { %v2121_v14 = vadd.f32 %v16282_v35, %v2105_v50  ;;  %v2091_v29 = vmul.f32 %v16268_v36, %v2056_v0  ;;  %v2076_v9 = vpop.permute.xlu0 %2075  ;;  %v2167_v48 = vsel %vm2135_vm9, %v2119_v39, %v2151_v24  ;;  %vm2140_vm12 = vcmp.gt.f32.partialorder %v2124_v20, 0.0 }
 0x1df   :  { %14152 = vmatmul.mubr.msk.f32.gmra.mrb[36].mxu1 %vm665_vm0, %v2167_v48  ;;  %v2096_v46 = vmul.f32 %v16268_v36, %v2076_v9  ;;  %v2126_v54 = vadd.f32 %v16282_v35, %v2110_v51  ;;  %v2156_v38 = vmul.f32 0.2, %v2124_v20  ;;  %v2015_v40 = vadd.f32 %v1999_v25, %v1919_v63 }
 0x1e0   :  { %v2107_v41 = vadd.f32 %v2091_v29, %v2011_v26  ;;  %3417 = vperm.xlu1 %15138, %v15630_v11   ;;  %14154 = vmatprep.mubr.msk.f32.mxu1 %vm665_vm0, %v2168_v57  ;;  %vm2137_vm11 = vcmp.gt.f32.partialorder %v2121_v14, 0.0  ;;  %v2153_v55 = vmul.f32 0.2, %v2121_v14  ;;  %v2001_v33 = vmul.f32 %v16251_v62, %v16290_v17 }
 0x1e1   :  { %3469 = vperm.xlu0 %15139, %v21438_v13   ;;  %v2064_v12 = vpop.permute.xlu1 %2063  ;;  %v2112_v27 = vadd.f32 %v2096_v46, %v2016_v56  ;;  %v1921_v37 = vmul.f32 %v16259_v2, %v16220_v15  ;;  %v2172_v3 = vsel %vm2140_vm12, %v2124_v20, %v2156_v38  ;;  %v2158_v29 = vmul.f32 0.2, %v2126_v54  ;;  %v16436_v46 = vld [vmem:[%s21093_s12] sm:$0xff] }
 0x1e2   :  { %v2123_v45 = vadd.f32 %v16282_v35, %v2107_v41  ;;  %v2093_v61 = vmul.f32 %v16268_v36, %v2064_v12  ;;  %v2169_v39 = vsel %vm2137_vm11, %v2121_v14, %v2153_v55  ;;  %vm2142_vm15 = vcmp.gt.f32.partialorder %v2126_v54, 0.0  ;;  %21472 = vst [vmem:[#allocation56_spill] sm:$0xff] %v16436_v46  ;;  %14117 = vmatprep.subr.mxu0 %v16436_v46 }
 0x1e3   :  { %v16402_v32 = vpop.permute.xlu0 %2616  ;;  %14155 = vmatmul.mubr.msk.f32.gmra.mrb[38].mxu1 %vm665_vm0, %v2169_v39  ;;  %v2128_v0 = vadd.f32 %v16282_v35, %v2112_v27  ;;  %v2017_v48 = vadd.f32 %v2001_v33, %v1921_v37  ;;  %v2174_v56 = vsel %vm2142_vm15, %v2126_v54, %v2158_v29  ;;  %v21483_v29 = vld [vmem:[#allocation7_spill] sm:$0xff] }
 0x1e4   :  { %v2109_v42 = vadd.f32 %v2093_v61, %v2013_v44  ;;  %3425 = vperm.xlu1 %15138, %v15641_v16   ;;  %14157 = vmatprep.mubr.msk.f32.mxu1 %vm665_vm0, %v2170_v59  ;;  %vm2139_vm13 = vcmp.gt.f32.partialorder %v2123_v45, 0.0  ;;  %v2155_v49 = vmul.f32 0.2, %v2123_v45 }
 0x1e5   :  { %3477 = vperm.xlu0 %15139, %v21440_v1   ;;  %v2072_v52 = vpop.permute.xlu1 %2071  ;;  %v2160_v25 = vmul.f32 0.2, %v2128_v0  ;;  %vm2144_vm2 = vcmp.gt.f32.partialorder %v2128_v0, 0.0  ;;  %v21509_v1 = vld [vmem:[#allocation29_spill] sm:$0xff] }
 0x1e6   :  { %v2125_v50 = vadd.f32 %v16282_v35, %v2109_v42  ;;  %v2095_v60 = vmul.f32 %v16268_v36, %v2072_v52  ;;  %v2171_v24 = vsel %vm2139_vm13, %v2123_v45, %v2155_v49  ;;  %v21476_v42 = vld [vmem:[#allocation14_spill] sm:$0xff] }
 0x1e7   :  { %v16415_v26 = vpop.f32.mrb[0].mxu1  ;;  %v16417_v47 = vpop.permute.xlu0 %2628  ;;  %14158 = vmatmul.mubr.msk.f32.gmra.mrb[40].mxu1 %vm665_vm0, %v2171_v24  ;;  %v2176_v38 = vsel %vm2144_vm2, %v2128_v0, %v2160_v25  ;;  %v21480_v24 = vld [vmem:[#allocation16_spill] sm:$0xff] }
 0x1e8   :  { %21469 = vst [vmem:[#allocation53_spill] sm:$0xff] %v16415_v26  ;;  %v2111_v14 = vadd.f32 %v2095_v60, %v2015_v40  ;;  %v16422_v17 = vpop.f32.mrb[1].mxu1  ;;  %3433 = vperm.xlu1 %15138, %v15649_v22   ;;  %14160 = vmatprep.mubr.msk.f32.mxu1 %vm665_vm0, %v2172_v3  ;;  %vm2141_vm14 = vcmp.gt.f32.partialorder %v2125_v50, 0.0  ;;  %v2157_v9 = vmul.f32 0.2, %v2125_v50  ;;  %v21479_v60 = vld [vmem:[#allocation5_spill] sm:$0xff] }
 0x1e9   :  { %21470 = vst [vmem:[#allocation54_spill] sm:$0xff] %v16422_v17  ;;  %3485 = vperm.xlu0 %15139, %v21442_v19   ;;  %v2080_v15 = vpop.permute.xlu1 %2079  ;;  %v21505_v17 = vld [vmem:[#allocation23_spill] sm:$0xff] }
 0x1ea   :  { %v2127_v57 = vadd.f32 %v16282_v35, %v2111_v14  ;;  %v2097_v20 = vmul.f32 %v16268_v36, %v2080_v15  ;;  %v2173_v41 = vsel %vm2141_vm14, %v2125_v50, %v2157_v9  ;;  %v21484_v15 = vld [vmem:[#allocation18_spill] sm:$0xff] }
 0x1eb   :  { %v16429_v51 = vpop.f32.mrb[2].mxu1  ;;  %v16431_v8 = vpop.permute.xlu0 %2636  ;;  %14161 = vmatmul.mubr.msk.f32.gmra.mrb[42].mxu1 %vm665_vm0, %v2173_v41  ;;  %v21487_v41 = vld [vmem:[#allocation9_spill] sm:$0xff] }
 0x1ec   :  { %21471 = vst [vmem:[#allocation55_spill] sm:$0xff] %v16429_v51  ;;  %v2113_v55 = vadd.f32 %v2097_v20, %v2017_v48  ;;  %v16438_v63 = vpop.f32.mrb[3].mxu1  ;;  %3441 = vperm.xlu1 %15138, %v15657_v43   ;;  %vm2143_vm1 = vcmp.gt.f32.partialorder %v2127_v57, 0.0  ;;  %14163 = vmatprep.mubr.msk.f32.mxu1 %vm665_vm0, %v2174_v56  ;;  %v2159_v12 = vmul.f32 0.2, %v2127_v57 }
 0x1ed   :  { %21473 = vst [vmem:[#allocation57_spill] sm:$0xff] %v16438_v63  ;;  %3493 = vperm.xlu0 %15139, %v21444_v58   ;;  %v21503_v63 = vld [vmem:[#allocation21_spill] sm:$0xff] }
 0x1ee   :  { %v2129_v44 = vadd.f32 %v16282_v35, %v2113_v55  ;;  %v16445_v45 = vpop.permute.xlu1 %2620  ;;  %v2175_v59 = vsel %vm2143_vm1, %v2127_v57, %v2159_v12  ;;  %v21488_v55 = vld [vmem:[#allocation20_spill] sm:$0xff] }
 0x1ef   :  { %v16448_v61 = vpop.f32.mrb[4].mxu1  ;;  %v16450_v39 = vpop.permute.xlu0 %2644  ;;  %14164 = vmatmul.mubr.msk.f32.gmra.mrb[44].mxu1 %vm665_vm0, %v2175_v59  ;;  %v21491_v59 = vld [vmem:[#allocation11_spill] sm:$0xff] }
 0x1f0   :  { %21474 = vst [vmem:[#allocation58_spill] sm:$0xff] %v16448_v61  ;;  %v16452_v54 = vpop.f32.mrb[5].mxu1  ;;  %3449 = vperm.xlu1 %15138, %v21405_v53   ;;  %vm2145_vm3 = vcmp.gt.f32.partialorder %v2129_v44, 0.0  ;;  %v2161_v27 = vmul.f32 0.2, %v2129_v44  ;;  %14166 = vmatprep.mubr.msk.f32.mxu1 %vm665_vm0, %v2176_v38  ;;  %v21492_v38 = vld [vmem:[#allocation22_spill] sm:$0xff] }
 0x1f1   :  { %21475 = vst [vmem:[#allocation59_spill] sm:$0xff] %v16452_v54  ;;  %3501 = vperm.xlu0 %15139, %v21476_v42   ;;  %v21499_v61 = vld [vmem:[#allocation17_spill] sm:$0xff]  ;;  %v21501_v54 = vld [vmem:[#allocation19_spill] sm:$0xff] }
 0x1f2   :  { %v16458_v49 = vpop.permute.xlu1 %2624  ;;  %v2177_v40 = vsel %vm2145_vm3, %v2129_v44, %v2161_v27 }
 0x1f3   :  { %v16460_v52 = vpop.f32.mrb[6].mxu1  ;;  %v16462_v33 = vpop.permute.xlu0 %2652  ;;  %14167 = vmatmul.mubr.msk.f32.gmra.mrb[46].mxu1 %vm665_vm0, %v2177_v40 }
 0x1f4   :  { %21477 = vst [vmem:[#allocation60_spill] sm:$0xff] %v16460_v52  ;;  %v16464_v50 = vpop.f32.mrb[7].mxu1  ;;  %3473 = vperm.xlu1 %15138, %v21479_v60  }
 0x1f5   :  { %21478 = vst [vmem:[#allocation61_spill] sm:$0xff] %v16464_v50  ;;  %3509 = vperm.xlu0 %15139, %v21480_v24  }
 0x1f6   :  { %v16469_v37 = vpop.permute.xlu1 %2632 }
 0x1f7   :  { %v16471_v3 = vpop.f32.mrb[8].mxu1  ;;  %v16473_v0 = vpop.permute.xlu0 %2660 }
 0x1f8   :  { %21481 = vst [vmem:[#allocation62_spill] sm:$0xff] %v16471_v3  ;;  %v16475_v14 = vpop.f32.mrb[9].mxu1  ;;  %3481 = vperm.xlu1 %15138, %v21483_v29   ;;  %v21495_v3 = vld [vmem:[#allocation13_spill] sm:$0xff] }
 0x1f9   :  { %21482 = vst [vmem:[#allocation63_spill] sm:$0xff] %v16475_v14  ;;  %3517 = vperm.xlu0 %15139, %v21484_v15   ;;  %v21496_v14 = vld [vmem:[#allocation24_spill] sm:$0xff] }
 0x1fa   :  { %v16479_v9 = vpop.permute.xlu1 %2640 }
 0x1fb   :  { %v16481_v48 = vpop.f32.mrb[10].mxu1  ;;  %v16483_v57 = vpop.permute.xlu0 %2668 }
 0x1fc   :  { %21485 = vst [vmem:[#allocation64_spill] sm:$0xff] %v16481_v48  ;;  %v16485_v20 = vpop.f32.mrb[11].mxu1  ;;  %3489 = vperm.xlu1 %15138, %v21487_v41  }
 0x1fd   :  { %21486 = vst [vmem:[#allocation65_spill] sm:$0xff] %v16485_v20  ;;  %3525 = vperm.xlu0 %15139, %v21488_v55   ;;  %v21497_v55 = vld [vmem:[#allocation15_spill] sm:$0xff] }
 0x1fe   :  { %v16489_v56 = vpop.permute.xlu1 %2648 }
 0x1ff   :  { %v16491_v25 = vpop.f32.mrb[12].mxu1  ;;  %v16493_v12 = vpop.permute.xlu0 %2676 }
 0x200   :  { %21489 = vst [vmem:[#allocation66_spill] sm:$0xff] %v16491_v25  ;;  %v16495_v44 = vpop.f32.mrb[13].mxu1  ;;  %3497 = vperm.xlu1 %15138, %v21491_v59   ;;  %v2682_v59 = vmul.f32 %v16259_v2, %v16417_v47 }
 0x201   :  { %21490 = vst [vmem:[#allocation67_spill] sm:$0xff] %v16495_v44  ;;  %3565 = vperm.xlu0 %15139, %v21492_v38   ;;  %v21498_v44 = vld [vmem:[#allocation26_spill] sm:$0xff] }
 0x202   :  { %v16499_v27 = vpop.permute.xlu1 %2656 }
 0x203   :  { %v16501_v40 = vpop.f32.mrb[14].mxu1  ;;  %v2701_v48 = vpop.permute.xlu0 %2700 }
 0x204   :  { %21493 = vst [vmem:[#allocation68_spill] sm:$0xff] %v16501_v40  ;;  %v16503_v20 = vpop.f32.mrb[15].mxu1  ;;  %3505 = vperm.xlu1 %15138, %v21495_v3   ;;  %v21500_v40 = vld [vmem:[#allocation28_spill] sm:$0xff]  ;;  %v21510_v3 = vld [vmem:[#allocation31_spill] sm:$0xff] }
 0x205   :  { %21494 = vst [vmem:[#allocation69_spill] sm:$0xff] %v16503_v20  ;;  %3573 = vperm.xlu0 %15139, %v21496_v14   ;;  %v21502_v14 = vld [vmem:[#allocation30_spill] sm:$0xff] }
 0x206   :  { %v16507_v25 = vpop.permute.xlu1 %2664 }
 0x207   :  { %v2709_v52 = vpop.permute.xlu0 %2708 }
 0x208   :  { %3513 = vperm.xlu1 %15138, %v21497_v55   ;;  %v2760_v55 = vmul.f32 %v16251_v62, %v2701_v48  ;;  %v2762_v31 = vmul.f32 %v16251_v62, %v2709_v52  ;;  %v2684_v52 = vmul.f32 %v16259_v2, %v16431_v8 }
 0x209   :  { %3581 = vperm.xlu0 %15139, %v21498_v44   ;;  %v21504_v44 = vld [vmem:[#allocation32_spill] sm:$0xff] }
 0x20a   :  { %v16511_v50 = vpop.permute.xlu1 %2672  ;;  %v2778_v47 = vadd.f32 %v2762_v31, %v2682_v59 }
 0x20b   :  { %v2717_v38 = vpop.permute.xlu0 %2716 }
 0x20c   :  { %3521 = vperm.xlu1 %15138, %v21499_v61   ;;  %v15241_v61 = vmov 5  }
 0x20d   :  { %3589 = vperm.xlu0 %15139, %v21500_v40   ;;  %v21506_v40 = vld [vmem:[#allocation34_spill] sm:$0xff] }
 0x20e   :  { %v2697_v15 = vpop.permute.xlu1 %2696 }
 0x20f   :  { %v16515_v20 = vpop.permute.xlu0 %2724  ;;  %v2759_v48 = vmul.f32 %v16251_v62, %v2697_v15  ;;  %v2688_v15 = vmul.f32 %v16259_v2, %v16462_v33  ;;  %v16578_v33 = vmul.f32 %v16259_v2, %v16473_v0  ;;  %v16594_v0 = vmul.f32 %v16259_v2, %v16493_v12 }
 0x210   :  { %3529 = vperm.xlu1 %15138, %v21501_v54   ;;  %v21507_v54 = vld [vmem:[#allocation25_spill] sm:$0xff] }
 0x211   :  { %3597 = vperm.xlu0 %15139, %v21502_v14  }
 0x212   :  { %v2705_v51 = vpop.permute.xlu1 %2704 }
 0x213   :  { %v16519_v24 = vpop.permute.xlu0 %2732 }
 0x214   :  { %3569 = vperm.xlu1 %15138, %v21503_v63  }
 0x215   :  { %3605 = vperm.xlu0 %15139, %v21504_v44   ;;  %v21508_v44 = vld [vmem:[#allocation27_spill] sm:$0xff] }
 0x216   :  { %v2713_v26 = vpop.permute.xlu1 %2712 }
 0x217   :  { %v16523_v42 = vpop.permute.xlu0 %2740 }
 0x218   :  { %3577 = vperm.xlu1 %15138, %v21505_v17  }
 0x219   :  { %3613 = vperm.xlu0 %15139, %v21506_v40  }
 0x21a   :  { %v16527_v58 = vpop.permute.xlu1 %2720 }
 0x21b   :  { %v16529_v19 = vpop.permute.xlu0 %2748 }
 0x21c   :  { %3585 = vperm.xlu1 %15138, %v21507_v54   ;;  %v2680_v54 = vmul.f32 %v16259_v2, %v16445_v45 }
 0x21d   :  { %3621 = vperm.xlu0 %15139, %v21466_v7  }
 0x21e   :  { %v16533_v14 = vpop.permute.xlu1 %2728 }
 0x21f   :  { %v16535_v63 = vpop.permute.xlu0 %2756 }
 0x220   :  { %3593 = vperm.xlu1 %15138, %v21508_v44  }
 0x221   :  { %15140 = vset.pattern.permute.xlu0 %v15241_v61 }
 0x222   :  { %4162 = vperm.xlu0 %15140, %v21467_v28   ;;  %v16539_v17 = vpop.permute.xlu1 %2736  ;;  %v2776_v28 = vadd.f32 %v2760_v55, %v2680_v54  ;;  %v2679_v54 = vmul.f32 %v16259_v2, %v16402_v32  ;;  %v2686_v55 = vmul.f32 %v16259_v2, %v16450_v39  ;;  %v2761_v32 = vmul.f32 %v16251_v62, %v2705_v51 }
 0x223   :  { %v2797_v40 = vpop.permute.xlu0 %2796  ;;  %v2685_v51 = vmul.f32 %v16259_v2, %v16479_v9 }
 0x224   :  { %3601 = vperm.xlu1 %15138, %v21509_v1   ;;  %v2856_v44 = vmul.f32 %v16268_v36, %v2797_v40  ;;  %v21511_v40 = vld [vmem:[#allocation33_spill] sm:$0xff] }
 0x226   :  { %4174 = vperm.xlu0 %15140, %v21468_v23   ;;  %v16544_v7 = vpop.permute.xlu1 %2744  ;;  %v2872_v23 = vadd.f32 %v2856_v44, %v2776_v28  ;;  %v2681_v28 = vmul.f32 %v16259_v2, %v16458_v49  ;;  %v2683_v49 = vmul.f32 %v16259_v2, %v16469_v37 }
 0x227   :  { %v2805_v13 = vpop.permute.xlu0 %2804 }
 0x228   :  { %3609 = vperm.xlu1 %15138, %v21510_v3   ;;  %v2858_v45 = vmul.f32 %v16268_v36, %v2805_v13  ;;  %v2764_v13 = vmul.f32 %v16251_v62, %v2717_v38  ;;  %v2888_v8 = vadd.f32 %v16282_v35, %v2872_v23  ;;  %v21512_v38 = vld [vmem:[#allocation35_spill] sm:$0xff]  ;;  %v16586_v23 = vmul.f32 %v16259_v2, %v16483_v57 }
 0x229   :  { %v2777_v57 = vadd.f32 %v2761_v32, %v2681_v28 }
 0x22a   :  { %4182 = vperm.xlu0 %15140, %v15617_v4   ;;  %v16552_v1 = vpop.permute.xlu1 %2752  ;;  %v2775_v4 = vadd.f32 %v2759_v48, %v2679_v54  ;;  %v2874_v31 = vadd.f32 %v2858_v45, %v2778_v47  ;;  %v16590_v48 = vmul.f32 %v16259_v2, %v16489_v56  ;;  %v2780_v45 = vadd.f32 %v2764_v13, %v2684_v52  ;;  %v21513_v13 = vld [vmem:[#allocation39_spill] sm:$0xff] }
 0x22b   :  { %v2813_v46 = vpop.permute.xlu0 %2812  ;;  %v2763_v54 = vmul.f32 %v16251_v62, %v2713_v26  ;;  %v2920_v47 = vmul.f32 0.2, %v2888_v8  ;;  %vm2904_vm4 = vcmp.gt.f32.partialorder %v2888_v8, 0.0  ;;  %v16606_v26 = vmul.f32 %v16259_v2, %v16499_v27 }
 0x22c   :  { %3617 = vperm.xlu1 %15138, %v21511_v40   ;;  %v2860_v59 = vmul.f32 %v16268_v36, %v2813_v46  ;;  %v2766_v46 = vmul.f32 %v16251_v62, %v16515_v20  ;;  %v2890_v12 = vadd.f32 %v16282_v35, %v2874_v31  ;;  %v2765_v31 = vmul.f32 %v16251_v62, %v16527_v58 }
 0x22e   :  { %4190 = vperm.xlu0 %15140, %v15630_v11   ;;  %v2793_v44 = vpop.permute.xlu1 %2792  ;;  %v2782_v32 = vadd.f32 %v2766_v46, %v2686_v55  ;;  %vm2906_vm7 = vcmp.gt.f32.partialorder %v2890_v12, 0.0 }
 0x22f   :  { %v2855_v40 = vmul.f32 %v16268_v36, %v2793_v44  ;;  %v2821_v39 = vpop.permute.xlu0 %2820 }
 0x230   :  { %3625 = vperm.xlu1 %15138, %v21512_v38   ;;  %v2862_v52 = vmul.f32 %v16268_v36, %v2821_v39 }
 0x231   :  { %v2871_v37 = vadd.f32 %v2855_v40, %v2775_v4  ;;  %v2876_v40 = vadd.f32 %v2860_v59, %v2780_v45 }
 0x232   :  { %4198 = vperm.xlu0 %15140, %v15641_v16   ;;  %v2801_v9 = vpop.permute.xlu1 %2800  ;;  %v2878_v46 = vadd.f32 %v2862_v52, %v2782_v32 }
 0x233   :  { %v2887_v44 = vadd.f32 %v16282_v35, %v2871_v37  ;;  %v2857_v56 = vmul.f32 %v16268_v36, %v2801_v9  ;;  %v2829_v4 = vpop.permute.xlu0 %2828  ;;  %v2768_v37 = vmul.f32 %v16251_v62, %v16519_v24  ;;  %v2779_v9 = vadd.f32 %v2763_v54, %v2683_v49 }
 0x234   :  { %15141 = vset.pattern.permute.xlu1 %v15241_v61  ;;  %v2892_v55 = vadd.f32 %v16282_v35, %v2876_v40  ;;  %v2864_v24 = vmul.f32 %v16268_v36, %v2829_v4  ;;  %v2922_v49 = vmul.f32 0.2, %v2890_v12  ;;  %v2767_v4 = vmul.f32 %v16251_v62, %v16533_v14 }
 0x235   :  { %v2873_v20 = vadd.f32 %v2857_v56, %v2777_v57  ;;  %4166 = vperm.xlu1 %15141, %v21513_v13   ;;  %vm2903_vm5 = vcmp.gt.f32.partialorder %v2887_v44, 0.0  ;;  %v2919_v28 = vmul.f32 0.2, %v2887_v44  ;;  %v2936_v57 = vsel %vm2904_vm4, %v2888_v8, %v2920_v47 }
 0x236   :  { %4206 = vperm.xlu0 %15140, %v15649_v22   ;;  %v2809_v61 = vpop.permute.xlu1 %2808  ;;  %v2784_v56 = vadd.f32 %v2768_v37, %v2688_v15  ;;  %v2770_v8 = vmul.f32 %v16251_v62, %v16523_v42  ;;  %v2781_v47 = vadd.f32 %v2765_v31, %v2685_v51  ;;  %v2894_v15 = vadd.f32 %v16282_v35, %v2878_v46 }
 0x237   :  { %v2889_v39 = vadd.f32 %v16282_v35, %v2873_v20  ;;  %v2859_v27 = vmul.f32 %v16268_v36, %v2809_v61  ;;  %v2837_v59 = vpop.permute.xlu0 %2836  ;;  %v2935_v45 = vsel %vm2903_vm5, %v2887_v44, %v2919_v28  ;;  %v2938_v51 = vsel %vm2906_vm7, %v2890_v12, %v2922_v49 }
 0x238   :  { %14197 = vmatprep.mubr.msk.f32.mxu1 %vm665_vm0, %v2935_v45  ;;  %v2880_v42 = vadd.f32 %v2864_v24, %v2784_v56  ;;  %v2924_v32 = vmul.f32 0.2, %v2892_v55  ;;  %vm2908_vm9 = vcmp.gt.f32.partialorder %v2892_v55, 0.0  ;;  %v2769_v31 = vmul.f32 %v16251_v62, %v16539_v17 }
 0x239   :  { %v2875_v58 = vadd.f32 %v2859_v27, %v2779_v9  ;;  %4170 = vperm.xlu1 %15141, %v15600_v10   ;;  %14198 = vmatmul.mubr.msk.f32.vlgmr.msra.gmra.mrb[48].mxu1 %vm665_vm0, %v2936_v57  ;;  %vm2905_vm6 = vcmp.gt.f32.partialorder %v2889_v39, 0.0  ;;  %v2921_v54 = vmul.f32 0.2, %v2889_v39  ;;  %v2691_v9 = vmul.f32 %v16259_v2, %v16507_v25 }
 0x23a   :  { %4214 = vperm.xlu0 %15140, %v15657_v43   ;;  %v2817_v44 = vpop.permute.xlu1 %2816  ;;  %14248 = vmatpush3.msra.mxu1 %v16365_v21  ;;  %v2866_v12 = vmul.f32 %v16268_v36, %v2837_v59  ;;  %v2786_v25 = vadd.f32 %v2770_v8, %v16578_v33  ;;  %v2940_v17 = vsel %vm2908_vm9, %v2892_v55, %v2924_v32  ;;  %v2926_v24 = vmul.f32 0.2, %v2894_v15 }
 0x23b   :  { %v2891_v40 = vadd.f32 %v16282_v35, %v2875_v58  ;;  %v2861_v52 = vmul.f32 %v16268_v36, %v2817_v44  ;;  %v2845_v20 = vpop.permute.xlu0 %2844  ;;  %v2937_v28 = vsel %vm2905_vm6, %v2889_v39, %v2921_v54  ;;  %14299 = vmatprep.subr.mxu1 %v16365_v21  ;;  %v2772_v21 = vmul.f32 %v16251_v62, %v16529_v19 }
 0x23c   :  { %14200 = vmatprep.mubr.msk.f32.mxu1 %vm665_vm0, %v2937_v28  ;;  %v2783_v39 = vadd.f32 %v2767_v4, %v16590_v48  ;;  %v2896_v19 = vadd.f32 %v16282_v35, %v2880_v42  ;;  %vm2910_vm11 = vcmp.gt.f32.partialorder %v2894_v15, 0.0  ;;  %v2785_v58 = vadd.f32 %v2769_v31, %v16606_v26  ;;  %v16677_v42 = vld [vmem:[%s21092_s11] ss:$0 sm:$0xff] }
 0x23d   :  { %v2877_v37 = vadd.f32 %v2861_v52, %v2781_v47  ;;  %4178 = vperm.xlu1 %15141, %v21437_v34   ;;  %14201 = vmatmul.mubr.msk.f32.gmra.mrb[50].mxu1 %vm665_vm0, %v2938_v51  ;;  %vm2907_vm8 = vcmp.gt.f32.partialorder %v2891_v40, 0.0  ;;  %v2923_v14 = vmul.f32 0.2, %v2891_v40  ;;  %v2788_v49 = vadd.f32 %v2772_v21, %v16586_v23 }
 0x23e   :  { %4222 = vperm.xlu0 %15140, %v21405_v53   ;;  %v2825_v61 = vpop.permute.xlu1 %2824  ;;  %v2882_v54 = vadd.f32 %v2866_v12, %v2786_v25  ;;  %v2868_v33 = vmul.f32 %v16268_v36, %v2845_v20  ;;  %v2771_v55 = vmul.f32 %v16251_v62, %v16544_v7  ;;  %v2774_v4 = vmul.f32 %v16251_v62, %v16535_v63 }
 0x23f   :  { %v2893_v27 = vadd.f32 %v16282_v35, %v2877_v37  ;;  %v2863_v45 = vmul.f32 %v16268_v36, %v2825_v61  ;;  %v2853_v57 = vpop.permute.xlu0 %2852  ;;  %v2939_v46 = vsel %vm2907_vm8, %v2891_v40, %v2923_v14  ;;  %v2773_v23 = vmul.f32 %v16251_v62, %v16552_v1 }
 0x240   :  { %14203 = vmatprep.mubr.msk.f32.mxu1 %vm665_vm0, %v2939_v46  ;;  %v2942_v40 = vsel %vm2910_vm11, %v2894_v15, %v2926_v24  ;;  %v2928_v52 = vmul.f32 0.2, %v2896_v19  ;;  %vm2912_vm13 = vcmp.gt.f32.partialorder %v2896_v19, 0.0  ;;  %v2693_v63 = vmul.f32 %v16259_v2, %v16511_v50 }
 0x241   :  { %v2879_v59 = vadd.f32 %v2863_v45, %v2783_v39  ;;  %4186 = vperm.xlu1 %15141, %v15620_v6   ;;  %14204 = vmatmul.mubr.msk.f32.gmra.mrb[52].mxu1 %vm665_vm0, %v2940_v17  ;;  %vm2909_vm10 = vcmp.gt.f32.partialorder %v2893_v27, 0.0  ;;  %v2925_v48 = vmul.f32 0.2, %v2893_v27  ;;  %v2898_v28 = vadd.f32 %v16282_v35, %v2882_v54  ;;  %v12760_v45 = vld [vmem:[%s21083_s2 + $0x88] sm:$0xff] }
 0x242   :  { %4246 = vperm.xlu0 %15140, %v21479_v60   ;;  %v2833_v56 = vpop.permute.xlu1 %2832  ;;  %v2884_v1 = vadd.f32 %v2868_v33, %v2788_v49  ;;  %v2870_v62 = vmul.f32 %v16268_v36, %v2853_v57  ;;  %v2787_v51 = vadd.f32 %v2771_v55, %v2691_v9  ;;  %v2790_v50 = vadd.f32 %v2774_v4, %v16594_v0  ;;  %v12759_v9 = vld [vmem:[%s21083_s2 + $0x80] sm:$0xff] }
 0x243   :  { %v2895_v8 = vadd.f32 %v16282_v35, %v2879_v59  ;;  %v2865_v47 = vmul.f32 %v16268_v36, %v2833_v56  ;;  %v2941_v44 = vsel %vm2909_vm10, %v2893_v27, %v2925_v48  ;;  %v2944_v61 = vsel %vm2912_vm13, %v2896_v19, %v2928_v52  ;;  %v12761_v56 = vld [vmem:[%s21083_s2 + $0x90] sm:$0xff] }
 0x244   :  { %v16664_v26 = vpop.permute.xlu0 %3393  ;;  %14206 = vmatprep.mubr.msk.f32.mxu1 %vm665_vm0, %v2941_v44  ;;  %v2789_v39 = vadd.f32 %v2773_v23, %v2693_v63  ;;  %v2900_v57 = vadd.f32 %v16282_v35, %v2884_v1  ;;  %v2886_v46 = vadd.f32 %v2870_v62, %v2790_v50  ;;  %v2930_v17 = vmul.f32 0.2, %v2898_v28  ;;  %v21514_v63 = vld [vmem:[#allocation11_spill] sm:$0xff] }
 0x245   :  { %v2881_v20 = vadd.f32 %v2865_v47, %v2785_v58  ;;  %4194 = vperm.xlu1 %15141, %v15633_v30   ;;  %14207 = vmatmul.mubr.msk.f32.gmra.mrb[54].mxu1 %vm665_vm0, %v2942_v40  ;;  %vm2911_vm12 = vcmp.gt.f32.partialorder %v2895_v8, 0.0  ;;  %v2927_v7 = vmul.f32 0.2, %v2895_v8  ;;  %vm2914_vm15 = vcmp.gt.f32.partialorder %v2898_v28, 0.0 }
 0x246   :  { %4254 = vperm.xlu0 %15140, %v21483_v29   ;;  %v2841_v15 = vpop.permute.xlu1 %2840  ;;  %v2902_v4 = vadd.f32 %v16282_v35, %v2886_v46  ;;  %v2946_v23 = vsel %vm2914_vm15, %v2898_v28, %v2930_v17  ;;  %v2932_v52 = vmul.f32 0.2, %v2900_v57  ;;  %vm2916_vm2 = vcmp.gt.f32.partialorder %v2900_v57, 0.0  ;;  %v12763_v28 = vld [vmem:[%s21083_s2 + $0xa0] sm:$0xff] }
 0x247   :  { %v2897_v32 = vadd.f32 %v16282_v35, %v2881_v20  ;;  %v2867_v37 = vmul.f32 %v16268_v36, %v2841_v15  ;;  %v14069_v14 = vpop.f32.mrb[16].mxu1  ;;  %v2943_v2 = vsel %vm2911_vm12, %v2895_v8, %v2927_v7 }
 0x248   :  { %v1348_v21 = vadd.f32 %v14069_v14, %v16677_v42  ;;  %v1342_v31 = vpop.f32.mrb[17].mxu1  ;;  %v16683_v12 = vpop.permute.xlu0 %3405  ;;  %14209 = vmatprep.mubr.msk.f32.mxu1 %vm665_vm0, %v2943_v2  ;;  %v21515_v14 = vld [vmem:[#allocation56_spill] sm:$0xff]  ;;  %v12764_v2 = vld [vmem:[%s21083_s2 + $0xa8] sm:$0xff]  ;;  %vm2918_vm4 = vcmp.gt.f32.partialorder %v2902_v4, 0.0 }
 0x249   :  { %v2883_v27 = vadd.f32 %v2867_v37, %v2787_v51  ;;  %v1343_v0 = vadd.f32 %v16677_v42, %v1342_v31  ;;  %4202 = vperm.xlu1 %15141, %v15644_v18   ;;  %14210 = vmatmul.mubr.msk.f32.gmra.mrb[56].mxu1 %vm665_vm0, %v2944_v61  ;;  %vm2913_vm14 = vcmp.gt.f32.partialorder %v2897_v32, 0.0  ;;  %v2929_v19 = vmul.f32 0.2, %v2897_v32  ;;  %v16739_v31 = vld [vmem:[%s21093_s12 + $0x10] sm:$0xff] }
 0x24a   :  { %4262 = vperm.xlu0 %15140, %v21487_v41   ;;  %v2849_v25 = vpop.permute.xlu1 %2848  ;;  %v1439_v58 = vmul.f32 %v12760_v45, %v1348_v21  ;;  %v21516_v61 = vld [vmem:[#allocation51_spill] sm:$0xff]  ;;  %v21517_v45 = vld [vmem:[#allocation13_spill] sm:$0xff] }
 0x24b   :  { %v2899_v24 = vadd.f32 %v16282_v35, %v2883_v27  ;;  %v2869_v59 = vmul.f32 %v16268_v36, %v2849_v25  ;;  %v14072_v48 = vpop.f32.mrb[18].mxu1  ;;  %v1438_v49 = vmul.f32 %v12759_v9, %v1343_v0  ;;  %v2945_v8 = vsel %vm2913_vm14, %v2897_v32, %v2929_v19  ;;  %v12762_v36 = vld [vmem:[%s21083_s2 + $0x98] sm:$0xff]  ;;  %v21545_v41 = vld [vmem:[#allocation65_spill] sm:$0xff] }
 0x24c   :  { %v1358_v54 = vadd.f32 %v14072_v48, %v16677_v42  ;;  %v1352_v33 = vpop.f32.mrb[19].mxu1  ;;  %v16704_v55 = vpop.permute.xlu0 %3413  ;;  %14212 = vmatprep.mubr.msk.f32.mxu1 %vm665_vm0, %v2945_v8  ;;  %v2948_v9 = vsel %vm2916_vm2, %v2900_v57, %v2932_v52  ;;  %v12766_v48 = vld [vmem:[%s21083_s2 + $0xb8] sm:$0xff] }
 0x24d   :  { %v2885_v47 = vadd.f32 %v2869_v59, %v2789_v39  ;;  %v1353_v44 = vadd.f32 %v16677_v42, %v1352_v33  ;;  %14093 = vmatprep.mubr.msk.f32.mxu0 %vm665_vm0, %v1438_v49  ;;  %vm2915_vm1 = vcmp.gt.f32.partialorder %v2899_v24, 0.0  ;;  %4210 = vperm.xlu1 %15141, %v15652_v5   ;;  %v2931_v40 = vmul.f32 0.2, %v2899_v24  ;;  %v12765_v59 = vld [vmem:[%s21083_s2 + $0xb0] sm:$0xff] }
 0x24e   :  { %14094 = vmatmul.mubr.msk.f32.vlgmr.msra.gmra.mrb[0].mxu0 %vm665_vm0, %v1439_v58  ;;  %4270 = vperm.xlu0 %15140, %v21514_v63   ;;  %v1441_v15 = vmul.f32 %v12762_v36, %v1358_v54  ;;  %v2934_v39 = vmul.f32 0.2, %v2902_v4  ;;  %v21518_v58 = vld [vmem:[#allocation6_spill] sm:$0xff] }
 0x24f   :  { %v2901_v20 = vadd.f32 %v16282_v35, %v2885_v47  ;;  %v1440_v7 = vmul.f32 %v12761_v56, %v1353_v44  ;;  %14213 = vmatmul.mubr.msk.f32.gmra.mrb[58].mxu1 %vm665_vm0, %v2946_v23  ;;  %v14075_v1 = vpop.f32.mrb[20].mxu1  ;;  %v16720_v62 = vpop.permute.xlu1 %3389  ;;  %v2947_v35 = vsel %vm2915_vm1, %v2899_v24, %v2931_v40  ;;  %14118 = vmatpush3.msra.mxu0 %v21515_v14  ;;  %v21519_v56 = vld [vmem:[#allocation15_spill] sm:$0xff]  ;;  %v12767_v40 = vld [vmem:[%s21083_s2 + $0xc0] sm:$0xff] }
 0x250   :  { %v1368_v51 = vadd.f32 %v14075_v1, %v16677_v42  ;;  %v1362_v32 = vpop.f32.mrb[21].mxu1  ;;  %v16726_v37 = vpop.permute.xlu0 %3421  ;;  %14215 = vmatprep.mubr.msk.f32.mxu1 %vm665_vm0, %v2947_v35  ;;  %14169 = vmatprep.subr.mxu0 %v16739_v31  ;;  %v2950_v54 = vsel %vm2918_vm4, %v2902_v4, %v2934_v39  ;;  %v12768_v4 = vld [vmem:[%s21083_s2 + $0xc8] sm:$0xff] }
 0x251   :  { %v1363_v50 = vadd.f32 %v16677_v42, %v1362_v32  ;;  %14096 = vmatprep.mubr.msk.f32.mxu0 %vm665_vm0, %v1440_v7  ;;  %vm2917_vm3 = vcmp.gt.f32.partialorder %v2901_v20, 0.0  ;;  %v2933_v21 = vmul.f32 0.2, %v2901_v20  ;;  %4218 = vperm.xlu1 %15141, %v21516_v61   ;;  %v21520_v7 = vld [vmem:[#allocation8_spill] sm:$0xff]  ;;  %v21522_v39 = vld [vmem:[#allocation10_spill] sm:$0xff] }
 0x252   :  { %14097 = vmatmul.mubr.msk.f32.gmra.mrb[2].mxu0 %vm665_vm0, %v1441_v15  ;;  %4278 = vperm.xlu0 %15140, %v21517_v45   ;;  %v1443_v19 = vmul.f32 %v12764_v2, %v1368_v51  ;;  %v21521_v15 = vld [vmem:[#allocation17_spill] sm:$0xff]  ;;  %v12769_v2 = vld [vmem:[%s21083_s2 + $0xd0] sm:$0xff] }
 0x253   :  { %v1442_v27 = vmul.f32 %v12763_v28, %v1363_v50  ;;  %14216 = vmatmul.mubr.msk.f32.gmra.mrb[60].mxu1 %vm665_vm0, %v2948_v9  ;;  %v14078_v0 = vpop.f32.mrb[22].mxu1  ;;  %v16746_v46 = vpop.permute.xlu1 %3397  ;;  %v2949_v25 = vsel %vm2917_vm3, %v2901_v20, %v2933_v21  ;;  %v12770_v21 = vld [vmem:[%s21083_s2 + $0xd8] sm:$0xff]  ;;  %v21542_v45 = vld [vmem:[#allocation63_spill] sm:$0xff] }
 0x254   :  { %v1378_v17 = vadd.f32 %v14078_v0, %v16677_v42  ;;  %v1372_v24 = vpop.f32.mrb[23].mxu1  ;;  %v16752_v57 = vpop.permute.xlu0 %3429  ;;  %14218 = vmatprep.mubr.msk.f32.mxu1 %vm665_vm0, %v2949_v25  ;;  %v21523_v0 = vld [vmem:[#allocation19_spill] sm:$0xff] }
 0x255   :  { %v1373_v49 = vadd.f32 %v16677_v42, %v1372_v24  ;;  %14099 = vmatprep.mubr.msk.f32.mxu0 %vm665_vm0, %v1442_v27  ;;  %4242 = vperm.xlu1 %15141, %v21518_v58  }
 0x256   :  { %14100 = vmatmul.mubr.msk.f32.gmra.mrb[4].mxu0 %vm665_vm0, %v1443_v19  ;;  %4286 = vperm.xlu0 %15140, %v21519_v56   ;;  %v1445_v36 = vmul.f32 %v12766_v48, %v1378_v17  ;;  %v12771_v48 = vld [vmem:[%s21083_s2 + $0xe0] sm:$0xff] }
 0x257   :  { %v1444_v33 = vmul.f32 %v12765_v59, %v1373_v49  ;;  %14219 = vmatmul.mubr.msk.f32.gmra.mrb[62].mxu1 %vm665_vm0, %v2950_v54  ;;  %v14081_v8 = vpop.f32.mrb[24].mxu1  ;;  %v16765_v47 = vpop.permute.xlu1 %3401  ;;  %v12772_v54 = vld [vmem:[%s21083_s2 + $0xe8] sm:$0xff] }
 0x258   :  { %v1388_v44 = vadd.f32 %v14081_v8, %v16677_v42  ;;  %v1382_v23 = vpop.f32.mrb[25].mxu1  ;;  %v16771_v52 = vpop.permute.xlu0 %3437  ;;  %v21524_v8 = vld [vmem:[#allocation12_spill] sm:$0xff] }
 0x259   :  { %v1383_v20 = vadd.f32 %v16677_v42, %v1382_v23  ;;  %14102 = vmatprep.mubr.msk.f32.mxu0 %vm665_vm0, %v1444_v33  ;;  %4250 = vperm.xlu1 %15141, %v21520_v7  }
 0x25a   :  { %14103 = vmatmul.mubr.msk.f32.gmra.mrb[6].mxu0 %vm665_vm0, %v1445_v36  ;;  %4294 = vperm.xlu0 %15140, %v21521_v15   ;;  %v1447_v28 = vmul.f32 %v12768_v4, %v1388_v44  ;;  %v21525_v44 = vld [vmem:[#allocation21_spill] sm:$0xff] }
 0x25b   :  { %v1446_v1 = vmul.f32 %v12767_v40, %v1383_v20  ;;  %v14084_v51 = vpop.f32.mrb[26].mxu1  ;;  %v16781_v32 = vpop.permute.xlu1 %3409 }
 0x25c   :  { %v1398_v35 = vadd.f32 %v14084_v51, %v16677_v42  ;;  %v1392_v14 = vpop.f32.mrb[27].mxu1  ;;  %v16787_v50 = vpop.permute.xlu0 %3445  ;;  %v12773_v51 = vld [vmem:[%s21083_s2 + $0xf0] sm:$0xff] }
 0x25d   :  { %v1393_v9 = vadd.f32 %v16677_v42, %v1392_v14  ;;  %14105 = vmatprep.mubr.msk.f32.mxu0 %vm665_vm0, %v1446_v1  ;;  %4258 = vperm.xlu1 %15141, %v21522_v39  }
 0x25e   :  { %14106 = vmatmul.mubr.msk.f32.gmra.mrb[8].mxu0 %vm665_vm0, %v1447_v28  ;;  %4302 = vperm.xlu0 %15140, %v21523_v0   ;;  %v1449_v17 = vmul.f32 %v12770_v21, %v1398_v35  ;;  %v21526_v35 = vld [vmem:[#allocation54_spill] sm:$0xff] }
 0x25f   :  { %v1448_v27 = vmul.f32 %v12769_v2, %v1393_v9  ;;  %v14087_v25 = vpop.f32.mrb[28].mxu1  ;;  %v16797_v19 = vpop.permute.xlu1 %3417  ;;  %v781_v14 = vadd.f32 %v16677_v42, %v21526_v35  ;;  %v12774_v2 = vld [vmem:[%s21083_s2 + $0xf8] sm:$0xff]  ;;  %v859_v9 = vld [vmem:[%s21083_s2] sm:$0xff] }
 0x260   :  { %v1408_v24 = vadd.f32 %v14087_v25, %v16677_v42  ;;  %v1402_v59 = vpop.f32.mrb[29].mxu1  ;;  %v16803_v49 = vpop.permute.xlu0 %3469 }
 0x261   :  { %v1403_v33 = vadd.f32 %v16677_v42, %v1402_v59  ;;  %14108 = vmatprep.mubr.msk.f32.mxu0 %vm665_vm0, %v1448_v27  ;;  %4266 = vperm.xlu1 %15141, %v21524_v8   ;;  %v21527_v27 = vld [vmem:[#allocation14_spill] sm:$0xff]  ;;  %v21529_v59 = vld [vmem:[#allocation53_spill] sm:$0xff] }
 0x262   :  { %14109 = vmatmul.mubr.msk.f32.gmra.mrb[10].mxu0 %vm665_vm0, %v1449_v17  ;;  %4342 = vperm.xlu0 %15140, %v21525_v44   ;;  %v1451_v4 = vmul.f32 %v12772_v54, %v1408_v24  ;;  %v21528_v17 = vld [vmem:[#allocation23_spill] sm:$0xff] }
 0x263   :  { %v1450_v36 = vmul.f32 %v12771_v48, %v1403_v33  ;;  %v14090_v23 = vpop.f32.mrb[30].mxu1  ;;  %v16813_v40 = vpop.permute.xlu1 %3425  ;;  %v786_v48 = vadd.f32 %v21529_v59, %v16677_v42 }
 0x264   :  { %v1418_v20 = vadd.f32 %v14090_v23, %v16677_v42  ;;  %v1412_v1 = vpop.f32.mrb[31].mxu1  ;;  %v16819_v28 = vpop.permute.xlu0 %3477  ;;  %v875_v23 = vmul.f32 %v859_v9, %v781_v14 }
 0x265   :  { %v1413_v21 = vadd.f32 %v16677_v42, %v1412_v1  ;;  %14111 = vmatprep.mubr.msk.f32.mxu0 %vm665_vm0, %v1450_v36  ;;  %4274 = vperm.xlu1 %15141, %v21527_v27   ;;  %v860_v36 = vld [vmem:[%s21083_s2 + $0x8] sm:$0xff]  ;;  %v21530_v1 = vld [vmem:[#allocation57_spill] sm:$0xff] }
 0x266   :  { %14112 = vmatmul.mubr.msk.f32.gmra.mrb[12].mxu0 %vm665_vm0, %v1451_v4  ;;  %4350 = vperm.xlu0 %15140, %v21528_v17   ;;  %v1453_v54 = vmul.f32 %v12774_v2, %v1418_v20  ;;  %v791_v35 = vadd.f32 %v16677_v42, %v21530_v1  ;;  %v861_v4 = vld [vmem:[%s21083_s2 + $0x10] sm:$0xff]  ;;  %v21532_v20 = vld [vmem:[#allocation25_spill] sm:$0xff]  ;;  %v876_v14 = vmul.f32 %v860_v36, %v786_v48 }
 0x267   :  { %v1452_v25 = vmul.f32 %v12773_v51, %v1413_v21  ;;  %v16834_v24 = vpop.permute.xlu1 %3433  ;;  %v21531_v51 = vld [vmem:[#allocation16_spill] sm:$0xff]  ;;  %v21533_v21 = vld [vmem:[#allocation55_spill] sm:$0xff] }
 0x268   :  { %v16838_v33 = vpop.permute.xlu0 %3485  ;;  %v796_v9 = vadd.f32 %v21533_v21, %v16677_v42  ;;  %v877_v1 = vmul.f32 %v861_v4, %v791_v35  ;;  %v21534_v17 = vld [vmem:[#allocation59_spill] sm:$0xff]  ;;  %v21537_v35 = vld [vmem:[#allocation58_spill] sm:$0xff] }
 0x269   :  { %14114 = vmatprep.mubr.msk.f32.mxu0 %vm665_vm0, %v1452_v25  ;;  %4282 = vperm.xlu1 %15141, %v21531_v51   ;;  %v862_v25 = vld [vmem:[%s21083_s2 + $0x18] sm:$0xff]  ;;  %v21536_v48 = vld [vmem:[#allocation27_spill] sm:$0xff]  ;;  %v806_v4 = vadd.f32 %v21537_v35, %v16677_v42 }
 0x26a   :  { %14115 = vmatmul.mubr.msk.f32.gmra.mrb[14].mxu0 %vm665_vm0, %v1453_v54  ;;  %4358 = vperm.xlu0 %15140, %v21532_v20   ;;  %v801_v54 = vadd.f32 %v16677_v42, %v21534_v17  ;;  %v21535_v20 = vld [vmem:[#allocation18_spill] sm:$0xff]  ;;  %v878_v21 = vmul.f32 %v862_v25, %v796_v9  ;;  %v21539_v9 = vld [vmem:[#allocation20_spill] sm:$0xff]  ;;  %v21540_v25 = vld [vmem:[#allocation29_spill] sm:$0xff] }
 0x26b   :  { %14119 = vmatprep.mubr.msk.f32.mxu0 %vm665_vm0, %v875_v23  ;;  %v16853_v2 = vpop.permute.xlu1 %3441  ;;  %v863_v23 = vld [vmem:[%s21083_s2 + $0x20] sm:$0xff]  ;;  %v864_v17 = vld [vmem:[%s21083_s2 + $0x28] sm:$0xff] }
 0x26c   :  { %v16857_v59 = vpop.permute.xlu0 %3493  ;;  %v879_v0 = vmul.f32 %v863_v23, %v801_v54  ;;  %v880_v35 = vmul.f32 %v864_v17, %v806_v4  ;;  %v21541_v54 = vld [vmem:[#allocation60_spill] sm:$0xff] }
 0x26d   :  { %4290 = vperm.xlu1 %15141, %v21535_v20   ;;  %v816_v23 = vadd.f32 %v21541_v54, %v16677_v42  ;;  %v21552_v20 = vld [vmem:[#allocation69_spill] sm:$0xff] }
 0x26e   :  { %14120 = vmatmul.mubr.msk.f32.vlgmr.msra.gmra.mrb[0].mxu0 %vm665_vm0, %v876_v14  ;;  %4366 = vperm.xlu0 %15140, %v21536_v48   ;;  %v21538_v14 = vld [vmem:[#allocation61_spill] sm:$0xff]  ;;  %v851_v53 = vadd.f32 %v16677_v42, %v21552_v20 }
 0x26f   :  { %14122 = vmatprep.mubr.msk.f32.mxu0 %vm665_vm0, %v877_v1  ;;  %v16871_v36 = vpop.permute.xlu1 %3449  ;;  %14170 = vmatpush3.msra.mxu0 %v16739_v31  ;;  %v811_v48 = vadd.f32 %v16677_v42, %v21538_v14  ;;  %v865_v1 = vld [vmem:[%s21083_s2 + $0x30] sm:$0xff]  ;;  %v866_v14 = vld [vmem:[%s21083_s2 + $0x38] sm:$0xff] }
 0x270   :  { %v16875_v44 = vpop.permute.xlu0 %3501  ;;  %v882_v17 = vmul.f32 %v866_v14, %v816_v23  ;;  %v21547_v23 = vld [vmem:[#allocation33_spill] sm:$0xff] }
 0x271   :  { %4298 = vperm.xlu1 %15141, %v21539_v9   ;;  %v881_v56 = vmul.f32 %v865_v1, %v811_v48  ;;  %v21544_v48 = vld [vmem:[#allocation62_spill] sm:$0xff] }
 0x272   :  { %14123 = vmatmul.mubr.msk.f32.gmra.mrb[2].mxu0 %vm665_vm0, %v878_v21  ;;  %4374 = vperm.xlu0 %15140, %v21540_v25   ;;  %v821_v21 = vadd.f32 %v16677_v42, %v21542_v45  ;;  %v21543_v25 = vld [vmem:[#allocation22_spill] sm:$0xff]  ;;  %v826_v1 = vadd.f32 %v21544_v48, %v16677_v42 }
 0x273   :  { %14125 = vmatprep.mubr.msk.f32.mxu0 %vm665_vm0, %v879_v0  ;;  %v16890_v31 = vpop.permute.xlu1 %3473  ;;  %v867_v0 = vld [vmem:[%s21083_s2 + $0x40] sm:$0xff]  ;;  %v868_v45 = vld [vmem:[%s21083_s2 + $0x48] sm:$0xff] }
 0x274   :  { %v16894_v15 = vpop.permute.xlu0 %3509  ;;  %v883_v63 = vmul.f32 %v867_v0, %v821_v21  ;;  %v884_v48 = vmul.f32 %v868_v45, %v826_v1  ;;  %v21548_v21 = vld [vmem:[#allocation64_spill] sm:$0xff]  ;;  %v871_v45 = vld [vmem:[%s21083_s2 + $0x60] sm:$0xff] }
 0x275   :  { %4338 = vperm.xlu1 %15141, %v21543_v25   ;;  %v836_v0 = vadd.f32 %v21548_v21, %v16677_v42  ;;  %v21550_v21 = vld [vmem:[#allocation26_spill] sm:$0xff] }
 0x276   :  { %14126 = vmatmul.mubr.msk.f32.gmra.mrb[4].mxu0 %vm665_vm0, %v880_v35  ;;  %4382 = vperm.xlu0 %15140, %v21510_v3   ;;  %v831_v35 = vadd.f32 %v16677_v42, %v21545_v41  ;;  %v21546_v3 = vld [vmem:[#allocation24_spill] sm:$0xff] }
 0x277   :  { %14128 = vmatprep.mubr.msk.f32.mxu0 %vm665_vm0, %v881_v56  ;;  %v16908_v4 = vpop.permute.xlu1 %3481  ;;  %v869_v56 = vld [vmem:[%s21083_s2 + $0x50] sm:$0xff]  ;;  %v870_v41 = vld [vmem:[%s21083_s2 + $0x58] sm:$0xff] }
 0x278   :  { %v16912_v54 = vpop.permute.xlu0 %3517  ;;  %v885_v29 = vmul.f32 %v869_v56, %v831_v35  ;;  %v886_v56 = vmul.f32 %v870_v41, %v836_v0  ;;  %v21553_v41 = vld [vmem:[#allocation28_spill] sm:$0xff] }
 0x279   :  { %4346 = vperm.xlu1 %15141, %v21546_v3   ;;  %v21549_v3 = vld [vmem:[#allocation67_spill] sm:$0xff] }
 0x27a   :  { %14129 = vmatmul.mubr.msk.f32.gmra.mrb[6].mxu0 %vm665_vm0, %v882_v17  ;;  %4390 = vperm.xlu0 %15140, %v21547_v23   ;;  %v841_v17 = vadd.f32 %v16677_v42, %v21549_v3  ;;  %v16952_v3 = vld [vmem:[%s21087_s6] ss:$0 sm:$0xff]  ;;  %v21551_v23 = vld [vmem:[#allocation66_spill] sm:$0xff] }
 0x27b   :  { %14131 = vmatprep.mubr.msk.f32.mxu0 %vm665_vm0, %v883_v63  ;;  %v16926_v14 = vpop.permute.xlu1 %3489  ;;  %v16940_v63 = vld [vmem:[%s21088_s7] ss:$0 sm:$0xff]  ;;  %v3452_v35 = vmul.f32 %v16952_v3, %v16720_v62 }
 0x27c   :  { %v16930_v25 = vpop.permute.xlu0 %3525  ;;  %v3532_v1 = vmul.f32 %v16940_v63, %v16803_v49  ;;  %v887_v60 = vmul.f32 %v871_v45, %v841_v17  ;;  %v21192_v45 = vmov 6  }
 0x27d   :  { %4354 = vperm.xlu1 %15141, %v21550_v21   ;;  %v846_v21 = vadd.f32 %v21551_v23, %v16677_v42  ;;  %v873_v23 = vld [vmem:[%s21083_s2 + $0x70] sm:$0xff] }
 0x27e   :  { %14132 = vmatmul.mubr.msk.f32.gmra.mrb[8].mxu0 %vm665_vm0, %v884_v48  ;;  %4398 = vperm.xlu0 %15140, %v21512_v38   ;;  %v872_v48 = vld [vmem:[%s21083_s2 + $0x68] sm:$0xff]  ;;  %v3548_v62 = vadd.f32 %v3532_v1, %v3452_v35  ;;  %v21554_v35 = vld [vmem:[#allocation68_spill] sm:$0xff] }
 0x27f   :  { %14134 = vmatprep.mubr.msk.f32.mxu0 %vm665_vm0, %v885_v29  ;;  %v16958_v49 = vpop.permute.xlu1 %3497  ;;  %v16970_v29 = vld [vmem:[%s21089_s8] ss:$0 sm:$0xff]  ;;  %v888_v1 = vmul.f32 %v872_v48, %v846_v21 }
 0x280   :  { %v3566_v9 = vpop.permute.xlu0 %3565 }
 0x281   :  { %v3628_v0 = vmul.f32 %v16970_v29, %v3566_v9  ;;  %4362 = vperm.xlu1 %15141, %v21553_v41   ;;  %v856_v9 = vadd.f32 %v21554_v35, %v16677_v42  ;;  %v874_v41 = vld [vmem:[%s21083_s2 + $0x78] sm:$0xff] }
 0x282   :  { %14135 = vmatmul.mubr.msk.f32.gmra.mrb[10].mxu0 %vm665_vm0, %v886_v56  ;;  %15143 = vset.pattern.permute.xlu0 %v21192_v45  ;;  %v889_v56 = vmul.f32 %v873_v23, %v851_v53  ;;  %v21556_v45 = vld [vmem:[#allocation32_spill] sm:$0xff] }
 0x283   :  { %v3644_v17 = vadd.f32 %v3628_v0, %v3548_v62  ;;  %14137 = vmatprep.mubr.msk.f32.mxu0 %vm665_vm0, %v887_v60  ;;  %v16980_v20 = vpop.permute.xlu1 %3505  ;;  %4939 = vperm.xlu0 %15143, %v21513_v13   ;;  %v16991_v62 = vld [vmem:[%s21090_s9] ss:$0 sm:$0xff]  ;;  %v21555_v0 = vld [vmem:[#allocation30_spill] sm:$0xff]  ;;  %v890_v35 = vmul.f32 %v874_v41, %v856_v9  ;;  %v3454_v41 = vmul.f32 %v16952_v3, %v16746_v46 }
 0x284   :  { %v3574_v38 = vpop.permute.xlu0 %3573  ;;  %v3536_v9 = vmul.f32 %v16940_v63, %v16838_v33 }
 0x285   :  { %v3660_v60 = vadd.f32 %v16991_v62, %v3644_v17  ;;  %4370 = vperm.xlu1 %15141, %v21555_v0   ;;  %v3534_v17 = vmul.f32 %v16940_v63, %v16819_v28  ;;  %v3456_v28 = vmul.f32 %v16952_v3, %v16683_v12  ;;  %v21558_v12 = vld [vmem:[#allocation36_spill] sm:$0xff] }
 0x286   :  { %14138 = vmatmul.mubr.msk.f32.gmra.mrb[12].mxu0 %vm665_vm0, %v888_v1 }
 0x287   :  { %14140 = vmatprep.mubr.msk.f32.mxu0 %vm665_vm0, %v889_v56  ;;  %v16997_v21 = vpop.permute.xlu1 %3513  ;;  %vm3676_vm5 = vcmp.gt.f32.partialorder %v3660_v60, 0.0  ;;  %v3692_v48 = vmul.f32 0.2, %v3660_v60  ;;  %4951 = vperm.xlu0 %15143, %v21437_v34   ;;  %v3552_v13 = vadd.f32 %v3536_v9, %v3456_v28 }
 0x288   :  { %v3582_v53 = vpop.permute.xlu0 %3581 }
 0x289   :  { %v3708_v23 = vsel %vm3676_vm5, %v3660_v60, %v3692_v48  ;;  %4378 = vperm.xlu1 %15141, %v21556_v45   ;;  %v3630_v60 = vmul.f32 %v16970_v29, %v3574_v38  ;;  %v21557_v48 = vld [vmem:[#allocation34_spill] sm:$0xff]  ;;  %v3453_v38 = vmul.f32 %v16952_v3, %v16664_v26 }
 0x28a   :  { %14141 = vmatmul.mubr.msk.f32.gmra.mrb[14].mxu0 %vm665_vm0, %v890_v35  ;;  %14249 = vmatprep.mubr.msk.f32.mxu1 %vm665_vm0, %v3708_v23  ;;  %v3550_v35 = vadd.f32 %v3534_v17, %v3454_v41  ;;  %v3632_v23 = vmul.f32 %v16970_v29, %v3582_v53  ;;  %v17030_v53 = vld [vmem:[%s21093_s12 + $0x18] sm:$0xff]  ;;  %v3460_v17 = vmul.f32 %v16952_v3, %v16726_v37 }
 0x28b   :  { %v17005_v1 = vpop.permute.xlu1 %3521  ;;  %4959 = vperm.xlu0 %15143, %v15620_v6   ;;  %v3533_v6 = vmul.f32 %v16940_v63, %v16890_v31  ;;  %v3458_v31 = vmul.f32 %v16952_v3, %v16704_v55  ;;  %v3462_v41 = vmul.f32 %v16952_v3, %v16752_v57  ;;  %14221 = vmatprep.subr.mxu0 %v17030_v53 }
 0x28c   :  { %v3590_v56 = vpop.permute.xlu0 %3589  ;;  %v3646_v33 = vadd.f32 %v3630_v60, %v3550_v35  ;;  %v3648_v26 = vadd.f32 %v3632_v23, %v3552_v13  ;;  %v3535_v60 = vmul.f32 %v16940_v63, %v16908_v4  ;;  %v3455_v37 = vmul.f32 %v16952_v3, %v16765_v47 }
 0x28d   :  { %4386 = vperm.xlu1 %15141, %v21557_v48   ;;  %v3538_v48 = vmul.f32 %v16940_v63, %v16857_v59  ;;  %v3549_v59 = vadd.f32 %v3533_v6, %v3453_v38  ;;  %v3634_v28 = vmul.f32 %v16970_v29, %v3590_v56  ;;  %v17048_v13 = vmul.f32 %v16952_v3, %v16771_v52 }
 0x28e   :  { %v3540_v6 = vmul.f32 %v16940_v63, %v16875_v44  ;;  %v3662_v57 = vadd.f32 %v16991_v62, %v3646_v33  ;;  %v3457_v4 = vmul.f32 %v16952_v3, %v16781_v32  ;;  %v17057_v56 = vmul.f32 %v16952_v3, %v16787_v50  ;;  %v21560_v33 = vld [vmem:[#allocation37_spill] sm:$0xff] }
 0x28f   :  { %v17017_v34 = vpop.permute.xlu1 %3529  ;;  %4967 = vperm.xlu0 %15143, %v15633_v30   ;;  %v3554_v23 = vadd.f32 %v3538_v48, %v3458_v31  ;;  %v3459_v47 = vmul.f32 %v16952_v3, %v16797_v19  ;;  %v17064_v52 = vmul.f32 %v16952_v3, %v16813_v40  ;;  %v3537_v44 = vmul.f32 %v16940_v63, %v16926_v14 }
 0x290   :  { %v3598_v46 = vpop.permute.xlu0 %3597  ;;  %v3664_v32 = vadd.f32 %v16991_v62, %v3648_v26  ;;  %v3542_v40 = vmul.f32 %v16940_v63, %v16894_v15  ;;  %vm3678_vm7 = vcmp.gt.f32.partialorder %v3662_v57, 0.0 }
 0x291   :  { %4394 = vperm.xlu1 %15141, %v21558_v12   ;;  %v3650_v48 = vadd.f32 %v3634_v28, %v3554_v23  ;;  %v3636_v14 = vmul.f32 %v16970_v29, %v3598_v46  ;;  %v3539_v28 = vmul.f32 %v16940_v63, %v16958_v49 }
 0x292   :  { %vm3680_vm8 = vcmp.gt.f32.partialorder %v3664_v32, 0.0  ;;  %v3696_v23 = vmul.f32 0.2, %v3664_v32 }
 0x293   :  { %v3570_v9 = vpop.permute.xlu1 %3569  ;;  %4975 = vperm.xlu0 %15143, %v15644_v18   ;;  %v3551_v18 = vadd.f32 %v3535_v60, %v3455_v37  ;;  %v3553_v60 = vadd.f32 %v3537_v44, %v3457_v4 }
 0x294   :  { %v3629_v55 = vmul.f32 %v16970_v29, %v3570_v9  ;;  %v3606_v35 = vpop.permute.xlu0 %3605  ;;  %v21559_v9 = vmov 6  }
 0x295   :  { %15142 = vset.pattern.permute.xlu1 %v21559_v9  ;;  %v3694_v9 = vmul.f32 0.2, %v3662_v57  ;;  %v3638_v44 = vmul.f32 %v16970_v29, %v3606_v35  ;;  %v3541_v35 = vmul.f32 %v16940_v63, %v16980_v20 }
 0x296   :  { %v3645_v38 = vadd.f32 %v3629_v55, %v3549_v59  ;;  %4935 = vperm.xlu1 %15142, %v21560_v33   ;;  %v3556_v55 = vadd.f32 %v3540_v6, %v3460_v17  ;;  %v3666_v17 = vadd.f32 %v16991_v62, %v3650_v48 }
 0x297   :  { %v3578_v50 = vpop.permute.xlu1 %3577  ;;  %4983 = vperm.xlu0 %15143, %v15652_v5   ;;  %v3710_v49 = vsel %vm3678_vm7, %v3662_v57, %v3694_v9  ;;  %v21561_v57 = vld [vmem:[#allocation40_spill] sm:$0xff] }
 0x298   :  { %v3661_v31 = vadd.f32 %v16991_v62, %v3645_v38  ;;  %v3631_v19 = vmul.f32 %v16970_v29, %v3578_v50  ;;  %v3614_v59 = vpop.permute.xlu0 %3613  ;;  %v3558_v38 = vadd.f32 %v3542_v40, %v3462_v41  ;;  %v3652_v4 = vadd.f32 %v3636_v14, %v3556_v55 }
 0x299   :  { %v3544_v50 = vmul.f32 %v16940_v63, %v16912_v54  ;;  %v3555_v41 = vadd.f32 %v3539_v28, %v3459_v47  ;;  %v3712_v54 = vsel %vm3680_vm8, %v3664_v32, %v3696_v23  ;;  %v3698_v9 = vmul.f32 0.2, %v3666_v17 }
 0x29a   :  { %vm3677_vm6 = vcmp.gt.f32.partialorder %v3661_v31, 0.0  ;;  %v3693_v26 = vmul.f32 0.2, %v3661_v31  ;;  %v3647_v30 = vadd.f32 %v3631_v19, %v3551_v18  ;;  %4943 = vperm.xlu1 %15142, %v15600_v10   ;;  %v3668_v47 = vadd.f32 %v16991_v62, %v3652_v4 }
 0x29b   :  { %v3586_v37 = vpop.permute.xlu1 %3585  ;;  %4991 = vperm.xlu0 %15143, %v21516_v61   ;;  %v3640_v20 = vmul.f32 %v16970_v29, %v3614_v59  ;;  %vm3682_vm10 = vcmp.gt.f32.partialorder %v3666_v17, 0.0  ;;  %v3463_v32 = vmul.f32 %v16952_v3, %v16834_v24  ;;  %v3560_v23 = vadd.f32 %v3544_v50, %v17048_v13 }
 0x29c   :  { %v3663_v15 = vadd.f32 %v16991_v62, %v3647_v30  ;;  %v3633_v46 = vmul.f32 %v16970_v29, %v3586_v37  ;;  %v3622_v6 = vpop.permute.xlu0 %3621  ;;  %v3709_v18 = vsel %vm3677_vm6, %v3661_v31, %v3693_v26  ;;  %v17092_v31 = vld [vmem:[%s21091_s10] sm:$0xff]  ;;  %v3654_v26 = vadd.f32 %v3638_v44, %v3558_v38 }
 0x29d   :  { %14250 = vmatmul.mubr.msk.f32.vlgmr.msra.gmra.mrb[64].mxu1 %vm665_vm0, %v3709_v18  ;;  %v3557_v59 = vadd.f32 %v3541_v35, %v17064_v52  ;;  %v21562_v18 = vld [vmem:[#allocation42_spill] sm:$0xff]  ;;  %v3714_v13 = vsel %vm3682_vm10, %v3666_v17, %v3698_v9  ;;  %vm3684_vm12 = vcmp.gt.f32.partialorder %v3668_v47, 0.0  ;;  %v3642_v52 = vmul.f32 %v16970_v29, %v3622_v6 }
 0x29e   :  { %v3649_v48 = vadd.f32 %v3633_v46, %v3553_v60  ;;  %14252 = vmatprep.mubr.msk.f32.mxu1 %vm665_vm0, %v3710_v49  ;;  %vm3679_vm9 = vcmp.gt.f32.partialorder %v3663_v15, 0.0  ;;  %v3695_v30 = vmul.f32 0.2, %v3663_v15  ;;  %14300 = vmatpush3.msra.mxu1 %v17092_v31  ;;  %v3543_v46 = vmul.f32 %v16940_v63, %v16997_v21 }
 0x29f   :  { %4947 = vperm.xlu1 %15142, %v21561_v57   ;;  %v3594_v19 = vpop.permute.xlu1 %3593  ;;  %14351 = vmatprep.subr.mxu1 %v17092_v31  ;;  %v3670_v49 = vadd.f32 %v16991_v62, %v3654_v26  ;;  %v3700_v21 = vmul.f32 0.2, %v3668_v47  ;;  %v3545_v35 = vmul.f32 %v16940_v63, %v17005_v1 }
 0x2a0   :  { %v3665_v55 = vadd.f32 %v16991_v62, %v3649_v48  ;;  %5015 = vperm.xlu0 %15143, %v21518_v58   ;;  %v3635_v40 = vmul.f32 %v16970_v29, %v3594_v19  ;;  %v3711_v14 = vsel %vm3679_vm9, %v3663_v15, %v3695_v30  ;;  %v3546_v15 = vmul.f32 %v16940_v63, %v16930_v25 }
 0x2a1   :  { %v17105_v60 = vpop.permute.xlu0 %4162  ;;  %14253 = vmatmul.mubr.msk.f32.gmra.mrb[66].mxu1 %vm665_vm0, %v3711_v14  ;;  %v3656_v25 = vadd.f32 %v3640_v20, %v3560_v23  ;;  %vm3686_vm14 = vcmp.gt.f32.partialorder %v3670_v49, 0.0  ;;  %v3702_v1 = vmul.f32 0.2, %v3670_v49 }
 0x2a2   :  { %v3651_v28 = vadd.f32 %v3635_v40, %v3555_v41  ;;  %14255 = vmatprep.mubr.msk.f32.mxu1 %vm665_vm0, %v3712_v54  ;;  %vm3681_vm11 = vcmp.gt.f32.partialorder %v3665_v55, 0.0  ;;  %v3697_v37 = vmul.f32 0.2, %v3665_v55  ;;  %v3465_v41 = vmul.f32 %v16952_v3, %v16853_v2 }
 0x2a3   :  { %4955 = vperm.xlu1 %15142, %v21562_v18   ;;  %v3602_v38 = vpop.permute.xlu1 %3601  ;;  %v3562_v17 = vadd.f32 %v3546_v15, %v17057_v56  ;;  %v3559_v54 = vadd.f32 %v3543_v46, %v3463_v32  ;;  %v3672_v14 = vadd.f32 %v16991_v62, %v3656_v25  ;;  %v3716_v2 = vsel %vm3684_vm12, %v3668_v47, %v3700_v21  ;;  %v12824_v47 = vld [vmem:[%s21083_s2 + $0x100] sm:$0xff] }
 0x2a4   :  { %v3667_v24 = vadd.f32 %v16991_v62, %v3651_v28  ;;  %5023 = vperm.xlu0 %15143, %v21520_v7   ;;  %v3637_v4 = vmul.f32 %v16970_v29, %v3602_v38  ;;  %v3713_v44 = vsel %vm3681_vm11, %v3665_v55, %v3697_v37  ;;  %v3561_v28 = vadd.f32 %v3545_v35, %v3465_v41  ;;  %v12825_v38 = vld [vmem:[%s21083_s2 + $0x108] sm:$0xff]  ;;  %v21584_v7 = vld [vmem:[#allocation31_spill] sm:$0xff] }
 0x2a5   :  { %v17123_v50 = vpop.permute.xlu0 %4174  ;;  %14256 = vmatmul.mubr.msk.f32.gmra.mrb[68].mxu1 %vm665_vm0, %v3713_v44  ;;  %v3658_v56 = vadd.f32 %v3642_v52, %v3562_v17  ;;  %v3547_v37 = vmul.f32 %v16940_v63, %v17017_v34  ;;  %v3467_v44 = vmul.f32 %v16952_v3, %v16871_v36  ;;  %v3718_v25 = vsel %vm3686_vm14, %v3670_v49, %v3702_v1  ;;  %v12826_v49 = vld [vmem:[%s21083_s2 + $0x110] sm:$0xff] }
 0x2a6   :  { %v3653_v48 = vadd.f32 %v3637_v4, %v3557_v59  ;;  %14258 = vmatprep.mubr.msk.f32.mxu1 %vm665_vm0, %v3714_v13  ;;  %vm3683_vm13 = vcmp.gt.f32.partialorder %v3667_v24, 0.0  ;;  %v3699_v30 = vmul.f32 0.2, %v3667_v24  ;;  %vm3688_vm1 = vcmp.gt.f32.partialorder %v3672_v14, 0.0 }
 0x2a7   :  { %4963 = vperm.xlu1 %15142, %v15630_v11   ;;  %v3610_v19 = vpop.permute.xlu1 %3609  ;;  %v3704_v21 = vmul.f32 0.2, %v3672_v14  ;;  %v3674_v52 = vadd.f32 %v16991_v62, %v3658_v56  ;;  %v3563_v17 = vadd.f32 %v3547_v37, %v3467_v44 }
 0x2a8   :  { %v3669_v55 = vadd.f32 %v16991_v62, %v3653_v48  ;;  %5031 = vperm.xlu0 %15143, %v21522_v39   ;;  %v3639_v6 = vmul.f32 %v16970_v29, %v3610_v19  ;;  %v3715_v40 = vsel %vm3683_vm13, %v3667_v24, %v3699_v30 }
 0x2a9   :  { %v17138_v9 = vpop.permute.xlu0 %4182  ;;  %14259 = vmatmul.mubr.msk.f32.gmra.mrb[70].mxu1 %vm665_vm0, %v3715_v40  ;;  %v12827_v40 = vld [vmem:[%s21083_s2 + $0x118] sm:$0xff]  ;;  %vm3690_vm4 = vcmp.gt.f32.partialorder %v3674_v52, 0.0 }
 0x2aa   :  { %v3655_v26 = vadd.f32 %v3639_v6, %v3559_v54  ;;  %v14147_v20 = vpop.f32.mrb[32].mxu1  ;;  %14261 = vmatprep.mubr.msk.f32.mxu1 %vm665_vm0, %v3716_v2  ;;  %vm3685_vm15 = vcmp.gt.f32.partialorder %v3669_v55, 0.0  ;;  %v3701_v32 = vmul.f32 0.2, %v3669_v55 }
 0x2ab   :  { %4971 = vperm.xlu1 %15142, %v15641_v16   ;;  %v2298_v23 = vadd.f32 %v14147_v20, %v16677_v42  ;;  %v3618_v15 = vpop.permute.xlu1 %3617  ;;  %v2292_v59 = vpop.f32.mrb[33].mxu1  ;;  %v3720_v20 = vsel %vm3688_vm1, %v3672_v14, %v3704_v21  ;;  %v12828_v14 = vld [vmem:[%s21083_s2 + $0x120] sm:$0xff] }
 0x2ac   :  { %v3671_v46 = vadd.f32 %v16991_v62, %v3655_v26  ;;  %5039 = vperm.xlu0 %15143, %v21524_v8   ;;  %v3641_v34 = vmul.f32 %v16970_v29, %v3618_v15  ;;  %v2293_v24 = vadd.f32 %v16677_v42, %v2292_v59  ;;  %v3717_v4 = vsel %vm3685_vm15, %v3669_v55, %v3701_v32  ;;  %v21582_v8 = vld [vmem:[#allocation27_spill] sm:$0xff] }
 0x2ad   :  { %v17159_v13 = vpop.permute.xlu0 %4190  ;;  %14262 = vmatmul.mubr.msk.f32.gmra.mrb[72].mxu1 %vm665_vm0, %v3717_v4  ;;  %v2389_v35 = vmul.f32 %v12825_v38, %v2298_v23  ;;  %v3706_v23 = vmul.f32 0.2, %v3674_v52 }
 0x2ae   :  { %v3657_v48 = vadd.f32 %v3641_v34, %v3561_v28  ;;  %v2388_v30 = vmul.f32 %v12824_v47, %v2293_v24  ;;  %v14150_v41 = vpop.f32.mrb[34].mxu1  ;;  %14264 = vmatprep.mubr.msk.f32.mxu1 %vm665_vm0, %v3718_v25  ;;  %vm3687_vm2 = vcmp.gt.f32.partialorder %v3671_v46, 0.0  ;;  %v3703_v55 = vmul.f32 0.2, %v3671_v46 }
 0x2af   :  { %4979 = vperm.xlu1 %15142, %v15649_v22   ;;  %v2308_v36 = vadd.f32 %v14150_v41, %v16677_v42  ;;  %v3626_v19 = vpop.permute.xlu1 %3625  ;;  %v2302_v54 = vpop.f32.mrb[35].mxu1 }
 0x2b0   :  { %v3673_v6 = vadd.f32 %v16991_v62, %v3657_v48  ;;  %5047 = vperm.xlu0 %15143, %v21527_v27   ;;  %v3643_v2 = vmul.f32 %v16970_v29, %v3626_v19  ;;  %v2303_v1 = vadd.f32 %v16677_v42, %v2302_v54  ;;  %14171 = vmatprep.mubr.msk.f32.mxu0 %vm665_vm0, %v2388_v30  ;;  %v12830_v19 = vld [vmem:[%s21083_s2 + $0x130] sm:$0xff]  ;;  %v12831_v54 = vld [vmem:[%s21083_s2 + $0x138] sm:$0xff] }
 0x2b1   :  { %v17178_v56 = vpop.permute.xlu0 %4198  ;;  %14172 = vmatmul.mubr.msk.f32.vlgmr.msra.gmra.mrb[0].mxu0 %vm665_vm0, %v2389_v35  ;;  %v3719_v26 = vsel %vm3687_vm2, %v3671_v46, %v3703_v55  ;;  %v2391_v15 = vmul.f32 %v12827_v40, %v2308_v36  ;;  %v3722_v48 = vsel %vm3690_vm4, %v3674_v52, %v3706_v23  ;;  %v12833_v23 = vld [vmem:[%s21083_s2 + $0x148] sm:$0xff] }
 0x2b2   :  { %v3659_v32 = vadd.f32 %v3643_v2, %v3563_v17  ;;  %v2390_v28 = vmul.f32 %v12826_v49, %v2303_v1  ;;  %14265 = vmatmul.mubr.msk.f32.gmra.mrb[74].mxu1 %vm665_vm0, %v3719_v26  ;;  %v14153_v37 = vpop.f32.mrb[36].mxu1  ;;  %vm3689_vm3 = vcmp.gt.f32.partialorder %v3673_v6, 0.0  ;;  %14222 = vmatpush3.msra.mxu0 %v17030_v53  ;;  %v3705_v46 = vmul.f32 0.2, %v3673_v6  ;;  %v12829_v53 = vld [vmem:[%s21083_s2 + $0x128] sm:$0xff]  ;;  %v21563_v17 = vld [vmem:[#allocation52_spill] sm:$0xff] }
 0x2b3   :  { %4987 = vperm.xlu1 %15142, %v15657_v43   ;;  %v2318_v59 = vadd.f32 %v14153_v37, %v16677_v42  ;;  %14267 = vmatprep.mubr.msk.f32.mxu1 %vm665_vm0, %v3720_v20  ;;  %v2312_v47 = vpop.f32.mrb[37].mxu1  ;;  %v21564_v49 = vld [vmem:[#allocation18_spill] sm:$0xff]  ;;  %v21565_v20 = vld [vmem:[#allocation5_spill] sm:$0xff] }
 0x2b4   :  { %v3675_v38 = vadd.f32 %v16991_v62, %v3659_v32  ;;  %5055 = vperm.xlu0 %15143, %v21531_v51   ;;  %v2313_v34 = vadd.f32 %v16677_v42, %v2312_v47  ;;  %v17197_v24 = vpop.permute.xlu1 %4166  ;;  %14174 = vmatprep.mubr.msk.f32.mxu0 %vm665_vm0, %v2390_v28  ;;  %v3721_v44 = vsel %vm3689_vm3, %v3673_v6, %v3705_v46  ;;  %v12832_v37 = vld [vmem:[%s21083_s2 + $0x140] sm:$0xff] }
 0x2b5   :  { %v17200_v4 = vpop.permute.xlu0 %4206  ;;  %14175 = vmatmul.mubr.msk.f32.gmra.mrb[2].mxu0 %vm665_vm0, %v2391_v15  ;;  %v2393_v41 = vmul.f32 %v12829_v53, %v2318_v59  ;;  %v21566_v15 = vld [vmem:[#allocation20_spill] sm:$0xff]  ;;  %v17235_v59 = vld [vmem:[%s21092_s11] ss:$0 sm:$0xff]  ;;  %v21567_v53 = vld [vmem:[#allocation7_spill] sm:$0xff] }
 0x2b6   :  { %v2392_v25 = vmul.f32 %v12828_v14, %v2313_v34  ;;  %14268 = vmatmul.mubr.msk.f32.gmra.mrb[76].mxu1 %vm665_vm0, %v3721_v44  ;;  %v14156_v21 = vpop.f32.mrb[38].mxu1  ;;  %vm3691_vm5 = vcmp.gt.f32.partialorder %v3675_v38, 0.0  ;;  %v3707_v30 = vmul.f32 0.2, %v3675_v38  ;;  %v21581_v51 = vld [vmem:[#allocation25_spill] sm:$0xff] }
 0x2b7   :  { %4995 = vperm.xlu1 %15142, %v21563_v17   ;;  %v2328_v35 = vadd.f32 %v14156_v21, %v16677_v42  ;;  %14270 = vmatprep.mubr.msk.f32.mxu1 %vm665_vm0, %v3722_v48  ;;  %v2322_v36 = vpop.f32.mrb[39].mxu1  ;;  %v12834_v48 = vld [vmem:[%s21083_s2 + $0x150] sm:$0xff] }
 0x2b8   :  { %5063 = vperm.xlu0 %15143, %v21564_v49   ;;  %v2323_v52 = vadd.f32 %v16677_v42, %v2322_v36  ;;  %v17216_v55 = vpop.permute.xlu1 %4170  ;;  %14177 = vmatprep.mubr.msk.f32.mxu0 %vm665_vm0, %v2392_v25  ;;  %v3723_v6 = vsel %vm3691_vm5, %v3675_v38, %v3707_v30  ;;  %v21568_v25 = vld [vmem:[#allocation22_spill] sm:$0xff] }
 0x2b9   :  { %v17219_v40 = vpop.permute.xlu0 %4214  ;;  %14178 = vmatmul.mubr.msk.f32.gmra.mrb[4].mxu0 %vm665_vm0, %v2393_v41  ;;  %v2395_v26 = vmul.f32 %v12831_v54, %v2328_v35  ;;  %v12835_v41 = vld [vmem:[%s21083_s2 + $0x158] sm:$0xff]  ;;  %v21569_v54 = vld [vmem:[#allocation9_spill] sm:$0xff] }
 0x2ba   :  { %v2394_v2 = vmul.f32 %v12830_v19, %v2323_v52  ;;  %14271 = vmatmul.mubr.msk.f32.gmra.mrb[78].mxu1 %vm665_vm0, %v3723_v6  ;;  %v14159_v1 = vpop.f32.mrb[40].mxu1 }
 0x2bb   :  { %5019 = vperm.xlu1 %15142, %v21565_v20   ;;  %v2338_v32 = vadd.f32 %v14159_v1, %v16677_v42  ;;  %v2332_v28 = vpop.f32.mrb[41].mxu1  ;;  %v21570_v1 = vld [vmem:[#allocation24_spill] sm:$0xff] }
 0x2bc   :  { %5071 = vperm.xlu0 %15143, %v21566_v15   ;;  %v2333_v47 = vadd.f32 %v17235_v59, %v2332_v28  ;;  %v17238_v14 = vpop.permute.xlu1 %4178  ;;  %14180 = vmatprep.mubr.msk.f32.mxu0 %vm665_vm0, %v2394_v2  ;;  %v21580_v15 = vld [vmem:[#allocation23_spill] sm:$0xff] }
 0x2bd   :  { %v17241_v42 = vpop.permute.xlu0 %4222  ;;  %14181 = vmatmul.mubr.msk.f32.gmra.mrb[6].mxu0 %vm665_vm0, %v2395_v26  ;;  %v2397_v38 = vmul.f32 %v12833_v23, %v2338_v32  ;;  %v12836_v32 = vld [vmem:[%s21083_s2 + $0x160] sm:$0xff] }
 0x2be   :  { %v2396_v46 = vmul.f32 %v12832_v37, %v2333_v47  ;;  %v14162_v34 = vpop.f32.mrb[42].mxu1  ;;  %v12837_v37 = vld [vmem:[%s21083_s2 + $0x168] sm:$0xff] }
 0x2bf   :  { %5027 = vperm.xlu1 %15142, %v21567_v53   ;;  %v2348_v44 = vadd.f32 %v17235_v59, %v14162_v34  ;;  %v2342_v21 = vpop.f32.mrb[43].mxu1 }
 0x2c0   :  { %5111 = vperm.xlu0 %15143, %v21568_v25   ;;  %v17250_v30 = vpop.permute.xlu1 %4186  ;;  %14183 = vmatprep.mubr.msk.f32.mxu0 %vm665_vm0, %v2396_v46  ;;  %v2343_v35 = vadd.f32 %v17235_v59, %v2342_v21 }
 0x2c1   :  { %v17257_v36 = vpop.permute.xlu0 %4246  ;;  %14184 = vmatmul.mubr.msk.f32.gmra.mrb[8].mxu0 %vm665_vm0, %v2397_v38  ;;  %v2399_v6 = vmul.f32 %v12835_v41, %v2348_v44  ;;  %v21571_v38 = vld [vmem:[#allocation11_spill] sm:$0xff] }
 0x2c2   :  { %v2398_v19 = vmul.f32 %v12834_v48, %v2343_v35  ;;  %v14165_v52 = vpop.f32.mrb[44].mxu1  ;;  %v21572_v48 = vld [vmem:[#allocation26_spill] sm:$0xff]  ;;  %v12838_v35 = vld [vmem:[%s21083_s2 + $0x170] sm:$0xff] }
 0x2c3   :  { %5035 = vperm.xlu1 %15142, %v21569_v54   ;;  %v2358_v2 = vadd.f32 %v17235_v59, %v14165_v52  ;;  %v2352_v26 = vpop.f32.mrb[45].mxu1 }
 0x2c4   :  { %5119 = vperm.xlu0 %15143, %v21570_v1   ;;  %v17266_v28 = vpop.permute.xlu1 %4194  ;;  %v2353_v23 = vadd.f32 %v17235_v59, %v2352_v26  ;;  %14186 = vmatprep.mubr.msk.f32.mxu0 %vm665_vm0, %v2398_v19  ;;  %v12839_v19 = vld [vmem:[%s21083_s2 + $0x178] sm:$0xff]  ;;  %v21579_v1 = vld [vmem:[#allocation21_spill] sm:$0xff] }
 0x2c5   :  { %v17273_v47 = vpop.permute.xlu0 %4254  ;;  %14187 = vmatmul.mubr.msk.f32.gmra.mrb[10].mxu0 %vm665_vm0, %v2399_v6  ;;  %v2401_v44 = vmul.f32 %v12837_v37, %v2358_v2 }
 0x2c6   :  { %v2400_v46 = vmul.f32 %v12836_v32, %v2353_v23  ;;  %v14168_v34 = vpop.f32.mrb[46].mxu1  ;;  %v21573_v32 = vld [vmem:[#allocation13_spill] sm:$0xff]  ;;  %v21574_v23 = vld [vmem:[#allocation28_spill] sm:$0xff] }
 0x2c7   :  { %5043 = vperm.xlu1 %15142, %v21571_v38   ;;  %v2368_v21 = vadd.f32 %v17235_v59, %v14168_v34  ;;  %v2362_v41 = vpop.f32.mrb[47].mxu1 }
 0x2c8   :  { %5127 = vperm.xlu0 %15143, %v21572_v48   ;;  %v17282_v52 = vpop.permute.xlu1 %4202  ;;  %v2363_v6 = vadd.f32 %v17235_v59, %v2362_v41  ;;  %14189 = vmatprep.mubr.msk.f32.mxu0 %vm665_vm0, %v2400_v46  ;;  %v21575_v41 = vld [vmem:[#allocation15_spill] sm:$0xff] }
 0x2c9   :  { %v4263_v2 = vpop.permute.xlu0 %4262  ;;  %14190 = vmatmul.mubr.msk.f32.gmra.mrb[12].mxu0 %vm665_vm0, %v2401_v44  ;;  %v2403_v37 = vmul.f32 %v12839_v19, %v2368_v21 }
 0x2ca   :  { %v2402_v26 = vmul.f32 %v12838_v35, %v2363_v6  ;;  %v21576_v35 = vld [vmem:[#allocation17_spill] sm:$0xff]  ;;  %v21577_v6 = vld [vmem:[#allocation19_spill] sm:$0xff] }
 0x2cb   :  { %5051 = vperm.xlu1 %15142, %v21573_v32  }
 0x2cc   :  { %5135 = vperm.xlu0 %15143, %v21574_v23   ;;  %v17292_v34 = vpop.permute.xlu1 %4210  ;;  %14192 = vmatprep.mubr.msk.f32.mxu0 %vm665_vm0, %v2402_v26  ;;  %v21578_v26 = vld [vmem:[#allocation34_spill] sm:$0xff] }
 0x2cd   :  { %v17295_v48 = vpop.permute.xlu0 %4270  ;;  %14193 = vmatmul.mubr.msk.f32.gmra.mrb[14].mxu0 %vm665_vm0, %v2403_v37 }
 0x2cf   :  { %5059 = vperm.xlu1 %15142, %v21575_v41  }
 0x2d0   :  { %5143 = vperm.xlu0 %15143, %v21555_v0   ;;  %v17300_v46 = vpop.permute.xlu1 %4218 }
 0x2d1   :  { %v17302_v44 = vpop.permute.xlu0 %4278 }
 0x2d3   :  { %5067 = vperm.xlu1 %15142, %v21576_v35  }
 0x2d4   :  { %5151 = vperm.xlu0 %15143, %v21556_v45   ;;  %v4243_v21 = vpop.permute.xlu1 %4242  ;;  %v21208_v45 = vmov 7  }
 0x2d5   :  { %v17306_v19 = vpop.permute.xlu0 %4286 }
 0x2d7   :  { %5075 = vperm.xlu1 %15142, %v21577_v6   ;;  %v4308_v6 = vmul.f32 %v16940_v63, %v17273_v47  ;;  %v21585_v47 = vld [vmem:[#allocation33_spill] sm:$0xff] }
 0x2d8   :  { %5159 = vperm.xlu0 %15143, %v21578_v26   ;;  %v4251_v37 = vpop.permute.xlu1 %4250 }
 0x2d9   :  { %v17310_v23 = vpop.permute.xlu0 %4294 }
 0x2db   :  { %5115 = vperm.xlu1 %15142, %v21579_v1   ;;  %v4226_v1 = vmul.f32 %v16952_v3, %v17197_v24  ;;  %v4225_v24 = vmul.f32 %v16952_v3, %v17105_v60  ;;  %v17364_v60 = vmul.f32 %v16952_v3, %v17200_v4 }
 0x2dc   :  { %5167 = vperm.xlu0 %15143, %v21558_v12   ;;  %v17314_v0 = vpop.permute.xlu1 %4258 }
 0x2dd   :  { %v17316_v25 = vpop.permute.xlu0 %4302 }
 0x2df   :  { %5123 = vperm.xlu1 %15142, %v21580_v15  }
 0x2e0   :  { %15144 = vset.pattern.permute.xlu0 %v21208_v45  ;;  %v17321_v49 = vpop.permute.xlu1 %4266  ;;  %v21583_v45 = vld [vmem:[#allocation29_spill] sm:$0xff] }
 0x2e1   :  { %5708 = vperm.xlu0 %15144, %v21560_v33   ;;  %v4343_v26 = vpop.permute.xlu0 %4342  ;;  %v4306_v33 = vmul.f32 %v16940_v63, %v17257_v36  ;;  %v4310_v36 = vmul.f32 %v16940_v63, %v4263_v2  ;;  %v4232_v2 = vmul.f32 %v16952_v3, %v17159_v13 }
 0x2e3   :  { %5131 = vperm.xlu1 %15142, %v21581_v51  }
 0x2e4   :  { %v17325_v27 = vpop.permute.xlu1 %4274 }
 0x2e5   :  { %5720 = vperm.xlu0 %15144, %v21561_v57   ;;  %v4351_v12 = vpop.permute.xlu0 %4350 }
 0x2e7   :  { %5139 = vperm.xlu1 %15142, %v21582_v8   ;;  %v4402_v8 = vmul.f32 %v16970_v29, %v4343_v26  ;;  %v4228_v26 = vmul.f32 %v16952_v3, %v17123_v50 }
 0x2e8   :  { %v17329_v15 = vpop.permute.xlu1 %4282 }
 0x2e9   :  { %5728 = vperm.xlu0 %15144, %v21562_v18   ;;  %v4359_v39 = vpop.permute.xlu0 %4358  ;;  %v4322_v18 = vadd.f32 %v4306_v33, %v4226_v1  ;;  %v4404_v1 = vmul.f32 %v16970_v29, %v4351_v12  ;;  %v17370_v12 = vmul.f32 %v16952_v3, %v17219_v40  ;;  %v4312_v40 = vmul.f32 %v16940_v63, %v17295_v48 }
 0x2ea   :  { %v4406_v50 = vmul.f32 %v16970_v29, %v4359_v39  ;;  %v17398_v48 = vmul.f32 %v16952_v3, %v17266_v28  ;;  %v17412_v28 = vmul.f32 %v16952_v3, %v17282_v52 }
 0x2eb   :  { %5147 = vperm.xlu1 %15142, %v21583_v45   ;;  %v4418_v33 = vadd.f32 %v4402_v8, %v4322_v18  ;;  %v4227_v8 = vmul.f32 %v16952_v3, %v17216_v55  ;;  %v4324_v18 = vadd.f32 %v4308_v6, %v4228_v26  ;;  %v17381_v55 = vld [vmem:[%s21093_s12 + $0x20] sm:$0xff]  ;;  %v21586_v26 = vld [vmem:[#allocation35_spill] sm:$0xff] }
 0x2ec   :  { %v17335_v51 = vpop.permute.xlu1 %4290  ;;  %14273 = vmatprep.subr.mxu0 %v17381_v55 }
 0x2ed   :  { %5736 = vperm.xlu0 %15144, %v15630_v11   ;;  %v4367_v57 = vpop.permute.xlu0 %4366  ;;  %v4305_v11 = vmul.f32 %v16940_v63, %v4243_v21  ;;  %v4234_v21 = vmul.f32 %v16952_v3, %v17178_v56  ;;  %v4307_v56 = vmul.f32 %v16940_v63, %v4251_v37  ;;  %v4434_v39 = vadd.f32 %v16991_v62, %v4418_v33 }
 0x2ee   :  { %v4420_v6 = vadd.f32 %v4404_v1, %v4324_v18  ;;  %v4231_v37 = vmul.f32 %v16952_v3, %v17250_v30  ;;  %v4309_v33 = vmul.f32 %v16940_v63, %v17314_v0  ;;  %v4408_v18 = vmul.f32 %v16970_v29, %v4367_v57 }
 0x2ef   :  { %5155 = vperm.xlu1 %15142, %v21584_v7   ;;  %vm4450_vm6 = vcmp.gt.f32.partialorder %v4434_v39, 0.0 }
 0x2f0   :  { %v17344_v45 = vpop.permute.xlu1 %4298  ;;  %v4436_v0 = vadd.f32 %v16991_v62, %v4420_v6 }
 0x2f1   :  { %5744 = vperm.xlu0 %15144, %v15641_v16   ;;  %v17348_v58 = vpop.permute.xlu0 %4374  ;;  %v4230_v16 = vmul.f32 %v16952_v3, %v17138_v9 }
 0x2f2   :  { %vm4452_vm9 = vcmp.gt.f32.partialorder %v4436_v0, 0.0 }
 0x2f3   :  { %5163 = vperm.xlu1 %15142, %v21585_v47   ;;  %v4326_v13 = vadd.f32 %v4310_v36, %v4230_v16  ;;  %v4321_v47 = vadd.f32 %v4305_v11, %v4225_v24  ;;  %v4229_v11 = vmul.f32 %v16952_v3, %v17238_v14  ;;  %v17392_v16 = vmul.f32 %v16952_v3, %v17241_v42 }
 0x2f4   :  { %v4339_v9 = vpop.permute.xlu1 %4338  ;;  %v4314_v24 = vmul.f32 %v16940_v63, %v17302_v44  ;;  %v4323_v42 = vadd.f32 %v4307_v56, %v4227_v8  ;;  %v4328_v44 = vadd.f32 %v4312_v40, %v4232_v2 }
 0x2f5   :  { %5752 = vperm.xlu0 %15144, %v15649_v22   ;;  %v4401_v4 = vmul.f32 %v16970_v29, %v4339_v9  ;;  %v17376_v7 = vpop.permute.xlu0 %4382  ;;  %v4422_v1 = vadd.f32 %v4406_v50, %v4326_v13  ;;  %v21587_v50 = vmov 7   ;;  %v21588_v13 = vld [vmem:[#allocation39_spill] sm:$0xff] }
 0x2f6   :  { %v4330_v56 = vadd.f32 %v4314_v24, %v4234_v21  ;;  %v4424_v40 = vadd.f32 %v4408_v18, %v4328_v44  ;;  %v4316_v21 = vmul.f32 %v16940_v63, %v17306_v19  ;;  %v4468_v24 = vmul.f32 0.2, %v4436_v0 }
 0x2f7   :  { %5171 = vperm.xlu1 %15142, %v21586_v26   ;;  %v4417_v36 = vadd.f32 %v4401_v4, %v4321_v47  ;;  %v4466_v4 = vmul.f32 0.2, %v4434_v39  ;;  %v4438_v52 = vadd.f32 %v16991_v62, %v4422_v1  ;;  %v4313_v19 = vmul.f32 %v16940_v63, %v17325_v27 }
 0x2f8   :  { %v4347_v14 = vpop.permute.xlu1 %4346 }
 0x2f9   :  { %5760 = vperm.xlu0 %15144, %v15657_v43   ;;  %v4433_v30 = vadd.f32 %v16991_v62, %v4417_v36  ;;  %v4403_v47 = vmul.f32 %v16970_v29, %v4347_v14  ;;  %v17408_v9 = vpop.permute.xlu0 %4390  ;;  %v4325_v36 = vadd.f32 %v4309_v33, %v4229_v11  ;;  %v4311_v14 = vmul.f32 %v16940_v63, %v17321_v49 }
 0x2fa   :  { %v4410_v11 = vmul.f32 %v16970_v29, %v17348_v58  ;;  %v4482_v49 = vsel %vm4450_vm6, %v4434_v39, %v4466_v4  ;;  %vm4454_vm10 = vcmp.gt.f32.partialorder %v4438_v52, 0.0  ;;  %v4440_v39 = vadd.f32 %v16991_v62, %v4424_v40 }
 0x2fb   :  { %15145 = vset.pattern.permute.xlu1 %v21587_v50  ;;  %v4419_v8 = vadd.f32 %v4403_v47, %v4323_v42  ;;  %vm4449_vm7 = vcmp.gt.f32.partialorder %v4433_v30, 0.0  ;;  %v4465_v57 = vmul.f32 0.2, %v4433_v30  ;;  %v4327_v18 = vadd.f32 %v4311_v14, %v4231_v37 }
 0x2fc   :  { %5712 = vperm.xlu1 %15145, %v21588_v13   ;;  %v4355_v2 = vpop.permute.xlu1 %4354  ;;  %v4237_v37 = vmul.f32 %v16952_v3, %v17292_v34  ;;  %v4426_v27 = vadd.f32 %v4410_v11, %v4330_v56  ;;  %v4484_v14 = vsel %vm4452_vm9, %v4436_v0, %v4468_v24  ;;  %v4318_v34 = vmul.f32 %v16940_v63, %v17310_v23 }
 0x2fd   :  { %5768 = vperm.xlu0 %15144, %v21563_v17   ;;  %v4435_v6 = vadd.f32 %v16991_v62, %v4419_v8  ;;  %v4405_v50 = vmul.f32 %v16970_v29, %v4355_v2  ;;  %v17423_v42 = vpop.permute.xlu0 %4398  ;;  %v4481_v47 = vsel %vm4449_vm7, %v4433_v30, %v4465_v57  ;;  %v4470_v30 = vmul.f32 0.2, %v4438_v52 }
 0x2fe   :  { %14301 = vmatprep.mubr.msk.f32.mxu1 %vm665_vm0, %v4481_v47  ;;  %v4412_v57 = vmul.f32 %v16970_v29, %v17376_v7  ;;  %v4332_v2 = vadd.f32 %v4316_v21, %v17364_v60  ;;  %v4329_v7 = vadd.f32 %v4313_v19, %v17398_v48  ;;  %v4315_v56 = vmul.f32 %v16940_v63, %v17329_v15 }
 0x2ff   :  { %v4421_v33 = vadd.f32 %v4405_v50, %v4325_v36  ;;  %14302 = vmatmul.mubr.msk.f32.vlgmr.msra.gmra.mrb[80].mxu1 %vm665_vm0, %v4482_v49  ;;  %vm4451_vm8 = vcmp.gt.f32.partialorder %v4435_v6, 0.0  ;;  %v4467_v1 = vmul.f32 0.2, %v4435_v6  ;;  %v21589_v50 = vld [vmem:[#allocation41_spill] sm:$0xff]  ;;  %v4486_v60 = vsel %vm4454_vm10, %v4438_v52, %v4470_v30  ;;  %v21590_v52 = vld [vmem:[#allocation43_spill] sm:$0xff] }
 0x300   :  { %5716 = vperm.xlu1 %15145, %v15600_v10   ;;  %v4363_v58 = vpop.permute.xlu1 %4362  ;;  %14352 = vmatpush3.msra.mxu1 %v17092_v31  ;;  %v4472_v11 = vmul.f32 0.2, %v4440_v39  ;;  %v4442_v49 = vadd.f32 %v16991_v62, %v4426_v27  ;;  %v4428_v24 = vadd.f32 %v4412_v57, %v4332_v2  ;;  %v4414_v23 = vmul.f32 %v16970_v29, %v17408_v9  ;;  %v17477_v9 = vld [vmem:[%s21088_s7] ss:$0 sm:$0xff] }
 0x301   :  { %5792 = vperm.xlu0 %15144, %v21565_v20   ;;  %v4437_v44 = vadd.f32 %v16991_v62, %v4421_v33  ;;  %v4407_v4 = vmul.f32 %v16970_v29, %v4363_v58  ;;  %v4483_v8 = vsel %vm4451_vm8, %v4435_v6, %v4467_v1  ;;  %14403 = vmatprep.subr.mxu1 %v17092_v31  ;;  %vm4456_vm12 = vcmp.gt.f32.partialorder %v4440_v39, 0.0  ;;  %v21591_v57 = vld [vmem:[#allocation45_spill] sm:$0xff] }
 0x302   :  { %v17445_v36 = vpop.permute.xlu0 %4939  ;;  %14304 = vmatprep.mubr.msk.f32.mxu1 %vm665_vm0, %v4483_v8  ;;  %v17469_v63 = vmul.f32 %v16952_v3, %v17300_v46  ;;  %v4334_v1 = vadd.f32 %v4318_v34, %v17370_v12  ;;  %v4331_v3 = vadd.f32 %v4315_v56, %v17412_v28  ;;  %v4317_v46 = vmul.f32 %v17477_v9, %v17335_v51  ;;  %v12874_v56 = vld [vmem:[%s21083_s2 + $0x188] sm:$0xff] }
 0x303   :  { %v4423_v40 = vadd.f32 %v4407_v4, %v4327_v18  ;;  %14305 = vmatmul.mubr.msk.f32.gmra.mrb[82].mxu1 %vm665_vm0, %v4484_v14  ;;  %vm4453_vm11 = vcmp.gt.f32.partialorder %v4437_v44, 0.0  ;;  %v4469_v31 = vmul.f32 0.2, %v4437_v44  ;;  %v4320_v18 = vmul.f32 %v17477_v9, %v17316_v25 }
 0x304   :  { %5724 = vperm.xlu1 %15145, %v21589_v50   ;;  %v4371_v0 = vpop.permute.xlu1 %4370  ;;  %v4444_v4 = vadd.f32 %v16991_v62, %v4428_v24  ;;  %v4430_v8 = vadd.f32 %v4414_v23, %v4334_v1  ;;  %vm4458_vm14 = vcmp.gt.f32.partialorder %v4442_v49, 0.0  ;;  %v4474_v25 = vmul.f32 0.2, %v4442_v49 }
 0x305   :  { %5800 = vperm.xlu0 %15144, %v21567_v53   ;;  %v4439_v6 = vadd.f32 %v16991_v62, %v4423_v40  ;;  %v4409_v47 = vmul.f32 %v16970_v29, %v4371_v0  ;;  %v4485_v21 = vsel %vm4453_vm11, %v4437_v44, %v4469_v31  ;;  %v4488_v44 = vsel %vm4456_vm12, %v4440_v39, %v4472_v11 }
 0x306   :  { %v17464_v48 = vpop.permute.xlu0 %4951  ;;  %14307 = vmatprep.mubr.msk.f32.mxu1 %vm665_vm0, %v4485_v21  ;;  %v4416_v51 = vmul.f32 %v16970_v29, %v17423_v42  ;;  %v4333_v2 = vadd.f32 %v4317_v46, %v4237_v37  ;;  %v4319_v40 = vmul.f32 %v17477_v9, %v17344_v45  ;;  %v12873_v42 = vld [vmem:[%s21083_s2 + $0x180] sm:$0xff]  ;;  %v4490_v21 = vsel %vm4458_vm14, %v4442_v49, %v4474_v25  ;;  %v12875_v49 = vld [vmem:[%s21083_s2 + $0x190] sm:$0xff] }
 0x307   :  { %v4425_v15 = vadd.f32 %v4409_v47, %v4329_v7  ;;  %14308 = vmatmul.mubr.msk.f32.gmra.mrb[84].mxu1 %vm665_vm0, %v4486_v60  ;;  %vm4455_vm13 = vcmp.gt.f32.partialorder %v4439_v6, 0.0  ;;  %v4471_v33 = vmul.f32 0.2, %v4439_v6  ;;  %v17507_v7 = vld [vmem:[%s21090_s9] ss:$0 sm:$0xff]  ;;  %vm4460_vm1 = vcmp.gt.f32.partialorder %v4444_v4, 0.0 }
 0x308   :  { %5732 = vperm.xlu1 %15145, %v21590_v52   ;;  %v4379_v19 = vpop.permute.xlu1 %4378  ;;  %v17513_v45 = vld [vmem:[%s21089_s8] ss:$0 sm:$0xff]  ;;  %v4476_v11 = vmul.f32 0.2, %v4444_v4 }
 0x309   :  { %5808 = vperm.xlu0 %15144, %v21569_v54   ;;  %v4441_v58 = vadd.f32 %v16991_v62, %v4425_v15  ;;  %v4411_v12 = vmul.f32 %v16970_v29, %v4379_v19  ;;  %v4487_v30 = vsel %vm4455_vm13, %v4439_v6, %v4471_v33  ;;  %v4336_v62 = vadd.f32 %v4320_v18, %v17392_v16  ;;  %v21592_v33 = vld [vmem:[#allocation47_spill] sm:$0xff] }
 0x30a   :  { %v17489_v27 = vpop.permute.xlu0 %4959  ;;  %14310 = vmatprep.mubr.msk.f32.mxu1 %vm665_vm0, %v4487_v30  ;;  %v4446_v6 = vadd.f32 %v17507_v7, %v4430_v8  ;;  %v12876_v8 = vld [vmem:[%s21083_s2 + $0x198] sm:$0xff] }
 0x30b   :  { %v4427_v28 = vadd.f32 %v4411_v12, %v4331_v3  ;;  %14311 = vmatmul.mubr.msk.f32.gmra.mrb[86].mxu1 %vm665_vm0, %v4488_v44  ;;  %vm4457_vm15 = vcmp.gt.f32.partialorder %v4441_v58, 0.0  ;;  %v4473_v39 = vmul.f32 0.2, %v4441_v58  ;;  %v4432_v24 = vadd.f32 %v4416_v51, %v4336_v62 }
 0x30c   :  { %5740 = vperm.xlu1 %15145, %v21591_v57   ;;  %v14199_v14 = vpop.f32.mrb[48].mxu1  ;;  %v4387_v31 = vpop.permute.xlu1 %4386  ;;  %v4335_v12 = vadd.f32 %v4319_v40, %v17469_v63  ;;  %vm4462_vm3 = vcmp.gt.f32.partialorder %v4446_v6, 0.0  ;;  %v4478_v63 = vmul.f32 0.2, %v4446_v6 }
 0x30d   :  { %5816 = vperm.xlu0 %15144, %v21571_v38   ;;  %v3071_v34 = vadd.f32 %v17235_v59, %v14199_v14  ;;  %v3065_v29 = vpop.f32.mrb[49].mxu1  ;;  %v4443_v16 = vadd.f32 %v17507_v7, %v4427_v28  ;;  %v4413_v37 = vmul.f32 %v17513_v45, %v4387_v31  ;;  %v4489_v60 = vsel %vm4457_vm15, %v4441_v58, %v4473_v39  ;;  %v21611_v38 = vld [vmem:[#allocation26_spill] sm:$0xff] }
 0x30e   :  { %v3066_v0 = vadd.f32 %v17235_v59, %v3065_v29  ;;  %v17522_v47 = vpop.permute.xlu0 %4967  ;;  %14313 = vmatprep.mubr.msk.f32.mxu1 %vm665_vm0, %v4489_v60  ;;  %v4492_v14 = vsel %vm4460_vm1, %v4444_v4, %v4476_v11  ;;  %v4448_v39 = vadd.f32 %v17507_v7, %v4432_v24  ;;  %v12877_v29 = vld [vmem:[%s21083_s2 + $0x1a0] sm:$0xff]  ;;  %v4494_v11 = vsel %vm4462_vm3, %v4446_v6, %v4478_v63  ;;  %v12879_v6 = vld [vmem:[%s21083_s2 + $0x1b0] sm:$0xff] }
 0x30f   :  { %v4429_v23 = vadd.f32 %v4413_v37, %v4333_v2  ;;  %14314 = vmatmul.mubr.msk.f32.gmra.mrb[88].mxu1 %vm665_vm0, %v4490_v21  ;;  %vm4459_vm2 = vcmp.gt.f32.partialorder %v4443_v16, 0.0  ;;  %v3162_v18 = vmul.f32 %v12874_v56, %v3071_v34  ;;  %v4475_v58 = vmul.f32 0.2, %v4443_v16  ;;  %v12878_v37 = vld [vmem:[%s21083_s2 + $0x1a8] sm:$0xff] }
 0x310   :  { %v3161_v15 = vmul.f32 %v12873_v42, %v3066_v0  ;;  %5748 = vperm.xlu1 %15145, %v21592_v33   ;;  %v14202_v1 = vpop.f32.mrb[50].mxu1  ;;  %v4395_v3 = vpop.permute.xlu1 %4394  ;;  %vm4464_vm6 = vcmp.gt.f32.partialorder %v4448_v39, 0.0 }
 0x311   :  { %5824 = vperm.xlu0 %15144, %v21573_v32   ;;  %v3081_v46 = vadd.f32 %v17235_v59, %v14202_v1  ;;  %v3075_v19 = vpop.f32.mrb[51].mxu1  ;;  %v4445_v30 = vadd.f32 %v17507_v7, %v4429_v23  ;;  %v4415_v44 = vmul.f32 %v17513_v45, %v4395_v3  ;;  %v4491_v28 = vsel %vm4459_vm2, %v4443_v16, %v4475_v58 }
 0x312   :  { %v3076_v25 = vadd.f32 %v17235_v59, %v3075_v19  ;;  %14223 = vmatprep.mubr.msk.f32.mxu0 %vm665_vm0, %v3161_v15  ;;  %v17541_v51 = vpop.permute.xlu0 %4975  ;;  %14316 = vmatprep.mubr.msk.f32.mxu1 %vm665_vm0, %v4491_v28  ;;  %v4480_v1 = vmul.f32 0.2, %v4448_v39 }
 0x313   :  { %14224 = vmatmul.mubr.msk.f32.vlgmr.msra.gmra.mrb[0].mxu0 %vm665_vm0, %v3162_v18  ;;  %v4431_v62 = vadd.f32 %v4415_v44, %v4335_v12  ;;  %vm4461_vm4 = vcmp.gt.f32.partialorder %v4445_v30, 0.0  ;;  %v3164_v31 = vmul.f32 %v12876_v8, %v3081_v46  ;;  %14317 = vmatmul.mubr.msk.f32.gmra.mrb[90].mxu1 %vm665_vm0, %v4492_v14  ;;  %v4477_v42 = vmul.f32 0.2, %v4445_v30  ;;  %v12880_v46 = vld [vmem:[%s21083_s2 + $0x1b8] sm:$0xff]  ;;  %v21593_v44 = vld [vmem:[#allocation6_spill] sm:$0xff]  ;;  %v21594_v14 = vld [vmem:[#allocation19_spill] sm:$0xff] }
 0x314   :  { %v3163_v2 = vmul.f32 %v12875_v49, %v3076_v25  ;;  %5756 = vperm.xlu1 %15145, %v15652_v5   ;;  %v14205_v40 = vpop.f32.mrb[52].mxu1  ;;  %14274 = vmatpush3.msra.mxu0 %v17381_v55  ;;  %v4496_v8 = vsel %vm4464_vm6, %v4448_v39, %v4480_v1 }
 0x315   :  { %5832 = vperm.xlu0 %15144, %v21575_v41   ;;  %v3091_v34 = vadd.f32 %v17235_v59, %v14205_v40  ;;  %v3085_v4 = vpop.f32.mrb[53].mxu1  ;;  %v4447_v16 = vadd.f32 %v17507_v7, %v4431_v62  ;;  %v17558_v56 = vpop.permute.xlu1 %4935  ;;  %v4493_v21 = vsel %vm4461_vm4, %v4445_v30, %v4477_v42  ;;  %v12882_v40 = vld [vmem:[%s21083_s2 + $0x1c8] sm:$0xff] }
 0x316   :  { %v3086_v0 = vadd.f32 %v17235_v59, %v3085_v4  ;;  %14226 = vmatprep.mubr.msk.f32.mxu0 %vm665_vm0, %v3163_v2  ;;  %v17563_v60 = vpop.permute.xlu0 %4983  ;;  %14319 = vmatprep.mubr.msk.f32.mxu1 %vm665_vm0, %v4493_v21  ;;  %v12881_v2 = vld [vmem:[%s21083_s2 + $0x1c0] sm:$0xff] }
 0x317   :  { %14227 = vmatmul.mubr.msk.f32.gmra.mrb[2].mxu0 %vm665_vm0, %v3164_v31  ;;  %vm4463_vm5 = vcmp.gt.f32.partialorder %v4447_v16, 0.0  ;;  %v4479_v15 = vmul.f32 0.2, %v4447_v16  ;;  %v3166_v18 = vmul.f32 %v12878_v37, %v3091_v34  ;;  %14320 = vmatmul.mubr.msk.f32.gmra.mrb[92].mxu1 %vm665_vm0, %v4494_v11 }
 0x318   :  { %v3165_v24 = vmul.f32 %v12877_v29, %v3086_v0  ;;  %5764 = vperm.xlu1 %15145, %v21516_v61   ;;  %v14208_v23 = vpop.f32.mrb[54].mxu1  ;;  %v21595_v29 = vld [vmem:[#allocation8_spill] sm:$0xff] }
 0x319   :  { %5840 = vperm.xlu0 %15144, %v21576_v35   ;;  %v3101_v55 = vadd.f32 %v17235_v59, %v14208_v23  ;;  %v3095_v3 = vpop.f32.mrb[55].mxu1  ;;  %v17578_v19 = vpop.permute.xlu1 %4943  ;;  %v4495_v58 = vsel %vm4463_vm5, %v4447_v16, %v4479_v15  ;;  %v21596_v16 = vld [vmem:[#allocation21_spill] sm:$0xff]  ;;  %v12884_v15 = vld [vmem:[%s21083_s2 + $0x1d8] sm:$0xff] }
 0x31a   :  { %v3096_v49 = vadd.f32 %v17235_v59, %v3095_v3  ;;  %14229 = vmatprep.mubr.msk.f32.mxu0 %vm665_vm0, %v3165_v24  ;;  %v17582_v12 = vpop.permute.xlu0 %4991  ;;  %14322 = vmatprep.mubr.msk.f32.mxu1 %vm665_vm0, %v4495_v58  ;;  %v12883_v24 = vld [vmem:[%s21083_s2 + $0x1d0] sm:$0xff] }
 0x31b   :  { %14230 = vmatmul.mubr.msk.f32.gmra.mrb[4].mxu0 %vm665_vm0, %v3166_v18  ;;  %v3168_v28 = vmul.f32 %v12880_v46, %v3101_v55  ;;  %14323 = vmatmul.mubr.msk.f32.gmra.mrb[94].mxu1 %vm665_vm0, %v4496_v8  ;;  %v21597_v18 = vld [vmem:[#allocation10_spill] sm:$0xff]  ;;  %v21598_v55 = vld [vmem:[#allocation23_spill] sm:$0xff]  ;;  %v12885_v8 = vld [vmem:[%s21083_s2 + $0x1e0] sm:$0xff] }
 0x31c   :  { %v3167_v30 = vmul.f32 %v12879_v6, %v3096_v49  ;;  %5788 = vperm.xlu1 %15145, %v21593_v44   ;;  %v14211_v25 = vpop.f32.mrb[56].mxu1 }
 0x31d   :  { %5848 = vperm.xlu0 %15144, %v21594_v14   ;;  %v3111_v63 = vadd.f32 %v17235_v59, %v14211_v25  ;;  %v3105_v62 = vpop.f32.mrb[57].mxu1  ;;  %v21610_v14 = vld [vmem:[#allocation24_spill] sm:$0xff] }
 0x31e   :  { %v17596_v31 = vpop.permute.xlu1 %4947  ;;  %v3106_v39 = vadd.f32 %v17235_v59, %v3105_v62  ;;  %14232 = vmatprep.mubr.msk.f32.mxu0 %vm665_vm0, %v3167_v30  ;;  %v21599_v62 = vld [vmem:[#allocation12_spill] sm:$0xff] }
 0x31f   :  { %v17600_v34 = vpop.permute.xlu0 %5015  ;;  %14233 = vmatmul.mubr.msk.f32.gmra.mrb[6].mxu0 %vm665_vm0, %v3168_v28  ;;  %v3170_v42 = vmul.f32 %v12882_v40, %v3111_v63  ;;  %v12886_v28 = vld [vmem:[%s21083_s2 + $0x1e8] sm:$0xff] }
 0x320   :  { %v3169_v4 = vmul.f32 %v12881_v2, %v3106_v39  ;;  %5796 = vperm.xlu1 %15145, %v21595_v29   ;;  %v21600_v2 = vld [vmem:[#allocation25_spill] sm:$0xff] }
 0x321   :  { %5888 = vperm.xlu0 %15144, %v21596_v16  }
 0x322   :  { %v14214_v37 = vpop.f32.mrb[58].mxu1  ;;  %v17605_v0 = vpop.permute.xlu1 %4955  ;;  %14235 = vmatprep.mubr.msk.f32.mxu0 %vm665_vm0, %v3169_v4 }
 0x323   :  { %v3121_v21 = vadd.f32 %v17235_v59, %v14214_v37  ;;  %v3115_v11 = vpop.f32.mrb[59].mxu1  ;;  %v17612_v23 = vpop.permute.xlu0 %5023  ;;  %14236 = vmatmul.mubr.msk.f32.gmra.mrb[8].mxu0 %vm665_vm0, %v3170_v42 }
 0x324   :  { %v3116_v1 = vadd.f32 %v17235_v59, %v3115_v11  ;;  %5804 = vperm.xlu1 %15145, %v21597_v18   ;;  %v12887_v11 = vld [vmem:[%s21083_s2 + $0x1f0] sm:$0xff] }
 0x325   :  { %5896 = vperm.xlu0 %15144, %v21598_v55   ;;  %v3172_v49 = vmul.f32 %v12884_v15, %v3121_v21  ;;  %v12888_v15 = vld [vmem:[%s21083_s2 + $0x1f8] sm:$0xff] }
 0x326   :  { %v3171_v3 = vmul.f32 %v12883_v24, %v3116_v1  ;;  %v14217_v6 = vpop.f32.mrb[60].mxu1  ;;  %v17621_v46 = vpop.permute.xlu1 %4963 }
 0x327   :  { %v3131_v58 = vadd.f32 %v17235_v59, %v14217_v6  ;;  %v3125_v30 = vpop.f32.mrb[61].mxu1  ;;  %v17627_v25 = vpop.permute.xlu0 %5031  ;;  %v21602_v6 = vld [vmem:[#allocation27_spill] sm:$0xff] }
 0x328   :  { %v3126_v63 = vadd.f32 %v17235_v59, %v3125_v30  ;;  %14238 = vmatprep.mubr.msk.f32.mxu0 %vm665_vm0, %v3171_v3  ;;  %5812 = vperm.xlu1 %15145, %v21599_v62   ;;  %v21601_v3 = vld [vmem:[#allocation14_spill] sm:$0xff] }
 0x329   :  { %14239 = vmatmul.mubr.msk.f32.gmra.mrb[10].mxu0 %vm665_vm0, %v3172_v49  ;;  %5904 = vperm.xlu0 %15144, %v21600_v2   ;;  %v3174_v42 = vmul.f32 %v12886_v28, %v3131_v58  ;;  %v21603_v28 = vld [vmem:[#allocation16_spill] sm:$0xff] }
 0x32a   :  { %v3173_v40 = vmul.f32 %v12885_v8, %v3126_v63  ;;  %v14220_v39 = vpop.f32.mrb[62].mxu1  ;;  %v17637_v4 = vpop.permute.xlu1 %4971 }
 0x32b   :  { %v3141_v37 = vadd.f32 %v17235_v59, %v14220_v39  ;;  %v3135_v21 = vpop.f32.mrb[63].mxu1  ;;  %v17643_v24 = vpop.permute.xlu0 %5039  ;;  %v21605_v39 = vld [vmem:[#allocation18_spill] sm:$0xff] }
 0x32c   :  { %v3136_v1 = vadd.f32 %v17235_v59, %v3135_v21  ;;  %14241 = vmatprep.mubr.msk.f32.mxu0 %vm665_vm0, %v3173_v40  ;;  %5820 = vperm.xlu1 %15145, %v21601_v3   ;;  %v21604_v59 = vld [vmem:[#allocation29_spill] sm:$0xff] }
 0x32d   :  { %14242 = vmatmul.mubr.msk.f32.gmra.mrb[12].mxu0 %vm665_vm0, %v3174_v42  ;;  %5912 = vperm.xlu0 %15144, %v21602_v6   ;;  %v3176_v30 = vmul.f32 %v12888_v15, %v3141_v37  ;;  %v21606_v42 = vld [vmem:[#allocation31_spill] sm:$0xff]  ;;  %v21608_v15 = vld [vmem:[#allocation33_spill] sm:$0xff] }
 0x32e   :  { %v3175_v49 = vmul.f32 %v12887_v11, %v3136_v1  ;;  %v17653_v58 = vpop.permute.xlu1 %4979  ;;  %v21607_v11 = vld [vmem:[#allocation20_spill] sm:$0xff] }
 0x32f   :  { %v17655_v8 = vpop.permute.xlu0 %5047 }
 0x330   :  { %14244 = vmatprep.mubr.msk.f32.mxu0 %vm665_vm0, %v3175_v49  ;;  %5828 = vperm.xlu1 %15145, %v21603_v28  }
 0x331   :  { %14245 = vmatmul.mubr.msk.f32.gmra.mrb[14].mxu0 %vm665_vm0, %v3176_v30  ;;  %5920 = vperm.xlu0 %15144, %v21604_v59   ;;  %v5078_v30 = vmul.f32 %v17477_v9, %v17600_v34  ;;  %v21609_v59 = vld [vmem:[#allocation22_spill] sm:$0xff]  ;;  %v15244_v34 = vmov 8  }
 0x332   :  { %v17661_v63 = vpop.permute.xlu1 %4987 }
 0x333   :  { %v17663_v40 = vpop.permute.xlu0 %5055 }
 0x334   :  { %5836 = vperm.xlu1 %15145, %v21605_v39  }
 0x335   :  { %5928 = vperm.xlu0 %15144, %v21606_v42   ;;  %v17682_v42 = vld [vmem:[%s21087_s6] ss:$0 sm:$0xff] }
 0x336   :  { %v17667_v21 = vpop.permute.xlu1 %4995  ;;  %v4998_v6 = vmul.f32 %v17682_v42, %v17558_v56 }
 0x337   :  { %v17669_v37 = vpop.permute.xlu0 %5063 }
 0x338   :  { %5844 = vperm.xlu1 %15145, %v21607_v11   ;;  %v5094_v55 = vadd.f32 %v5078_v30, %v4998_v6  ;;  %v21612_v30 = vld [vmem:[#allocation28_spill] sm:$0xff] }
 0x339   :  { %5936 = vperm.xlu0 %15144, %v21608_v15  }
 0x33a   :  { %v5020_v1 = vpop.permute.xlu1 %5019 }
 0x33b   :  { %v17673_v49 = vpop.permute.xlu0 %5071 }
 0x33c   :  { %5884 = vperm.xlu1 %15145, %v21609_v59   ;;  %v21616_v59 = vld [vmem:[#allocation36_spill] sm:$0xff] }
 0x33d   :  { %5944 = vperm.xlu0 %15144, %v21586_v26  }
 0x33e   :  { %v5028_v2 = vpop.permute.xlu1 %5027 }
 0x33f   :  { %v5112_v15 = vpop.permute.xlu0 %5111 }
 0x340   :  { %v5174_v16 = vmul.f32 %v17513_v45, %v5112_v15  ;;  %5892 = vperm.xlu1 %15145, %v21610_v14   ;;  %v5079_v14 = vmul.f32 %v17477_v9, %v5020_v1  ;;  %v5004_v1 = vmul.f32 %v17682_v42, %v17489_v27  ;;  %v17753_v27 = vmul.f32 %v17682_v42, %v17563_v60  ;;  %v21617_v60 = vld [vmem:[#allocation37_spill] sm:$0xff] }
 0x341   :  { %15147 = vset.pattern.permute.xlu0 %v15244_v34 }
 0x342   :  { %v5190_v35 = vadd.f32 %v5174_v16, %v5094_v55  ;;  %6485 = vperm.xlu0 %15147, %v21588_v13   ;;  %v17689_v26 = vpop.permute.xlu1 %5035 }
 0x343   :  { %v5120_v41 = vpop.permute.xlu0 %5119 }
 0x344   :  { %v5206_v32 = vadd.f32 %v17507_v7, %v5190_v35  ;;  %5900 = vperm.xlu1 %15145, %v21611_v38   ;;  %v21613_v35 = vld [vmem:[#allocation30_spill] sm:$0xff]  ;;  %v21614_v38 = vld [vmem:[#allocation32_spill] sm:$0xff] }
 0x346   :  { %6497 = vperm.xlu0 %15147, %v21589_v50   ;;  %v17694_v56 = vpop.permute.xlu1 %5043  ;;  %vm5222_vm7 = vcmp.gt.f32.partialorder %v5206_v32, 0.0  ;;  %v5238_v6 = vmul.f32 0.2, %v5206_v32 }
 0x347   :  { %v5128_v15 = vpop.permute.xlu0 %5127 }
 0x348   :  { %5908 = vperm.xlu1 %15145, %v21612_v30   ;;  %v5254_v54 = vsel %vm5222_vm7, %v5206_v32, %v5238_v6  ;;  %v5080_v30 = vmul.f32 %v17477_v9, %v17612_v23  ;;  %v5000_v6 = vmul.f32 %v17682_v42, %v17578_v19 }
 0x349   :  { %14353 = vmatprep.mubr.msk.f32.mxu1 %vm665_vm0, %v5254_v54 }
 0x34a   :  { %6505 = vperm.xlu0 %15147, %v21590_v52   ;;  %v17699_v16 = vpop.permute.xlu1 %5051  ;;  %v5176_v52 = vmul.f32 %v17513_v45, %v5120_v41  ;;  %v5096_v23 = vadd.f32 %v5080_v30, %v5000_v6  ;;  %v17732_v41 = vld [vmem:[%s21093_s12 + $0x28] sm:$0xff] }
 0x34b   :  { %v5136_v55 = vpop.permute.xlu0 %5135  ;;  %14325 = vmatprep.subr.mxu0 %v17732_v41 }
 0x34c   :  { %5916 = vperm.xlu1 %15145, %v21613_v35   ;;  %v21615_v35 = vld [vmem:[#allocation34_spill] sm:$0xff] }
 0x34e   :  { %6513 = vperm.xlu0 %15147, %v21591_v57   ;;  %v17703_v50 = vpop.permute.xlu1 %5059  ;;  %v5082_v57 = vmul.f32 %v17477_v9, %v17627_v25  ;;  %v5192_v25 = vadd.f32 %v5176_v52, %v5096_v23  ;;  %v5008_v52 = vmul.f32 %v17682_v42, %v17541_v51  ;;  %v5001_v51 = vmul.f32 %v17682_v42, %v17596_v31 }
 0x34f   :  { %v5144_v13 = vpop.permute.xlu0 %5143 }
 0x350   :  { %5924 = vperm.xlu1 %15145, %v21614_v38   ;;  %v5002_v38 = vmul.f32 %v17682_v42, %v17464_v48  ;;  %v4999_v48 = vmul.f32 %v17682_v42, %v17445_v36  ;;  %v5081_v36 = vmul.f32 %v17477_v9, %v5028_v2 }
 0x352   :  { %6521 = vperm.xlu0 %15147, %v21592_v33   ;;  %v17709_v54 = vpop.permute.xlu1 %5067  ;;  %v5178_v33 = vmul.f32 %v17513_v45, %v5128_v15  ;;  %v5098_v20 = vadd.f32 %v5082_v57, %v5002_v38  ;;  %v5084_v15 = vmul.f32 %v17477_v9, %v17643_v24  ;;  %v5006_v38 = vmul.f32 %v17682_v42, %v17522_v47 }
 0x353   :  { %v17711_v32 = vpop.permute.xlu0 %5151  ;;  %v5095_v6 = vadd.f32 %v5079_v14, %v4999_v48  ;;  %v5180_v24 = vmul.f32 %v17513_v45, %v5136_v55  ;;  %v17757_v47 = vmul.f32 %v17682_v42, %v17582_v12  ;;  %v5003_v14 = vmul.f32 %v17682_v42, %v17605_v0 }
 0x354   :  { %5932 = vperm.xlu1 %15145, %v21615_v35   ;;  %v5194_v57 = vadd.f32 %v5178_v33, %v5098_v20  ;;  %v5086_v20 = vmul.f32 %v17477_v9, %v17655_v8  ;;  %v5208_v33 = vadd.f32 %v17507_v7, %v5192_v25  ;;  %v5100_v2 = vadd.f32 %v5084_v15, %v5004_v1 }
 0x355   :  { %v5005_v12 = vmul.f32 %v17682_v42, %v17621_v46  ;;  %v17771_v48 = vmul.f32 %v17682_v42, %v17637_v4  ;;  %v5083_v8 = vmul.f32 %v17477_v9, %v17689_v26  ;;  %v5097_v0 = vadd.f32 %v5081_v36, %v5001_v51 }
 0x356   :  { %6529 = vperm.xlu0 %15147, %v15652_v5   ;;  %v17723_v53 = vpop.permute.xlu1 %5075  ;;  %v5196_v25 = vadd.f32 %v5180_v24, %v5100_v2  ;;  %v5088_v46 = vmul.f32 %v17477_v9, %v17663_v40  ;;  %v5182_v4 = vmul.f32 %v17513_v45, %v5144_v13  ;;  %v5240_v26 = vmul.f32 0.2, %v5208_v33 }
 0x357   :  { %v17726_v19 = vpop.permute.xlu0 %5159  ;;  %vm5224_vm9 = vcmp.gt.f32.partialorder %v5208_v33, 0.0  ;;  %v5099_v36 = vadd.f32 %v5083_v8, %v5003_v14  ;;  %v5085_v24 = vmul.f32 %v17477_v9, %v17694_v56  ;;  %v5184_v14 = vmul.f32 %v17513_v45, %v17711_v32 }
 0x358   :  { %5940 = vperm.xlu1 %15145, %v21616_v59   ;;  %v5212_v13 = vadd.f32 %v17507_v7, %v5196_v25  ;;  %v5256_v56 = vsel %vm5224_vm9, %v5208_v33, %v5240_v26  ;;  %v5087_v32 = vmul.f32 %v17477_v9, %v17699_v16 }
 0x35a   :  { %6537 = vperm.xlu0 %15147, %v21516_v61   ;;  %v5116_v30 = vpop.permute.xlu1 %5115  ;;  %v5244_v26 = vmul.f32 0.2, %v5212_v13  ;;  %vm5228_vm12 = vcmp.gt.f32.partialorder %v5212_v13, 0.0 }
 0x35b   :  { %v5175_v23 = vmul.f32 %v17513_v45, %v5116_v30  ;;  %v17749_v5 = vpop.permute.xlu0 %5167  ;;  %v5102_v30 = vadd.f32 %v5086_v20, %v5006_v38 }
 0x35c   :  { %15146 = vset.pattern.permute.xlu1 %v15244_v34  ;;  %v5210_v34 = vadd.f32 %v17507_v7, %v5194_v57 }
 0x35d   :  { %v5191_v55 = vadd.f32 %v5175_v23, %v5095_v6  ;;  %6481 = vperm.xlu1 %15146, %v21617_v60  }
 0x35e   :  { %6561 = vperm.xlu0 %15147, %v21593_v44   ;;  %v5124_v31 = vpop.permute.xlu1 %5123  ;;  %vm5226_vm10 = vcmp.gt.f32.partialorder %v5210_v34, 0.0  ;;  %v5242_v40 = vmul.f32 0.2, %v5210_v34 }
 0x35f   :  { %v5207_v15 = vadd.f32 %v17507_v7, %v5191_v55  ;;  %v5177_v1 = vmul.f32 %v17513_v45, %v5124_v31  ;;  %v5104_v55 = vadd.f32 %v5088_v46, %v5008_v52  ;;  %v5198_v31 = vadd.f32 %v5182_v4, %v5102_v30 }
 0x360   :  { %v17782_v6 = vpop.permute.xlu0 %5708  ;;  %v5258_v46 = vsel %vm5226_vm10, %v5210_v34, %v5242_v40  ;;  %v5186_v34 = vmul.f32 %v17513_v45, %v17726_v19  ;;  %v5092_v19 = vmul.f32 %v17477_v9, %v17673_v49 }
 0x361   :  { %vm5223_vm8 = vcmp.gt.f32.partialorder %v5207_v15, 0.0  ;;  %v5239_v57 = vmul.f32 0.2, %v5207_v15  ;;  %v5193_v23 = vadd.f32 %v5177_v1, %v5097_v0  ;;  %6489 = vperm.xlu1 %15146, %v15600_v10   ;;  %v5090_v0 = vmul.f32 %v17477_v9, %v17669_v37  ;;  %v21618_v1 = vld [vmem:[#allocation40_spill] sm:$0xff]  ;;  %v17808_v37 = vld [vmem:[%s21091_s10] sm:$0xff] }
 0x362   :  { %6569 = vperm.xlu0 %15147, %v21595_v29   ;;  %v5132_v38 = vpop.permute.xlu1 %5131  ;;  %v5214_v16 = vadd.f32 %v17507_v7, %v5198_v31 }
 0x363   :  { %v5209_v20 = vadd.f32 %v17507_v7, %v5193_v23  ;;  %v5179_v51 = vmul.f32 %v17513_v45, %v5132_v38  ;;  %v5255_v2 = vsel %vm5223_vm8, %v5207_v15, %v5239_v57  ;;  %v5101_v15 = vadd.f32 %v5085_v24, %v5005_v12  ;;  %v21619_v38 = vld [vmem:[#allocation42_spill] sm:$0xff] }
 0x364   :  { %v17793_v8 = vpop.permute.xlu0 %5720  ;;  %14354 = vmatmul.mubr.msk.f32.vlgmr.msra.gmra.mrb[96].mxu1 %vm665_vm0, %v5255_v2  ;;  %v5200_v57 = vadd.f32 %v5184_v14, %v5104_v55  ;;  %v5089_v2 = vmul.f32 %v17477_v9, %v17703_v50  ;;  %vm5230_vm14 = vcmp.gt.f32.partialorder %v5214_v16, 0.0  ;;  %v5246_v49 = vmul.f32 0.2, %v5214_v16 }
 0x365   :  { %v5195_v25 = vadd.f32 %v5179_v51, %v5099_v36  ;;  %6493 = vperm.xlu1 %15146, %v21618_v1   ;;  %14356 = vmatprep.mubr.msk.f32.mxu1 %vm665_vm0, %v5256_v56  ;;  %vm5225_vm11 = vcmp.gt.f32.partialorder %v5209_v20, 0.0  ;;  %v5241_v52 = vmul.f32 0.2, %v5209_v20  ;;  %v5009_v36 = vmul.f32 %v17682_v42, %v17653_v58 }
 0x366   :  { %6577 = vperm.xlu0 %15147, %v21597_v18   ;;  %v5140_v30 = vpop.permute.xlu1 %5139  ;;  %14404 = vmatpush3.msra.mxu1 %v17808_v37  ;;  %v5103_v51 = vadd.f32 %v5087_v32, %v17771_v48  ;;  %v5260_v56 = vsel %vm5228_vm12, %v5212_v13, %v5244_v26  ;;  %v5188_v50 = vmul.f32 %v17513_v45, %v17749_v5 }
 0x367   :  { %v5211_v33 = vadd.f32 %v17507_v7, %v5195_v25  ;;  %v5181_v4 = vmul.f32 %v17513_v45, %v5140_v30  ;;  %v5257_v12 = vsel %vm5225_vm11, %v5209_v20, %v5241_v52  ;;  %14455 = vmatprep.subr.mxu1 %v17808_v37  ;;  %v5106_v20 = vadd.f32 %v5090_v0, %v17753_v27  ;;  %v21620_v52 = vld [vmem:[#allocation44_spill] sm:$0xff] }
 0x368   :  { %v17817_v23 = vpop.permute.xlu0 %5728  ;;  %14357 = vmatmul.mubr.msk.f32.gmra.mrb[98].mxu1 %vm665_vm0, %v5257_v12  ;;  %v5216_v27 = vadd.f32 %v17507_v7, %v5200_v57  ;;  %v5108_v13 = vadd.f32 %v5092_v19, %v17757_v47  ;;  %v5105_v32 = vadd.f32 %v5089_v2, %v5009_v36  ;;  %v5011_v12 = vmul.f32 %v17682_v42, %v17661_v63  ;;  %v12922_v63 = vld [vmem:[%s21083_s2 + $0x200] sm:$0xff] }
 0x369   :  { %v5197_v24 = vadd.f32 %v5181_v4, %v5101_v15  ;;  %6501 = vperm.xlu1 %15146, %v21619_v38   ;;  %14359 = vmatprep.mubr.msk.f32.mxu1 %vm665_vm0, %v5258_v46  ;;  %vm5227_vm13 = vcmp.gt.f32.partialorder %v5211_v33, 0.0  ;;  %v5243_v40 = vmul.f32 0.2, %v5211_v33  ;;  %v5202_v0 = vadd.f32 %v5186_v34, %v5106_v20 }
 0x36a   :  { %6585 = vperm.xlu0 %15147, %v21599_v62   ;;  %v5148_v58 = vpop.permute.xlu1 %5147  ;;  %v5091_v46 = vmul.f32 %v17477_v9, %v17709_v54  ;;  %v5262_v34 = vsel %vm5230_vm14, %v5214_v16, %v5246_v49  ;;  %v5248_v36 = vmul.f32 0.2, %v5216_v27  ;;  %vm5232_vm2 = vcmp.gt.f32.partialorder %v5216_v27, 0.0  ;;  %v17865_v16 = vld [vmem:[%s21092_s11] ss:$0 sm:$0xff] }
 0x36b   :  { %v5213_v55 = vadd.f32 %v17507_v7, %v5197_v24  ;;  %v5183_v31 = vmul.f32 %v17513_v45, %v5148_v58  ;;  %v5259_v14 = vsel %vm5227_vm13, %v5211_v33, %v5243_v40  ;;  %v5218_v26 = vadd.f32 %v17507_v7, %v5202_v0  ;;  %v21621_v40 = vld [vmem:[#allocation46_spill] sm:$0xff] }
 0x36c   :  { %v17835_v25 = vpop.permute.xlu0 %5736  ;;  %14360 = vmatmul.mubr.msk.f32.gmra.mrb[100].mxu1 %vm665_vm0, %v5259_v14  ;;  %v5204_v24 = vadd.f32 %v5188_v50, %v5108_v13  ;;  %v5013_v19 = vmul.f32 %v17682_v42, %v17667_v21  ;;  %v5093_v14 = vmul.f32 %v17477_v9, %v17723_v53  ;;  %v12923_v21 = vld [vmem:[%s21083_s2 + $0x208] sm:$0xff]  ;;  %v5264_v13 = vsel %vm5232_vm2, %v5216_v27, %v5248_v36  ;;  %v12925_v36 = vld [vmem:[%s21083_s2 + $0x218] sm:$0xff] }
 0x36d   :  { %v5199_v48 = vadd.f32 %v5183_v31, %v5103_v51  ;;  %6509 = vperm.xlu1 %15146, %v21620_v52   ;;  %14362 = vmatprep.mubr.msk.f32.mxu1 %vm665_vm0, %v5260_v56  ;;  %vm5229_vm15 = vcmp.gt.f32.partialorder %v5213_v55, 0.0  ;;  %v5245_v15 = vmul.f32 0.2, %v5213_v55  ;;  %v5107_v31 = vadd.f32 %v5091_v46, %v5011_v12  ;;  %v12924_v46 = vld [vmem:[%s21083_s2 + $0x210] sm:$0xff] }
 0x36e   :  { %6593 = vperm.xlu0 %15147, %v21601_v3   ;;  %v5156_v30 = vpop.permute.xlu1 %5155  ;;  %vm5234_vm4 = vcmp.gt.f32.partialorder %v5218_v26, 0.0 }
 0x36f   :  { %v5215_v33 = vadd.f32 %v17507_v7, %v5199_v48  ;;  %v5185_v5 = vmul.f32 %v17513_v45, %v5156_v30  ;;  %v5261_v4 = vsel %vm5229_vm15, %v5213_v55, %v5245_v15  ;;  %v5220_v30 = vadd.f32 %v17507_v7, %v5204_v24 }
 0x370   :  { %v17851_v57 = vpop.permute.xlu0 %5744  ;;  %14363 = vmatmul.mubr.msk.f32.gmra.mrb[102].mxu1 %vm665_vm0, %v5261_v4  ;;  %v14251_v47 = vpop.f32.mrb[64].mxu1 }
 0x371   :  { %v5201_v54 = vadd.f32 %v5185_v5, %v5105_v32  ;;  %6517 = vperm.xlu1 %15146, %v21621_v40   ;;  %14365 = vmatprep.mubr.msk.f32.mxu1 %vm665_vm0, %v5262_v34  ;;  %v3838_v20 = vpop.f32.mrb[65].mxu1  ;;  %vm5231_vm1 = vcmp.gt.f32.partialorder %v5215_v33, 0.0  ;;  %v3844_v51 = vadd.f32 %v17865_v16, %v14251_v47  ;;  %v5247_v55 = vmul.f32 0.2, %v5215_v33 }
 0x372   :  { %6601 = vperm.xlu0 %15147, %v21603_v28   ;;  %v5164_v2 = vpop.permute.xlu1 %5163  ;;  %v3839_v58 = vadd.f32 %v17865_v16, %v3838_v20  ;;  %v5250_v32 = vmul.f32 0.2, %v5218_v26  ;;  %v5109_v47 = vadd.f32 %v5093_v14, %v5013_v19  ;;  %vm5236_vm6 = vcmp.gt.f32.partialorder %v5220_v30, 0.0  ;;  %v21640_v28 = vld [vmem:[#allocation29_spill] sm:$0xff] }
 0x373   :  { %v5217_v56 = vadd.f32 %v17507_v7, %v5201_v54  ;;  %v5187_v0 = vmul.f32 %v17513_v45, %v5164_v2  ;;  %v5263_v48 = vsel %vm5231_vm1, %v5215_v33, %v5247_v55  ;;  %v3935_v5 = vmul.f32 %v12923_v21, %v3844_v51 }
 0x374   :  { %v3934_v49 = vmul.f32 %v12922_v63, %v3839_v58  ;;  %v17877_v50 = vpop.permute.xlu0 %5752  ;;  %v14254_v15 = vpop.f32.mrb[66].mxu1  ;;  %14366 = vmatmul.mubr.msk.f32.gmra.mrb[104].mxu1 %vm665_vm0, %v5263_v48  ;;  %v5266_v19 = vsel %vm5234_vm4, %v5218_v26, %v5250_v32  ;;  %v5252_v55 = vmul.f32 0.2, %v5220_v30 }
 0x375   :  { %v5203_v53 = vadd.f32 %v5187_v0, %v5107_v31  ;;  %6525 = vperm.xlu1 %15146, %v15649_v22   ;;  %v3848_v9 = vpop.f32.mrb[67].mxu1  ;;  %vm5233_vm3 = vcmp.gt.f32.partialorder %v5217_v56, 0.0  ;;  %v3854_v33 = vadd.f32 %v17865_v16, %v14254_v15  ;;  %14368 = vmatprep.mubr.msk.f32.mxu1 %vm665_vm0, %v5264_v13  ;;  %v5249_v12 = vmul.f32 0.2, %v5217_v56  ;;  %v12927_v0 = vld [vmem:[%s21083_s2 + $0x228] sm:$0xff] }
 0x376   :  { %6609 = vperm.xlu0 %15147, %v21605_v39   ;;  %v5172_v27 = vpop.permute.xlu1 %5171  ;;  %v3849_v4 = vadd.f32 %v17865_v16, %v3848_v9  ;;  %14275 = vmatprep.mubr.msk.f32.mxu0 %vm665_vm0, %v3934_v49  ;;  %v12928_v9 = vld [vmem:[%s21083_s2 + $0x230] sm:$0xff] }
 0x377   :  { %v5219_v34 = vadd.f32 %v17507_v7, %v5203_v53  ;;  %v5189_v24 = vmul.f32 %v17513_v45, %v5172_v27  ;;  %14276 = vmatmul.mubr.msk.f32.vlgmr.msra.gmra.mrb[0].mxu0 %vm665_vm0, %v3935_v5  ;;  %v5265_v63 = vsel %vm5233_vm3, %v5217_v56, %v5249_v12  ;;  %v12926_v45 = vld [vmem:[%s21083_s2 + $0x220] sm:$0xff]  ;;  %v3937_v31 = vmul.f32 %v12925_v36, %v3854_v33  ;;  %v21622_v33 = vld [vmem:[#allocation22_spill] sm:$0xff] }
 0x378   :  { %v3936_v54 = vmul.f32 %v12924_v46, %v3849_v4  ;;  %v17897_v20 = vpop.permute.xlu0 %5760  ;;  %v14257_v51 = vpop.f32.mrb[68].mxu1  ;;  %14369 = vmatmul.mubr.msk.f32.gmra.mrb[106].mxu1 %vm665_vm0, %v5265_v63  ;;  %14326 = vmatpush3.msra.mxu0 %v17732_v41  ;;  %v12930_v63 = vld [vmem:[%s21083_s2 + $0x240] sm:$0xff] }
 0x379   :  { %v5205_v2 = vadd.f32 %v5189_v24, %v5109_v47  ;;  %6533 = vperm.xlu1 %15146, %v15657_v43   ;;  %v3858_v58 = vpop.f32.mrb[69].mxu1  ;;  %vm5235_vm5 = vcmp.gt.f32.partialorder %v5219_v34, 0.0  ;;  %v3864_v14 = vadd.f32 %v17865_v16, %v14257_v51  ;;  %14371 = vmatprep.mubr.msk.f32.mxu1 %vm665_vm0, %v5266_v19  ;;  %v5251_v56 = vmul.f32 0.2, %v5219_v34  ;;  %v21623_v24 = vld [vmem:[#allocation5_spill] sm:$0xff] }
 0x37a   :  { %6617 = vperm.xlu0 %15147, %v21607_v11   ;;  %v3859_v26 = vadd.f32 %v17865_v16, %v3858_v58  ;;  %14278 = vmatprep.mubr.msk.f32.mxu0 %vm665_vm0, %v3936_v54  ;;  %v21639_v11 = vld [vmem:[#allocation27_spill] sm:$0xff] }
 0x37b   :  { %v5221_v21 = vadd.f32 %v17507_v7, %v5205_v2  ;;  %v17915_v49 = vpop.permute.xlu1 %5712  ;;  %14279 = vmatmul.mubr.msk.f32.gmra.mrb[2].mxu0 %vm665_vm0, %v3937_v31  ;;  %v5267_v13 = vsel %vm5235_vm5, %v5219_v34, %v5251_v56  ;;  %v5268_v7 = vsel %vm5236_vm6, %v5220_v30, %v5252_v55  ;;  %v3939_v46 = vmul.f32 %v12927_v0, %v3864_v14  ;;  %v12929_v30 = vld [vmem:[%s21083_s2 + $0x238] sm:$0xff] }
 0x37c   :  { %v3938_v48 = vmul.f32 %v12926_v45, %v3859_v26  ;;  %v17919_v15 = vpop.permute.xlu0 %5768  ;;  %v14260_v32 = vpop.f32.mrb[70].mxu1  ;;  %14372 = vmatmul.mubr.msk.f32.gmra.mrb[108].mxu1 %vm665_vm0, %v5267_v13  ;;  %v21624_v2 = vld [vmem:[#allocation24_spill] sm:$0xff]  ;;  %v12931_v45 = vld [vmem:[%s21083_s2 + $0x248] sm:$0xff]  ;;  %v21625_v26 = vld [vmem:[#allocation7_spill] sm:$0xff]  ;;  %v5772_v3 = vmul.f32 %v17682_v42, %v17915_v49 }
 0x37d   :  { %6541 = vperm.xlu1 %15146, %v21563_v17   ;;  %v3868_v53 = vpop.f32.mrb[71].mxu1  ;;  %vm5237_vm7 = vcmp.gt.f32.partialorder %v5221_v21, 0.0  ;;  %v5253_v41 = vmul.f32 0.2, %v5221_v21  ;;  %v3874_v5 = vadd.f32 %v17865_v16, %v14260_v32  ;;  %14374 = vmatprep.mubr.msk.f32.mxu1 %vm665_vm0, %v5268_v7  ;;  %v12932_v32 = vld [vmem:[%s21083_s2 + $0x250] sm:$0xff]  ;;  %v12933_v7 = vld [vmem:[%s21083_s2 + $0x258] sm:$0xff] }
 0x37e   :  { %6657 = vperm.xlu0 %15147, %v21622_v33   ;;  %v3869_v27 = vadd.f32 %v17865_v16, %v3868_v53  ;;  %14281 = vmatprep.mubr.msk.f32.mxu0 %vm665_vm0, %v3938_v48  ;;  %v21626_v48 = vld [vmem:[#allocation26_spill] sm:$0xff]  ;;  %v21638_v33 = vld [vmem:[#allocation25_spill] sm:$0xff] }
 0x37f   :  { %v17936_v4 = vpop.permute.xlu1 %5716  ;;  %v5269_v12 = vsel %vm5237_vm7, %v5221_v21, %v5253_v41  ;;  %14282 = vmatmul.mubr.msk.f32.gmra.mrb[4].mxu0 %vm665_vm0, %v3939_v46  ;;  %v3941_v51 = vmul.f32 %v12929_v30, %v3874_v5  ;;  %v21627_v5 = vld [vmem:[#allocation9_spill] sm:$0xff] }
 0x380   :  { %v3940_v47 = vmul.f32 %v12928_v9, %v3869_v27  ;;  %v17939_v34 = vpop.permute.xlu0 %5792  ;;  %v14263_v36 = vpop.f32.mrb[72].mxu1  ;;  %14375 = vmatmul.mubr.msk.f32.gmra.mrb[110].mxu1 %vm665_vm0, %v5269_v12 }
 0x381   :  { %6565 = vperm.xlu1 %15146, %v21623_v24   ;;  %v3878_v54 = vpop.f32.mrb[73].mxu1  ;;  %v3884_v19 = vadd.f32 %v17865_v16, %v14263_v36 }
 0x382   :  { %6665 = vperm.xlu0 %15147, %v21624_v2   ;;  %v3879_v58 = vadd.f32 %v17865_v16, %v3878_v54  ;;  %14284 = vmatprep.mubr.msk.f32.mxu0 %vm665_vm0, %v3940_v47  ;;  %v21628_v47 = vld [vmem:[#allocation28_spill] sm:$0xff]  ;;  %v12934_v54 = vld [vmem:[%s21083_s2 + $0x260] sm:$0xff] }
 0x383   :  { %v17954_v55 = vpop.permute.xlu1 %5724  ;;  %14285 = vmatmul.mubr.msk.f32.gmra.mrb[6].mxu0 %vm665_vm0, %v3941_v51  ;;  %v3943_v21 = vmul.f32 %v12931_v45, %v3884_v19 }
 0x384   :  { %v3942_v31 = vmul.f32 %v12930_v63, %v3879_v58  ;;  %v17956_v14 = vpop.permute.xlu0 %5800  ;;  %v12935_v63 = vld [vmem:[%s21083_s2 + $0x268] sm:$0xff] }
 0x385   :  { %6573 = vperm.xlu1 %15146, %v21625_v26   ;;  %v14266_v56 = vpop.f32.mrb[74].mxu1 }
 0x386   :  { %v3894_v0 = vadd.f32 %v17865_v16, %v14266_v56  ;;  %6673 = vperm.xlu0 %15147, %v21626_v48   ;;  %v3888_v13 = vpop.f32.mrb[75].mxu1  ;;  %14287 = vmatprep.mubr.msk.f32.mxu0 %vm665_vm0, %v3942_v31  ;;  %v21629_v31 = vld [vmem:[#allocation11_spill] sm:$0xff] }
 0x387   :  { %v3889_v53 = vadd.f32 %v17865_v16, %v3888_v13  ;;  %v17970_v9 = vpop.permute.xlu1 %5732  ;;  %14288 = vmatmul.mubr.msk.f32.gmra.mrb[8].mxu0 %vm665_vm0, %v3943_v21  ;;  %v21630_v13 = vld [vmem:[#allocation30_spill] sm:$0xff] }
 0x388   :  { %v17972_v41 = vpop.permute.xlu0 %5808  ;;  %v3945_v30 = vmul.f32 %v12933_v7, %v3894_v0  ;;  %v12936_v7 = vld [vmem:[%s21083_s2 + $0x270] sm:$0xff] }
 0x389   :  { %v3944_v46 = vmul.f32 %v12932_v32, %v3889_v53  ;;  %6581 = vperm.xlu1 %15146, %v21627_v5   ;;  %v14269_v27 = vpop.f32.mrb[76].mxu1  ;;  %v12937_v53 = vld [vmem:[%s21083_s2 + $0x278] sm:$0xff] }
 0x38a   :  { %v3904_v12 = vadd.f32 %v17865_v16, %v14269_v27  ;;  %6681 = vperm.xlu0 %15147, %v21628_v47   ;;  %v3898_v36 = vpop.f32.mrb[77].mxu1 }
 0x38b   :  { %v3899_v51 = vadd.f32 %v17865_v16, %v3898_v36  ;;  %v17985_v19 = vpop.permute.xlu1 %5740  ;;  %14290 = vmatprep.mubr.msk.f32.mxu0 %vm665_vm0, %v3944_v46  ;;  %v21631_v36 = vld [vmem:[#allocation13_spill] sm:$0xff] }
 0x38c   :  { %v17988_v58 = vpop.permute.xlu0 %5816  ;;  %14291 = vmatmul.mubr.msk.f32.gmra.mrb[10].mxu0 %vm665_vm0, %v3945_v30  ;;  %v3947_v21 = vmul.f32 %v12935_v63, %v3904_v12  ;;  %v21632_v63 = vld [vmem:[#allocation32_spill] sm:$0xff] }
 0x38d   :  { %v3946_v45 = vmul.f32 %v12934_v54, %v3899_v51  ;;  %6589 = vperm.xlu1 %15146, %v21629_v31   ;;  %v14272_v56 = vpop.f32.mrb[78].mxu1 }
 0x38e   :  { %v3914_v0 = vadd.f32 %v17865_v16, %v14272_v56  ;;  %6689 = vperm.xlu0 %15147, %v21630_v13   ;;  %v3908_v32 = vpop.f32.mrb[79].mxu1 }
 0x38f   :  { %v3909_v46 = vadd.f32 %v17865_v16, %v3908_v32  ;;  %v18001_v27 = vpop.permute.xlu1 %5748  ;;  %14293 = vmatprep.mubr.msk.f32.mxu0 %vm665_vm0, %v3946_v45  ;;  %v21633_v32 = vld [vmem:[#allocation15_spill] sm:$0xff] }
 0x390   :  { %v18004_v30 = vpop.permute.xlu0 %5824  ;;  %14294 = vmatmul.mubr.msk.f32.gmra.mrb[12].mxu0 %vm665_vm0, %v3947_v21  ;;  %v3949_v54 = vmul.f32 %v12937_v53, %v3914_v0 }
 0x391   :  { %v3948_v12 = vmul.f32 %v12936_v7, %v3909_v46  ;;  %6597 = vperm.xlu1 %15146, %v21631_v36   ;;  %v21634_v7 = vld [vmem:[#allocation17_spill] sm:$0xff]  ;;  %v21635_v46 = vld [vmem:[#allocation19_spill] sm:$0xff] }
 0x392   :  { %6697 = vperm.xlu0 %15147, %v21632_v63   ;;  %v21636_v63 = vld [vmem:[#allocation21_spill] sm:$0xff] }
 0x393   :  { %v18009_v51 = vpop.permute.xlu1 %5756  ;;  %14296 = vmatprep.mubr.msk.f32.mxu0 %vm665_vm0, %v3948_v12  ;;  %v21235_v12 = vmov 9  }
 0x394   :  { %v18012_v56 = vpop.permute.xlu0 %5832  ;;  %14297 = vmatmul.mubr.msk.f32.gmra.mrb[14].mxu0 %vm665_vm0, %v3949_v54 }
 0x395   :  { %6605 = vperm.xlu1 %15146, %v21633_v32  }
 0x396   :  { %6705 = vperm.xlu0 %15147, %v21615_v35  }
 0x397   :  { %v18017_v45 = vpop.permute.xlu1 %5764 }
 0x398   :  { %v18019_v21 = vpop.permute.xlu0 %5840 }
 0x399   :  { %6613 = vperm.xlu1 %15146, %v21634_v7  }
 0x39a   :  { %6713 = vperm.xlu0 %15147, %v21616_v59   ;;  %v21637_v59 = vld [vmem:[#allocation23_spill] sm:$0xff] }
 0x39b   :  { %v5789_v0 = vpop.permute.xlu1 %5788 }
 0x39c   :  { %v18023_v53 = vpop.permute.xlu0 %5848 }
 0x39d   :  { %6621 = vperm.xlu1 %15146, %v21635_v46  }
 0x39e   :  { %15148 = vset.pattern.permute.xlu0 %v21235_v12 }
 0x39f   :  { %7254 = vperm.xlu0 %15148, %v21617_v60   ;;  %v5797_v54 = vpop.permute.xlu1 %5796 }
 0x3a0   :  { %v5889_v35 = vpop.permute.xlu0 %5888 }
 0x3a1   :  { %6661 = vperm.xlu1 %15146, %v21636_v63  }
 0x3a3   :  { %7266 = vperm.xlu0 %15148, %v21618_v1   ;;  %v18030_v13 = vpop.permute.xlu1 %5804 }
 0x3a4   :  { %v5897_v47 = vpop.permute.xlu0 %5896 }
 0x3a5   :  { %6669 = vperm.xlu1 %15146, %v21637_v59  }
 0x3a7   :  { %7274 = vperm.xlu0 %15148, %v21619_v38   ;;  %v18034_v48 = vpop.permute.xlu1 %5812  ;;  %v18051_v38 = vld [vmem:[%s21088_s7] ss:$0 sm:$0xff] }
 0x3a8   :  { %v5905_v2 = vpop.permute.xlu0 %5904 }
 0x3a9   :  { %6677 = vperm.xlu1 %15146, %v21638_v33  }
 0x3ab   :  { %7282 = vperm.xlu0 %15148, %v21620_v52   ;;  %v18038_v12 = vpop.permute.xlu1 %5820  ;;  %v5852_v52 = vmul.f32 %v18051_v38, %v17939_v34  ;;  %v21641_v34 = vld [vmem:[#allocation31_spill] sm:$0xff] }
 0x3ac   :  { %v18040_v60 = vpop.permute.xlu0 %5912 }
 0x3ad   :  { %6685 = vperm.xlu1 %15146, %v21639_v11   ;;  %v5868_v33 = vadd.f32 %v5852_v52, %v5772_v3  ;;  %v21642_v3 = vld [vmem:[#allocation33_spill] sm:$0xff]  ;;  %v5771_v52 = vmul.f32 %v17682_v42, %v17782_v6  ;;  %v5780_v6 = vmul.f32 %v17682_v42, %v17851_v57  ;;  %v21643_v57 = vld [vmem:[#allocation35_spill] sm:$0xff] }
 0x3af   :  { %7290 = vperm.xlu0 %15148, %v21621_v40   ;;  %v18044_v1 = vpop.permute.xlu1 %5828  ;;  %v18061_v40 = vld [vmem:[%s21089_s8] ss:$0 sm:$0xff] }
 0x3b0   :  { %v18046_v39 = vpop.permute.xlu0 %5920  ;;  %v5948_v62 = vmul.f32 %v18061_v40, %v5889_v35  ;;  %v5774_v35 = vmul.f32 %v17682_v42, %v17793_v8  ;;  %v5950_v59 = vmul.f32 %v18061_v40, %v5897_v47  ;;  %v5778_v8 = vmul.f32 %v17682_v42, %v17835_v25  ;;  %v18094_v47 = vld [vmem:[%s21090_s9] ss:$0 sm:$0xff] }
 0x3b1   :  { %6693 = vperm.xlu1 %15146, %v21640_v28   ;;  %v5854_v28 = vmul.f32 %v18051_v38, %v17956_v14 }
 0x3b2   :  { %v5964_v49 = vadd.f32 %v5948_v62, %v5868_v33  ;;  %v5856_v62 = vmul.f32 %v18051_v38, %v17972_v41  ;;  %v5776_v33 = vmul.f32 %v17682_v42, %v17817_v23 }
 0x3b3   :  { %7298 = vperm.xlu0 %15148, %v15649_v22   ;;  %v18065_v11 = vpop.permute.xlu1 %5836  ;;  %v5851_v22 = vmul.f32 %v18051_v38, %v5789_v0  ;;  %v5870_v14 = vadd.f32 %v5854_v28, %v5774_v35  ;;  %v5853_v0 = vmul.f32 %v18051_v38, %v5797_v54  ;;  %v18105_v54 = vmul.f32 %v17682_v42, %v17877_v50 }
 0x3b4   :  { %v18067_v18 = vpop.permute.xlu0 %5928  ;;  %v5775_v50 = vmul.f32 %v17682_v42, %v17954_v55 }
 0x3b5   :  { %6701 = vperm.xlu1 %15146, %v21641_v34   ;;  %v5867_v41 = vadd.f32 %v5851_v22, %v5771_v52  ;;  %v5966_v23 = vadd.f32 %v5950_v59, %v5870_v14  ;;  %v18118_v22 = vld [vmem:[%s21093_s12 + $0x30] sm:$0xff]  ;;  %v18122_v59 = vmul.f32 %v17682_v42, %v17919_v15 }
 0x3b6   :  { %14377 = vmatprep.subr.mxu0 %v18118_v22 }
 0x3b7   :  { %7306 = vperm.xlu0 %15148, %v15657_v43   ;;  %v18073_v29 = vpop.permute.xlu1 %5844  ;;  %v5980_v43 = vadd.f32 %v18094_v47, %v5964_v49  ;;  %v5773_v49 = vmul.f32 %v17682_v42, %v17936_v4  ;;  %v5858_v4 = vmul.f32 %v18051_v38, %v17988_v58  ;;  %v5982_v15 = vadd.f32 %v18094_v47, %v5966_v23 }
 0x3b8   :  { %v18079_v44 = vpop.permute.xlu0 %5936  ;;  %v5779_v58 = vmul.f32 %v17682_v42, %v17985_v19  ;;  %v5860_v23 = vmul.f32 %v18051_v38, %v18004_v30 }
 0x3b9   :  { %6709 = vperm.xlu1 %15146, %v21642_v3   ;;  %v18109_v3 = vmul.f32 %v17682_v42, %v17897_v20  ;;  %v5872_v20 = vadd.f32 %v5856_v62, %v5776_v33  ;;  %v6012_v14 = vmul.f32 0.2, %v5980_v43  ;;  %vm5996_vm8 = vcmp.gt.f32.partialorder %v5980_v43, 0.0 }
 0x3ba   :  { %v5777_v33 = vmul.f32 %v17682_v42, %v17970_v9  ;;  %v5874_v9 = vadd.f32 %v5858_v4, %v5778_v8  ;;  %v5956_v8 = vmul.f32 %v18061_v40, %v18046_v39  ;;  %vm5998_vm10 = vcmp.gt.f32.partialorder %v5982_v15, 0.0 }
 0x3bb   :  { %7314 = vperm.xlu0 %15148, %v21563_v17   ;;  %v5885_v28 = vpop.permute.xlu1 %5884  ;;  %v5952_v17 = vmul.f32 %v18061_v40, %v5905_v2  ;;  %v5869_v2 = vadd.f32 %v5853_v0, %v5773_v49  ;;  %v6028_v19 = vsel %vm5996_vm8, %v5980_v43, %v6012_v14  ;;  %v5862_v14 = vmul.f32 %v18051_v38, %v18012_v56 }
 0x3bc   :  { %v5947_v35 = vmul.f32 %v18061_v40, %v5885_v28  ;;  %v18101_v25 = vpop.permute.xlu0 %5944  ;;  %v5855_v28 = vmul.f32 %v18051_v38, %v18030_v13  ;;  %v5954_v13 = vmul.f32 %v18061_v40, %v18040_v60  ;;  %v5859_v39 = vmul.f32 %v18051_v38, %v18038_v12 }
 0x3bd   :  { %6717 = vperm.xlu1 %15146, %v21643_v57   ;;  %v5968_v0 = vadd.f32 %v5952_v17, %v5872_v20  ;;  %v5857_v17 = vmul.f32 %v18051_v38, %v18034_v48  ;;  %v5876_v48 = vadd.f32 %v5860_v23, %v5780_v6 }
 0x3be   :  { %v5963_v52 = vadd.f32 %v5947_v35, %v5867_v41  ;;  %v21645_v35 = vmov 9  }
 0x3bf   :  { %7338 = vperm.xlu0 %15148, %v21623_v24   ;;  %v5893_v57 = vpop.permute.xlu1 %5892  ;;  %v5871_v24 = vadd.f32 %v5855_v28, %v5775_v50  ;;  %v5873_v28 = vadd.f32 %v5857_v17, %v5777_v33  ;;  %v5972_v33 = vadd.f32 %v5956_v8, %v5876_v48  ;;  %v5864_v17 = vmul.f32 %v18051_v38, %v18019_v21  ;;  %v21648_v48 = vld [vmem:[#allocation43_spill] sm:$0xff] }
 0x3c0   :  { %v5979_v55 = vadd.f32 %v18094_v47, %v5963_v52  ;;  %v5949_v62 = vmul.f32 %v18061_v40, %v5893_v57  ;;  %v21646_v52 = vld [vmem:[#allocation39_spill] sm:$0xff] }
 0x3c1   :  { %v18141_v41 = vpop.permute.xlu0 %6485  ;;  %15149 = vset.pattern.permute.xlu1 %v21645_v35 }
 0x3c2   :  { %21644 = vst [vmem:[#allocation56_spill] sm:$0xff] %v18141_v41  ;;  %v5965_v49 = vadd.f32 %v5949_v62, %v5869_v2  ;;  %7258 = vperm.xlu1 %15149, %v21646_v52   ;;  %vm5995_vm9 = vcmp.gt.f32.partialorder %v5979_v55, 0.0  ;;  %v6011_v57 = vmul.f32 0.2, %v5979_v55  ;;  %v6014_v2 = vmul.f32 0.2, %v5982_v15 }
 0x3c3   :  { %7346 = vperm.xlu0 %15148, %v21625_v26   ;;  %v5901_v60 = vpop.permute.xlu1 %5900  ;;  %v5984_v62 = vadd.f32 %v18094_v47, %v5968_v0  ;;  %v5970_v41 = vadd.f32 %v5954_v13, %v5874_v9  ;;  %v21647_v9 = vld [vmem:[#allocation41_spill] sm:$0xff] }
 0x3c4   :  { %v5981_v20 = vadd.f32 %v18094_v47, %v5965_v49  ;;  %v5951_v35 = vmul.f32 %v18061_v40, %v5901_v60  ;;  %v6027_v30 = vsel %vm5995_vm9, %v5979_v55, %v6011_v57  ;;  %v6030_v13 = vsel %vm5998_vm10, %v5982_v15, %v6014_v2 }
 0x3c5   :  { %v18156_v50 = vpop.permute.xlu0 %6497  ;;  %14405 = vmatprep.mubr.msk.f32.mxu1 %vm665_vm0, %v6027_v30  ;;  %v5986_v56 = vadd.f32 %v18094_v47, %v5970_v41  ;;  %vm6000_vm12 = vcmp.gt.f32.partialorder %v5984_v62, 0.0  ;;  %v6016_v12 = vmul.f32 0.2, %v5984_v62  ;;  %v5958_v49 = vmul.f32 %v18061_v40, %v18067_v18 }
 0x3c6   :  { %v5967_v4 = vadd.f32 %v5951_v35, %v5871_v24  ;;  %7262 = vperm.xlu1 %15149, %v15600_v10   ;;  %14406 = vmatmul.mubr.msk.f32.vlgmr.msra.gmra.mrb[112].mxu1 %vm665_vm0, %v6028_v19  ;;  %vm5997_vm11 = vcmp.gt.f32.partialorder %v5981_v20, 0.0  ;;  %v6013_v43 = vmul.f32 0.2, %v5981_v20  ;;  %v5878_v41 = vadd.f32 %v5862_v14, %v18105_v54 }
 0x3c7   :  { %7354 = vperm.xlu0 %15148, %v21627_v5   ;;  %v5909_v55 = vpop.permute.xlu1 %5908  ;;  %14456 = vmatpush3.msra.mxu1 %v17808_v37  ;;  %v5875_v60 = vadd.f32 %v5859_v39, %v5779_v58  ;;  %v5861_v18 = vmul.f32 %v18051_v38, %v18044_v1  ;;  %v5988_v2 = vadd.f32 %v18094_v47, %v5972_v33  ;;  %vm6002_vm14 = vcmp.gt.f32.partialorder %v5986_v56, 0.0 }
 0x3c8   :  { %v5983_v24 = vadd.f32 %v18094_v47, %v5967_v4  ;;  %v5953_v6 = vmul.f32 %v18061_v40, %v5909_v55  ;;  %v6029_v0 = vsel %vm5997_vm11, %v5981_v20, %v6013_v43  ;;  %14507 = vmatprep.subr.mxu1 %v17808_v37  ;;  %v5781_v37 = vmul.f32 %v17682_v42, %v18001_v27 }
 0x3c9   :  { %v18172_v23 = vpop.permute.xlu0 %6505  ;;  %14408 = vmatprep.mubr.msk.f32.mxu1 %vm665_vm0, %v6029_v0  ;;  %v6032_v21 = vsel %vm6000_vm12, %v5984_v62, %v6016_v12  ;;  %v6018_v54 = vmul.f32 0.2, %v5986_v56  ;;  %v5974_v58 = vadd.f32 %v5958_v49, %v5878_v41  ;;  %v5783_v4 = vmul.f32 %v17682_v42, %v18009_v51 }
 0x3ca   :  { %v5969_v57 = vadd.f32 %v5953_v6, %v5873_v28  ;;  %7270 = vperm.xlu1 %15149, %v21647_v9   ;;  %14409 = vmatmul.mubr.msk.f32.gmra.mrb[114].mxu1 %vm665_vm0, %v6030_v13  ;;  %vm5999_vm13 = vcmp.gt.f32.partialorder %v5983_v24, 0.0  ;;  %v6015_v15 = vmul.f32 0.2, %v5983_v24  ;;  %v5880_v43 = vadd.f32 %v5864_v17, %v18109_v3  ;;  %v21649_v13 = vld [vmem:[#allocation45_spill] sm:$0xff] }
 0x3cb   :  { %7362 = vperm.xlu0 %15148, %v21629_v31   ;;  %v5917_v19 = vpop.permute.xlu1 %5916  ;;  %v5863_v14 = vmul.f32 %v18051_v38, %v18065_v11  ;;  %v5960_v62 = vmul.f32 %v18061_v40, %v18079_v44  ;;  %v5877_v39 = vadd.f32 %v5861_v18, %v5781_v37  ;;  %v5866_v42 = vmul.f32 %v18051_v38, %v18023_v53  ;;  %v18218_v53 = vld [vmem:[%s21087_s6] ss:$0 sm:$0xff] }
 0x3cc   :  { %v5985_v20 = vadd.f32 %v18094_v47, %v5969_v57  ;;  %v5955_v35 = vmul.f32 %v18061_v40, %v5917_v19  ;;  %v6031_v30 = vsel %vm5999_vm13, %v5983_v24, %v6015_v15  ;;  %v6034_v11 = vsel %vm6002_vm14, %v5986_v56, %v6018_v54  ;;  %v12972_v54 = vld [vmem:[%s21083_s2 + $0x288] sm:$0xff] }
 0x3cd   :  { %v18190_v27 = vpop.permute.xlu0 %6513  ;;  %14411 = vmatprep.mubr.msk.f32.mxu1 %vm665_vm0, %v6031_v30  ;;  %vm6004_vm1 = vcmp.gt.f32.partialorder %v5988_v2, 0.0  ;;  %v6020_v44 = vmul.f32 0.2, %v5988_v2  ;;  %v5990_v3 = vadd.f32 %v18094_v47, %v5974_v58  ;;  %v5785_v12 = vmul.f32 %v18218_v53, %v18017_v45  ;;  %v12971_v45 = vld [vmem:[%s21083_s2 + $0x280] sm:$0xff]  ;;  %v21650_v58 = vld [vmem:[#allocation47_spill] sm:$0xff] }
 0x3ce   :  { %v5971_v8 = vadd.f32 %v5955_v35, %v5875_v60  ;;  %7278 = vperm.xlu1 %15149, %v21648_v48   ;;  %14412 = vmatmul.mubr.msk.f32.gmra.mrb[116].mxu1 %vm665_vm0, %v6032_v21  ;;  %vm6001_vm15 = vcmp.gt.f32.partialorder %v5985_v20, 0.0  ;;  %v6017_v1 = vmul.f32 0.2, %v5985_v20  ;;  %v5879_v56 = vadd.f32 %v5863_v14, %v5783_v4 }
 0x3cf   :  { %7370 = vperm.xlu0 %15148, %v21631_v36   ;;  %v5925_v28 = vpop.permute.xlu1 %5924  ;;  %v5976_v49 = vadd.f32 %v5960_v62, %v5880_v43  ;;  %v5962_v57 = vmul.f32 %v18061_v40, %v18101_v25  ;;  %v5865_v41 = vmul.f32 %v18051_v38, %v18073_v29  ;;  %v6036_v29 = vsel %vm6004_vm1, %v5988_v2, %v6020_v44 }
 0x3d0   :  { %v5987_v55 = vadd.f32 %v18094_v47, %v5971_v8  ;;  %v5957_v24 = vmul.f32 %v18061_v40, %v5925_v28  ;;  %v6033_v6 = vsel %vm6001_vm15, %v5985_v20, %v6017_v1  ;;  %v5882_v20 = vadd.f32 %v5866_v42, %v18122_v59 }
 0x3d1   :  { %v18208_v51 = vpop.permute.xlu0 %6521  ;;  %14414 = vmatprep.mubr.msk.f32.mxu1 %vm665_vm0, %v6033_v6  ;;  %vm6006_vm4 = vcmp.gt.f32.partialorder %v5990_v3, 0.0  ;;  %v6022_v59 = vmul.f32 0.2, %v5990_v3  ;;  %v5992_v8 = vadd.f32 %v18094_v47, %v5976_v49  ;;  %v5881_v62 = vadd.f32 %v5865_v41, %v5785_v12  ;;  %v12974_v12 = vld [vmem:[%s21083_s2 + $0x298] sm:$0xff] }
 0x3d2   :  { %v5973_v0 = vadd.f32 %v5957_v24, %v5877_v39  ;;  %7286 = vperm.xlu1 %15149, %v21649_v13   ;;  %14415 = vmatmul.mubr.msk.f32.gmra.mrb[118].mxu1 %vm665_vm0, %v6034_v11  ;;  %vm6003_vm2 = vcmp.gt.f32.partialorder %v5987_v55, 0.0  ;;  %v6019_v33 = vmul.f32 0.2, %v5987_v55  ;;  %v14303_v37 = vpop.f32.mrb[80].mxu1  ;;  %v5978_v1 = vadd.f32 %v5962_v57, %v5882_v20  ;;  %v12973_v24 = vld [vmem:[%s21083_s2 + $0x290] sm:$0xff] }
 0x3d3   :  { %7378 = vperm.xlu0 %15148, %v21633_v32   ;;  %v5933_v15 = vpop.permute.xlu1 %5932  ;;  %v4611_v19 = vpop.f32.mrb[81].mxu1  ;;  %v4617_v25 = vadd.f32 %v17865_v16, %v14303_v37  ;;  %v6038_v49 = vsel %vm6006_vm4, %v5990_v3, %v6022_v59  ;;  %v12975_v3 = vld [vmem:[%s21083_s2 + $0x2a0] sm:$0xff]  ;;  %vm6008_vm6 = vcmp.gt.f32.partialorder %v5992_v8, 0.0 }
 0x3d4   :  { %v5989_v17 = vadd.f32 %v18094_v47, %v5973_v0  ;;  %v5959_v60 = vmul.f32 %v18061_v40, %v5933_v15  ;;  %v6035_v18 = vsel %vm6003_vm2, %v5987_v55, %v6019_v33  ;;  %v4612_v35 = vadd.f32 %v17865_v16, %v4611_v19 }
 0x3d5   :  { %v18235_v30 = vpop.permute.xlu0 %6529  ;;  %14417 = vmatprep.mubr.msk.f32.mxu1 %vm665_vm0, %v6035_v18  ;;  %v4708_v6 = vmul.f32 %v12972_v54, %v4617_v25  ;;  %v5994_v57 = vadd.f32 %v18094_v47, %v5978_v1 }
 0x3d6   :  { %v5975_v21 = vadd.f32 %v5959_v60, %v5879_v56  ;;  %7294 = vperm.xlu1 %15149, %v21650_v58   ;;  %14418 = vmatmul.mubr.msk.f32.gmra.mrb[120].mxu1 %vm665_vm0, %v6036_v29  ;;  %vm6005_vm3 = vcmp.gt.f32.partialorder %v5989_v17, 0.0  ;;  %v4707_v4 = vmul.f32 %v12971_v45, %v4612_v35  ;;  %v14306_v2 = vpop.f32.mrb[82].mxu1  ;;  %v6021_v14 = vmul.f32 0.2, %v5989_v17  ;;  %v21651_v56 = vld [vmem:[#allocation49_spill] sm:$0xff] }
 0x3d7   :  { %7386 = vperm.xlu0 %15148, %v21634_v7   ;;  %v5941_v43 = vpop.permute.xlu1 %5940  ;;  %v4621_v55 = vpop.f32.mrb[83].mxu1  ;;  %v4627_v42 = vadd.f32 %v17865_v16, %v14306_v2  ;;  %vm6010_vm8 = vcmp.gt.f32.partialorder %v5994_v57, 0.0  ;;  %v21672_v7 = vld [vmem:[#allocation34_spill] sm:$0xff]  ;;  %v18473_v5 = vmul.f32 %v18218_v53, %v18235_v30 }
 0x3d8   :  { %v5991_v28 = vadd.f32 %v18094_v47, %v5975_v21  ;;  %v5961_v39 = vmul.f32 %v18061_v40, %v5941_v43  ;;  %v4622_v11 = vadd.f32 %v17865_v16, %v4621_v55  ;;  %14327 = vmatprep.mubr.msk.f32.mxu0 %vm665_vm0, %v4707_v4  ;;  %v6037_v0 = vsel %vm6005_vm3, %v5989_v17, %v6021_v14  ;;  %v12976_v21 = vld [vmem:[%s21083_s2 + $0x2a8] sm:$0xff]  ;;  %v12977_v14 = vld [vmem:[%s21083_s2 + $0x2b0] sm:$0xff] }
 0x3d9   :  { %v18253_v44 = vpop.permute.xlu0 %6537  ;;  %14420 = vmatprep.mubr.msk.f32.mxu1 %vm665_vm0, %v6037_v0  ;;  %14328 = vmatmul.mubr.msk.f32.vlgmr.msra.gmra.mrb[0].mxu0 %vm665_vm0, %v4708_v6  ;;  %v6024_v17 = vmul.f32 0.2, %v5992_v8  ;;  %v4710_v18 = vmul.f32 %v12974_v12, %v4627_v42  ;;  %v6026_v4 = vmul.f32 0.2, %v5994_v57  ;;  %v21652_v6 = vld [vmem:[#allocation6_spill] sm:$0xff] }
 0x3da   :  { %v5977_v33 = vadd.f32 %v5961_v39, %v5881_v62  ;;  %7302 = vperm.xlu1 %15149, %v21651_v56   ;;  %vm6007_vm5 = vcmp.gt.f32.partialorder %v5991_v28, 0.0  ;;  %v4709_v15 = vmul.f32 %v12973_v24, %v4622_v11  ;;  %v14309_v37 = vpop.f32.mrb[84].mxu1  ;;  %v6023_v41 = vmul.f32 0.2, %v5991_v28  ;;  %14421 = vmatmul.mubr.msk.f32.gmra.mrb[122].mxu1 %vm665_vm0, %v6038_v49  ;;  %v21653_v11 = vld [vmem:[#allocation23_spill] sm:$0xff] }
 0x3db   :  { %7394 = vperm.xlu0 %15148, %v21635_v46   ;;  %v4631_v45 = vpop.f32.mrb[85].mxu1  ;;  %14378 = vmatpush3.msra.mxu0 %v18118_v22  ;;  %v4637_v20 = vadd.f32 %v17865_v16, %v14309_v37  ;;  %v6040_v59 = vsel %vm6008_vm6, %v5992_v8, %v6024_v17  ;;  %v12978_v8 = vld [vmem:[%s21083_s2 + $0x2b8] sm:$0xff]  ;;  %v6042_v0 = vsel %vm6010_vm8, %v5994_v57, %v6026_v4  ;;  %v12980_v57 = vld [vmem:[%s21083_s2 + $0x2c8] sm:$0xff] }
 0x3dc   :  { %v5993_v60 = vadd.f32 %v18094_v47, %v5977_v33  ;;  %v18268_v19 = vpop.permute.xlu1 %6481  ;;  %v4632_v25 = vadd.f32 %v17865_v16, %v4631_v45  ;;  %14330 = vmatprep.mubr.msk.f32.mxu0 %vm665_vm0, %v4709_v15  ;;  %v6039_v29 = vsel %vm6007_vm5, %v5991_v28, %v6023_v41  ;;  %v12979_v15 = vld [vmem:[%s21083_s2 + $0x2c0] sm:$0xff]  ;;  %v21654_v45 = vld [vmem:[#allocation8_spill] sm:$0xff] }
 0x3dd   :  { %v18276_v35 = vpop.permute.xlu0 %6561  ;;  %14423 = vmatprep.mubr.msk.f32.mxu1 %vm665_vm0, %v6039_v29  ;;  %14331 = vmatmul.mubr.msk.f32.gmra.mrb[2].mxu0 %vm665_vm0, %v4710_v18  ;;  %v4712_v28 = vmul.f32 %v12976_v21, %v4637_v20  ;;  %v21655_v18 = vld [vmem:[#allocation25_spill] sm:$0xff] }
 0x3de   :  { %7310 = vperm.xlu1 %15149, %v21516_v61   ;;  %vm6009_vm7 = vcmp.gt.f32.partialorder %v5993_v60, 0.0  ;;  %v6025_v22 = vmul.f32 0.2, %v5993_v60  ;;  %v4711_v54 = vmul.f32 %v12975_v3, %v4632_v25  ;;  %v14312_v1 = vpop.f32.mrb[86].mxu1  ;;  %14424 = vmatmul.mubr.msk.f32.gmra.mrb[124].mxu1 %vm665_vm0, %v6040_v59 }
 0x3df   :  { %7434 = vperm.xlu0 %15148, %v21636_v63   ;;  %v4641_v2 = vpop.f32.mrb[87].mxu1  ;;  %v4647_v39 = vadd.f32 %v17865_v16, %v14312_v1  ;;  %v12982_v1 = vld [vmem:[%s21083_s2 + $0x2d8] sm:$0xff] }
 0x3e0   :  { %v18289_v43 = vpop.permute.xlu1 %6489  ;;  %v6041_v62 = vsel %vm6009_vm7, %v5993_v60, %v6025_v22  ;;  %v4642_v55 = vadd.f32 %v17865_v16, %v4641_v2  ;;  %14333 = vmatprep.mubr.msk.f32.mxu0 %vm665_vm0, %v4711_v54  ;;  %v12981_v54 = vld [vmem:[%s21083_s2 + $0x2d0] sm:$0xff]  ;;  %v21656_v2 = vld [vmem:[#allocation10_spill] sm:$0xff] }
 0x3e1   :  { %v18296_v24 = vpop.permute.xlu0 %6569  ;;  %14426 = vmatprep.mubr.msk.f32.mxu1 %vm665_vm0, %v6041_v62  ;;  %14334 = vmatmul.mubr.msk.f32.gmra.mrb[4].mxu0 %vm665_vm0, %v4712_v28  ;;  %v4714_v37 = vmul.f32 %v12978_v8, %v4647_v39 }
 0x3e2   :  { %7334 = vperm.xlu1 %15149, %v21652_v6   ;;  %v4713_v42 = vmul.f32 %v12977_v14, %v4642_v55  ;;  %v14315_v33 = vpop.f32.mrb[88].mxu1  ;;  %14427 = vmatmul.mubr.msk.f32.gmra.mrb[126].mxu1 %vm665_vm0, %v6042_v0  ;;  %v21657_v14 = vld [vmem:[#allocation27_spill] sm:$0xff]  ;;  %v12983_v0 = vld [vmem:[%s21083_s2 + $0x2e0] sm:$0xff] }
 0x3e3   :  { %7442 = vperm.xlu0 %15148, %v21653_v11   ;;  %v4651_v49 = vpop.f32.mrb[89].mxu1  ;;  %v4657_v41 = vadd.f32 %v17865_v16, %v14315_v33  ;;  %v6546_v11 = vmul.f32 %v18218_v53, %v18289_v43 }
 0x3e4   :  { %v18307_v12 = vpop.permute.xlu1 %6493  ;;  %v4652_v17 = vadd.f32 %v17865_v16, %v4651_v49  ;;  %14336 = vmatprep.mubr.msk.f32.mxu0 %vm665_vm0, %v4713_v42  ;;  %v12984_v49 = vld [vmem:[%s21083_s2 + $0x2e8] sm:$0xff] }
 0x3e5   :  { %v18314_v60 = vpop.permute.xlu0 %6577  ;;  %14337 = vmatmul.mubr.msk.f32.gmra.mrb[6].mxu0 %vm665_vm0, %v4714_v37  ;;  %v4716_v29 = vmul.f32 %v12980_v57, %v4657_v41  ;;  %v21658_v37 = vld [vmem:[#allocation12_spill] sm:$0xff]  ;;  %v21659_v41 = vld [vmem:[#allocation29_spill] sm:$0xff] }
 0x3e6   :  { %7342 = vperm.xlu1 %15149, %v21654_v45   ;;  %v4715_v3 = vmul.f32 %v12979_v15, %v4652_v17  ;;  %v14318_v20 = vpop.f32.mrb[90].mxu1  ;;  %v6628_v36 = vmul.f32 %v18051_v38, %v18314_v60 }
 0x3e7   :  { %7450 = vperm.xlu0 %15148, %v21655_v18   ;;  %v4667_v21 = vadd.f32 %v17865_v16, %v14318_v20  ;;  %v4661_v22 = vpop.f32.mrb[91].mxu1 }
 0x3e8   :  { %v18323_v25 = vpop.permute.xlu1 %6501  ;;  %14339 = vmatprep.mubr.msk.f32.mxu0 %vm665_vm0, %v4715_v3  ;;  %v4662_v4 = vadd.f32 %v17865_v16, %v4661_v22  ;;  %v12985_v22 = vld [vmem:[%s21083_s2 + $0x2f0] sm:$0xff] }
 0x3e9   :  { %v18329_v59 = vpop.permute.xlu0 %6585  ;;  %14340 = vmatmul.mubr.msk.f32.gmra.mrb[8].mxu0 %vm665_vm0, %v4716_v29  ;;  %v4718_v55 = vmul.f32 %v12982_v1, %v4667_v21  ;;  %v12986_v1 = vld [vmem:[%s21083_s2 + $0x2f8] sm:$0xff] }
 0x3ea   :  { %7350 = vperm.xlu1 %15149, %v21656_v2   ;;  %v4717_v62 = vmul.f32 %v12981_v54, %v4662_v4  ;;  %v14321_v28 = vpop.f32.mrb[92].mxu1  ;;  %v6630_v31 = vmul.f32 %v18051_v38, %v18329_v59 }
 0x3eb   :  { %7458 = vperm.xlu0 %15148, %v21657_v14   ;;  %v4677_v8 = vadd.f32 %v17865_v16, %v14321_v28  ;;  %v4671_v42 = vpop.f32.mrb[93].mxu1 }
 0x3ec   :  { %v18339_v39 = vpop.permute.xlu1 %6509  ;;  %v4672_v15 = vadd.f32 %v17865_v16, %v4671_v42  ;;  %14342 = vmatprep.mubr.msk.f32.mxu0 %vm665_vm0, %v4717_v62  ;;  %v21660_v62 = vld [vmem:[#allocation14_spill] sm:$0xff] }
 0x3ed   :  { %v18345_v33 = vpop.permute.xlu0 %6593  ;;  %14343 = vmatmul.mubr.msk.f32.gmra.mrb[10].mxu0 %vm665_vm0, %v4718_v55  ;;  %v4720_v20 = vmul.f32 %v12984_v49, %v4677_v8 }
 0x3ee   :  { %7358 = vperm.xlu1 %15149, %v21658_v37   ;;  %v4719_v17 = vmul.f32 %v12983_v0, %v4672_v15  ;;  %v14324_v57 = vpop.f32.mrb[94].mxu1  ;;  %v21661_v0 = vld [vmem:[#allocation16_spill] sm:$0xff] }
 0x3ef   :  { %7466 = vperm.xlu0 %15148, %v21659_v41   ;;  %v4687_v29 = vadd.f32 %v17865_v16, %v14324_v57  ;;  %v4681_v21 = vpop.f32.mrb[95].mxu1  ;;  %v6624_v57 = vmul.f32 %v18051_v38, %v18276_v35  ;;  %v21666_v41 = vld [vmem:[#allocation22_spill] sm:$0xff] }
 0x3f0   :  { %v18355_v3 = vpop.permute.xlu1 %6517  ;;  %v4682_v4 = vadd.f32 %v17865_v16, %v4681_v21  ;;  %14345 = vmatprep.mubr.msk.f32.mxu0 %vm665_vm0, %v4719_v17  ;;  %v21662_v16 = vld [vmem:[#allocation33_spill] sm:$0xff]  ;;  %v6544_v17 = vmul.f32 %v18218_v53, %v18268_v19 }
 0x3f1   :  { %v18361_v54 = vpop.permute.xlu0 %6601  ;;  %14346 = vmatmul.mubr.msk.f32.gmra.mrb[12].mxu0 %vm665_vm0, %v4720_v20  ;;  %v4722_v8 = vmul.f32 %v12986_v1, %v4687_v29  ;;  %v21663_v20 = vld [vmem:[#allocation18_spill] sm:$0xff]  ;;  %v21664_v29 = vld [vmem:[#allocation35_spill] sm:$0xff] }
 0x3f2   :  { %7366 = vperm.xlu1 %15149, %v21660_v62   ;;  %v4721_v28 = vmul.f32 %v12985_v22, %v4682_v4  ;;  %v6640_v1 = vadd.f32 %v6624_v57, %v6544_v17  ;;  %v6634_v30 = vmul.f32 %v18051_v38, %v18361_v54 }
 0x3f3   :  { %7474 = vperm.xlu0 %15148, %v21641_v34  }
 0x3f4   :  { %v18371_v55 = vpop.permute.xlu1 %6525  ;;  %14348 = vmatprep.mubr.msk.f32.mxu0 %vm665_vm0, %v4721_v28  ;;  %v21665_v28 = vld [vmem:[#allocation20_spill] sm:$0xff] }
 0x3f5   :  { %v18373_v42 = vpop.permute.xlu0 %6609  ;;  %14349 = vmatmul.mubr.msk.f32.gmra.mrb[14].mxu0 %vm665_vm0, %v4722_v8  ;;  %v21256_v8 = vmov 10  }
 0x3f6   :  { %7374 = vperm.xlu1 %15149, %v21661_v0  }
 0x3f7   :  { %7482 = vperm.xlu0 %15148, %v21662_v16  }
 0x3f8   :  { %v18379_v49 = vpop.permute.xlu1 %6533 }
 0x3f9   :  { %v18381_v15 = vpop.permute.xlu0 %6617 }
 0x3fa   :  { %7382 = vperm.xlu1 %15149, %v21663_v20  }
 0x3fb   :  { %7490 = vperm.xlu0 %15148, %v21664_v29  }
 0x3fc   :  { %v18389_v21 = vpop.permute.xlu1 %6541 }
 0x3fd   :  { %v6658_v22 = vpop.permute.xlu0 %6657 }
 0x3fe   :  { %v6720_v4 = vmul.f32 %v18061_v40, %v6658_v22  ;;  %7390 = vperm.xlu1 %15149, %v21665_v28   ;;  %v21667_v22 = vld [vmem:[#allocation24_spill] sm:$0xff] }
 0x3ff   :  { %15151 = vset.pattern.permute.xlu0 %v21256_v8  ;;  %v21668_v8 = vld [vmem:[#allocation26_spill] sm:$0xff] }
 0x400   :  { %v6736_v16 = vadd.f32 %v6720_v4, %v6640_v1  ;;  %8031 = vperm.xlu0 %15151, %v21646_v52   ;;  %v6566_v19 = vpop.permute.xlu1 %6565  ;;  %v21669_v52 = vld [vmem:[#allocation28_spill] sm:$0xff] }
 0x401   :  { %v6666_v35 = vpop.permute.xlu0 %6665 }
 0x402   :  { %v6752_v34 = vadd.f32 %v18094_v47, %v6736_v16  ;;  %7430 = vperm.xlu1 %15149, %v21666_v41  }
 0x404   :  { %8043 = vperm.xlu0 %15151, %v21647_v9   ;;  %v6574_v29 = vpop.permute.xlu1 %6573  ;;  %vm6768_vm9 = vcmp.gt.f32.partialorder %v6752_v34, 0.0  ;;  %v6784_v17 = vmul.f32 0.2, %v6752_v34 }
 0x405   :  { %v6674_v57 = vpop.permute.xlu0 %6673 }
 0x406   :  { %7438 = vperm.xlu1 %15149, %v21667_v22   ;;  %v6800_v14 = vsel %vm6768_vm9, %v6752_v34, %v6784_v17  ;;  %v21670_v17 = vld [vmem:[#allocation30_spill] sm:$0xff] }
 0x407   :  { %14457 = vmatprep.mubr.msk.f32.mxu1 %vm665_vm0, %v6800_v14 }
 0x408   :  { %8051 = vperm.xlu0 %15151, %v21648_v48   ;;  %v18401_v1 = vpop.permute.xlu1 %6581 }
 0x409   :  { %v6682_v4 = vpop.permute.xlu0 %6681 }
 0x40a   :  { %7446 = vperm.xlu1 %15149, %v21668_v8   ;;  %v6726_v59 = vmul.f32 %v18061_v40, %v6682_v4 }
 0x40c   :  { %8059 = vperm.xlu0 %15151, %v21649_v13   ;;  %v18405_v16 = vpop.permute.xlu1 %6589  ;;  %v21671_v13 = vld [vmem:[#allocation32_spill] sm:$0xff] }
 0x40d   :  { %v18407_v9 = vpop.permute.xlu0 %6689 }
 0x40e   :  { %7454 = vperm.xlu1 %15149, %v21669_v52  }
 0x410   :  { %8067 = vperm.xlu0 %15151, %v21650_v58   ;;  %v18411_v34 = vpop.permute.xlu1 %6597  ;;  %v6626_v58 = vmul.f32 %v18051_v38, %v18296_v24  ;;  %v6625_v24 = vmul.f32 %v18051_v38, %v6566_v19 }
 0x411   :  { %v18413_v14 = vpop.permute.xlu0 %6697 }
 0x412   :  { %7462 = vperm.xlu1 %15149, %v21670_v17   ;;  %v6642_v32 = vadd.f32 %v6626_v58, %v6546_v11  ;;  %v21674_v58 = vld [vmem:[#allocation36_spill] sm:$0xff] }
 0x413   :  { %v21675_v11 = vld [vmem:[#allocation56_spill] sm:$0xff] }
 0x414   :  { %8075 = vperm.xlu0 %15151, %v21651_v56   ;;  %v18417_v48 = vpop.permute.xlu1 %6605  ;;  %v6722_v56 = vmul.f32 %v18061_v40, %v6666_v35  ;;  %v6724_v35 = vmul.f32 %v18061_v40, %v6674_v57  ;;  %v6545_v60 = vmul.f32 %v18218_v53, %v21675_v11  ;;  %v6554_v57 = vmul.f32 %v18218_v53, %v18208_v51 }
 0x415   :  { %v18419_v18 = vpop.permute.xlu0 %6705  ;;  %v6627_v11 = vmul.f32 %v18051_v38, %v6574_v29  ;;  %v18477_v51 = vmul.f32 %v18218_v53, %v18253_v44 }
 0x416   :  { %7470 = vperm.xlu1 %15149, %v21671_v13   ;;  %v6738_v13 = vadd.f32 %v6722_v56, %v6642_v32  ;;  %v6552_v32 = vmul.f32 %v18218_v53, %v18190_v27  ;;  %v6632_v27 = vmul.f32 %v18051_v38, %v18345_v33  ;;  %v21677_v33 = vld [vmem:[#allocation37_spill] sm:$0xff] }
 0x418   :  { %8083 = vperm.xlu0 %15151, %v21516_v61   ;;  %v18427_v63 = vpop.permute.xlu1 %6613  ;;  %v6548_v61 = vmul.f32 %v18218_v53, %v18156_v50  ;;  %v18454_v50 = vld [vmem:[%s21093_s12 + $0x38] sm:$0xff] }
 0x419   :  { %v18429_v46 = vpop.permute.xlu0 %6713  ;;  %14429 = vmatprep.subr.mxu0 %v18454_v50 }
 0x41a   :  { %7478 = vperm.xlu1 %15149, %v21672_v7   ;;  %v6644_v56 = vadd.f32 %v6628_v36, %v6548_v61  ;;  %v6754_v61 = vadd.f32 %v18094_v47, %v6738_v13  ;;  %v6549_v13 = vmul.f32 %v18218_v53, %v18323_v25 }
 0x41c   :  { %8107 = vperm.xlu0 %15151, %v21652_v6   ;;  %v18436_v43 = vpop.permute.xlu1 %6621  ;;  %v6550_v6 = vmul.f32 %v18218_v53, %v18172_v23  ;;  %v6641_v23 = vadd.f32 %v6625_v24, %v6545_v60  ;;  %v6740_v36 = vadd.f32 %v6724_v35, %v6644_v56  ;;  %v6648_v60 = vadd.f32 %v6632_v27, %v6552_v32 }
 0x41d   :  { %v6786_v54 = vmul.f32 0.2, %v6754_v61  ;;  %vm6770_vm11 = vcmp.gt.f32.partialorder %v6754_v61, 0.0 }
 0x41e   :  { %v18444_v7 = vpop.permute.xlu0 %7254  ;;  %7486 = vperm.xlu1 %15149, %v21674_v58   ;;  %v6646_v58 = vadd.f32 %v6630_v31, %v6550_v6  ;;  %v6547_v31 = vmul.f32 %v18218_v53, %v18307_v12  ;;  %v6629_v12 = vmul.f32 %v18051_v38, %v18401_v1  ;;  %v6756_v25 = vadd.f32 %v18094_v47, %v6740_v36 }
 0x41f   :  { %21673 = vst [vmem:[#allocation54_spill] sm:$0xff] %v18444_v7  ;;  %v6553_v1 = vmul.f32 %v18218_v53, %v18355_v3 }
 0x420   :  { %8115 = vperm.xlu0 %15151, %v21654_v45   ;;  %v6662_v19 = vpop.permute.xlu1 %6661  ;;  %v21676_v45 = vmov 10   ;;  %v6742_v29 = vadd.f32 %v6726_v59, %v6646_v58  ;;  %v6643_v24 = vadd.f32 %v6627_v11, %v6547_v31  ;;  %v6645_v11 = vadd.f32 %v6629_v12, %v6549_v13 }
 0x421   :  { %v6721_v7 = vmul.f32 %v18061_v40, %v6662_v19  ;;  %v6650_v19 = vadd.f32 %v6634_v30, %v6554_v57  ;;  %v6802_v57 = vsel %vm6770_vm11, %v6754_v61, %v6786_v54  ;;  %v6788_v30 = vmul.f32 0.2, %v6756_v25 }
 0x422   :  { %v18468_v4 = vpop.permute.xlu0 %7266  ;;  %15150 = vset.pattern.permute.xlu1 %v21676_v45  ;;  %v6551_v45 = vmul.f32 %v18218_v53, %v18339_v39  ;;  %v6728_v39 = vmul.f32 %v18061_v40, %v18407_v9  ;;  %v6758_v32 = vadd.f32 %v18094_v47, %v6742_v29  ;;  %v21678_v29 = vld [vmem:[#allocation40_spill] sm:$0xff]  ;;  %vm6772_vm13 = vcmp.gt.f32.partialorder %v6756_v25, 0.0 }
 0x423   :  { %v6737_v6 = vadd.f32 %v6721_v7, %v6641_v23  ;;  %8027 = vperm.xlu1 %15150, %v21677_v33   ;;  %v6631_v23 = vmul.f32 %v18051_v38, %v18405_v16  ;;  %v6732_v54 = vmul.f32 %v18061_v40, %v18419_v18  ;;  %v6638_v18 = vmul.f32 %v18051_v38, %v18381_v15 }
 0x424   :  { %8123 = vperm.xlu0 %15151, %v21656_v2   ;;  %v6670_v44 = vpop.permute.xlu1 %6669  ;;  %v6790_v61 = vmul.f32 0.2, %v6758_v32  ;;  %vm6774_vm14 = vcmp.gt.f32.partialorder %v6758_v32, 0.0 }
 0x425   :  { %v6753_v7 = vadd.f32 %v18094_v47, %v6737_v6  ;;  %v6723_v35 = vmul.f32 %v18061_v40, %v6670_v44  ;;  %v6744_v6 = vadd.f32 %v6728_v39, %v6648_v60  ;;  %v6730_v44 = vmul.f32 %v18061_v40, %v18413_v14 }
 0x426   :  { %v18496_v56 = vpop.permute.xlu0 %7274  ;;  %v6647_v12 = vadd.f32 %v6631_v23, %v6551_v45  ;;  %v6633_v14 = vmul.f32 %v18051_v38, %v18411_v34  ;;  %v6555_v23 = vmul.f32 %v18218_v53, %v18371_v55  ;;  %v6635_v55 = vmul.f32 %v18051_v38, %v18417_v48 }
 0x427   :  { %vm6769_vm10 = vcmp.gt.f32.partialorder %v6753_v7, 0.0  ;;  %v6785_v58 = vmul.f32 0.2, %v6753_v7  ;;  %v6739_v59 = vadd.f32 %v6723_v35, %v6643_v24  ;;  %8035 = vperm.xlu1 %15150, %v15600_v10   ;;  %v6636_v24 = vmul.f32 %v18051_v38, %v18373_v42  ;;  %v18522_v35 = vld [vmem:[%s21091_s10] sm:$0xff] }
 0x428   :  { %8131 = vperm.xlu0 %15151, %v21658_v37   ;;  %v6678_v9 = vpop.permute.xlu1 %6677  ;;  %v6760_v34 = vadd.f32 %v18094_v47, %v6744_v6  ;;  %v6746_v45 = vadd.f32 %v6730_v44, %v6650_v19 }
 0x429   :  { %v6755_v27 = vadd.f32 %v18094_v47, %v6739_v59  ;;  %v6725_v36 = vmul.f32 %v18061_v40, %v6678_v9  ;;  %v6801_v31 = vsel %vm6769_vm10, %v6753_v7, %v6785_v58  ;;  %v6804_v59 = vsel %vm6772_vm13, %v6756_v25, %v6788_v30 }
 0x42a   :  { %v18509_v3 = vpop.permute.xlu0 %7282  ;;  %14458 = vmatmul.mubr.msk.f32.vlgmr.msra.gmra.mrb[128].mxu1 %vm665_vm0, %v6801_v31  ;;  %v6652_v19 = vadd.f32 %v6636_v24, %v18473_v5  ;;  %v6806_v25 = vsel %vm6774_vm14, %v6758_v32, %v6790_v61  ;;  %v6762_v30 = vadd.f32 %v18094_v47, %v6746_v45  ;;  %vm6776_vm1 = vcmp.gt.f32.partialorder %v6760_v34, 0.0 }
 0x42b   :  { %v6741_v16 = vadd.f32 %v6725_v36, %v6645_v11  ;;  %8039 = vperm.xlu1 %15150, %v21678_v29   ;;  %14460 = vmatprep.mubr.msk.f32.mxu1 %vm665_vm0, %v6802_v57  ;;  %vm6771_vm12 = vcmp.gt.f32.partialorder %v6755_v27, 0.0  ;;  %v6787_v13 = vmul.f32 0.2, %v6755_v27  ;;  %v21679_v11 = vld [vmem:[#allocation42_spill] sm:$0xff]  ;;  %v6649_v36 = vadd.f32 %v6633_v14, %v6553_v1 }
 0x42c   :  { %8139 = vperm.xlu0 %15151, %v21660_v62   ;;  %v6686_v7 = vpop.permute.xlu1 %6685  ;;  %14508 = vmatpush3.msra.mxu1 %v18522_v35  ;;  %v6748_v5 = vadd.f32 %v6732_v54, %v6652_v19  ;;  %v6792_v15 = vmul.f32 0.2, %v6760_v34  ;;  %v6734_v1 = vmul.f32 %v18061_v40, %v18429_v46  ;;  %v6557_v24 = vmul.f32 %v18218_v53, %v18379_v49  ;;  %v21681_v54 = vld [vmem:[#allocation46_spill] sm:$0xff] }
 0x42d   :  { %v6757_v60 = vadd.f32 %v18094_v47, %v6741_v16  ;;  %v6727_v39 = vmul.f32 %v18061_v40, %v6686_v7  ;;  %v6803_v42 = vsel %vm6771_vm12, %v6755_v27, %v6787_v13  ;;  %14559 = vmatprep.subr.mxu1 %v18522_v35  ;;  %v21680_v13 = vld [vmem:[#allocation44_spill] sm:$0xff]  ;;  %v6637_v14 = vmul.f32 %v18051_v38, %v18427_v63 }
 0x42e   :  { %v18531_v58 = vpop.permute.xlu0 %7290  ;;  %14461 = vmatmul.mubr.msk.f32.gmra.mrb[130].mxu1 %vm665_vm0, %v6803_v42  ;;  %v6651_v61 = vadd.f32 %v6635_v55, %v6555_v23  ;;  %v6764_v42 = vadd.f32 %v18094_v47, %v6748_v5  ;;  %v6808_v49 = vsel %vm6776_vm1, %v6760_v34, %v6792_v15  ;;  %vm6778_vm3 = vcmp.gt.f32.partialorder %v6762_v30, 0.0  ;;  %v18595_v55 = vld [vmem:[%s21089_s8] ss:$0 sm:$0xff] }
 0x42f   :  { %v6743_v9 = vadd.f32 %v6727_v39, %v6647_v12  ;;  %8047 = vperm.xlu1 %15150, %v21679_v11   ;;  %14463 = vmatprep.mubr.msk.f32.mxu1 %vm665_vm0, %v6804_v59  ;;  %vm6773_vm15 = vcmp.gt.f32.partialorder %v6757_v60, 0.0  ;;  %v6789_v27 = vmul.f32 0.2, %v6757_v60  ;;  %v6654_v12 = vadd.f32 %v6638_v18, %v18477_v51 }
 0x430   :  { %8147 = vperm.xlu0 %15151, %v21661_v0   ;;  %v6694_v31 = vpop.permute.xlu1 %6693  ;;  %v6794_v51 = vmul.f32 0.2, %v6762_v30  ;;  %v6653_v23 = vadd.f32 %v6637_v14, %v6557_v24  ;;  %v6559_v5 = vmul.f32 %v18218_v53, %v18389_v21  ;;  %vm6780_vm5 = vcmp.gt.f32.partialorder %v6764_v42, 0.0  ;;  %v21682_v14 = vld [vmem:[#allocation48_spill] sm:$0xff] }
 0x431   :  { %v6759_v6 = vadd.f32 %v18094_v47, %v6743_v9  ;;  %v6729_v44 = vmul.f32 %v18061_v40, %v6694_v31  ;;  %v6805_v57 = vsel %vm6773_vm15, %v6757_v60, %v6789_v27  ;;  %v6750_v38 = vadd.f32 %v6734_v1, %v6654_v12  ;;  %v18574_v9 = vld [vmem:[%s21088_s7] ss:$0 sm:$0xff] }
 0x432   :  { %v18549_v16 = vpop.permute.xlu0 %7298  ;;  %14464 = vmatmul.mubr.msk.f32.gmra.mrb[132].mxu1 %vm665_vm0, %v6805_v57  ;;  %v6639_v34 = vmul.f32 %v18574_v9, %v18436_v43  ;;  %v18581_v27 = vld [vmem:[%s21092_s11] ss:$0 sm:$0xff]  ;;  %v13021_v43 = vld [vmem:[%s21083_s2 + $0x308] sm:$0xff]  ;;  %v6810_v1 = vsel %vm6778_vm3, %v6762_v30, %v6794_v51  ;;  %v13022_v30 = vld [vmem:[%s21083_s2 + $0x310] sm:$0xff] }
 0x433   :  { %v6745_v32 = vadd.f32 %v6729_v44, %v6649_v36  ;;  %8055 = vperm.xlu1 %15150, %v21680_v13   ;;  %14466 = vmatprep.mubr.msk.f32.mxu1 %vm665_vm0, %v6806_v25  ;;  %vm6775_vm2 = vcmp.gt.f32.partialorder %v6759_v6, 0.0  ;;  %v6791_v48 = vmul.f32 0.2, %v6759_v6  ;;  %v13020_v31 = vld [vmem:[%s21083_s2 + $0x300] sm:$0xff]  ;;  %v13023_v51 = vld [vmem:[%s21083_s2 + $0x318] sm:$0xff] }
 0x434   :  { %8155 = vperm.xlu0 %15151, %v21663_v20   ;;  %v6702_v7 = vpop.permute.xlu1 %6701 }
 0x435   :  { %v6761_v46 = vadd.f32 %v18094_v47, %v6745_v32  ;;  %v6731_v60 = vmul.f32 %v18061_v40, %v6702_v7  ;;  %v6807_v39 = vsel %vm6775_vm2, %v6759_v6, %v6791_v48  ;;  %v6796_v32 = vmul.f32 0.2, %v6764_v42 }
 0x436   :  { %v18565_v45 = vpop.permute.xlu0 %7306  ;;  %14467 = vmatmul.mubr.msk.f32.gmra.mrb[134].mxu1 %vm665_vm0, %v6807_v39  ;;  %v6766_v48 = vadd.f32 %v18094_v47, %v6750_v38  ;;  %v18617_v39 = vld [vmem:[%s21090_s9] ss:$0 sm:$0xff] }
 0x437   :  { %v6747_v63 = vadd.f32 %v6731_v60, %v6651_v61  ;;  %8063 = vperm.xlu1 %15150, %v21681_v54   ;;  %v14355_v59 = vpop.f32.mrb[96].mxu1  ;;  %14469 = vmatprep.mubr.msk.f32.mxu1 %vm665_vm0, %v6808_v49  ;;  %vm6777_vm4 = vcmp.gt.f32.partialorder %v6761_v46, 0.0  ;;  %v6793_v40 = vmul.f32 0.2, %v6761_v46  ;;  %v6655_v60 = vadd.f32 %v6639_v34, %v6559_v5  ;;  %v13025_v5 = vld [vmem:[%s21083_s2 + $0x328] sm:$0xff] }
 0x438   :  { %v5390_v19 = vadd.f32 %v18581_v27, %v14355_v59  ;;  %8163 = vperm.xlu0 %15151, %v21665_v28   ;;  %v6710_v18 = vpop.permute.xlu1 %6709  ;;  %v5384_v36 = vpop.f32.mrb[97].mxu1  ;;  %vm6782_vm8 = vcmp.gt.f32.partialorder %v6766_v48, 0.0 }
 0x439   :  { %v6763_v25 = vadd.f32 %v18094_v47, %v6747_v63  ;;  %v6733_v6 = vmul.f32 %v18595_v55, %v6710_v18  ;;  %v5385_v44 = vadd.f32 %v18581_v27, %v5384_v36  ;;  %v6809_v57 = vsel %vm6777_vm4, %v6761_v46, %v6793_v40  ;;  %v21683_v18 = vld [vmem:[#allocation50_spill] sm:$0xff] }
 0x43a   :  { %v18602_v15 = vpop.permute.xlu0 %7314  ;;  %14470 = vmatmul.mubr.msk.f32.gmra.mrb[136].mxu1 %vm665_vm0, %v6809_v57  ;;  %v5481_v61 = vmul.f32 %v13021_v43, %v5390_v19 }
 0x43b   :  { %v6749_v24 = vadd.f32 %v6733_v6, %v6653_v23  ;;  %v5480_v12 = vmul.f32 %v13020_v31, %v5385_v44  ;;  %8071 = vperm.xlu1 %15150, %v21682_v14   ;;  %v14358_v7 = vpop.f32.mrb[98].mxu1  ;;  %14472 = vmatprep.mubr.msk.f32.mxu1 %vm665_vm0, %v6810_v1  ;;  %vm6779_vm6 = vcmp.gt.f32.partialorder %v6763_v25, 0.0  ;;  %v6795_v47 = vmul.f32 0.2, %v6763_v25 }
 0x43c   :  { %v5400_v53 = vadd.f32 %v18581_v27, %v14358_v7  ;;  %8203 = vperm.xlu0 %15151, %v21666_v41   ;;  %v6718_v21 = vpop.permute.xlu1 %6717  ;;  %v5394_v46 = vpop.f32.mrb[99].mxu1  ;;  %v6812_v23 = vsel %vm6780_vm5, %v6764_v42, %v6796_v32  ;;  %v6798_v31 = vmul.f32 0.2, %v6766_v48  ;;  %v13024_v42 = vld [vmem:[%s21083_s2 + $0x320] sm:$0xff] }
 0x43d   :  { %v6765_v49 = vadd.f32 %v18617_v39, %v6749_v24  ;;  %v6735_v38 = vmul.f32 %v18595_v55, %v6718_v21  ;;  %v5395_v63 = vadd.f32 %v18581_v27, %v5394_v46  ;;  %14379 = vmatprep.mubr.msk.f32.mxu0 %vm665_vm0, %v5480_v12  ;;  %v6811_v40 = vsel %vm6779_vm6, %v6763_v25, %v6795_v47 }
 0x43e   :  { %v18626_v59 = vpop.permute.xlu0 %7338  ;;  %14380 = vmatmul.mubr.msk.f32.vlgmr.msra.gmra.mrb[0].mxu0 %vm665_vm0, %v5481_v61  ;;  %14473 = vmatmul.mubr.msk.f32.gmra.mrb[138].mxu1 %vm665_vm0, %v6811_v40  ;;  %v5483_v43 = vmul.f32 %v13023_v51, %v5400_v53  ;;  %v21684_v61 = vld [vmem:[#allocation52_spill] sm:$0xff]  ;;  %v6814_v21 = vsel %vm6782_vm8, %v6766_v48, %v6798_v31 }
 0x43f   :  { %v6751_v34 = vadd.f32 %v6735_v38, %v6655_v60  ;;  %v5482_v19 = vmul.f32 %v13022_v30, %v5395_v63  ;;  %8079 = vperm.xlu1 %15150, %v21683_v18   ;;  %v14361_v36 = vpop.f32.mrb[100].mxu1  ;;  %vm6781_vm7 = vcmp.gt.f32.partialorder %v6765_v49, 0.0  ;;  %14475 = vmatprep.mubr.msk.f32.mxu1 %vm665_vm0, %v6812_v23  ;;  %v6797_v25 = vmul.f32 0.2, %v6765_v49  ;;  %v13026_v60 = vld [vmem:[%s21083_s2 + $0x330] sm:$0xff]  ;;  %v21685_v23 = vld [vmem:[#allocation5_spill] sm:$0xff] }
 0x440   :  { %v5410_v6 = vadd.f32 %v18581_v27, %v14361_v36  ;;  %8211 = vperm.xlu0 %15151, %v21667_v22   ;;  %v5404_v44 = vpop.f32.mrb[101].mxu1  ;;  %14430 = vmatpush3.msra.mxu0 %v18454_v50  ;;  %v7398_v28 = vmul.f32 %v18574_v9, %v18626_v59  ;;  %v21700_v59 = vld [vmem:[#allocation31_spill] sm:$0xff] }
 0x441   :  { %v6767_v57 = vadd.f32 %v18617_v39, %v6751_v34  ;;  %v5405_v1 = vadd.f32 %v18581_v27, %v5404_v44  ;;  %v18644_v32 = vpop.permute.xlu1 %7258  ;;  %14382 = vmatprep.mubr.msk.f32.mxu0 %vm665_vm0, %v5482_v19  ;;  %v6813_v12 = vsel %vm6781_vm7, %v6765_v49, %v6797_v25  ;;  %v13027_v49 = vld [vmem:[%s21083_s2 + $0x338] sm:$0xff]  ;;  %v13029_v44 = vld [vmem:[%s21083_s2 + $0x348] sm:$0xff] }
 0x442   :  { %v18648_v24 = vpop.permute.xlu0 %7346  ;;  %14383 = vmatmul.mubr.msk.f32.gmra.mrb[2].mxu0 %vm665_vm0, %v5483_v43  ;;  %14476 = vmatmul.mubr.msk.f32.gmra.mrb[140].mxu1 %vm665_vm0, %v6813_v12  ;;  %v5485_v30 = vmul.f32 %v13025_v5, %v5410_v6  ;;  %v13028_v43 = vld [vmem:[%s21083_s2 + $0x340] sm:$0xff] }
 0x443   :  { %v5484_v7 = vmul.f32 %v13024_v42, %v5405_v1  ;;  %8087 = vperm.xlu1 %15150, %v21684_v61   ;;  %v14364_v53 = vpop.f32.mrb[102].mxu1  ;;  %vm6783_vm9 = vcmp.gt.f32.partialorder %v6767_v57, 0.0  ;;  %v6799_v46 = vmul.f32 0.2, %v6767_v57  ;;  %14478 = vmatprep.mubr.msk.f32.mxu1 %vm665_vm0, %v6814_v21  ;;  %v7400_v62 = vmul.f32 %v18574_v9, %v18648_v24  ;;  %v21701_v24 = vld [vmem:[#allocation33_spill] sm:$0xff] }
 0x444   :  { %v5420_v47 = vadd.f32 %v18581_v27, %v14364_v53  ;;  %8219 = vperm.xlu0 %15151, %v21668_v8   ;;  %v5414_v50 = vpop.f32.mrb[103].mxu1  ;;  %v13030_v53 = vld [vmem:[%s21083_s2 + $0x350] sm:$0xff] }
 0x445   :  { %v5415_v48 = vadd.f32 %v18581_v27, %v5414_v50  ;;  %v18664_v51 = vpop.permute.xlu1 %7262  ;;  %14385 = vmatprep.mubr.msk.f32.mxu0 %vm665_vm0, %v5484_v7  ;;  %v6815_v38 = vsel %vm6783_vm9, %v6767_v57, %v6799_v46  ;;  %v13031_v46 = vld [vmem:[%s21083_s2 + $0x358] sm:$0xff]  ;;  %v21686_v50 = vld [vmem:[#allocation9_spill] sm:$0xff] }
 0x446   :  { %v18667_v63 = vpop.permute.xlu0 %7354  ;;  %14386 = vmatmul.mubr.msk.f32.gmra.mrb[4].mxu0 %vm665_vm0, %v5485_v30  ;;  %14479 = vmatmul.mubr.msk.f32.gmra.mrb[142].mxu1 %vm665_vm0, %v6815_v38  ;;  %v5487_v34 = vmul.f32 %v13027_v49, %v5420_v47 }
 0x447   :  { %v5486_v40 = vmul.f32 %v13026_v60, %v5415_v48  ;;  %8111 = vperm.xlu1 %15150, %v21685_v23   ;;  %v14367_v19 = vpop.f32.mrb[104].mxu1  ;;  %v21687_v48 = vld [vmem:[#allocation32_spill] sm:$0xff] }
 0x448   :  { %8227 = vperm.xlu0 %15151, %v21669_v52   ;;  %v5430_v36 = vadd.f32 %v18581_v27, %v14367_v19  ;;  %v5424_v31 = vpop.f32.mrb[105].mxu1  ;;  %v13032_v19 = vld [vmem:[%s21083_s2 + $0x360] sm:$0xff] }
 0x449   :  { %v18677_v6 = vpop.permute.xlu1 %7270  ;;  %14388 = vmatprep.mubr.msk.f32.mxu0 %vm665_vm0, %v5486_v40  ;;  %v5425_v42 = vadd.f32 %v18581_v27, %v5424_v31  ;;  %v13033_v31 = vld [vmem:[%s21083_s2 + $0x368] sm:$0xff]  ;;  %v21697_v52 = vld [vmem:[#allocation25_spill] sm:$0xff] }
 0x44a   :  { %v18684_v25 = vpop.permute.xlu0 %7362  ;;  %14389 = vmatmul.mubr.msk.f32.gmra.mrb[6].mxu0 %vm665_vm0, %v5487_v34  ;;  %v5489_v1 = vmul.f32 %v13029_v44, %v5430_v36 }
 0x44b   :  { %8119 = vperm.xlu1 %15150, %v21625_v26   ;;  %v5488_v57 = vmul.f32 %v13028_v43, %v5425_v42  ;;  %v14370_v5 = vpop.f32.mrb[106].mxu1  ;;  %v21688_v42 = vld [vmem:[#allocation11_spill] sm:$0xff] }
 0x44c   :  { %8235 = vperm.xlu0 %15151, %v21670_v17   ;;  %v5440_v12 = vadd.f32 %v18581_v27, %v14370_v5  ;;  %v5434_v7 = vpop.f32.mrb[107].mxu1 }
 0x44d   :  { %v18693_v21 = vpop.permute.xlu1 %7278  ;;  %v5435_v30 = vadd.f32 %v18581_v27, %v5434_v7  ;;  %14391 = vmatprep.mubr.msk.f32.mxu0 %vm665_vm0, %v5488_v57 }
 0x44e   :  { %v18700_v47 = vpop.permute.xlu0 %7370  ;;  %14392 = vmatmul.mubr.msk.f32.gmra.mrb[8].mxu0 %vm665_vm0, %v5489_v1  ;;  %v5491_v38 = vmul.f32 %v13031_v46, %v5440_v12  ;;  %v21689_v1 = vld [vmem:[#allocation34_spill] sm:$0xff]  ;;  %v13034_v46 = vld [vmem:[%s21083_s2 + $0x370] sm:$0xff] }
 0x44f   :  { %8127 = vperm.xlu1 %15150, %v21686_v50   ;;  %v5490_v60 = vmul.f32 %v13030_v53, %v5435_v30  ;;  %v14373_v49 = vpop.f32.mrb[108].mxu1 }
 0x450   :  { %8243 = vperm.xlu0 %15151, %v21687_v48   ;;  %v5450_v40 = vadd.f32 %v18581_v27, %v14373_v49  ;;  %v5444_v34 = vpop.f32.mrb[109].mxu1  ;;  %v21696_v48 = vld [vmem:[#allocation23_spill] sm:$0xff] }
 0x451   :  { %v18709_v36 = vpop.permute.xlu1 %7286  ;;  %v5445_v43 = vadd.f32 %v18581_v27, %v5444_v34  ;;  %14394 = vmatprep.mubr.msk.f32.mxu0 %vm665_vm0, %v5490_v60  ;;  %v13035_v60 = vld [vmem:[%s21083_s2 + $0x378] sm:$0xff] }
 0x452   :  { %v18716_v44 = vpop.permute.xlu0 %7378  ;;  %14395 = vmatmul.mubr.msk.f32.gmra.mrb[10].mxu0 %vm665_vm0, %v5491_v38  ;;  %v5493_v12 = vmul.f32 %v13033_v31, %v5450_v40  ;;  %v21690_v40 = vld [vmem:[#allocation13_spill] sm:$0xff] }
 0x453   :  { %8135 = vperm.xlu1 %15150, %v21688_v42   ;;  %v5492_v57 = vmul.f32 %v13032_v19, %v5445_v43  ;;  %v14376_v5 = vpop.f32.mrb[110].mxu1  ;;  %v21691_v19 = vld [vmem:[#allocation36_spill] sm:$0xff] }
 0x454   :  { %8251 = vperm.xlu0 %15151, %v21689_v1   ;;  %v5460_v7 = vadd.f32 %v18581_v27, %v14376_v5  ;;  %v5454_v53 = vpop.f32.mrb[111].mxu1  ;;  %v21695_v1 = vld [vmem:[#allocation21_spill] sm:$0xff] }
 0x455   :  { %v18725_v30 = vpop.permute.xlu1 %7294  ;;  %v5455_v49 = vadd.f32 %v18581_v27, %v5454_v53  ;;  %14397 = vmatprep.mubr.msk.f32.mxu0 %vm665_vm0, %v5492_v57  ;;  %v21692_v53 = vld [vmem:[#allocation15_spill] sm:$0xff]  ;;  %v21273_v57 = vmov 11  }
 0x456   :  { %v18732_v38 = vpop.permute.xlu0 %7386  ;;  %14398 = vmatmul.mubr.msk.f32.gmra.mrb[12].mxu0 %vm665_vm0, %v5493_v12  ;;  %v5495_v31 = vmul.f32 %v13035_v60, %v5460_v7 }
 0x457   :  { %8143 = vperm.xlu1 %15150, %v21690_v40   ;;  %v5494_v34 = vmul.f32 %v13034_v46, %v5455_v49  ;;  %v21693_v49 = vld [vmem:[#allocation17_spill] sm:$0xff] }
 0x458   :  { %8259 = vperm.xlu0 %15151, %v21691_v19  }
 0x459   :  { %v18737_v43 = vpop.permute.xlu1 %7302  ;;  %14400 = vmatprep.mubr.msk.f32.mxu0 %vm665_vm0, %v5494_v34  ;;  %v21694_v34 = vld [vmem:[#allocation19_spill] sm:$0xff] }
 0x45a   :  { %v18740_v5 = vpop.permute.xlu0 %7394  ;;  %14401 = vmatmul.mubr.msk.f32.gmra.mrb[14].mxu0 %vm665_vm0, %v5495_v31 }
 0x45b   :  { %8151 = vperm.xlu1 %15150, %v21692_v53  }
 0x45c   :  { %15152 = vset.pattern.permute.xlu0 %v21273_v57 }
 0x45d   :  { %8800 = vperm.xlu0 %15152, %v21677_v33   ;;  %v18746_v12 = vpop.permute.xlu1 %7310 }
 0x45e   :  { %v7435_v46 = vpop.permute.xlu0 %7434 }
 0x45f   :  { %8159 = vperm.xlu1 %15150, %v21693_v49   ;;  %v7494_v37 = vmul.f32 %v18595_v55, %v7435_v46  ;;  %v21702_v46 = vld [vmem:[#allocation54_spill] sm:$0xff] }
 0x461   :  { %8812 = vperm.xlu0 %15152, %v21678_v29   ;;  %v7335_v7 = vpop.permute.xlu1 %7334 }
 0x462   :  { %v7443_v60 = vpop.permute.xlu0 %7442 }
 0x463   :  { %8167 = vperm.xlu1 %15150, %v21694_v34  }
 0x465   :  { %8820 = vperm.xlu0 %15152, %v21679_v11   ;;  %v7343_v31 = vpop.permute.xlu1 %7342 }
 0x466   :  { %v7451_v19 = vpop.permute.xlu0 %7450 }
 0x467   :  { %8207 = vperm.xlu1 %15150, %v21695_v1  }
 0x469   :  { %8828 = vperm.xlu0 %15152, %v21680_v13   ;;  %v7351_v57 = vpop.permute.xlu1 %7350  ;;  %v21698_v13 = vld [vmem:[#allocation27_spill] sm:$0xff] }
 0x46a   :  { %v18754_v33 = vpop.permute.xlu0 %7458 }
 0x46b   :  { %8215 = vperm.xlu1 %15150, %v21696_v48  }
 0x46d   :  { %8836 = vperm.xlu0 %15152, %v21681_v54   ;;  %v18758_v29 = vpop.permute.xlu1 %7358  ;;  %v21699_v54 = vld [vmem:[#allocation29_spill] sm:$0xff] }
 0x46e   :  { %v18760_v17 = vpop.permute.xlu0 %7466 }
 0x46f   :  { %8223 = vperm.xlu1 %15150, %v21697_v52  }
 0x471   :  { %8844 = vperm.xlu0 %15152, %v21682_v14   ;;  %v18764_v11 = vpop.permute.xlu1 %7366  ;;  %v18780_v14 = vld [vmem:[%s21087_s6] ss:$0 sm:$0xff] }
 0x472   :  { %v18766_v8 = vpop.permute.xlu0 %7474  ;;  %v7318_v20 = vmul.f32 %v18780_v14, %v18644_v32  ;;  %v7320_v2 = vmul.f32 %v18780_v14, %v18468_v4  ;;  %v7324_v4 = vmul.f32 %v18780_v14, %v18509_v3  ;;  %v18824_v3 = vmul.f32 %v18780_v14, %v18565_v45 }
 0x473   :  { %8231 = vperm.xlu1 %15150, %v21698_v13   ;;  %v7496_v13 = vmul.f32 %v18595_v55, %v7443_v60  ;;  %v7399_v60 = vmul.f32 %v18574_v9, %v7343_v31  ;;  %v7319_v45 = vmul.f32 %v18780_v14, %v18664_v51 }
 0x474   :  { %v7416_v52 = vadd.f32 %v7400_v62, %v7320_v2  ;;  %v7326_v2 = vmul.f32 %v18780_v14, %v18531_v58  ;;  %v7498_v58 = vmul.f32 %v18595_v55, %v7451_v19  ;;  %v7321_v19 = vmul.f32 %v18780_v14, %v18677_v6 }
 0x475   :  { %8852 = vperm.xlu0 %15152, %v21683_v18   ;;  %v18770_v22 = vpop.permute.xlu1 %7374 }
 0x476   :  { %v18772_v41 = vpop.permute.xlu0 %7482 }
 0x477   :  { %8239 = vperm.xlu1 %15150, %v21699_v54   ;;  %v7414_v54 = vadd.f32 %v7398_v28, %v7318_v20  ;;  %v7402_v20 = vmul.f32 %v18574_v9, %v18667_v63  ;;  %v7322_v28 = vmul.f32 %v18780_v14, %v18496_v56  ;;  %v18820_v56 = vmul.f32 %v18780_v14, %v18549_v16 }
 0x478   :  { %v18838_v16 = vmul.f32 %v18780_v14, %v18602_v15 }
 0x479   :  { %8860 = vperm.xlu0 %15152, %v21684_v61   ;;  %v18785_v18 = vpop.permute.xlu1 %7382  ;;  %v7397_v61 = vmul.f32 %v18574_v9, %v7335_v7  ;;  %v7510_v48 = vadd.f32 %v7494_v37, %v7414_v54  ;;  %v7512_v37 = vadd.f32 %v7496_v13, %v7416_v52  ;;  %v7404_v54 = vmul.f32 %v18574_v9, %v18684_v25  ;;  %v21703_v25 = vld [vmem:[#allocation35_spill] sm:$0xff] }
 0x47a   :  { %v18787_v0 = vpop.permute.xlu0 %7490  ;;  %v7418_v31 = vadd.f32 %v7402_v20, %v7322_v28  ;;  %v7323_v28 = vmul.f32 %v18780_v14, %v18693_v21 }
 0x47b   :  { %8247 = vperm.xlu1 %15150, %v21700_v59   ;;  %v7317_v59 = vmul.f32 %v18780_v14, %v21702_v46  ;;  %v7526_v52 = vadd.f32 %v18617_v39, %v7510_v48  ;;  %v7528_v46 = vadd.f32 %v18617_v39, %v7512_v37 }
 0x47d   :  { %8884 = vperm.xlu0 %15152, %v21685_v23   ;;  %v18797_v32 = vpop.permute.xlu1 %7390  ;;  %v7413_v7 = vadd.f32 %v7397_v61, %v7317_v59  ;;  %v18834_v61 = vld [vmem:[%s21093_s12 + $0x40] sm:$0xff]  ;;  %v7406_v59 = vmul.f32 %v18574_v9, %v18700_v47  ;;  %v7415_v23 = vadd.f32 %v7399_v60, %v7319_v45  ;;  %v7558_v6 = vmul.f32 0.2, %v7526_v52 }
 0x47e   :  { %14481 = vmatprep.subr.mxu0 %v18834_v61  ;;  %v7500_v47 = vmul.f32 %v18595_v55, %v18754_v33  ;;  %vm7542_vm10 = vcmp.gt.f32.partialorder %v7526_v52, 0.0  ;;  %vm7544_vm12 = vcmp.gt.f32.partialorder %v7528_v46, 0.0  ;;  %v7403_v33 = vmul.f32 %v18574_v9, %v18758_v29 }
 0x47f   :  { %v18800_v1 = vpop.permute.xlu0 %8031  ;;  %8255 = vperm.xlu1 %15150, %v21701_v24   ;;  %v7422_v60 = vadd.f32 %v7406_v59, %v7326_v2  ;;  %v7502_v2 = vmul.f32 %v18595_v55, %v18760_v17  ;;  %v7574_v59 = vsel %vm7542_vm10, %v7526_v52, %v7558_v6  ;;  %v7325_v29 = vmul.f32 %v18780_v14, %v18709_v36 }
 0x480   :  { %v7405_v17 = vmul.f32 %v18574_v9, %v18764_v11  ;;  %v7419_v36 = vadd.f32 %v7403_v33, %v7323_v28 }
 0x481   :  { %8892 = vperm.xlu0 %15152, %v21625_v26   ;;  %v7431_v62 = vpop.permute.xlu1 %7430  ;;  %v7420_v26 = vadd.f32 %v7404_v54, %v7324_v4  ;;  %v21705_v4 = vld [vmem:[#allocation39_spill] sm:$0xff] }
 0x482   :  { %v7493_v63 = vmul.f32 %v18595_v55, %v7431_v62  ;;  %v7401_v62 = vmul.f32 %v18574_v9, %v7351_v57  ;;  %v21704_v57 = vmov 11   ;;  %v7421_v33 = vadd.f32 %v7405_v17, %v7325_v29 }
 0x483   :  { %v18828_v13 = vpop.permute.xlu0 %8043  ;;  %8263 = vperm.xlu1 %15150, %v21703_v25   ;;  %v7506_v17 = vmul.f32 %v18595_v55, %v18772_v41 }
 0x484   :  { %v7509_v48 = vadd.f32 %v7493_v63, %v7413_v7  ;;  %v7514_v7 = vadd.f32 %v7498_v58, %v7418_v31  ;;  %v7417_v45 = vadd.f32 %v7401_v62, %v7321_v19  ;;  %v7560_v58 = vmul.f32 0.2, %v7528_v46 }
 0x485   :  { %8900 = vperm.xlu0 %15152, %v21686_v50   ;;  %v7439_v15 = vpop.permute.xlu1 %7438 }
 0x486   :  { %v7525_v51 = vadd.f32 %v18617_v39, %v7509_v48  ;;  %v7495_v20 = vmul.f32 %v18595_v55, %v7439_v15  ;;  %v7576_v52 = vsel %vm7544_vm12, %v7528_v46, %v7560_v58  ;;  %v7504_v46 = vmul.f32 %v18595_v55, %v18766_v8 }
 0x487   :  { %v18856_v37 = vpop.permute.xlu0 %8051  ;;  %15153 = vset.pattern.permute.xlu1 %v21704_v57  ;;  %v7410_v58 = vmul.f32 %v18574_v9, %v18732_v38  ;;  %v7407_v8 = vmul.f32 %v18574_v9, %v18770_v22 }
 0x488   :  { %v7511_v63 = vadd.f32 %v7495_v20, %v7415_v23  ;;  %8804 = vperm.xlu1 %15153, %v21705_v4   ;;  %vm7541_vm11 = vcmp.gt.f32.partialorder %v7525_v51, 0.0  ;;  %v7557_v54 = vmul.f32 0.2, %v7525_v51  ;;  %v7530_v23 = vadd.f32 %v18617_v39, %v7514_v7 }
 0x489   :  { %8908 = vperm.xlu0 %15152, %v21688_v42   ;;  %v7447_v21 = vpop.permute.xlu1 %7446  ;;  %v7516_v20 = vadd.f32 %v7500_v47, %v7420_v26  ;;  %v7408_v26 = vmul.f32 %v18574_v9, %v18716_v44  ;;  %v21736_v42 = vld [vmem:[#allocation36_spill] sm:$0xff] }
 0x48a   :  { %v7527_v31 = vadd.f32 %v18617_v39, %v7511_v63  ;;  %v7497_v48 = vmul.f32 %v18595_v55, %v7447_v21  ;;  %v7573_v15 = vsel %vm7541_vm11, %v7525_v51, %v7557_v54  ;;  %v7518_v63 = vadd.f32 %v7502_v2, %v7422_v60 }
 0x48b   :  { %v18868_v19 = vpop.permute.xlu0 %8059  ;;  %14509 = vmatprep.mubr.msk.f32.mxu1 %vm665_vm0, %v7573_v15  ;;  %v7532_v44 = vadd.f32 %v18617_v39, %v7516_v20  ;;  %vm7546_vm14 = vcmp.gt.f32.partialorder %v7530_v23, 0.0  ;;  %v7562_v11 = vmul.f32 0.2, %v7530_v23  ;;  %v7327_v60 = vmul.f32 %v18780_v14, %v18725_v30 }
 0x48c   :  { %v7513_v62 = vadd.f32 %v7497_v48, %v7417_v45  ;;  %8808 = vperm.xlu1 %15153, %v15600_v10   ;;  %14510 = vmatmul.mubr.msk.f32.vlgmr.msra.gmra.mrb[144].mxu1 %vm665_vm0, %v7574_v59  ;;  %vm7543_vm13 = vcmp.gt.f32.partialorder %v7527_v31, 0.0  ;;  %v7559_v51 = vmul.f32 0.2, %v7527_v31  ;;  %v21706_v45 = vld [vmem:[#allocation41_spill] sm:$0xff] }
 0x48d   :  { %8916 = vperm.xlu0 %15152, %v21690_v40   ;;  %v7455_v7 = vpop.permute.xlu1 %7454  ;;  %14560 = vmatpush3.msra.mxu1 %v18522_v35  ;;  %v7578_v30 = vsel %vm7546_vm14, %v7530_v23, %v7562_v11  ;;  %vm7548_vm1 = vcmp.gt.f32.partialorder %v7532_v44, 0.0  ;;  %v7564_v38 = vmul.f32 0.2, %v7532_v44  ;;  %v7409_v23 = vmul.f32 %v18574_v9, %v18785_v18  ;;  %v21708_v11 = vld [vmem:[#allocation45_spill] sm:$0xff] }
 0x48e   :  { %v7529_v6 = vadd.f32 %v18617_v39, %v7513_v62  ;;  %v7499_v47 = vmul.f32 %v18595_v55, %v7455_v7  ;;  %v7575_v57 = vsel %vm7543_vm13, %v7527_v31, %v7559_v51  ;;  %14611 = vmatprep.subr.mxu1 %v18522_v35  ;;  %v7424_v35 = vadd.f32 %v7408_v26, %v18820_v56  ;;  %v21707_v62 = vld [vmem:[#allocation43_spill] sm:$0xff] }
 0x48f   :  { %v18887_v54 = vpop.permute.xlu0 %8067  ;;  %14512 = vmatprep.mubr.msk.f32.mxu1 %vm665_vm0, %v7575_v57  ;;  %v7534_v56 = vadd.f32 %v18617_v39, %v7518_v63  ;;  %v7426_v51 = vadd.f32 %v7410_v58, %v18824_v3  ;;  %v7412_v26 = vmul.f32 %v18574_v9, %v18740_v5  ;;  %v7329_v3 = vmul.f32 %v18780_v14, %v18737_v43 }
 0x490   :  { %v7515_v28 = vadd.f32 %v7499_v47, %v7419_v36  ;;  %8816 = vperm.xlu1 %15153, %v21706_v45   ;;  %14513 = vmatmul.mubr.msk.f32.gmra.mrb[146].mxu1 %vm665_vm0, %v7576_v52  ;;  %vm7545_vm15 = vcmp.gt.f32.partialorder %v7529_v6, 0.0  ;;  %v7561_v21 = vmul.f32 0.2, %v7529_v6  ;;  %v7520_v59 = vadd.f32 %v7504_v46, %v7424_v35 }
 0x491   :  { %8924 = vperm.xlu0 %15152, %v21692_v53   ;;  %v7463_v31 = vpop.permute.xlu1 %7462  ;;  %v7423_v52 = vadd.f32 %v7407_v8, %v7327_v60  ;;  %v7580_v41 = vsel %vm7548_vm1, %v7532_v44, %v7564_v38  ;;  %vm7550_vm3 = vcmp.gt.f32.partialorder %v7534_v56, 0.0  ;;  %v7566_v18 = vmul.f32 0.2, %v7534_v56 }
 0x492   :  { %v7531_v48 = vadd.f32 %v18617_v39, %v7515_v28  ;;  %v7501_v15 = vmul.f32 %v18595_v55, %v7463_v31  ;;  %v7577_v20 = vsel %vm7545_vm15, %v7529_v6, %v7561_v21  ;;  %v7536_v5 = vadd.f32 %v18617_v39, %v7520_v59  ;;  %v13070_v59 = vld [vmem:[%s21083_s2 + $0x388] sm:$0xff] }
 0x493   :  { %v18905_v2 = vpop.permute.xlu0 %8075  ;;  %14515 = vmatprep.mubr.msk.f32.mxu1 %vm665_vm0, %v7577_v20  ;;  %v7428_v28 = vadd.f32 %v7412_v26, %v18838_v16  ;;  %v7522_v43 = vadd.f32 %v7506_v17, %v7426_v51  ;;  %v7425_v21 = vadd.f32 %v7409_v23, %v7329_v3  ;;  %v7508_v35 = vmul.f32 %v18595_v55, %v18787_v0  ;;  %v13069_v16 = vld [vmem:[%s21083_s2 + $0x380] sm:$0xff]  ;;  %v13071_v3 = vld [vmem:[%s21083_s2 + $0x390] sm:$0xff] }
 0x494   :  { %v7517_v29 = vadd.f32 %v7501_v15, %v7421_v33  ;;  %8824 = vperm.xlu1 %15153, %v21707_v62   ;;  %14516 = vmatmul.mubr.msk.f32.gmra.mrb[148].mxu1 %vm665_vm0, %v7578_v30  ;;  %vm7547_vm2 = vcmp.gt.f32.partialorder %v7531_v48, 0.0  ;;  %v7563_v22 = vmul.f32 0.2, %v7531_v48  ;;  %v7411_v58 = vmul.f32 %v18574_v9, %v18797_v32  ;;  %v21710_v17 = vld [vmem:[#allocation21_spill] sm:$0xff] }
 0x495   :  { %8932 = vperm.xlu0 %15152, %v21693_v49   ;;  %v7471_v7 = vpop.permute.xlu1 %7470  ;;  %v7331_v0 = vmul.f32 %v18780_v14, %v18746_v12  ;;  %v7582_v32 = vsel %vm7550_vm3, %v7534_v56, %v7566_v18  ;;  %vm7552_vm6 = vcmp.gt.f32.partialorder %v7536_v5, 0.0  ;;  %v7568_v12 = vmul.f32 0.2, %v7536_v5 }
 0x496   :  { %v7533_v36 = vadd.f32 %v18617_v39, %v7517_v29  ;;  %v7503_v6 = vmul.f32 %v18595_v55, %v7471_v7  ;;  %v7579_v47 = vsel %vm7547_vm2, %v7531_v48, %v7563_v22  ;;  %v21709_v29 = vld [vmem:[#allocation47_spill] sm:$0xff]  ;;  %v7538_v22 = vadd.f32 %v18617_v39, %v7522_v43 }
 0x497   :  { %v18923_v57 = vpop.permute.xlu0 %8083  ;;  %14518 = vmatprep.mubr.msk.f32.mxu1 %vm665_vm0, %v7579_v47  ;;  %v7524_v51 = vadd.f32 %v7508_v35, %v7428_v28  ;;  %v21711_v35 = vld [vmem:[#allocation49_spill] sm:$0xff] }
 0x498   :  { %v7519_v63 = vadd.f32 %v7503_v6, %v7423_v52  ;;  %8832 = vperm.xlu1 %15153, %v21708_v11   ;;  %14519 = vmatmul.mubr.msk.f32.gmra.mrb[150].mxu1 %vm665_vm0, %v7580_v41  ;;  %vm7549_vm4 = vcmp.gt.f32.partialorder %v7533_v36, 0.0  ;;  %v7565_v46 = vmul.f32 0.2, %v7533_v36  ;;  %v7427_v52 = vadd.f32 %v7411_v58, %v7331_v0 }
 0x499   :  { %8940 = vperm.xlu0 %15152, %v21694_v34   ;;  %v7479_v44 = vpop.permute.xlu1 %7478  ;;  %v14407_v60 = vpop.f32.mrb[112].mxu1  ;;  %vm7554_vm8 = vcmp.gt.f32.partialorder %v7538_v22, 0.0  ;;  %v21734_v34 = vld [vmem:[#allocation34_spill] sm:$0xff] }
 0x49a   :  { %v7535_v33 = vadd.f32 %v18617_v39, %v7519_v63  ;;  %v7505_v31 = vmul.f32 %v18595_v55, %v7479_v44  ;;  %v6157_v8 = vpop.f32.mrb[113].mxu1  ;;  %v7581_v48 = vsel %vm7549_vm4, %v7533_v36, %v7565_v46  ;;  %v6163_v15 = vadd.f32 %v18581_v27, %v14407_v60 }
 0x49b   :  { %v6158_v20 = vadd.f32 %v18581_v27, %v6157_v8  ;;  %v18945_v30 = vpop.permute.xlu0 %8107  ;;  %14521 = vmatprep.mubr.msk.f32.mxu1 %vm665_vm0, %v7581_v48  ;;  %v7584_v44 = vsel %vm7552_vm6, %v7536_v5, %v7568_v12  ;;  %v7540_v60 = vadd.f32 %v18617_v39, %v7524_v51  ;;  %v13073_v5 = vld [vmem:[%s21083_s2 + $0x3a0] sm:$0xff]  ;;  %v13074_v51 = vld [vmem:[%s21083_s2 + $0x3a8] sm:$0xff] }
 0x49c   :  { %v7521_v38 = vadd.f32 %v7505_v31, %v7425_v21  ;;  %8840 = vperm.xlu1 %15153, %v21709_v29   ;;  %14522 = vmatmul.mubr.msk.f32.gmra.mrb[152].mxu1 %vm665_vm0, %v7582_v32  ;;  %vm7551_vm5 = vcmp.gt.f32.partialorder %v7535_v33, 0.0  ;;  %v7567_v7 = vmul.f32 0.2, %v7535_v33  ;;  %v6254_v41 = vmul.f32 %v13070_v59, %v6163_v15  ;;  %v13072_v21 = vld [vmem:[%s21083_s2 + $0x398] sm:$0xff]  ;;  %v21712_v31 = vld [vmem:[#allocation23_spill] sm:$0xff] }
 0x49d   :  { %v6253_v26 = vmul.f32 %v13069_v16, %v6158_v20  ;;  %8980 = vperm.xlu0 %15152, %v21710_v17   ;;  %v7487_v23 = vpop.permute.xlu1 %7486  ;;  %v14410_v56 = vpop.f32.mrb[114].mxu1  ;;  %v7570_v16 = vmul.f32 0.2, %v7538_v22  ;;  %vm7556_vm10 = vcmp.gt.f32.partialorder %v7540_v60, 0.0  ;;  %v8094_v17 = vmul.f32 %v18780_v14, %v18828_v13  ;;  %v19174_v13 = vld [vmem:[%s21093_s12 + $0x48] sm:$0xff] }
 0x49e   :  { %v7537_v36 = vadd.f32 %v18617_v39, %v7521_v38  ;;  %v7507_v6 = vmul.f32 %v18595_v55, %v7487_v23  ;;  %v6167_v47 = vpop.f32.mrb[115].mxu1  ;;  %v6173_v18 = vadd.f32 %v18581_v27, %v14410_v56  ;;  %v7583_v28 = vsel %vm7551_vm5, %v7535_v33, %v7567_v7  ;;  %v21714_v56 = vld [vmem:[#allocation25_spill] sm:$0xff] }
 0x49f   :  { %v6168_v63 = vadd.f32 %v18581_v27, %v6167_v47  ;;  %v18963_v46 = vpop.permute.xlu0 %8115  ;;  %14431 = vmatprep.mubr.msk.f32.mxu0 %vm665_vm0, %v6253_v26  ;;  %14524 = vmatprep.mubr.msk.f32.mxu1 %vm665_vm0, %v7583_v28  ;;  %v21713_v26 = vld [vmem:[#allocation51_spill] sm:$0xff]  ;;  %v7586_v7 = vsel %vm7554_vm8, %v7538_v22, %v7570_v16  ;;  %v13076_v22 = vld [vmem:[%s21083_s2 + $0x3b8] sm:$0xff] }
 0x4a0   :  { %v7523_v43 = vadd.f32 %v7507_v6, %v7427_v52  ;;  %8848 = vperm.xlu1 %15153, %v21711_v35   ;;  %vm7553_vm7 = vcmp.gt.f32.partialorder %v7537_v36, 0.0  ;;  %14432 = vmatmul.mubr.msk.f32.vlgmr.msra.gmra.mrb[0].mxu0 %vm665_vm0, %v6254_v41  ;;  %v7569_v8 = vmul.f32 0.2, %v7537_v36  ;;  %v6256_v20 = vmul.f32 %v13072_v21, %v6173_v18  ;;  %v21715_v21 = vld [vmem:[#allocation6_spill] sm:$0xff] }
 0x4a1   :  { %v6255_v58 = vmul.f32 %v13071_v3, %v6168_v63  ;;  %8988 = vperm.xlu0 %15152, %v21712_v31   ;;  %v14413_v33 = vpop.f32.mrb[116].mxu1  ;;  %14525 = vmatmul.mubr.msk.f32.gmra.mrb[154].mxu1 %vm665_vm0, %v7584_v44  ;;  %v7572_v6 = vmul.f32 0.2, %v7540_v60  ;;  %v13075_v3 = vld [vmem:[%s21083_s2 + $0x3b0] sm:$0xff] }
 0x4a2   :  { %v7539_v48 = vadd.f32 %v18617_v39, %v7523_v43  ;;  %v18978_v0 = vpop.permute.xlu1 %8027  ;;  %v6177_v15 = vpop.f32.mrb[117].mxu1  ;;  %14482 = vmatpush3.msra.mxu0 %v18834_v61  ;;  %v6183_v32 = vadd.f32 %v18581_v27, %v14413_v33  ;;  %v7585_v12 = vsel %vm7553_vm7, %v7537_v36, %v7569_v8 }
 0x4a3   :  { %v6178_v38 = vadd.f32 %v18581_v27, %v6177_v15  ;;  %v18986_v59 = vpop.permute.xlu0 %8123  ;;  %14434 = vmatprep.mubr.msk.f32.mxu0 %vm665_vm0, %v6255_v58  ;;  %14527 = vmatprep.mubr.msk.f32.mxu1 %vm665_vm0, %v7585_v12  ;;  %v21716_v58 = vld [vmem:[#allocation27_spill] sm:$0xff]  ;;  %v7588_v33 = vsel %vm7556_vm10, %v7540_v60, %v7572_v6  ;;  %v13077_v15 = vld [vmem:[%s21083_s2 + $0x3c0] sm:$0xff]  ;;  %v13078_v60 = vld [vmem:[%s21083_s2 + $0x3c8] sm:$0xff] }
 0x4a4   :  { %8856 = vperm.xlu1 %15153, %v21713_v26   ;;  %vm7555_vm9 = vcmp.gt.f32.partialorder %v7539_v48, 0.0  ;;  %v7571_v61 = vmul.f32 0.2, %v7539_v48  ;;  %14435 = vmatmul.mubr.msk.f32.gmra.mrb[2].mxu0 %vm665_vm0, %v6256_v20  ;;  %v6258_v18 = vmul.f32 %v13074_v51, %v6183_v32  ;;  %v21717_v12 = vld [vmem:[#allocation8_spill] sm:$0xff] }
 0x4a5   :  { %v6257_v23 = vmul.f32 %v13073_v5, %v6178_v38  ;;  %8996 = vperm.xlu0 %15152, %v21714_v56   ;;  %v14416_v52 = vpop.f32.mrb[118].mxu1  ;;  %14528 = vmatmul.mubr.msk.f32.gmra.mrb[156].mxu1 %vm665_vm0, %v7586_v7 }
 0x4a6   :  { %v18999_v36 = vpop.permute.xlu1 %8035  ;;  %v6187_v47 = vpop.f32.mrb[119].mxu1  ;;  %v7587_v41 = vsel %vm7555_vm9, %v7539_v48, %v7571_v61  ;;  %v6193_v63 = vadd.f32 %v18581_v27, %v14416_v52  ;;  %v21718_v61 = vld [vmem:[#allocation29_spill] sm:$0xff]  ;;  %14533 = vmatprep.subr.mxu0 %v19174_v13 }
 0x4a7   :  { %v6188_v28 = vadd.f32 %v18581_v27, %v6187_v47  ;;  %v19006_v43 = vpop.permute.xlu0 %8131  ;;  %14437 = vmatprep.mubr.msk.f32.mxu0 %vm665_vm0, %v6257_v23  ;;  %14530 = vmatprep.mubr.msk.f32.mxu1 %vm665_vm0, %v7587_v41  ;;  %v13079_v41 = vld [vmem:[%s21083_s2 + $0x3d0] sm:$0xff] }
 0x4a8   :  { %8880 = vperm.xlu1 %15153, %v21715_v21   ;;  %14438 = vmatmul.mubr.msk.f32.gmra.mrb[4].mxu0 %vm665_vm0, %v6258_v18  ;;  %v6260_v5 = vmul.f32 %v13076_v22, %v6193_v63  ;;  %v21719_v18 = vld [vmem:[#allocation10_spill] sm:$0xff]  ;;  %v13080_v63 = vld [vmem:[%s21083_s2 + $0x3d8] sm:$0xff]  ;;  %v21720_v22 = vld [vmem:[#allocation31_spill] sm:$0xff] }
 0x4a9   :  { %v6259_v44 = vmul.f32 %v13075_v3, %v6188_v28  ;;  %9004 = vperm.xlu0 %15152, %v21716_v58   ;;  %v14419_v8 = vpop.f32.mrb[120].mxu1  ;;  %14531 = vmatmul.mubr.msk.f32.gmra.mrb[158].mxu1 %vm665_vm0, %v7588_v33  ;;  %v8092_v58 = vmul.f32 %v18780_v14, %v18999_v36 }
 0x4aa   :  { %v19017_v16 = vpop.permute.xlu1 %8039  ;;  %v6197_v48 = vpop.f32.mrb[121].mxu1  ;;  %v6203_v20 = vadd.f32 %v18581_v27, %v14419_v8 }
 0x4ab   :  { %v6198_v32 = vadd.f32 %v18581_v27, %v6197_v48  ;;  %v19024_v38 = vpop.permute.xlu0 %8139  ;;  %14440 = vmatprep.mubr.msk.f32.mxu0 %vm665_vm0, %v6259_v44 }
 0x4ac   :  { %8888 = vperm.xlu1 %15153, %v21717_v12   ;;  %14441 = vmatmul.mubr.msk.f32.gmra.mrb[6].mxu0 %vm665_vm0, %v6260_v5  ;;  %v6262_v7 = vmul.f32 %v13078_v60, %v6203_v20  ;;  %v21721_v60 = vld [vmem:[#allocation12_spill] sm:$0xff] }
 0x4ad   :  { %v6261_v51 = vmul.f32 %v13077_v15, %v6198_v32  ;;  %9012 = vperm.xlu0 %15152, %v21718_v61   ;;  %v14422_v52 = vpop.f32.mrb[122].mxu1  ;;  %v13081_v32 = vld [vmem:[%s21083_s2 + $0x3e0] sm:$0xff]  ;;  %v21296_v61 = vmov 12  }
 0x4ae   :  { %v19033_v23 = vpop.permute.xlu1 %8047  ;;  %v6213_v47 = vadd.f32 %v18581_v27, %v14422_v52  ;;  %v6207_v3 = vpop.f32.mrb[123].mxu1 }
 0x4af   :  { %v19035_v6 = vpop.permute.xlu0 %8147  ;;  %14443 = vmatprep.mubr.msk.f32.mxu0 %vm665_vm0, %v6261_v51  ;;  %v6208_v28 = vadd.f32 %v18581_v27, %v6207_v3  ;;  %v13082_v51 = vld [vmem:[%s21083_s2 + $0x3e8] sm:$0xff] }
 0x4b0   :  { %8896 = vperm.xlu1 %15153, %v21719_v18   ;;  %14444 = vmatmul.mubr.msk.f32.gmra.mrb[8].mxu0 %vm665_vm0, %v6262_v7  ;;  %v6264_v15 = vmul.f32 %v13080_v63, %v6213_v47  ;;  %v8170_v63 = vmul.f32 %v18574_v9, %v18945_v30 }
 0x4b1   :  { %9020 = vperm.xlu0 %15152, %v21720_v22   ;;  %v6263_v33 = vmul.f32 %v13079_v41, %v6208_v28  ;;  %v14425_v8 = vpop.f32.mrb[124].mxu1  ;;  %v8090_v28 = vmul.f32 %v18780_v14, %v18978_v0  ;;  %v21723_v22 = vld [vmem:[#allocation16_spill] sm:$0xff] }
 0x4b2   :  { %v19049_v44 = vpop.permute.xlu1 %8055  ;;  %v6223_v5 = vadd.f32 %v18581_v27, %v14425_v8  ;;  %v6217_v20 = vpop.f32.mrb[125].mxu1 }
 0x4b3   :  { %v19051_v48 = vpop.permute.xlu0 %8155  ;;  %v6218_v7 = vadd.f32 %v18581_v27, %v6217_v20  ;;  %14446 = vmatprep.mubr.msk.f32.mxu0 %vm665_vm0, %v6263_v33 }
 0x4b4   :  { %8904 = vperm.xlu1 %15153, %v21721_v60   ;;  %14447 = vmatmul.mubr.msk.f32.gmra.mrb[10].mxu0 %vm665_vm0, %v6264_v15  ;;  %v6266_v8 = vmul.f32 %v13082_v51, %v6223_v5  ;;  %v13083_v15 = vld [vmem:[%s21083_s2 + $0x3f0] sm:$0xff]  ;;  %v8186_v5 = vadd.f32 %v8170_v63, %v8090_v28  ;;  %v21724_v28 = vld [vmem:[#allocation18_spill] sm:$0xff] }
 0x4b5   :  { %9028 = vperm.xlu0 %15152, %v21701_v24   ;;  %v6265_v47 = vmul.f32 %v13081_v32, %v6218_v7  ;;  %v14428_v3 = vpop.f32.mrb[126].mxu1  ;;  %v21722_v24 = vld [vmem:[#allocation14_spill] sm:$0xff]  ;;  %v13084_v32 = vld [vmem:[%s21083_s2 + $0x3f8] sm:$0xff] }
 0x4b6   :  { %v19065_v52 = vpop.permute.xlu1 %8063  ;;  %v6233_v20 = vadd.f32 %v18581_v27, %v14428_v3  ;;  %v6227_v33 = vpop.f32.mrb[127].mxu1 }
 0x4b7   :  { %v19067_v41 = vpop.permute.xlu0 %8163  ;;  %v6228_v7 = vadd.f32 %v18581_v27, %v6227_v33  ;;  %14449 = vmatprep.mubr.msk.f32.mxu0 %vm665_vm0, %v6265_v47 }
 0x4b8   :  { %8912 = vperm.xlu1 %15153, %v21722_v24   ;;  %14450 = vmatmul.mubr.msk.f32.gmra.mrb[12].mxu0 %vm665_vm0, %v6266_v8  ;;  %v6268_v51 = vmul.f32 %v13084_v32, %v6233_v20 }
 0x4b9   :  { %9036 = vperm.xlu0 %15152, %v21703_v25   ;;  %v6267_v30 = vmul.f32 %v13083_v15, %v6228_v7  ;;  %v21725_v15 = vld [vmem:[#allocation20_spill] sm:$0xff]  ;;  %v19135_v25 = vld [vmem:[%s21088_s7] ss:$0 sm:$0xff] }
 0x4ba   :  { %v19085_v9 = vpop.permute.xlu1 %8071 }
 0x4bb   :  { %v8204_v0 = vpop.permute.xlu0 %8203  ;;  %14452 = vmatprep.mubr.msk.f32.mxu0 %vm665_vm0, %v6267_v30 }
 0x4bc   :  { %v8266_v3 = vmul.f32 %v18595_v55, %v8204_v0  ;;  %8920 = vperm.xlu1 %15153, %v21723_v22   ;;  %14453 = vmatmul.mubr.msk.f32.gmra.mrb[14].mxu0 %vm665_vm0, %v6268_v51  ;;  %v21726_v0 = vld [vmem:[#allocation22_spill] sm:$0xff]  ;;  %v21727_v51 = vld [vmem:[#allocation24_spill] sm:$0xff] }
 0x4bd   :  { %15155 = vset.pattern.permute.xlu0 %v21296_v61  ;;  %v21729_v61 = vld [vmem:[#allocation28_spill] sm:$0xff] }
 0x4be   :  { %v8282_v27 = vadd.f32 %v8266_v3, %v8186_v5  ;;  %9577 = vperm.xlu0 %15155, %v21705_v4   ;;  %v19093_v47 = vpop.permute.xlu1 %8079 }
 0x4bf   :  { %v8212_v8 = vpop.permute.xlu0 %8211 }
 0x4c0   :  { %v8298_v63 = vadd.f32 %v18617_v39, %v8282_v27  ;;  %8928 = vperm.xlu1 %15153, %v21724_v28  }
 0x4c2   :  { %9589 = vperm.xlu0 %15155, %v21706_v45   ;;  %v19098_v55 = vpop.permute.xlu1 %8087  ;;  %vm8314_vm11 = vcmp.gt.f32.partialorder %v8298_v63, 0.0  ;;  %v8330_v20 = vmul.f32 0.2, %v8298_v63 }
 0x4c3   :  { %v8220_v33 = vpop.permute.xlu0 %8219 }
 0x4c4   :  { %8936 = vperm.xlu1 %15153, %v21725_v15   ;;  %v8346_v32 = vsel %vm8314_vm11, %v8298_v63, %v8330_v20  ;;  %v21728_v63 = vld [vmem:[#allocation26_spill] sm:$0xff] }
 0x4c5   :  { %14561 = vmatprep.mubr.msk.f32.mxu1 %vm665_vm0, %v8346_v32 }
 0x4c6   :  { %9597 = vperm.xlu0 %15155, %v21707_v62   ;;  %v8112_v7 = vpop.permute.xlu1 %8111 }
 0x4c7   :  { %v8228_v30 = vpop.permute.xlu0 %8227 }
 0x4c8   :  { %8976 = vperm.xlu1 %15153, %v21726_v0  }
 0x4ca   :  { %9605 = vperm.xlu0 %15155, %v21708_v11   ;;  %v8120_v39 = vpop.permute.xlu1 %8119 }
 0x4cb   :  { %v19105_v5 = vpop.permute.xlu0 %8235 }
 0x4cc   :  { %8984 = vperm.xlu1 %15153, %v21727_v51  }
 0x4ce   :  { %9613 = vperm.xlu0 %15155, %v21709_v29   ;;  %v19109_v3 = vpop.permute.xlu1 %8127  ;;  %v21730_v29 = vld [vmem:[#allocation30_spill] sm:$0xff] }
 0x4cf   :  { %v19111_v27 = vpop.permute.xlu0 %8243 }
 0x4d0   :  { %8992 = vperm.xlu1 %15153, %v21728_v63  }
 0x4d2   :  { %9621 = vperm.xlu0 %15155, %v21711_v35   ;;  %v19115_v20 = vpop.permute.xlu1 %8135  ;;  %v21732_v35 = vld [vmem:[#allocation32_spill] sm:$0xff] }
 0x4d3   :  { %v19117_v32 = vpop.permute.xlu0 %8251 }
 0x4d4   :  { %9000 = vperm.xlu1 %15153, %v21729_v61  }
 0x4d6   :  { %9629 = vperm.xlu0 %15155, %v21713_v26   ;;  %v19121_v11 = vpop.permute.xlu1 %8143  ;;  %v8172_v26 = vmul.f32 %v19135_v25, %v18963_v46  ;;  %v8174_v46 = vmul.f32 %v19135_v25, %v18986_v59  ;;  %v8091_v59 = vmul.f32 %v18780_v14, %v18800_v1  ;;  %v8098_v1 = vmul.f32 %v18780_v14, %v18868_v19 }
 0x4d7   :  { %v19123_v62 = vpop.permute.xlu0 %8259  ;;  %v21737_v19 = vmov 12  }
 0x4d8   :  { %9008 = vperm.xlu1 %15153, %v21730_v29   ;;  %v8188_v49 = vadd.f32 %v8172_v26, %v8092_v58  ;;  %v8096_v26 = vmul.f32 %v18780_v14, %v18856_v37  ;;  %v8190_v58 = vadd.f32 %v8174_v46, %v8094_v17  ;;  %v8180_v17 = vmul.f32 %v19135_v25, %v19035_v6 }
 0x4d9   :  { %v8093_v6 = vmul.f32 %v18780_v14, %v19017_v16 }
 0x4da   :  { %9653 = vperm.xlu0 %15155, %v21715_v21   ;;  %v19127_v45 = vpop.permute.xlu1 %8151 }
 0x4dc   :  { %v19129_v4 = vpop.permute.xlu0 %8800  ;;  %9016 = vperm.xlu1 %15153, %v21732_v35  }
 0x4dd   :  { %21731 = vst [vmem:[#allocation53_spill] sm:$0xff] %v19129_v4  ;;  %v19147_v4 = vld [vmem:[%s21089_s8] ss:$0 sm:$0xff] }
 0x4de   :  { %9661 = vperm.xlu0 %15155, %v21717_v12   ;;  %v19142_v21 = vpop.permute.xlu1 %8159  ;;  %v8268_v56 = vmul.f32 %v19147_v4, %v8212_v8  ;;  %v8171_v12 = vmul.f32 %v19135_v25, %v8112_v7  ;;  %v8176_v8 = vmul.f32 %v19135_v25, %v19006_v43 }
 0x4e0   :  { %v19150_v31 = vpop.permute.xlu0 %8812  ;;  %9024 = vperm.xlu1 %15153, %v21734_v34   ;;  %v8284_v53 = vadd.f32 %v8268_v56, %v8188_v49  ;;  %v8178_v49 = vmul.f32 %v19135_v25, %v19024_v38  ;;  %v8272_v56 = vmul.f32 %v19147_v4, %v8228_v30  ;;  %v8187_v37 = vadd.f32 %v8171_v12, %v8091_v59  ;;  %v19190_v38 = vld [vmem:[%s21090_s9] ss:$0 sm:$0xff] }
 0x4e1   :  { %21733 = vst [vmem:[#allocation57_spill] sm:$0xff] %v19150_v31  ;;  %v8270_v31 = vmul.f32 %v19147_v4, %v8220_v33  ;;  %v8173_v33 = vmul.f32 %v19135_v25, %v8120_v39  ;;  %v8100_v12 = vmul.f32 %v18780_v14, %v18887_v54  ;;  %v19200_v39 = vmul.f32 %v18780_v14, %v18905_v2  ;;  %v21738_v59 = vld [vmem:[#allocation37_spill] sm:$0xff] }
 0x4e2   :  { %9669 = vperm.xlu0 %15155, %v21719_v18   ;;  %v19156_v36 = vpop.permute.xlu1 %8167  ;;  %v8300_v30 = vadd.f32 %v19190_v38, %v8284_v53  ;;  %v19207_v53 = vmul.f32 %v18780_v14, %v18923_v57  ;;  %v8095_v2 = vmul.f32 %v18780_v14, %v19033_v23  ;;  %v8097_v23 = vmul.f32 %v18780_v14, %v19049_v44 }
 0x4e3   :  { %v8286_v46 = vadd.f32 %v8270_v31, %v8190_v58  ;;  %v8194_v31 = vadd.f32 %v8178_v49, %v8098_v1  ;;  %v8175_v58 = vmul.f32 %v19135_v25, %v19109_v3  ;;  %v8276_v44 = vmul.f32 %v19147_v4, %v19111_v27 }
 0x4e4   :  { %v19164_v40 = vpop.permute.xlu0 %8820  ;;  %9032 = vperm.xlu1 %15153, %v21736_v42   ;;  %v8332_v3 = vmul.f32 0.2, %v8300_v30  ;;  %vm8316_vm13 = vcmp.gt.f32.partialorder %v8300_v30, 0.0  ;;  %v8179_v27 = vmul.f32 %v19135_v25, %v19121_v11 }
 0x4e5   :  { %21735 = vst [vmem:[#allocation55_spill] sm:$0xff] %v19164_v40  ;;  %v8192_v40 = vadd.f32 %v8176_v8, %v8096_v26  ;;  %v8302_v57 = vadd.f32 %v19190_v38, %v8286_v46  ;;  %v8191_v46 = vadd.f32 %v8175_v58, %v8095_v2  ;;  %v21739_v2 = vld [vmem:[#allocation40_spill] sm:$0xff] }
 0x4e6   :  { %9677 = vperm.xlu0 %15155, %v21721_v60   ;;  %v8208_v43 = vpop.permute.xlu1 %8207 }
 0x4e7   :  { %v8267_v7 = vmul.f32 %v19147_v4, %v8208_v43  ;;  %v8288_v26 = vadd.f32 %v8272_v56, %v8192_v40  ;;  %v8189_v43 = vadd.f32 %v8173_v33, %v8093_v6  ;;  %v8274_v40 = vmul.f32 %v19147_v4, %v19105_v5 }
 0x4e8   :  { %v19193_v60 = vpop.permute.xlu0 %8828  ;;  %15154 = vset.pattern.permute.xlu1 %v21737_v19  ;;  %v8182_v33 = vmul.f32 %v19135_v25, %v19051_v48  ;;  %v8177_v19 = vmul.f32 %v19135_v25, %v19115_v20  ;;  %v8348_v48 = vsel %vm8316_vm13, %v8300_v30, %v8332_v3  ;;  %vm8318_vm15 = vcmp.gt.f32.partialorder %v8302_v57, 0.0 }
 0x4e9   :  { %v8283_v8 = vadd.f32 %v8267_v7, %v8187_v37  ;;  %9573 = vperm.xlu1 %15154, %v21738_v59   ;;  %v8196_v7 = vadd.f32 %v8180_v17, %v8100_v12  ;;  %v8304_v17 = vadd.f32 %v19190_v38, %v8288_v26  ;;  %v8334_v26 = vmul.f32 0.2, %v8302_v57 }
 0x4ea   :  { %9685 = vperm.xlu0 %15155, %v21722_v24   ;;  %v8216_v54 = vpop.permute.xlu1 %8215 }
 0x4eb   :  { %v8299_v16 = vadd.f32 %v19190_v38, %v8283_v8  ;;  %v8269_v37 = vmul.f32 %v19147_v4, %v8216_v54  ;;  %v8290_v54 = vadd.f32 %v8274_v40, %v8194_v31  ;;  %v8099_v31 = vmul.f32 %v18780_v14, %v19065_v52 }
 0x4ec   :  { %v19219_v49 = vpop.permute.xlu0 %8836  ;;  %vm8320_vm1 = vcmp.gt.f32.partialorder %v8304_v17, 0.0  ;;  %v8336_v30 = vmul.f32 0.2, %v8304_v17  ;;  %v8193_v40 = vadd.f32 %v8177_v19, %v8097_v23  ;;  %v8198_v23 = vadd.f32 %v8182_v33, %v19200_v39 }
 0x4ed   :  { %vm8315_vm12 = vcmp.gt.f32.partialorder %v8299_v16, 0.0  ;;  %v8331_v56 = vmul.f32 0.2, %v8299_v16  ;;  %v8285_v1 = vadd.f32 %v8269_v37, %v8189_v43  ;;  %9581 = vperm.xlu1 %15154, %v15600_v10   ;;  %v19247_v37 = vld [vmem:[%s21091_s10] sm:$0xff]  ;;  %v8306_v11 = vadd.f32 %v19190_v38, %v8290_v54 }
 0x4ee   :  { %9693 = vperm.xlu0 %15155, %v21723_v22   ;;  %v8224_v5 = vpop.permute.xlu1 %8223  ;;  %v8195_v54 = vadd.f32 %v8179_v27, %v8099_v31  ;;  %v8181_v39 = vmul.f32 %v19135_v25, %v19127_v45  ;;  %v21741_v27 = vld [vmem:[#allocation44_spill] sm:$0xff] }
 0x4ef   :  { %v8301_v12 = vadd.f32 %v19190_v38, %v8285_v1  ;;  %v8271_v6 = vmul.f32 %v19147_v4, %v8224_v5  ;;  %v8347_v8 = vsel %vm8315_vm12, %v8299_v16, %v8331_v56  ;;  %v8292_v1 = vadd.f32 %v8276_v44, %v8196_v7 }
 0x4f0   :  { %v19234_v43 = vpop.permute.xlu0 %8844  ;;  %14562 = vmatmul.mubr.msk.f32.vlgmr.msra.gmra.mrb[160].mxu1 %vm665_vm0, %v8347_v8  ;;  %v21740_v8 = vld [vmem:[#allocation42_spill] sm:$0xff]  ;;  %v8184_v7 = vmul.f32 %v19135_v25, %v19067_v41  ;;  %vm8322_vm3 = vcmp.gt.f32.partialorder %v8306_v11, 0.0 }
 0x4f1   :  { %v8287_v58 = vadd.f32 %v8271_v6, %v8191_v46  ;;  %9585 = vperm.xlu1 %15154, %v21739_v2   ;;  %14564 = vmatprep.mubr.msk.f32.mxu1 %vm665_vm0, %v8348_v48  ;;  %vm8317_vm14 = vcmp.gt.f32.partialorder %v8301_v12, 0.0  ;;  %v8333_v20 = vmul.f32 0.2, %v8301_v12  ;;  %v8278_v46 = vmul.f32 %v19147_v4, %v19117_v32 }
 0x4f2   :  { %9701 = vperm.xlu0 %15155, %v21724_v28   ;;  %v8232_v16 = vpop.permute.xlu1 %8231  ;;  %14612 = vmatpush3.msra.mxu1 %v19247_v37  ;;  %v8350_v6 = vsel %vm8318_vm15, %v8302_v57, %v8334_v26  ;;  %v8101_v32 = vmul.f32 %v18780_v14, %v19085_v9  ;;  %v8352_v57 = vsel %vm8320_vm1, %v8304_v17, %v8336_v30  ;;  %v8338_v9 = vmul.f32 0.2, %v8306_v11 }
 0x4f3   :  { %v8303_v3 = vadd.f32 %v19190_v38, %v8287_v58  ;;  %v8273_v52 = vmul.f32 %v19147_v4, %v8232_v16  ;;  %v8349_v56 = vsel %vm8317_vm14, %v8301_v12, %v8333_v20  ;;  %14663 = vmatprep.subr.mxu1 %v19247_v37  ;;  %v8308_v58 = vadd.f32 %v19190_v38, %v8292_v1 }
 0x4f4   :  { %v19256_v5 = vpop.permute.xlu0 %8852  ;;  %14565 = vmatmul.mubr.msk.f32.gmra.mrb[162].mxu1 %vm665_vm0, %v8349_v56  ;;  %v8294_v41 = vadd.f32 %v8278_v46, %v8198_v23  ;;  %v8280_v17 = vmul.f32 %v19147_v4, %v19123_v62  ;;  %v8200_v16 = vadd.f32 %v8184_v7, %v19207_v53  ;;  %v8103_v30 = vmul.f32 %v18780_v14, %v19093_v47  ;;  %v21742_v23 = vld [vmem:[#allocation46_spill] sm:$0xff] }
 0x4f5   :  { %v8289_v19 = vadd.f32 %v8273_v52, %v8193_v40  ;;  %9593 = vperm.xlu1 %15154, %v21740_v8   ;;  %14567 = vmatprep.mubr.msk.f32.mxu1 %vm665_vm0, %v8350_v6  ;;  %vm8319_vm2 = vcmp.gt.f32.partialorder %v8303_v3, 0.0  ;;  %v8335_v12 = vmul.f32 0.2, %v8303_v3  ;;  %v8183_v40 = vmul.f32 %v19135_v25, %v19142_v21 }
 0x4f6   :  { %9709 = vperm.xlu0 %15155, %v21725_v15   ;;  %v8240_v44 = vpop.permute.xlu1 %8239  ;;  %v8197_v52 = vadd.f32 %v8181_v39, %v8101_v32  ;;  %v8310_v46 = vadd.f32 %v19190_v38, %v8294_v41  ;;  %v8354_v14 = vsel %vm8322_vm3, %v8306_v11, %v8338_v9  ;;  %vm8324_vm5 = vcmp.gt.f32.partialorder %v8308_v58, 0.0  ;;  %v13118_v39 = vld [vmem:[%s21083_s2 + $0x400] sm:$0xff] }
 0x4f7   :  { %v8305_v33 = vadd.f32 %v19190_v38, %v8289_v19  ;;  %v8275_v48 = vmul.f32 %v19147_v4, %v8240_v44  ;;  %v8351_v26 = vsel %vm8319_vm2, %v8303_v3, %v8335_v12  ;;  %v8340_v47 = vmul.f32 0.2, %v8308_v58  ;;  %v19317_v9 = vld [vmem:[%s21087_s6] ss:$0 sm:$0xff] }
 0x4f8   :  { %v19274_v20 = vpop.permute.xlu0 %8860  ;;  %14568 = vmatmul.mubr.msk.f32.gmra.mrb[164].mxu1 %vm665_vm0, %v8351_v26  ;;  %v8296_v21 = vadd.f32 %v8280_v17, %v8200_v16  ;;  %v8199_v7 = vadd.f32 %v8183_v40, %v8103_v30  ;;  %v8185_v32 = vmul.f32 %v19135_v25, %v19156_v36  ;;  %v13119_v36 = vld [vmem:[%s21083_s2 + $0x408] sm:$0xff]  ;;  %v8105_v17 = vmul.f32 %v19317_v9, %v19098_v55 }
 0x4f9   :  { %v8291_v31 = vadd.f32 %v8275_v48, %v8195_v54  ;;  %9601 = vperm.xlu1 %15154, %v21741_v27   ;;  %14570 = vmatprep.mubr.msk.f32.mxu1 %vm665_vm0, %v8352_v57  ;;  %vm8321_vm4 = vcmp.gt.f32.partialorder %v8305_v33, 0.0  ;;  %v8337_v45 = vmul.f32 0.2, %v8305_v33  ;;  %v19301_v54 = vld [vmem:[%s21092_s11] ss:$0 sm:$0xff]  ;;  %vm8326_vm7 = vcmp.gt.f32.partialorder %v8310_v46, 0.0 }
 0x4fa   :  { %9749 = vperm.xlu0 %15155, %v21726_v0   ;;  %v8248_v3 = vpop.permute.xlu1 %8247  ;;  %21743 = vst [vmem:[#allocation59_spill] sm:$0xff] %v19301_v54  ;;  %v8342_v16 = vmul.f32 0.2, %v8310_v46  ;;  %v8312_v30 = vadd.f32 %v19190_v38, %v8296_v21  ;;  %v8201_v21 = vadd.f32 %v8185_v32, %v8105_v17 }
 0x4fb   :  { %v8307_v62 = vadd.f32 %v19190_v38, %v8291_v31  ;;  %v8277_v56 = vmul.f32 %v19147_v4, %v8248_v3  ;;  %v8353_v1 = vsel %vm8321_vm4, %v8305_v33, %v8337_v45  ;;  %v8356_v45 = vsel %vm8324_vm5, %v8308_v58, %v8340_v47  ;;  %v13120_v58 = vld [vmem:[%s21083_s2 + $0x410] sm:$0xff] }
 0x4fc   :  { %v19290_v6 = vpop.permute.xlu0 %8884  ;;  %14571 = vmatmul.mubr.msk.f32.gmra.mrb[166].mxu1 %vm665_vm0, %v8353_v1  ;;  %v8358_v32 = vsel %vm8326_vm7, %v8310_v46, %v8342_v16  ;;  %v13122_v46 = vld [vmem:[%s21083_s2 + $0x420] sm:$0xff]  ;;  %vm8328_vm10 = vcmp.gt.f32.partialorder %v8312_v30, 0.0 }
 0x4fd   :  { %v8293_v53 = vadd.f32 %v8277_v56, %v8197_v52  ;;  %9609 = vperm.xlu1 %15154, %v21742_v23   ;;  %v14459_v19 = vpop.f32.mrb[128].mxu1  ;;  %14573 = vmatprep.mubr.msk.f32.mxu1 %vm665_vm0, %v8354_v14  ;;  %vm8323_vm6 = vcmp.gt.f32.partialorder %v8307_v62, 0.0  ;;  %v8339_v12 = vmul.f32 0.2, %v8307_v62  ;;  %v21744_v52 = vld [vmem:[#allocation48_spill] sm:$0xff]  ;;  %v8944_v23 = vmul.f32 %v19135_v25, %v19290_v6 }
 0x4fe   :  { %v6936_v11 = vadd.f32 %v19301_v54, %v14459_v19  ;;  %9757 = vperm.xlu0 %15155, %v21727_v51   ;;  %v8256_v44 = vpop.permute.xlu1 %8255  ;;  %v6930_v57 = vpop.f32.mrb[129].mxu1  ;;  %v13121_v19 = vld [vmem:[%s21083_s2 + $0x418] sm:$0xff] }
 0x4ff   :  { %v8309_v33 = vadd.f32 %v19190_v38, %v8293_v53  ;;  %v8279_v48 = vmul.f32 %v19147_v4, %v8256_v44  ;;  %v6931_v26 = vadd.f32 %v19301_v54, %v6930_v57  ;;  %v8355_v41 = vsel %vm8323_vm6, %v8307_v62, %v8339_v12 }
 0x500   :  { %v19321_v31 = vpop.permute.xlu0 %8892  ;;  %14574 = vmatmul.mubr.msk.f32.gmra.mrb[168].mxu1 %vm665_vm0, %v8355_v41  ;;  %v7027_v56 = vmul.f32 %v13119_v36, %v6936_v11  ;;  %v21745_v36 = vld [vmem:[#allocation50_spill] sm:$0xff] }
 0x501   :  { %v8295_v40 = vadd.f32 %v8279_v48, %v8199_v7  ;;  %v7026_v3 = vmul.f32 %v13118_v39, %v6931_v26  ;;  %9617 = vperm.xlu1 %15154, %v21744_v52   ;;  %v14462_v62 = vpop.f32.mrb[130].mxu1  ;;  %14576 = vmatprep.mubr.msk.f32.mxu1 %vm665_vm0, %v8356_v45  ;;  %vm8325_vm8 = vcmp.gt.f32.partialorder %v8309_v33, 0.0  ;;  %v8341_v47 = vmul.f32 0.2, %v8309_v33  ;;  %v21759_v52 = vld [vmem:[#allocation27_spill] sm:$0xff] }
 0x502   :  { %v6946_v55 = vadd.f32 %v19301_v54, %v14462_v62  ;;  %9765 = vperm.xlu0 %15155, %v21728_v63   ;;  %v8264_v1 = vpop.permute.xlu1 %8263  ;;  %v6940_v14 = vpop.f32.mrb[131].mxu1  ;;  %v8344_v26 = vmul.f32 0.2, %v8312_v30  ;;  %v21765_v63 = vld [vmem:[#allocation57_spill] sm:$0xff] }
 0x503   :  { %v8311_v53 = vadd.f32 %v19190_v38, %v8295_v40  ;;  %v8281_v12 = vmul.f32 %v19147_v4, %v8264_v1  ;;  %v6941_v7 = vadd.f32 %v19301_v54, %v6940_v14  ;;  %14483 = vmatprep.mubr.msk.f32.mxu0 %vm665_vm0, %v7026_v3  ;;  %v8357_v44 = vsel %vm8325_vm8, %v8309_v33, %v8341_v47  ;;  %v13123_v40 = vld [vmem:[%s21083_s2 + $0x428] sm:$0xff]  ;;  %v21746_v14 = vld [vmem:[#allocation52_spill] sm:$0xff] }
 0x504   :  { %v19340_v11 = vpop.permute.xlu0 %8900  ;;  %14484 = vmatmul.mubr.msk.f32.vlgmr.msra.gmra.mrb[0].mxu0 %vm665_vm0, %v7027_v56  ;;  %14577 = vmatmul.mubr.msk.f32.gmra.mrb[170].mxu1 %vm665_vm0, %v8357_v44  ;;  %v7029_v41 = vmul.f32 %v13121_v19, %v6946_v55  ;;  %v8360_v47 = vsel %vm8328_vm10, %v8312_v30, %v8344_v26  ;;  %v8866_v8 = vmul.f32 %v19317_v9, %v21765_v63 }
 0x505   :  { %v8297_v57 = vadd.f32 %v8281_v12, %v8201_v21  ;;  %v7028_v39 = vmul.f32 %v13120_v58, %v6941_v7  ;;  %9625 = vperm.xlu1 %15154, %v21745_v36   ;;  %v14465_v48 = vpop.f32.mrb[132].mxu1  ;;  %vm8327_vm9 = vcmp.gt.f32.partialorder %v8311_v53, 0.0  ;;  %14579 = vmatprep.mubr.msk.f32.mxu1 %vm665_vm0, %v8358_v32  ;;  %v8343_v33 = vmul.f32 0.2, %v8311_v53  ;;  %v13125_v7 = vld [vmem:[%s21083_s2 + $0x438] sm:$0xff] }
 0x506   :  { %v6956_v17 = vadd.f32 %v19301_v54, %v14465_v48  ;;  %9773 = vperm.xlu0 %15155, %v21729_v61   ;;  %v6950_v45 = vpop.f32.mrb[133].mxu1  ;;  %14534 = vmatpush3.msra.mxu0 %v19174_v13  ;;  %v21747_v48 = vld [vmem:[#allocation5_spill] sm:$0xff]  ;;  %v21762_v61 = vld [vmem:[#allocation12_spill] sm:$0xff]  ;;  %v8870_v63 = vmul.f32 %v19317_v9, %v19193_v60  ;;  %v8872_v60 = vmul.f32 %v19317_v9, %v19219_v49 }
 0x507   :  { %v8313_v16 = vadd.f32 %v19190_v38, %v8297_v57  ;;  %v6951_v3 = vadd.f32 %v19301_v54, %v6950_v45  ;;  %v19358_v62 = vpop.permute.xlu1 %8804  ;;  %14486 = vmatprep.mubr.msk.f32.mxu0 %vm665_vm0, %v7028_v39  ;;  %v8359_v55 = vsel %vm8327_vm9, %v8311_v53, %v8343_v33  ;;  %v13124_v53 = vld [vmem:[%s21083_s2 + $0x430] sm:$0xff]  ;;  %v13127_v33 = vld [vmem:[%s21083_s2 + $0x448] sm:$0xff]  ;;  %v19545_v49 = vmul.f32 %v19317_v9, %v19256_v5 }
 0x508   :  { %v19362_v56 = vpop.permute.xlu0 %8908  ;;  %14487 = vmatmul.mubr.msk.f32.gmra.mrb[2].mxu0 %vm665_vm0, %v7029_v41  ;;  %14580 = vmatmul.mubr.msk.f32.gmra.mrb[172].mxu1 %vm665_vm0, %v8359_v55  ;;  %v7031_v19 = vmul.f32 %v13123_v40, %v6956_v17 }
 0x509   :  { %v7030_v1 = vmul.f32 %v13122_v46, %v6951_v3  ;;  %9633 = vperm.xlu1 %15154, %v21746_v14   ;;  %v14468_v58 = vpop.f32.mrb[134].mxu1  ;;  %vm8329_vm11 = vcmp.gt.f32.partialorder %v8313_v16, 0.0  ;;  %v8345_v21 = vmul.f32 0.2, %v8313_v16  ;;  %14582 = vmatprep.mubr.msk.f32.mxu1 %vm665_vm0, %v8360_v47  ;;  %v13126_v46 = vld [vmem:[%s21083_s2 + $0x440] sm:$0xff] }
 0x50a   :  { %v6966_v12 = vadd.f32 %v19301_v54, %v14468_v58  ;;  %9781 = vperm.xlu0 %15155, %v21730_v29   ;;  %v6960_v13 = vpop.f32.mrb[135].mxu1 }
 0x50b   :  { %v6961_v30 = vadd.f32 %v19301_v54, %v6960_v13  ;;  %v19378_v44 = vpop.permute.xlu1 %8808  ;;  %14489 = vmatprep.mubr.msk.f32.mxu0 %vm665_vm0, %v7030_v1  ;;  %v8361_v32 = vsel %vm8329_vm11, %v8313_v16, %v8345_v21  ;;  %v21748_v1 = vld [vmem:[#allocation7_spill] sm:$0xff] }
 0x50c   :  { %v19381_v57 = vpop.permute.xlu0 %8916  ;;  %14490 = vmatmul.mubr.msk.f32.gmra.mrb[4].mxu0 %vm665_vm0, %v7031_v19  ;;  %14583 = vmatmul.mubr.msk.f32.gmra.mrb[174].mxu1 %vm665_vm0, %v8361_v32  ;;  %v7033_v41 = vmul.f32 %v13125_v7, %v6966_v12  ;;  %v13128_v12 = vld [vmem:[%s21083_s2 + $0x450] sm:$0xff] }
 0x50d   :  { %v7032_v39 = vmul.f32 %v13124_v53, %v6961_v30  ;;  %9657 = vperm.xlu1 %15154, %v21747_v48   ;;  %v14471_v26 = vpop.f32.mrb[136].mxu1  ;;  %v13129_v53 = vld [vmem:[%s21083_s2 + $0x458] sm:$0xff] }
 0x50e   :  { %v6976_v17 = vadd.f32 %v19301_v54, %v14471_v26  ;;  %9789 = vperm.xlu0 %15155, %v21732_v35   ;;  %v6970_v45 = vpop.f32.mrb[137].mxu1  ;;  %v21758_v35 = vld [vmem:[#allocation25_spill] sm:$0xff] }
 0x50f   :  { %v6971_v16 = vadd.f32 %v19301_v54, %v6970_v45  ;;  %v19395_v40 = vpop.permute.xlu1 %8816  ;;  %14492 = vmatprep.mubr.msk.f32.mxu0 %vm665_vm0, %v7032_v39  ;;  %v13130_v45 = vld [vmem:[%s21083_s2 + $0x460] sm:$0xff] }
 0x510   :  { %v19398_v3 = vpop.permute.xlu0 %8924  ;;  %14493 = vmatmul.mubr.msk.f32.gmra.mrb[6].mxu0 %vm665_vm0, %v7033_v41  ;;  %v7035_v58 = vmul.f32 %v13127_v33, %v6976_v17  ;;  %v13131_v33 = vld [vmem:[%s21083_s2 + $0x468] sm:$0xff] }
 0x511   :  { %v7034_v55 = vmul.f32 %v13126_v46, %v6971_v16  ;;  %9665 = vperm.xlu1 %15154, %v21748_v1   ;;  %v14474_v47 = vpop.f32.mrb[138].mxu1 }
 0x512   :  { %9797 = vperm.xlu0 %15155, %v21734_v34   ;;  %v6986_v21 = vadd.f32 %v19301_v54, %v14474_v47  ;;  %v6980_v19 = vpop.f32.mrb[139].mxu1 }
 0x513   :  { %v19407_v13 = vpop.permute.xlu1 %8824  ;;  %14495 = vmatprep.mubr.msk.f32.mxu0 %vm665_vm0, %v7034_v55  ;;  %v6981_v7 = vadd.f32 %v19301_v54, %v6980_v19  ;;  %v21313_v19 = vmov 13  }
 0x514   :  { %v19414_v30 = vpop.permute.xlu0 %8932  ;;  %14496 = vmatmul.mubr.msk.f32.gmra.mrb[8].mxu0 %vm665_vm0, %v7035_v58  ;;  %v7037_v26 = vmul.f32 %v13129_v53, %v6986_v21  ;;  %v21749_v58 = vld [vmem:[#allocation11_spill] sm:$0xff] }
 0x515   :  { %9673 = vperm.xlu1 %15154, %v21686_v50   ;;  %v7036_v32 = vmul.f32 %v13128_v12, %v6981_v7  ;;  %v14477_v39 = vpop.f32.mrb[140].mxu1 }
 0x516   :  { %9805 = vperm.xlu0 %15155, %v21736_v42   ;;  %v6996_v41 = vadd.f32 %v19301_v54, %v14477_v39  ;;  %v6990_v17 = vpop.f32.mrb[141].mxu1  ;;  %v13132_v39 = vld [vmem:[%s21083_s2 + $0x470] sm:$0xff]  ;;  %v21754_v42 = vld [vmem:[#allocation17_spill] sm:$0xff] }
 0x517   :  { %v19423_v46 = vpop.permute.xlu1 %8832  ;;  %v6991_v16 = vadd.f32 %v19301_v54, %v6990_v17  ;;  %14498 = vmatprep.mubr.msk.f32.mxu0 %vm665_vm0, %v7036_v32 }
 0x518   :  { %v19430_v55 = vpop.permute.xlu0 %8940  ;;  %14499 = vmatmul.mubr.msk.f32.gmra.mrb[10].mxu0 %vm665_vm0, %v7037_v26  ;;  %v7039_v12 = vmul.f32 %v13131_v33, %v6996_v41  ;;  %v13133_v26 = vld [vmem:[%s21083_s2 + $0x478] sm:$0xff] }
 0x519   :  { %9681 = vperm.xlu1 %15154, %v21749_v58   ;;  %v7038_v47 = vmul.f32 %v13130_v45, %v6991_v16  ;;  %v14480_v21 = vpop.f32.mrb[142].mxu1  ;;  %v21750_v45 = vld [vmem:[#allocation13_spill] sm:$0xff] }
 0x51a   :  { %15156 = vset.pattern.permute.xlu0 %v21313_v19  ;;  %v7006_v53 = vadd.f32 %v19301_v54, %v14480_v21  ;;  %v7000_v7 = vpop.f32.mrb[143].mxu1 }
 0x51b   :  { %10346 = vperm.xlu0 %15156, %v21738_v59   ;;  %v19440_v32 = vpop.permute.xlu1 %8840  ;;  %v7001_v17 = vadd.f32 %v19301_v54, %v7000_v7  ;;  %14501 = vmatprep.mubr.msk.f32.mxu0 %vm665_vm0, %v7038_v47  ;;  %v21751_v59 = vld [vmem:[#allocation15_spill] sm:$0xff]  ;;  %v21752_v7 = vld [vmem:[#allocation21_spill] sm:$0xff] }
 0x51c   :  { %v8981_v41 = vpop.permute.xlu0 %8980  ;;  %14502 = vmatmul.mubr.msk.f32.gmra.mrb[12].mxu0 %vm665_vm0, %v7039_v12  ;;  %v7041_v16 = vmul.f32 %v13133_v26, %v7006_v53 }
 0x51d   :  { %9689 = vperm.xlu1 %15154, %v21750_v45   ;;  %v7040_v33 = vmul.f32 %v13132_v39, %v7001_v17  ;;  %v21755_v39 = vld [vmem:[#allocation8_spill] sm:$0xff]  ;;  %v21756_v17 = vld [vmem:[#allocation19_spill] sm:$0xff] }
 0x51f   :  { %10430 = vperm.xlu0 %15156, %v21747_v48   ;;  %v19450_v21 = vpop.permute.xlu1 %8848  ;;  %14504 = vmatprep.mubr.msk.f32.mxu0 %vm665_vm0, %v7040_v33  ;;  %v21757_v48 = vld [vmem:[#allocation23_spill] sm:$0xff] }
 0x520   :  { %v8989_v19 = vpop.permute.xlu0 %8988  ;;  %14505 = vmatmul.mubr.msk.f32.gmra.mrb[14].mxu0 %vm665_vm0, %v7041_v16 }
 0x521   :  { %9697 = vperm.xlu1 %15154, %v21751_v59  }
 0x523   :  { %10526 = vperm.xlu0 %15156, %v21752_v7   ;;  %v19456_v47 = vpop.permute.xlu1 %8856 }
 0x524   :  { %21753 = vst [vmem:[#allocation58_spill] sm:$0xff] %v19456_v47  ;;  %v8997_v12 = vpop.permute.xlu0 %8996  ;;  %v21768_v47 = vld [vmem:[#allocation55_spill] sm:$0xff] }
 0x525   :  { %9705 = vperm.xlu1 %15154, %v21754_v42   ;;  %v9042_v42 = vmul.f32 %v19147_v4, %v8989_v19 }
 0x527   :  { %10434 = vperm.xlu0 %15156, %v21755_v39   ;;  %v8881_v53 = vpop.permute.xlu1 %8880 }
 0x528   :  { %v19460_v26 = vpop.permute.xlu0 %9004 }
 0x529   :  { %9713 = vperm.xlu1 %15154, %v21756_v17   ;;  %v8946_v17 = vmul.f32 %v19135_v25, %v19321_v31 }
 0x52b   :  { %10438 = vperm.xlu0 %15156, %v21748_v1   ;;  %v8889_v33 = vpop.permute.xlu1 %8888  ;;  %v8962_v28 = vadd.f32 %v8946_v17, %v8866_v8  ;;  %v8950_v8 = vmul.f32 %v19135_v25, %v19362_v56 }
 0x52c   :  { %v19464_v16 = vpop.permute.xlu0 %9012  ;;  %v8945_v17 = vmul.f32 %v19135_v25, %v8889_v33 }
 0x52d   :  { %9753 = vperm.xlu1 %15154, %v21752_v7   ;;  %v8966_v33 = vadd.f32 %v8950_v8, %v8870_v63  ;;  %v21772_v8 = vld [vmem:[#allocation6_spill] sm:$0xff] }
 0x52f   :  { %10534 = vperm.xlu0 %15156, %v21757_v48   ;;  %v8897_v14 = vpop.permute.xlu1 %8896 }
 0x530   :  { %v19468_v34 = vpop.permute.xlu0 %9020 }
 0x531   :  { %9761 = vperm.xlu1 %15154, %v21757_v48  }
 0x533   :  { %10442 = vperm.xlu0 %15156, %v21719_v18   ;;  %v19472_v39 = vpop.permute.xlu1 %8904  ;;  %v21761_v18 = vld [vmem:[#allocation29_spill] sm:$0xff] }
 0x534   :  { %v19474_v36 = vpop.permute.xlu0 %9028 }
 0x535   :  { %9769 = vperm.xlu1 %15154, %v21758_v35  }
 0x537   :  { %10446 = vperm.xlu0 %15156, %v21686_v50   ;;  %v19478_v1 = vpop.permute.xlu1 %8912  ;;  %v8864_v50 = vmul.f32 %v19317_v9, %v19358_v62 }
 0x538   :  { %v19480_v7 = vpop.permute.xlu0 %9036 }
 0x539   :  { %9777 = vperm.xlu1 %15154, %v21759_v52   ;;  %v8960_v6 = vadd.f32 %v8944_v23, %v8864_v50  ;;  %v8868_v50 = vmul.f32 %v19317_v9, %v21768_v47  ;;  %v8948_v23 = vmul.f32 %v19135_v25, %v19340_v11  ;;  %v19531_v11 = vmul.f32 %v19317_v9, %v19234_v43 }
 0x53a   :  { %v19549_v43 = vmul.f32 %v19317_v9, %v19274_v20 }
 0x53b   :  { %10542 = vperm.xlu0 %15156, %v21758_v35   ;;  %v19484_v29 = vpop.permute.xlu1 %8920  ;;  %v9040_v35 = vmul.f32 %v19147_v4, %v8981_v41  ;;  %v21766_v41 = vld [vmem:[#allocation33_spill] sm:$0xff] }
 0x53d   :  { %v19486_v48 = vpop.permute.xlu0 %9577  ;;  %9785 = vperm.xlu1 %15154, %v21761_v18   ;;  %v9056_v31 = vadd.f32 %v9040_v35, %v8960_v6  ;;  %v9058_v35 = vadd.f32 %v9042_v42, %v8962_v28  ;;  %v9044_v28 = vmul.f32 %v19147_v4, %v8997_v12  ;;  %v21770_v6 = vld [vmem:[#allocation35_spill] sm:$0xff]  ;;  %v8964_v12 = vadd.f32 %v8948_v23, %v8868_v50 }
 0x53e   :  { %21760 = vst [vmem:[#allocation61_spill] sm:$0xff] %v19486_v48  ;;  %v21764_v48 = vld [vmem:[#allocation31_spill] sm:$0xff]  ;;  %v9046_v50 = vmul.f32 %v19147_v4, %v19460_v26  ;;  %v8949_v26 = vmul.f32 %v19135_v25, %v19472_v39  ;;  %v8869_v39 = vmul.f32 %v19317_v9, %v19407_v13 }
 0x53f   :  { %10450 = vperm.xlu0 %15156, %v21762_v61   ;;  %v19494_v27 = vpop.permute.xlu1 %8928  ;;  %v8943_v61 = vmul.f32 %v19135_v25, %v8881_v53  ;;  %v8952_v53 = vmul.f32 %v19135_v25, %v19381_v57  ;;  %v9072_v42 = vadd.f32 %v19190_v38, %v9056_v31  ;;  %v9074_v31 = vadd.f32 %v19190_v38, %v9058_v35 }
 0x540   :  { %v8965_v13 = vadd.f32 %v8949_v26, %v8869_v39 }
 0x541   :  { %v19499_v15 = vpop.permute.xlu0 %9589  ;;  %9793 = vperm.xlu1 %15154, %v21764_v48   ;;  %vm9088_vm12 = vcmp.gt.f32.partialorder %v9072_v42, 0.0  ;;  %vm9090_vm14 = vcmp.gt.f32.partialorder %v9074_v31, 0.0 }
 0x542   :  { %21763 = vst [vmem:[#allocation60_spill] sm:$0xff] %v19499_v15  ;;  %v21767_v15 = vld [vmem:[#allocation53_spill] sm:$0xff] }
 0x543   :  { %10454 = vperm.xlu0 %15156, %v21749_v58   ;;  %v19506_v62 = vpop.permute.xlu1 %8936  ;;  %v8863_v54 = vmul.f32 %v19317_v9, %v21767_v15 }
 0x545   :  { %v19509_v51 = vpop.permute.xlu0 %9597  ;;  %9801 = vperm.xlu1 %15154, %v21766_v41   ;;  %v8959_v15 = vadd.f32 %v8943_v61, %v8863_v54  ;;  %v19541_v61 = vld [vmem:[%s21093_s12 + $0x50] sm:$0xff]  ;;  %v8865_v54 = vmul.f32 %v19317_v9, %v19378_v44  ;;  %v8867_v44 = vmul.f32 %v19317_v9, %v19395_v40 }
 0x546   :  { %14585 = vmatprep.subr.mxu0 %v19541_v61 }
 0x547   :  { %10550 = vperm.xlu0 %15156, %v21759_v52   ;;  %v8977_v19 = vpop.permute.xlu1 %8976  ;;  %v8968_v52 = vadd.f32 %v8952_v53, %v8872_v60  ;;  %v8961_v58 = vadd.f32 %v8945_v17, %v8865_v54  ;;  %v8954_v53 = vmul.f32 %v19135_v25, %v19398_v3  ;;  %v9106_v60 = vmul.f32 0.2, %v9074_v31 }
 0x548   :  { %v9039_v47 = vmul.f32 %v19147_v4, %v8977_v19  ;;  %v8947_v19 = vmul.f32 %v19135_v25, %v8897_v14  ;;  %v21771_v14 = vmov 13   ;;  %v9048_v3 = vmul.f32 %v19147_v4, %v19464_v16 }
 0x549   :  { %v19535_v56 = vpop.permute.xlu0 %9605  ;;  %9809 = vperm.xlu1 %15154, %v21770_v6   ;;  %v8951_v16 = vmul.f32 %v19135_v25, %v19478_v1 }
 0x54a   :  { %21769 = vst [vmem:[#allocation63_spill] sm:$0xff] %v19535_v56  ;;  %v9055_v57 = vadd.f32 %v9039_v47, %v8959_v15  ;;  %v9104_v15 = vmul.f32 0.2, %v9072_v42  ;;  %v9060_v47 = vadd.f32 %v9044_v28, %v8964_v12  ;;  %v8963_v17 = vadd.f32 %v8947_v19, %v8867_v44  ;;  %v21773_v44 = vld [vmem:[#allocation39_spill] sm:$0xff] }
 0x54b   :  { %10458 = vperm.xlu0 %15156, %v21722_v24   ;;  %v8985_v5 = vpop.permute.xlu1 %8984  ;;  %v21801_v24 = vld [vmem:[#allocation36_spill] sm:$0xff] }
 0x54c   :  { %v9071_v20 = vadd.f32 %v19190_v38, %v9055_v57  ;;  %v9041_v56 = vmul.f32 %v19147_v4, %v8985_v5  ;;  %v9076_v54 = vadd.f32 %v19190_v38, %v9060_v47  ;;  %v9062_v57 = vadd.f32 %v9046_v50, %v8966_v33 }
 0x54d   :  { %v19563_v63 = vpop.permute.xlu0 %9613  ;;  %15157 = vset.pattern.permute.xlu1 %v21771_v14  ;;  %v9120_v19 = vsel %vm9088_vm12, %v9072_v42, %v9104_v15  ;;  %v8871_v33 = vmul.f32 %v19317_v9, %v19423_v46  ;;  %v9122_v42 = vsel %vm9090_vm14, %v9074_v31, %v9106_v60  ;;  %v9050_v31 = vmul.f32 %v19147_v4, %v19468_v34 }
 0x54e   :  { %v9057_v23 = vadd.f32 %v9041_v56, %v8961_v58  ;;  %10426 = vperm.xlu1 %15157, %v21772_v8   ;;  %vm9087_vm13 = vcmp.gt.f32.partialorder %v9071_v20, 0.0  ;;  %v9103_v35 = vmul.f32 0.2, %v9071_v20  ;;  %v9078_v46 = vadd.f32 %v19190_v38, %v9062_v57 }
 0x54f   :  { %10462 = vperm.xlu0 %15156, %v21750_v45   ;;  %v8993_v40 = vpop.permute.xlu1 %8992  ;;  %vm9092_vm1 = vcmp.gt.f32.partialorder %v9076_v54, 0.0  ;;  %v9108_v1 = vmul.f32 0.2, %v9076_v54  ;;  %v8873_v60 = vmul.f32 %v19317_v9, %v19440_v32  ;;  %v8967_v26 = vadd.f32 %v8951_v16, %v8871_v33 }
 0x550   :  { %v9073_v28 = vadd.f32 %v19190_v38, %v9057_v23  ;;  %v9043_v58 = vmul.f32 %v19147_v4, %v8993_v40  ;;  %v9119_v56 = vsel %vm9087_vm13, %v9071_v20, %v9103_v35  ;;  %v9064_v23 = vadd.f32 %v9048_v3, %v8968_v52 }
 0x551   :  { %v19577_v12 = vpop.permute.xlu0 %9621  ;;  %14613 = vmatprep.mubr.msk.f32.mxu1 %vm665_vm0, %v9119_v56  ;;  %v8956_v52 = vmul.f32 %v19135_v25, %v19414_v30  ;;  %v8953_v34 = vmul.f32 %v19135_v25, %v19484_v29  ;;  %v9124_v30 = vsel %vm9092_vm1, %v9076_v54, %v9108_v1  ;;  %vm9094_vm3 = vcmp.gt.f32.partialorder %v9078_v46, 0.0 }
 0x552   :  { %v9059_v5 = vadd.f32 %v9043_v58, %v8963_v17  ;;  %10350 = vperm.xlu1 %15157, %v21773_v44   ;;  %14614 = vmatmul.mubr.msk.f32.vlgmr.msra.gmra.mrb[176].mxu1 %vm665_vm0, %v9120_v19  ;;  %vm9089_vm15 = vcmp.gt.f32.partialorder %v9073_v28, 0.0  ;;  %v9105_v20 = vmul.f32 0.2, %v9073_v28  ;;  %v9110_v32 = vmul.f32 0.2, %v9078_v46 }
 0x553   :  { %10558 = vperm.xlu0 %15156, %v21761_v18   ;;  %v9001_v47 = vpop.permute.xlu1 %9000  ;;  %14664 = vmatpush3.msra.mxu1 %v19247_v37  ;;  %v8972_v39 = vadd.f32 %v8956_v52, %v19545_v49  ;;  %v8955_v54 = vmul.f32 %v19135_v25, %v19494_v27  ;;  %v8969_v16 = vadd.f32 %v8953_v34, %v8873_v60  ;;  %v21775_v34 = vld [vmem:[#allocation59_spill] sm:$0xff] }
 0x554   :  { %v9075_v15 = vadd.f32 %v19190_v38, %v9059_v5  ;;  %v9045_v50 = vmul.f32 %v19147_v4, %v9001_v47  ;;  %v9121_v14 = vsel %vm9089_vm15, %v9073_v28, %v9105_v20  ;;  %14715 = vmatprep.subr.mxu1 %v19247_v37  ;;  %v8970_v37 = vadd.f32 %v8954_v53, %v19531_v11 }
 0x555   :  { %v19596_v35 = vpop.permute.xlu0 %9629  ;;  %14616 = vmatprep.mubr.msk.f32.mxu1 %vm665_vm0, %v9121_v14  ;;  %v9080_v11 = vadd.f32 %v19190_v38, %v9064_v23  ;;  %v8958_v5 = vmul.f32 %v19135_v25, %v19430_v55  ;;  %v9052_v20 = vmul.f32 %v19147_v4, %v19474_v36  ;;  %v8875_v49 = vmul.f32 %v19317_v9, %v19450_v21 }
 0x556   :  { %v9061_v17 = vadd.f32 %v9045_v50, %v8965_v13  ;;  %10522 = vperm.xlu1 %15157, %v21726_v0   ;;  %14617 = vmatmul.mubr.msk.f32.gmra.mrb[178].mxu1 %vm665_vm0, %v9122_v42  ;;  %vm9091_vm2 = vcmp.gt.f32.partialorder %v9075_v15, 0.0  ;;  %v9107_v40 = vmul.f32 0.2, %v9075_v15  ;;  %v9066_v3 = vadd.f32 %v9050_v31, %v8970_v37 }
 0x557   :  { %10466 = vperm.xlu0 %15156, %v21723_v22   ;;  %v9009_v28 = vpop.permute.xlu1 %9008  ;;  %v9126_v36 = vsel %vm9094_vm3, %v9078_v46, %v9110_v32  ;;  %vm9096_vm5 = vcmp.gt.f32.partialorder %v9080_v11, 0.0  ;;  %v9112_v27 = vmul.f32 0.2, %v9080_v11  ;;  %v8974_v23 = vadd.f32 %v8958_v5, %v19549_v43  ;;  %v13167_v43 = vld [vmem:[%s21083_s2 + $0x480] sm:$0xff] }
 0x558   :  { %v9077_v58 = vadd.f32 %v19190_v38, %v9061_v17  ;;  %v9047_v56 = vmul.f32 %v19147_v4, %v9009_v28  ;;  %v9123_v57 = vsel %vm9091_vm2, %v9075_v15, %v9107_v40  ;;  %v9082_v55 = vadd.f32 %v19190_v38, %v9066_v3  ;;  %v21774_v28 = vld [vmem:[#allocation58_spill] sm:$0xff] }
 0x559   :  { %v19614_v53 = vpop.permute.xlu0 %9653  ;;  %14619 = vmatprep.mubr.msk.f32.mxu1 %vm665_vm0, %v9123_v57  ;;  %v9068_v21 = vadd.f32 %v9052_v20, %v8972_v39  ;;  %v9054_v1 = vmul.f32 %v19147_v4, %v19480_v7  ;;  %v8971_v31 = vadd.f32 %v8955_v54, %v8875_v49  ;;  %v8957_v40 = vmul.f32 %v19135_v25, %v19506_v62  ;;  %v13168_v62 = vld [vmem:[%s21083_s2 + $0x488] sm:$0xff] }
 0x55a   :  { %v9063_v19 = vadd.f32 %v9047_v56, %v8967_v26  ;;  %10354 = vperm.xlu1 %15157, %v15600_v10   ;;  %14620 = vmatmul.mubr.msk.f32.gmra.mrb[180].mxu1 %vm665_vm0, %v9124_v30  ;;  %vm9093_vm4 = vcmp.gt.f32.partialorder %v9077_v58, 0.0  ;;  %v9109_v29 = vmul.f32 0.2, %v9077_v58  ;;  %v8877_v7 = vmul.f32 %v19317_v9, %v21774_v28  ;;  %v21776_v30 = vld [vmem:[#allocation24_spill] sm:$0xff]  ;;  %v21777_v39 = vld [vmem:[#allocation18_spill] sm:$0xff] }
 0x55b   :  { %10470 = vperm.xlu0 %15156, %v21751_v59   ;;  %v9017_v33 = vpop.permute.xlu1 %9016  ;;  %v9128_v25 = vsel %vm9096_vm5, %v9080_v11, %v9112_v27  ;;  %vm9098_vm8 = vcmp.gt.f32.partialorder %v9082_v55, 0.0  ;;  %v9114_v32 = vmul.f32 0.2, %v9082_v55  ;;  %v9084_v3 = vadd.f32 %v19190_v38, %v9068_v21  ;;  %v13170_v21 = vld [vmem:[%s21083_s2 + $0x498] sm:$0xff] }
 0x55c   :  { %v9079_v47 = vadd.f32 %v19190_v38, %v9063_v19  ;;  %v9049_v42 = vmul.f32 %v19147_v4, %v9017_v33  ;;  %v9125_v13 = vsel %vm9093_vm4, %v9077_v58, %v9109_v29  ;;  %v9070_v19 = vadd.f32 %v9054_v1, %v8974_v23  ;;  %v21778_v1 = vld [vmem:[#allocation41_spill] sm:$0xff]  ;;  %v21799_v59 = vld [vmem:[#allocation60_spill] sm:$0xff] }
 0x55d   :  { %v19632_v15 = vpop.permute.xlu0 %9661  ;;  %14622 = vmatprep.mubr.msk.f32.mxu1 %vm665_vm0, %v9125_v13  ;;  %v8973_v54 = vadd.f32 %v8957_v40, %v8877_v7  ;;  %v13169_v13 = vld [vmem:[%s21083_s2 + $0x490] sm:$0xff]  ;;  %v21779_v40 = vld [vmem:[#allocation17_spill] sm:$0xff]  ;;  %vm9100_vm10 = vcmp.gt.f32.partialorder %v9084_v3, 0.0 }
 0x55e   :  { %v9065_v50 = vadd.f32 %v9049_v42, %v8969_v16  ;;  %10358 = vperm.xlu1 %15157, %v21739_v2   ;;  %14623 = vmatmul.mubr.msk.f32.gmra.mrb[182].mxu1 %vm665_vm0, %v9126_v36  ;;  %vm9095_vm6 = vcmp.gt.f32.partialorder %v9079_v47, 0.0  ;;  %v9111_v14 = vmul.f32 0.2, %v9079_v47  ;;  %v19669_v16 = vld [vmem:[%s21089_s8] ss:$0 sm:$0xff] }
 0x55f   :  { %10566 = vperm.xlu0 %15156, %v21764_v48   ;;  %v9025_v46 = vpop.permute.xlu1 %9024  ;;  %v14511_v17 = vpop.f32.mrb[144].mxu1 }
 0x560   :  { %v9081_v37 = vadd.f32 %v19190_v38, %v9065_v50  ;;  %v9051_v52 = vmul.f32 %v19147_v4, %v9025_v46  ;;  %v7703_v60 = vpop.f32.mrb[145].mxu1  ;;  %v9127_v26 = vsel %vm9095_vm6, %v9079_v47, %v9111_v14  ;;  %v7709_v58 = vadd.f32 %v21775_v34, %v14511_v17 }
 0x561   :  { %v7704_v56 = vadd.f32 %v21775_v34, %v7703_v60  ;;  %v19654_v57 = vpop.permute.xlu0 %9669  ;;  %14625 = vmatprep.mubr.msk.f32.mxu1 %vm665_vm0, %v9127_v26  ;;  %v9086_v46 = vadd.f32 %v19190_v38, %v9070_v19  ;;  %v9116_v60 = vmul.f32 0.2, %v9084_v3 }
 0x562   :  { %v9067_v4 = vadd.f32 %v9051_v52, %v8971_v31  ;;  %10530 = vperm.xlu1 %15157, %v21776_v30   ;;  %14626 = vmatmul.mubr.msk.f32.gmra.mrb[184].mxu1 %vm665_vm0, %v9128_v25  ;;  %vm9097_vm7 = vcmp.gt.f32.partialorder %v9081_v37, 0.0  ;;  %v9113_v20 = vmul.f32 0.2, %v9081_v37  ;;  %v7800_v49 = vmul.f32 %v13168_v62, %v7709_v58  ;;  %v21780_v62 = vld [vmem:[#allocation42_spill] sm:$0xff] }
 0x563   :  { %v7799_v29 = vmul.f32 %v13167_v43, %v7704_v56  ;;  %10474 = vperm.xlu0 %15156, %v21777_v39   ;;  %v9033_v5 = vpop.permute.xlu1 %9032  ;;  %v14514_v11 = vpop.f32.mrb[146].mxu1  ;;  %v9130_v31 = vsel %vm9098_vm8, %v9082_v55, %v9114_v32  ;;  %v13171_v55 = vld [vmem:[%s21083_s2 + $0x4a0] sm:$0xff]  ;;  %v9132_v19 = vsel %vm9100_vm10, %v9084_v3, %v9116_v60  ;;  %vm9102_vm12 = vcmp.gt.f32.partialorder %v9086_v46, 0.0  ;;  %v13174_v3 = vld [vmem:[%s21083_s2 + $0x4b8] sm:$0xff] }
 0x564   :  { %v9083_v33 = vadd.f32 %v19190_v38, %v9067_v4  ;;  %v9053_v47 = vmul.f32 %v19669_v16, %v9033_v5  ;;  %v7713_v42 = vpop.f32.mrb[147].mxu1  ;;  %v7719_v36 = vadd.f32 %v21775_v34, %v14514_v11  ;;  %v9129_v14 = vsel %vm9097_vm7, %v9081_v37, %v9113_v20  ;;  %v13172_v4 = vld [vmem:[%s21083_s2 + $0x4a8] sm:$0xff] }
 0x565   :  { %v7714_v27 = vadd.f32 %v21775_v34, %v7713_v42  ;;  %v19677_v50 = vpop.permute.xlu0 %9677  ;;  %14535 = vmatprep.mubr.msk.f32.mxu0 %vm665_vm0, %v7799_v29  ;;  %14628 = vmatprep.mubr.msk.f32.mxu1 %vm665_vm0, %v9129_v14  ;;  %v9118_v5 = vmul.f32 0.2, %v9086_v46  ;;  %v21782_v14 = vld [vmem:[#allocation20_spill] sm:$0xff] }
 0x566   :  { %v9069_v23 = vadd.f32 %v9053_v47, %v8973_v54  ;;  %10362 = vperm.xlu1 %15157, %v21778_v1   ;;  %vm9099_vm9 = vcmp.gt.f32.partialorder %v9083_v33, 0.0  ;;  %14536 = vmatmul.mubr.msk.f32.vlgmr.msra.gmra.mrb[0].mxu0 %vm665_vm0, %v7800_v49  ;;  %v9115_v52 = vmul.f32 0.2, %v9083_v33  ;;  %v7802_v7 = vmul.f32 %v13170_v21, %v7719_v36  ;;  %v13173_v54 = vld [vmem:[%s21083_s2 + $0x4b0] sm:$0xff]  ;;  %v21781_v36 = vld [vmem:[#allocation26_spill] sm:$0xff] }
 0x567   :  { %v7801_v17 = vmul.f32 %v13169_v13, %v7714_v27  ;;  %10478 = vperm.xlu0 %15156, %v21779_v40   ;;  %v14517_v37 = vpop.f32.mrb[148].mxu1  ;;  %14629 = vmatmul.mubr.msk.f32.gmra.mrb[186].mxu1 %vm665_vm0, %v9130_v31  ;;  %v21798_v40 = vld [vmem:[#allocation52_spill] sm:$0xff] }
 0x568   :  { %v9085_v43 = vadd.f32 %v19190_v38, %v9069_v23  ;;  %v9574_v26 = vpop.permute.xlu1 %9573  ;;  %v7723_v28 = vpop.f32.mrb[149].mxu1  ;;  %14586 = vmatpush3.msra.mxu0 %v19541_v61  ;;  %v7729_v58 = vadd.f32 %v21775_v34, %v14517_v37  ;;  %v9131_v38 = vsel %vm9099_vm9, %v9083_v33, %v9115_v52  ;;  %v9134_v23 = vsel %vm9102_vm12, %v9086_v46, %v9118_v5  ;;  %v13175_v37 = vld [vmem:[%s21083_s2 + $0x4c0] sm:$0xff]  ;;  %v13176_v46 = vld [vmem:[%s21083_s2 + $0x4c8] sm:$0xff] }
 0x569   :  { %v7724_v56 = vadd.f32 %v21775_v34, %v7723_v28  ;;  %v19698_v25 = vpop.permute.xlu0 %9685  ;;  %14538 = vmatprep.mubr.msk.f32.mxu0 %vm665_vm0, %v7801_v17  ;;  %14631 = vmatprep.mubr.msk.f32.mxu1 %vm665_vm0, %v9131_v38 }
 0x56a   :  { %10366 = vperm.xlu1 %15157, %v21780_v62   ;;  %vm9101_vm11 = vcmp.gt.f32.partialorder %v9085_v43, 0.0  ;;  %v9117_v61 = vmul.f32 0.2, %v9085_v43  ;;  %14539 = vmatmul.mubr.msk.f32.gmra.mrb[2].mxu0 %vm665_vm0, %v7802_v7  ;;  %v7804_v47 = vmul.f32 %v13172_v4, %v7729_v58  ;;  %v21784_v58 = vld [vmem:[#allocation19_spill] sm:$0xff] }
 0x56b   :  { %v7803_v32 = vmul.f32 %v13171_v55, %v7724_v56  ;;  %10574 = vperm.xlu0 %15156, %v21766_v41   ;;  %v14520_v29 = vpop.f32.mrb[150].mxu1  ;;  %14632 = vmatmul.mubr.msk.f32.gmra.mrb[188].mxu1 %vm665_vm0, %v9132_v19  ;;  %v21783_v55 = vld [vmem:[#allocation43_spill] sm:$0xff] }
 0x56c   :  { %v19711_v11 = vpop.permute.xlu1 %9581  ;;  %v7733_v20 = vpop.f32.mrb[151].mxu1  ;;  %v9133_v33 = vsel %vm9101_vm11, %v9085_v43, %v9117_v61  ;;  %v7739_v42 = vadd.f32 %v21775_v34, %v14520_v29  ;;  %v9636_v29 = vmul.f32 %v19317_v9, %v9574_v26 }
 0x56d   :  { %v7734_v13 = vadd.f32 %v21775_v34, %v7733_v20  ;;  %v19718_v49 = vpop.permute.xlu0 %9693  ;;  %14541 = vmatprep.mubr.msk.f32.mxu0 %vm665_vm0, %v7803_v32  ;;  %14634 = vmatprep.mubr.msk.f32.mxu1 %vm665_vm0, %v9133_v33  ;;  %v19753_v32 = vld [vmem:[%s21088_s7] ss:$0 sm:$0xff]  ;;  %v21785_v33 = vld [vmem:[#allocation44_spill] sm:$0xff] }
 0x56e   :  { %10538 = vperm.xlu1 %15157, %v21781_v36   ;;  %14542 = vmatmul.mubr.msk.f32.gmra.mrb[4].mxu0 %vm665_vm0, %v7804_v47  ;;  %v7806_v52 = vmul.f32 %v13174_v3, %v7739_v42  ;;  %v9716_v19 = vmul.f32 %v19753_v32, %v19614_v53  ;;  %v13178_v47 = vld [vmem:[%s21083_s2 + $0x4d8] sm:$0xff] }
 0x56f   :  { %v7805_v27 = vmul.f32 %v13173_v54, %v7734_v13  ;;  %10482 = vperm.xlu0 %15156, %v21782_v14   ;;  %v14523_v21 = vpop.f32.mrb[152].mxu1  ;;  %14635 = vmatmul.mubr.msk.f32.gmra.mrb[190].mxu1 %vm665_vm0, %v9134_v23  ;;  %v13177_v54 = vld [vmem:[%s21083_s2 + $0x4d0] sm:$0xff] }
 0x570   :  { %v19729_v31 = vpop.permute.xlu1 %9585  ;;  %v7743_v17 = vpop.f32.mrb[153].mxu1  ;;  %v7749_v60 = vadd.f32 %v21775_v34, %v14523_v21  ;;  %v9732_v3 = vadd.f32 %v9716_v19, %v9636_v29 }
 0x571   :  { %v7744_v43 = vadd.f32 %v21775_v34, %v7743_v17  ;;  %v19736_v28 = vpop.permute.xlu0 %9701  ;;  %14544 = vmatprep.mubr.msk.f32.mxu0 %vm665_vm0, %v7805_v27  ;;  %v13179_v17 = vld [vmem:[%s21083_s2 + $0x4e0] sm:$0xff] }
 0x572   :  { %10370 = vperm.xlu1 %15157, %v21783_v55   ;;  %14545 = vmatmul.mubr.msk.f32.gmra.mrb[6].mxu0 %vm665_vm0, %v7806_v52  ;;  %v7808_v38 = vmul.f32 %v13176_v46, %v7749_v60  ;;  %v21786_v52 = vld [vmem:[#allocation28_spill] sm:$0xff]  ;;  %v13180_v60 = vld [vmem:[%s21083_s2 + $0x4e8] sm:$0xff]  ;;  %v21335_v46 = vmov 14  }
 0x573   :  { %v7807_v7 = vmul.f32 %v13175_v37, %v7744_v43  ;;  %10486 = vperm.xlu0 %15156, %v21784_v58  }
 0x574   :  { %v19745_v56 = vpop.permute.xlu1 %9593  ;;  %v14526_v4 = vpop.f32.mrb[154].mxu1 }
 0x575   :  { %v19747_v61 = vpop.permute.xlu0 %9709  ;;  %14547 = vmatprep.mubr.msk.f32.mxu0 %vm665_vm0, %v7807_v7  ;;  %v7759_v5 = vadd.f32 %v21775_v34, %v14526_v4  ;;  %v7753_v20 = vpop.f32.mrb[155].mxu1 }
 0x576   :  { %10374 = vperm.xlu1 %15157, %v21785_v33   ;;  %v7754_v42 = vadd.f32 %v21775_v34, %v7753_v20  ;;  %14548 = vmatmul.mubr.msk.f32.gmra.mrb[8].mxu0 %vm665_vm0, %v7808_v38  ;;  %v19790_v20 = vld [vmem:[%s21090_s9] ss:$0 sm:$0xff] }
 0x577   :  { %10582 = vperm.xlu0 %15156, %v21770_v6   ;;  %v7810_v27 = vmul.f32 %v13178_v47, %v7759_v5  ;;  %v9718_v6 = vmul.f32 %v19753_v32, %v19632_v15  ;;  %v9720_v15 = vmul.f32 %v19753_v32, %v19654_v57 }
 0x578   :  { %v19769_v9 = vpop.permute.xlu1 %9601  ;;  %v7809_v53 = vmul.f32 %v13177_v54, %v7754_v42  ;;  %v14529_v26 = vpop.f32.mrb[156].mxu1 }
 0x579   :  { %v9750_v13 = vpop.permute.xlu0 %9749  ;;  %v7769_v23 = vadd.f32 %v21775_v34, %v14529_v26  ;;  %v7763_v21 = vpop.f32.mrb[157].mxu1  ;;  %v21787_v26 = vld [vmem:[#allocation45_spill] sm:$0xff] }
 0x57a   :  { %v9812_v37 = vmul.f32 %v19669_v16, %v9750_v13  ;;  %10546 = vperm.xlu1 %15157, %v21786_v52   ;;  %v7764_v43 = vadd.f32 %v21775_v34, %v7763_v21  ;;  %14550 = vmatprep.mubr.msk.f32.mxu0 %vm665_vm0, %v7809_v53  ;;  %v13181_v53 = vld [vmem:[%s21083_s2 + $0x4f0] sm:$0xff]  ;;  %v13182_v13 = vld [vmem:[%s21083_s2 + $0x4f8] sm:$0xff] }
 0x57b   :  { %15159 = vset.pattern.permute.xlu0 %v21335_v46  ;;  %14551 = vmatmul.mubr.msk.f32.gmra.mrb[10].mxu0 %vm665_vm0, %v7810_v27  ;;  %v7812_v5 = vmul.f32 %v13180_v60, %v7769_v23  ;;  %v21788_v60 = vld [vmem:[#allocation46_spill] sm:$0xff] }
 0x57c   :  { %v9828_v7 = vadd.f32 %v9812_v37, %v9732_v3  ;;  %11199 = vperm.xlu0 %15159, %v21772_v8   ;;  %v19785_v38 = vpop.permute.xlu1 %9609  ;;  %v7811_v4 = vmul.f32 %v13179_v17, %v7764_v43  ;;  %v14532_v19 = vpop.f32.mrb[158].mxu1 }
 0x57d   :  { %v9758_v29 = vpop.permute.xlu0 %9757  ;;  %v7779_v47 = vadd.f32 %v21775_v34, %v14532_v19  ;;  %v7773_v42 = vpop.f32.mrb[159].mxu1 }
 0x57e   :  { %v9844_v54 = vadd.f32 %v19790_v20, %v9828_v7  ;;  %10378 = vperm.xlu1 %15157, %v21787_v26   ;;  %v7774_v3 = vadd.f32 %v21775_v34, %v7773_v42  ;;  %14553 = vmatprep.mubr.msk.f32.mxu0 %vm665_vm0, %v7811_v4  ;;  %v21789_v4 = vld [vmem:[#allocation30_spill] sm:$0xff]  ;;  %v9814_v14 = vmul.f32 %v19669_v16, %v9758_v29 }
 0x57f   :  { %14554 = vmatmul.mubr.msk.f32.gmra.mrb[12].mxu0 %vm665_vm0, %v7812_v5  ;;  %v7814_v37 = vmul.f32 %v13182_v13, %v7779_v47  ;;  %v9722_v29 = vmul.f32 %v19753_v32, %v19677_v50 }
 0x580   :  { %11295 = vperm.xlu0 %15159, %v21726_v0   ;;  %v19805_v27 = vpop.permute.xlu1 %9617  ;;  %vm9860_vm13 = vcmp.gt.f32.partialorder %v9844_v54, 0.0  ;;  %v9876_v23 = vmul.f32 0.2, %v9844_v54  ;;  %v7813_v21 = vmul.f32 %v13181_v53, %v7774_v3  ;;  %v21791_v53 = vld [vmem:[#allocation48_spill] sm:$0xff] }
 0x581   :  { %v9766_v17 = vpop.permute.xlu0 %9765 }
 0x582   :  { %10382 = vperm.xlu1 %15157, %v21788_v60   ;;  %v9892_v43 = vsel %vm9860_vm13, %v9844_v54, %v9876_v23  ;;  %14556 = vmatprep.mubr.msk.f32.mxu0 %vm665_vm0, %v7813_v21  ;;  %v21790_v54 = vld [vmem:[#allocation47_spill] sm:$0xff]  ;;  %v21792_v23 = vld [vmem:[#allocation32_spill] sm:$0xff]  ;;  %v9816_v18 = vmul.f32 %v19669_v16, %v9766_v17  ;;  %v9726_v17 = vmul.f32 %v19753_v32, %v19718_v49 }
 0x583   :  { %14665 = vmatprep.mubr.msk.f32.mxu1 %vm665_vm0, %v9892_v43  ;;  %14557 = vmatmul.mubr.msk.f32.gmra.mrb[14].mxu0 %vm665_vm0, %v7814_v37  ;;  %v21793_v43 = vld [vmem:[#allocation49_spill] sm:$0xff] }
 0x584   :  { %11127 = vperm.xlu0 %15159, %v15600_v10   ;;  %v19812_v34 = vpop.permute.xlu1 %9625 }
 0x585   :  { %v9774_v7 = vpop.permute.xlu0 %9773 }
 0x586   :  { %10554 = vperm.xlu1 %15157, %v21789_v4   ;;  %v9818_v50 = vmul.f32 %v19669_v16, %v9774_v7 }
 0x588   :  { %11131 = vperm.xlu0 %15159, %v21739_v2   ;;  %v19816_v19 = vpop.permute.xlu1 %9633  ;;  %v21794_v2 = vld [vmem:[#allocation50_spill] sm:$0xff] }
 0x589   :  { %v19818_v5 = vpop.permute.xlu0 %9781 }
 0x58a   :  { %10386 = vperm.xlu1 %15157, %v21790_v54  }
 0x58c   :  { %11303 = vperm.xlu0 %15159, %v21776_v30   ;;  %v9658_v47 = vpop.permute.xlu1 %9657 }
 0x58d   :  { %v19822_v42 = vpop.permute.xlu0 %9789 }
 0x58e   :  { %10390 = vperm.xlu1 %15157, %v21791_v53  }
 0x590   :  { %11135 = vperm.xlu0 %15159, %v21778_v1   ;;  %v9666_v13 = vpop.permute.xlu1 %9665 }
 0x591   :  { %v19826_v3 = vpop.permute.xlu0 %9797 }
 0x592   :  { %10562 = vperm.xlu1 %15157, %v21792_v23  }
 0x594   :  { %11139 = vperm.xlu0 %15159, %v21780_v62   ;;  %v9674_v21 = vpop.permute.xlu1 %9673  ;;  %v21795_v62 = vld [vmem:[#allocation34_spill] sm:$0xff] }
 0x595   :  { %v19830_v37 = vpop.permute.xlu0 %9805 }
 0x596   :  { %10394 = vperm.xlu1 %15157, %v21793_v43  }
 0x598   :  { %11311 = vperm.xlu0 %15159, %v21781_v36   ;;  %v19834_v46 = vpop.permute.xlu1 %9681  ;;  %v21796_v36 = vld [vmem:[#allocation51_spill] sm:$0xff] }
 0x59a   :  { %v19836_v30 = vpop.permute.xlu0 %10346  ;;  %10398 = vperm.xlu1 %15157, %v21794_v2  }
 0x59c   :  { %11143 = vperm.xlu0 %15159, %v21783_v55   ;;  %v19840_v1 = vpop.permute.xlu1 %9689  ;;  %v19856_v55 = vld [vmem:[%s21087_s6] ss:$0 sm:$0xff] }
 0x59d   :  { %v9638_v58 = vmul.f32 %v19856_v55, %v19711_v11  ;;  %v9717_v11 = vmul.f32 %v19753_v32, %v9658_v47  ;;  %v19909_v49 = vmul.f32 %v19856_v55, %v19577_v12 }
 0x59e   :  { %v19842_v10 = vpop.permute.xlu0 %10430  ;;  %10570 = vperm.xlu1 %15157, %v21795_v62  }
 0x59f   :  { %v9734_v39 = vadd.f32 %v9718_v6, %v9638_v58  ;;  %v21802_v6 = vld [vmem:[#allocation61_spill] sm:$0xff]  ;;  %v9642_v58 = vmul.f32 %v19856_v55, %v19509_v51 }
 0x5a0   :  { %11147 = vperm.xlu0 %15159, %v21785_v33   ;;  %v19846_v0 = vpop.permute.xlu1 %9697  ;;  %v9637_v57 = vmul.f32 %v19856_v55, %v21802_v6  ;;  %v9719_v6 = vmul.f32 %v19753_v32, %v9666_v13  ;;  %v9639_v13 = vmul.f32 %v19856_v55, %v19729_v31 }
 0x5a1   :  { %v9830_v22 = vadd.f32 %v9814_v14, %v9734_v39  ;;  %v9724_v39 = vmul.f32 %v19753_v32, %v19698_v25 }
 0x5a2   :  { %v19848_v8 = vpop.permute.xlu0 %10526  ;;  %10402 = vperm.xlu1 %15157, %v21796_v36   ;;  %v9733_v51 = vadd.f32 %v9717_v11, %v9637_v57  ;;  %v9735_v12 = vadd.f32 %v9719_v6, %v9639_v13  ;;  %v9723_v6 = vmul.f32 %v19753_v32, %v19834_v46 }
 0x5a3   :  { %v9846_v25 = vadd.f32 %v19790_v20, %v9830_v22 }
 0x5a4   :  { %11319 = vperm.xlu0 %15159, %v21786_v52   ;;  %v19861_v33 = vpop.permute.xlu1 %9705  ;;  %v9640_v52 = vmul.f32 %v19856_v55, %v21799_v59  ;;  %v19888_v59 = vld [vmem:[%s21093_s12 + $0x58] sm:$0xff] }
 0x5a5   :  { %14637 = vmatprep.subr.mxu0 %v19888_v59  ;;  %vm9862_vm15 = vcmp.gt.f32.partialorder %v9846_v25, 0.0 }
 0x5a6   :  { %v19864_v41 = vpop.permute.xlu0 %10434  ;;  %10406 = vperm.xlu1 %15157, %v21798_v40   ;;  %v9736_v47 = vadd.f32 %v9720_v15, %v9640_v52  ;;  %v9738_v15 = vadd.f32 %v9722_v29, %v9642_v58 }
 0x5a7   :  { %21797 = vst [vmem:[#allocation62_spill] sm:$0xff] %v19864_v41  ;;  %v21803_v41 = vld [vmem:[#allocation63_spill] sm:$0xff] }
 0x5a8   :  { %11151 = vperm.xlu0 %15159, %v21787_v26   ;;  %v19870_v48 = vpop.permute.xlu1 %9713  ;;  %v9644_v52 = vmul.f32 %v19856_v55, %v21803_v41  ;;  %v9832_v7 = vadd.f32 %v9816_v18, %v9736_v47  ;;  %v21805_v41 = vld [vmem:[#allocation37_spill] sm:$0xff]  ;;  %v19916_v18 = vmul.f32 %v19856_v55, %v19596_v35  ;;  %v9834_v29 = vadd.f32 %v9818_v50, %v9738_v15 }
 0x5a9   :  { %v9820_v35 = vmul.f32 %v19669_v16, %v19818_v5 }
 0x5aa   :  { %v19878_v45 = vpop.permute.xlu0 %10438  ;;  %10578 = vperm.xlu1 %15157, %v21801_v24   ;;  %v9646_v24 = vmul.f32 %v19856_v55, %v19563_v63  ;;  %v9740_v22 = vadd.f32 %v9724_v39, %v9644_v52  ;;  %v9848_v47 = vadd.f32 %v19790_v20, %v9832_v7 }
 0x5ab   :  { %21800 = vst [vmem:[#allocation65_spill] sm:$0xff] %v19878_v45 }
 0x5ac   :  { %11155 = vperm.xlu0 %15159, %v21788_v60   ;;  %v9754_v14 = vpop.permute.xlu1 %9753  ;;  %v21804_v60 = vmov 14   ;;  %v9742_v57 = vadd.f32 %v9726_v17, %v9646_v24  ;;  %v9728_v24 = vmul.f32 %v19753_v32, %v19736_v28  ;;  %v9850_v17 = vadd.f32 %v19790_v20, %v9834_v29 }
 0x5ad   :  { %v9813_v26 = vmul.f32 %v19669_v16, %v9754_v14  ;;  %v9836_v13 = vadd.f32 %v9820_v35, %v9740_v22  ;;  %v9822_v28 = vmul.f32 %v19669_v16, %v19822_v42  ;;  %v9880_v29 = vmul.f32 0.2, %v9848_v47 }
 0x5ae   :  { %v19902_v45 = vpop.permute.xlu0 %10534  ;;  %15158 = vset.pattern.permute.xlu1 %v21804_v60  ;;  %v9721_v60 = vmul.f32 %v19753_v32, %v9674_v21  ;;  %v9878_v21 = vmul.f32 0.2, %v9846_v25  ;;  %vm9864_vm2 = vcmp.gt.f32.partialorder %v9848_v47, 0.0  ;;  %v9645_v22 = vmul.f32 %v19856_v55, %v19785_v38 }
 0x5af   :  { %v9829_v11 = vadd.f32 %v9813_v26, %v9733_v51  ;;  %11119 = vperm.xlu1 %15158, %v21805_v41   ;;  %v9641_v26 = vmul.f32 %v19856_v55, %v19745_v56  ;;  %v9643_v56 = vmul.f32 %v19856_v55, %v19769_v9  ;;  %v9725_v42 = vmul.f32 %v19753_v32, %v19840_v1 }
 0x5b0   :  { %11327 = vperm.xlu0 %15159, %v21789_v4   ;;  %v9762_v63 = vpop.permute.xlu1 %9761  ;;  %v9894_v9 = vsel %vm9862_vm15, %v9846_v25, %v9878_v21  ;;  %vm9866_vm3 = vcmp.gt.f32.partialorder %v9850_v17, 0.0  ;;  %v9882_v25 = vmul.f32 0.2, %v9850_v17  ;;  %v9852_v1 = vadd.f32 %v19790_v20, %v9836_v13 }
 0x5b1   :  { %v9845_v58 = vadd.f32 %v19790_v20, %v9829_v11  ;;  %v9815_v31 = vmul.f32 %v19669_v16, %v9762_v63  ;;  %v9737_v51 = vadd.f32 %v9721_v60, %v9641_v26  ;;  %v21806_v63 = vld [vmem:[#allocation5_spill] sm:$0xff]  ;;  %v9838_v21 = vadd.f32 %v9822_v28, %v9742_v57 }
 0x5b2   :  { %v19927_v39 = vpop.permute.xlu0 %10442  ;;  %v9730_v57 = vmul.f32 %v19753_v32, %v19747_v61  ;;  %vm9868_vm5 = vcmp.gt.f32.partialorder %v9852_v1, 0.0 }
 0x5b3   :  { %vm9861_vm14 = vcmp.gt.f32.partialorder %v9845_v58, 0.0  ;;  %v9877_v50 = vmul.f32 0.2, %v9845_v58  ;;  %v9831_v14 = vadd.f32 %v9815_v31, %v9735_v12  ;;  %11123 = vperm.xlu1 %15158, %v21773_v44   ;;  %v9739_v31 = vadd.f32 %v9723_v6, %v9643_v56  ;;  %v21807_v6 = vld [vmem:[#allocation21_spill] sm:$0xff] }
 0x5b4   :  { %11159 = vperm.xlu0 %15159, %v21790_v54   ;;  %v9770_v5 = vpop.permute.xlu1 %9769  ;;  %v9744_v56 = vadd.f32 %v9728_v24, %v19909_v49  ;;  %v9727_v49 = vmul.f32 %v19753_v32, %v19846_v0 }
 0x5b5   :  { %v9847_v52 = vadd.f32 %v19790_v20, %v9831_v14  ;;  %v9817_v15 = vmul.f32 %v19669_v16, %v9770_v5  ;;  %v9893_v7 = vsel %vm9861_vm14, %v9845_v58, %v9877_v50  ;;  %v19955_v58 = vld [vmem:[%s21091_s10] sm:$0xff]  ;;  %v9824_v50 = vmul.f32 %v19669_v16, %v19826_v3 }
 0x5b6   :  { %v19942_v11 = vpop.permute.xlu0 %10446  ;;  %14666 = vmatmul.mubr.msk.f32.vlgmr.msra.gmra.mrb[192].mxu1 %vm665_vm0, %v9893_v7  ;;  %v9647_v3 = vmul.f32 %v19856_v55, %v19805_v27  ;;  %v9884_v27 = vmul.f32 0.2, %v9852_v1 }
 0x5b7   :  { %v9833_v60 = vadd.f32 %v9817_v15, %v9737_v51  ;;  %11203 = vperm.xlu1 %15158, %v21806_v63   ;;  %14668 = vmatprep.mubr.msk.f32.mxu1 %vm665_vm0, %v9894_v9  ;;  %vm9863_vm1 = vcmp.gt.f32.partialorder %v9847_v52, 0.0  ;;  %v9879_v46 = vmul.f32 0.2, %v9847_v52  ;;  %v9896_v51 = vsel %vm9864_vm2, %v9848_v47, %v9880_v29 }
 0x5b8   :  { %11163 = vperm.xlu0 %15159, %v21791_v53   ;;  %v9778_v12 = vpop.permute.xlu1 %9777  ;;  %14716 = vmatpush3.msra.mxu1 %v19955_v58  ;;  %v9741_v15 = vadd.f32 %v9725_v42, %v9645_v22  ;;  %v9898_v47 = vsel %vm9866_vm3, %v9850_v17, %v9882_v25  ;;  %v9854_v9 = vadd.f32 %v19790_v20, %v9838_v21 }
 0x5b9   :  { %v9849_v26 = vadd.f32 %v19790_v20, %v9833_v60  ;;  %v9819_v38 = vmul.f32 %v19669_v16, %v9778_v12  ;;  %v9895_v35 = vsel %vm9863_vm1, %v9847_v52, %v9879_v46  ;;  %14767 = vmatprep.subr.mxu1 %v19955_v58  ;;  %v9840_v61 = vadd.f32 %v9824_v50, %v9744_v56  ;;  %v21808_v46 = vld [vmem:[#allocation8_spill] sm:$0xff] }
 0x5ba   :  { %v19964_v14 = vpop.permute.xlu0 %10542  ;;  %14669 = vmatmul.mubr.msk.f32.gmra.mrb[194].mxu1 %vm665_vm0, %v9895_v35  ;;  %v9826_v17 = vmul.f32 %v19669_v16, %v19830_v37  ;;  %v9746_v22 = vadd.f32 %v9730_v57, %v19916_v18  ;;  %v9649_v42 = vmul.f32 %v19856_v55, %v19812_v34  ;;  %v9729_v12 = vmul.f32 %v19753_v32, %v19861_v33 }
 0x5bb   :  { %v9835_v5 = vadd.f32 %v9819_v38, %v9739_v31  ;;  %11299 = vperm.xlu1 %15158, %v21807_v6   ;;  %14671 = vmatprep.mubr.msk.f32.mxu1 %vm665_vm0, %v9896_v51  ;;  %vm9865_vm4 = vcmp.gt.f32.partialorder %v9849_v26, 0.0  ;;  %v9881_v52 = vmul.f32 0.2, %v9849_v26  ;;  %v9743_v31 = vadd.f32 %v9727_v49, %v9647_v3  ;;  %v21809_v51 = vld [vmem:[#allocation7_spill] sm:$0xff]  ;;  %v20009_v3 = vld [vmem:[%s21092_s11] ss:$0 sm:$0xff] }
 0x5bc   :  { %11335 = vperm.xlu0 %15159, %v21792_v23   ;;  %v9786_v7 = vpop.permute.xlu1 %9785  ;;  %v9856_v35 = vadd.f32 %v19790_v20, %v9840_v61  ;;  %v9900_v34 = vsel %vm9868_vm5, %v9852_v1, %v9884_v27  ;;  %vm9870_vm7 = vcmp.gt.f32.partialorder %v9854_v9, 0.0  ;;  %v9886_v18 = vmul.f32 0.2, %v9854_v9 }
 0x5bd   :  { %v9851_v24 = vadd.f32 %v19790_v20, %v9835_v5  ;;  %v9821_v13 = vmul.f32 %v19669_v16, %v9786_v7  ;;  %v9897_v28 = vsel %vm9865_vm4, %v9849_v26, %v9881_v52  ;;  %v9842_v33 = vadd.f32 %v9826_v17, %v9746_v22 }
 0x5be   :  { %v19982_v29 = vpop.permute.xlu0 %10450  ;;  %14672 = vmatmul.mubr.msk.f32.gmra.mrb[196].mxu1 %vm665_vm0, %v9897_v28  ;;  %v9745_v52 = vadd.f32 %v9729_v12, %v9649_v42  ;;  %v9731_v57 = vmul.f32 %v19753_v32, %v19870_v48  ;;  %v13217_v48 = vld [vmem:[%s21083_s2 + $0x508] sm:$0xff]  ;;  %v9651_v61 = vmul.f32 %v19856_v55, %v19816_v19  ;;  %v9902_v17 = vsel %vm9870_vm7, %v9854_v9, %v9886_v18  ;;  %v21810_v12 = vld [vmem:[#allocation23_spill] sm:$0xff] }
 0x5bf   :  { %v9837_v60 = vadd.f32 %v9821_v13, %v9741_v15  ;;  %11207 = vperm.xlu1 %15158, %v21808_v46   ;;  %14674 = vmatprep.mubr.msk.f32.mxu1 %vm665_vm0, %v9898_v47  ;;  %vm9867_vm6 = vcmp.gt.f32.partialorder %v9851_v24, 0.0  ;;  %v9883_v0 = vmul.f32 0.2, %v9851_v24  ;;  %v13216_v47 = vld [vmem:[%s21083_s2 + $0x500] sm:$0xff]  ;;  %vm9872_vm9 = vcmp.gt.f32.partialorder %v9856_v35, 0.0  ;;  %v13218_v9 = vld [vmem:[%s21083_s2 + $0x510] sm:$0xff] }
 0x5c0   :  { %11167 = vperm.xlu0 %15159, %v21793_v43   ;;  %v9794_v25 = vpop.permute.xlu1 %9793 }
 0x5c1   :  { %v9853_v37 = vadd.f32 %v19790_v20, %v9837_v60  ;;  %v9823_v26 = vmul.f32 %v19669_v16, %v9794_v25  ;;  %v9899_v38 = vsel %vm9867_vm6, %v9851_v24, %v9883_v0  ;;  %v9888_v60 = vmul.f32 0.2, %v9856_v35 }
 0x5c2   :  { %v19998_v21 = vpop.permute.xlu0 %10454  ;;  %14675 = vmatmul.mubr.msk.f32.gmra.mrb[198].mxu1 %vm665_vm0, %v9899_v38  ;;  %v9858_v0 = vadd.f32 %v19790_v20, %v9842_v33  ;;  %v13219_v33 = vld [vmem:[%s21083_s2 + $0x518] sm:$0xff] }
 0x5c3   :  { %v9839_v50 = vadd.f32 %v9823_v26, %v9743_v31  ;;  %11211 = vperm.xlu1 %15158, %v21809_v51   ;;  %v14563_v56 = vpop.f32.mrb[160].mxu1  ;;  %14677 = vmatprep.mubr.msk.f32.mxu1 %vm665_vm0, %v9900_v34  ;;  %vm9869_vm8 = vcmp.gt.f32.partialorder %v9853_v37, 0.0  ;;  %v9885_v5 = vmul.f32 0.2, %v9853_v37  ;;  %v9747_v34 = vadd.f32 %v9731_v57, %v9651_v61 }
 0x5c4   :  { %v8482_v1 = vadd.f32 %v20009_v3, %v14563_v56  ;;  %11171 = vperm.xlu0 %15159, %v21794_v2   ;;  %v9802_v15 = vpop.permute.xlu1 %9801  ;;  %v8476_v7 = vpop.f32.mrb[161].mxu1  ;;  %v9904_v57 = vsel %vm9872_vm9, %v9856_v35, %v9888_v60  ;;  %v13220_v35 = vld [vmem:[%s21083_s2 + $0x520] sm:$0xff]  ;;  %vm9874_vm12 = vcmp.gt.f32.partialorder %v9858_v0, 0.0 }
 0x5c5   :  { %v9855_v49 = vadd.f32 %v19790_v20, %v9839_v50  ;;  %v9825_v24 = vmul.f32 %v19669_v16, %v9802_v15  ;;  %v8477_v13 = vadd.f32 %v20009_v3, %v8476_v7  ;;  %v9901_v28 = vsel %vm9869_vm8, %v9853_v37, %v9885_v5  ;;  %v21811_v7 = vld [vmem:[#allocation10_spill] sm:$0xff] }
 0x5c6   :  { %v20024_v27 = vpop.permute.xlu0 %10550  ;;  %14678 = vmatmul.mubr.msk.f32.gmra.mrb[200].mxu1 %vm665_vm0, %v9901_v28  ;;  %v8573_v31 = vmul.f32 %v13217_v48, %v8482_v1  ;;  %v9890_v48 = vmul.f32 0.2, %v9858_v0 }
 0x5c7   :  { %v9841_v22 = vadd.f32 %v9825_v24, %v9745_v52  ;;  %v8572_v42 = vmul.f32 %v13216_v47, %v8477_v13  ;;  %11307 = vperm.xlu1 %15158, %v21810_v12   ;;  %v14566_v25 = vpop.f32.mrb[162].mxu1  ;;  %14680 = vmatprep.mubr.msk.f32.mxu1 %vm665_vm0, %v9902_v17  ;;  %vm9871_vm10 = vcmp.gt.f32.partialorder %v9855_v49, 0.0  ;;  %v9887_v38 = vmul.f32 0.2, %v9855_v49  ;;  %v13221_v17 = vld [vmem:[%s21083_s2 + $0x528] sm:$0xff] }
 0x5c8   :  { %v8492_v19 = vadd.f32 %v20009_v3, %v14566_v25  ;;  %11343 = vperm.xlu0 %15159, %v21795_v62   ;;  %v9810_v37 = vpop.permute.xlu1 %9809  ;;  %v8486_v26 = vpop.f32.mrb[163].mxu1 }
 0x5c9   :  { %v9857_v18 = vadd.f32 %v19790_v20, %v9841_v22  ;;  %v9827_v50 = vmul.f32 %v19669_v16, %v9810_v37  ;;  %v8487_v56 = vadd.f32 %v20009_v3, %v8486_v26  ;;  %14587 = vmatprep.mubr.msk.f32.mxu0 %vm665_vm0, %v8572_v42  ;;  %v9903_v52 = vsel %vm9871_vm10, %v9855_v49, %v9887_v38 }
 0x5ca   :  { %v20043_v5 = vpop.permute.xlu0 %10458  ;;  %14588 = vmatmul.mubr.msk.f32.vlgmr.msra.gmra.mrb[0].mxu0 %vm665_vm0, %v8573_v31  ;;  %14681 = vmatmul.mubr.msk.f32.gmra.mrb[202].mxu1 %vm665_vm0, %v9903_v52  ;;  %v8575_v24 = vmul.f32 %v13219_v33, %v8492_v19  ;;  %v21812_v19 = vld [vmem:[#allocation9_spill] sm:$0xff]  ;;  %v9906_v26 = vsel %vm9874_vm12, %v9858_v0, %v9890_v48  ;;  %v10490_v38 = vmul.f32 %v19753_v32, %v19842_v10  ;;  %v13222_v33 = vld [vmem:[%s21083_s2 + $0x530] sm:$0xff]  ;;  %v13223_v0 = vld [vmem:[%s21083_s2 + $0x538] sm:$0xff] }
 0x5cb   :  { %v9843_v1 = vadd.f32 %v9827_v50, %v9747_v34  ;;  %v8574_v15 = vmul.f32 %v13218_v9, %v8487_v56  ;;  %11215 = vperm.xlu1 %15158, %v21811_v7   ;;  %v14569_v47 = vpop.f32.mrb[164].mxu1  ;;  %vm9873_vm11 = vcmp.gt.f32.partialorder %v9857_v18, 0.0  ;;  %14683 = vmatprep.mubr.msk.f32.mxu1 %vm665_vm0, %v9904_v57  ;;  %v9889_v49 = vmul.f32 0.2, %v9857_v18  ;;  %v21813_v48 = vld [vmem:[#allocation25_spill] sm:$0xff] }
 0x5cc   :  { %v8502_v13 = vadd.f32 %v20009_v3, %v14569_v47  ;;  %11175 = vperm.xlu0 %15159, %v21796_v36   ;;  %v8496_v28 = vpop.f32.mrb[165].mxu1  ;;  %14638 = vmatpush3.msra.mxu0 %v19888_v59  ;;  %v10586_v52 = vmul.f32 %v19669_v16, %v19848_v8 }
 0x5cd   :  { %v9859_v61 = vadd.f32 %v19790_v20, %v9843_v1  ;;  %v8497_v60 = vadd.f32 %v20009_v3, %v8496_v28  ;;  %v10427_v22 = vpop.permute.xlu1 %10426  ;;  %14590 = vmatprep.mubr.msk.f32.mxu0 %vm665_vm0, %v8574_v15  ;;  %v9905_v25 = vsel %vm9873_vm11, %v9857_v18, %v9889_v49  ;;  %v21814_v49 = vld [vmem:[#allocation36_spill] sm:$0xff] }
 0x5ce   :  { %v20063_v42 = vpop.permute.xlu0 %10462  ;;  %14591 = vmatmul.mubr.msk.f32.gmra.mrb[2].mxu0 %vm665_vm0, %v8575_v24  ;;  %14684 = vmatmul.mubr.msk.f32.gmra.mrb[204].mxu1 %vm665_vm0, %v9905_v25  ;;  %v8577_v34 = vmul.f32 %v13221_v17, %v8502_v13  ;;  %v10489_v57 = vmul.f32 %v19753_v32, %v10427_v22  ;;  %v10409_v13 = vmul.f32 %v19856_v55, %v19836_v30  ;;  %v13224_v17 = vld [vmem:[%s21083_s2 + $0x540] sm:$0xff] }
 0x5cf   :  { %v8576_v31 = vmul.f32 %v13220_v35, %v8497_v60  ;;  %11219 = vperm.xlu1 %15158, %v21812_v19   ;;  %v14572_v37 = vpop.f32.mrb[166].mxu1  ;;  %vm9875_vm13 = vcmp.gt.f32.partialorder %v9859_v61, 0.0  ;;  %v9891_v9 = vmul.f32 0.2, %v9859_v61  ;;  %14686 = vmatprep.mubr.msk.f32.mxu1 %vm665_vm0, %v9906_v26  ;;  %v13225_v60 = vld [vmem:[%s21083_s2 + $0x548] sm:$0xff] }
 0x5d0   :  { %v8512_v59 = vadd.f32 %v20009_v3, %v14572_v37  ;;  %11179 = vperm.xlu0 %15159, %v21798_v40   ;;  %v8506_v18 = vpop.f32.mrb[167].mxu1  ;;  %v10505_v30 = vadd.f32 %v10489_v57, %v10409_v13  ;;  %v21816_v13 = vld [vmem:[#allocation11_spill] sm:$0xff] }
 0x5d1   :  { %v8507_v50 = vadd.f32 %v20009_v3, %v8506_v18  ;;  %v10351_v56 = vpop.permute.xlu1 %10350  ;;  %14593 = vmatprep.mubr.msk.f32.mxu0 %vm665_vm0, %v8576_v31  ;;  %v9907_v10 = vsel %vm9875_vm13, %v9859_v61, %v9891_v9 }
 0x5d2   :  { %v10410_v1 = vmul.f32 %v19856_v55, %v10351_v56  ;;  %v20086_v15 = vpop.permute.xlu0 %10558  ;;  %14594 = vmatmul.mubr.msk.f32.gmra.mrb[4].mxu0 %vm665_vm0, %v8577_v34  ;;  %14687 = vmatmul.mubr.msk.f32.gmra.mrb[206].mxu1 %vm665_vm0, %v9907_v10  ;;  %v8579_v28 = vmul.f32 %v13223_v0, %v8512_v59  ;;  %v15251_v0 = vmov 15   ;;  %v13226_v10 = vld [vmem:[%s21083_s2 + $0x550] sm:$0xff] }
 0x5d3   :  { %v8578_v47 = vmul.f32 %v13222_v33, %v8507_v50  ;;  %11315 = vperm.xlu1 %15158, %v21813_v48   ;;  %v14575_v24 = vpop.f32.mrb[168].mxu1 }
 0x5d4   :  { %v10506_v35 = vadd.f32 %v10490_v38, %v10410_v1  ;;  %v8522_v8 = vadd.f32 %v20009_v3, %v14575_v24  ;;  %11351 = vperm.xlu0 %15159, %v21814_v49   ;;  %v8516_v61 = vpop.f32.mrb[169].mxu1  ;;  %v21815_v38 = vld [vmem:[#allocation12_spill] sm:$0xff] }
 0x5d5   :  { %v8517_v22 = vadd.f32 %v20009_v3, %v8516_v61  ;;  %v10523_v25 = vpop.permute.xlu1 %10522  ;;  %14596 = vmatprep.mubr.msk.f32.mxu0 %vm665_vm0, %v8578_v47  ;;  %v13227_v1 = vld [vmem:[%s21083_s2 + $0x558] sm:$0xff] }
 0x5d6   :  { %v10602_v31 = vadd.f32 %v10586_v52, %v10506_v35  ;;  %v10585_v37 = vmul.f32 %v19669_v16, %v10523_v25  ;;  %v20104_v26 = vpop.permute.xlu0 %10466  ;;  %14597 = vmatmul.mubr.msk.f32.gmra.mrb[6].mxu0 %vm665_vm0, %v8579_v28  ;;  %v8581_v59 = vmul.f32 %v13225_v60, %v8522_v8  ;;  %v13228_v25 = vld [vmem:[%s21083_s2 + $0x560] sm:$0xff] }
 0x5d7   :  { %v8580_v9 = vmul.f32 %v13224_v17, %v8517_v22  ;;  %11223 = vperm.xlu1 %15158, %v21815_v38   ;;  %v14578_v33 = vpop.f32.mrb[170].mxu1 }
 0x5d8   :  { %v10618_v34 = vadd.f32 %v19790_v20, %v10602_v31  ;;  %v10601_v18 = vadd.f32 %v10585_v37, %v10505_v30  ;;  %15160 = vset.pattern.permute.xlu0 %v15251_v0  ;;  %v8532_v50 = vadd.f32 %v20009_v3, %v14578_v33  ;;  %v8526_v56 = vpop.f32.mrb[171].mxu1  ;;  %v21817_v31 = vld [vmem:[#allocation65_spill] sm:$0xff] }
 0x5d9   :  { %11892 = vperm.xlu0 %15160, %v21805_v41   ;;  %v10355_v52 = vpop.permute.xlu1 %10354  ;;  %14599 = vmatprep.mubr.msk.f32.mxu0 %vm665_vm0, %v8580_v9  ;;  %v8527_v47 = vadd.f32 %v20009_v3, %v8526_v56  ;;  %v10492_v37 = vmul.f32 %v19753_v32, %v21817_v31  ;;  %v13229_v9 = vld [vmem:[%s21083_s2 + $0x568] sm:$0xff]  ;;  %v13231_v31 = vld [vmem:[%s21083_s2 + $0x578] sm:$0xff] }
 0x5da   :  { %v10617_v57 = vadd.f32 %v19790_v20, %v10601_v18  ;;  %v20121_v24 = vpop.permute.xlu0 %10470  ;;  %14600 = vmatmul.mubr.msk.f32.gmra.mrb[8].mxu0 %vm665_vm0, %v8581_v59  ;;  %v10650_v28 = vmul.f32 0.2, %v10618_v34  ;;  %v8583_v61 = vmul.f32 %v13227_v1, %v8532_v50  ;;  %v10411_v17 = vmul.f32 %v19856_v55, %v10355_v52 }
 0x5db   :  { %11227 = vperm.xlu1 %15158, %v21816_v13   ;;  %v8582_v35 = vmul.f32 %v13226_v10, %v8527_v47  ;;  %v14581_v41 = vpop.f32.mrb[172].mxu1  ;;  %vm10634_vm15 = vcmp.gt.f32.partialorder %v10618_v34, 0.0  ;;  %v21819_v10 = vld [vmem:[#allocation27_spill] sm:$0xff]  ;;  %v10588_v52 = vmul.f32 %v19669_v16, %v19902_v45 }
 0x5dc   :  { %vm10633_vm14 = vcmp.gt.f32.partialorder %v10617_v57, 0.0  ;;  %v10649_v8 = vmul.f32 0.2, %v10617_v57  ;;  %v8542_v60 = vadd.f32 %v20009_v3, %v14581_v41  ;;  %v8536_v22 = vpop.f32.mrb[173].mxu1 }
 0x5dd   :  { %11976 = vperm.xlu0 %15160, %v21806_v63   ;;  %v10359_v30 = vpop.permute.xlu1 %10358  ;;  %v8537_v59 = vadd.f32 %v20009_v3, %v8536_v22  ;;  %14602 = vmatprep.mubr.msk.f32.mxu0 %vm665_vm0, %v8582_v35  ;;  %v21818_v63 = vld [vmem:[#allocation62_spill] sm:$0xff]  ;;  %v10666_v35 = vsel %vm10634_vm15, %v10618_v34, %v10650_v28 }
 0x5de   :  { %v10412_v18 = vmul.f32 %v19856_v55, %v10359_v30  ;;  %v20139_v33 = vpop.permute.xlu0 %10566  ;;  %v10665_v50 = vsel %vm10633_vm14, %v10617_v57, %v10649_v8  ;;  %v10491_v56 = vmul.f32 %v19753_v32, %v21818_v63  ;;  %14603 = vmatmul.mubr.msk.f32.gmra.mrb[10].mxu0 %vm665_vm0, %v8583_v61  ;;  %v8585_v30 = vmul.f32 %v13229_v9, %v8542_v60  ;;  %v13230_v61 = vld [vmem:[%s21083_s2 + $0x570] sm:$0xff]  ;;  %v21821_v63 = vld [vmem:[#allocation13_spill] sm:$0xff] }
 0x5df   :  { %11323 = vperm.xlu1 %15158, %v21819_v10   ;;  %v8584_v1 = vmul.f32 %v13228_v25, %v8537_v59  ;;  %v14584_v41 = vpop.f32.mrb[174].mxu1  ;;  %14717 = vmatprep.mubr.msk.f32.mxu1 %vm665_vm0, %v10665_v50 }
 0x5e0   :  { %v10508_v47 = vadd.f32 %v10492_v37, %v10412_v18  ;;  %v10507_v22 = vadd.f32 %v10491_v56, %v10411_v17  ;;  %v8552_v57 = vadd.f32 %v20009_v3, %v14584_v41  ;;  %v8546_v8 = vpop.f32.mrb[175].mxu1  ;;  %14718 = vmatmul.mubr.msk.f32.vlgmr.msra.gmra.mrb[208].mxu1 %vm665_vm0, %v10666_v35 }
 0x5e1   :  { %12072 = vperm.xlu0 %15160, %v21807_v6   ;;  %v10531_v45 = vpop.permute.xlu1 %10530  ;;  %v8547_v34 = vadd.f32 %v20009_v3, %v8546_v8  ;;  %14605 = vmatprep.mubr.msk.f32.mxu0 %vm665_vm0, %v8584_v1  ;;  %v21820_v6 = vld [vmem:[#allocation14_spill] sm:$0xff] }
 0x5e2   :  { %v10604_v25 = vadd.f32 %v10588_v52, %v10508_v47  ;;  %v10587_v28 = vmul.f32 %v19669_v16, %v10531_v45  ;;  %v20162_v17 = vpop.permute.xlu0 %10474  ;;  %14768 = vmatpush3.msra.mxu1 %v19955_v58  ;;  %14606 = vmatmul.mubr.msk.f32.gmra.mrb[12].mxu0 %vm665_vm0, %v8585_v30  ;;  %v8587_v59 = vmul.f32 %v13231_v31, %v8552_v57 }
 0x5e3   :  { %11231 = vperm.xlu1 %15158, %v21820_v6   ;;  %v8586_v37 = vmul.f32 %v13230_v61, %v8547_v34  ;;  %14819 = vmatprep.subr.mxu1 %v19955_v58  ;;  %v10493_v57 = vmul.f32 %v19753_v32, %v19927_v39  ;;  %v21823_v39 = vld [vmem:[#allocation16_spill] sm:$0xff] }
 0x5e4   :  { %v10620_v60 = vadd.f32 %v19790_v20, %v10604_v25  ;;  %v10603_v9 = vadd.f32 %v10587_v28, %v10507_v22  ;;  %v21822_v22 = vld [vmem:[#allocation29_spill] sm:$0xff] }
 0x5e5   :  { %11980 = vperm.xlu0 %15160, %v21808_v46   ;;  %v10363_v16 = vpop.permute.xlu1 %10362  ;;  %14608 = vmatprep.mubr.msk.f32.mxu0 %vm665_vm0, %v8586_v37  ;;  %v10494_v46 = vmul.f32 %v19753_v32, %v19942_v11 }
 0x5e6   :  { %v10619_v18 = vadd.f32 %v19790_v20, %v10603_v9  ;;  %v20172_v50 = vpop.permute.xlu0 %10478  ;;  %14609 = vmatmul.mubr.msk.f32.gmra.mrb[14].mxu0 %vm665_vm0, %v8587_v59  ;;  %v10652_v56 = vmul.f32 0.2, %v10620_v60  ;;  %vm10636_vm2 = vcmp.gt.f32.partialorder %v10620_v60, 0.0  ;;  %v10413_v1 = vmul.f32 %v19856_v55, %v10363_v16 }
 0x5e7   :  { %11235 = vperm.xlu1 %15158, %v21821_v63  }
 0x5e8   :  { %vm10635_vm1 = vcmp.gt.f32.partialorder %v10619_v18, 0.0  ;;  %v10651_v52 = vmul.f32 0.2, %v10619_v18  ;;  %v10668_v30 = vsel %vm10636_vm2, %v10620_v60, %v10652_v56  ;;  %v10509_v45 = vadd.f32 %v10493_v57, %v10413_v1  ;;  %v21825_v1 = vld [vmem:[#allocation31_spill] sm:$0xff] }
 0x5e9   :  { %11984 = vperm.xlu0 %15160, %v21809_v51   ;;  %v10367_v58 = vpop.permute.xlu1 %10366  ;;  %v20190_v51 = vld [vmem:[%s21089_s8] ss:$0 sm:$0xff]  ;;  %v10496_v56 = vmul.f32 %v19753_v32, %v19998_v21 }
 0x5ea   :  { %v10414_v47 = vmul.f32 %v19856_v55, %v10367_v58  ;;  %v20181_v41 = vpop.permute.xlu0 %10574  ;;  %v10667_v35 = vsel %vm10635_vm1, %v10619_v18, %v10651_v52  ;;  %v10590_v11 = vmul.f32 %v20190_v51, %v19964_v14 }
 0x5eb   :  { %11331 = vperm.xlu1 %15158, %v21822_v22   ;;  %14720 = vmatprep.mubr.msk.f32.mxu1 %vm665_vm0, %v10667_v35  ;;  %v10495_v35 = vmul.f32 %v19753_v32, %v19982_v29 }
 0x5ec   :  { %v10510_v8 = vadd.f32 %v10494_v46, %v10414_v47  ;;  %14721 = vmatmul.mubr.msk.f32.gmra.mrb[210].mxu1 %vm665_vm0, %v10668_v30 }
 0x5ed   :  { %12080 = vperm.xlu0 %15160, %v21810_v12   ;;  %v10539_v61 = vpop.permute.xlu1 %10538  ;;  %v21824_v12 = vld [vmem:[#allocation15_spill] sm:$0xff] }
 0x5ee   :  { %v10606_v25 = vadd.f32 %v10590_v11, %v10510_v8  ;;  %v10589_v31 = vmul.f32 %v20190_v51, %v10539_v61  ;;  %v20197_v34 = vpop.permute.xlu0 %10482 }
 0x5ef   :  { %11239 = vperm.xlu1 %15158, %v21823_v39  }
 0x5f0   :  { %v10622_v28 = vadd.f32 %v19790_v20, %v10606_v25  ;;  %v10605_v60 = vadd.f32 %v10589_v31, %v10509_v45  ;;  %v21826_v45 = vld [vmem:[#allocation18_spill] sm:$0xff] }
 0x5f1   :  { %11988 = vperm.xlu0 %15160, %v21811_v7   ;;  %v10371_v14 = vpop.permute.xlu1 %10370 }
 0x5f2   :  { %v10621_v37 = vadd.f32 %v19790_v20, %v10605_v60  ;;  %v20203_v9 = vpop.permute.xlu0 %10486  ;;  %v10654_v59 = vmul.f32 0.2, %v10622_v28  ;;  %vm10638_vm4 = vcmp.gt.f32.partialorder %v10622_v28, 0.0  ;;  %v10415_v52 = vmul.f32 %v19856_v55, %v10371_v14 }
 0x5f3   :  { %11243 = vperm.xlu1 %15158, %v21824_v12  }
 0x5f4   :  { %vm10637_vm3 = vcmp.gt.f32.partialorder %v10621_v37, 0.0  ;;  %v10653_v16 = vmul.f32 0.2, %v10621_v37  ;;  %v10670_v47 = vsel %vm10638_vm4, %v10622_v28, %v10654_v59  ;;  %v10511_v57 = vadd.f32 %v10495_v35, %v10415_v52  ;;  %v21828_v52 = vld [vmem:[#allocation33_spill] sm:$0xff] }
 0x5f5   :  { %11992 = vperm.xlu0 %15160, %v21812_v19   ;;  %v10375_v18 = vpop.permute.xlu1 %10374  ;;  %v10592_v19 = vmul.f32 %v20190_v51, %v20024_v27  ;;  %v10498_v59 = vmul.f32 %v19753_v32, %v20063_v42 }
 0x5f6   :  { %v10416_v7 = vmul.f32 %v19856_v55, %v10375_v18  ;;  %v20211_v58 = vpop.permute.xlu0 %10582  ;;  %v10669_v46 = vsel %vm10637_vm3, %v10621_v37, %v10653_v16 }
 0x5f7   :  { %11339 = vperm.xlu1 %15158, %v21825_v1   ;;  %14723 = vmatprep.mubr.msk.f32.mxu1 %vm665_vm0, %v10669_v46  ;;  %v10497_v46 = vmul.f32 %v19753_v32, %v20043_v5 }
 0x5f8   :  { %v10512_v30 = vadd.f32 %v10496_v56, %v10416_v7  ;;  %14724 = vmatmul.mubr.msk.f32.gmra.mrb[212].mxu1 %vm665_vm0, %v10670_v47 }
 0x5f9   :  { %12088 = vperm.xlu0 %15160, %v21813_v48   ;;  %v10547_v21 = vpop.permute.xlu1 %10546  ;;  %v21827_v48 = vld [vmem:[#allocation17_spill] sm:$0xff] }
 0x5fa   :  { %v10608_v11 = vadd.f32 %v10592_v19, %v10512_v30  ;;  %v10591_v8 = vmul.f32 %v20190_v51, %v10547_v21 }
 0x5fb   :  { %v20222_v61 = vpop.permute.xlu0 %11199  ;;  %11247 = vperm.xlu1 %15158, %v21826_v45  }
 0x5fc   :  { %v10624_v25 = vadd.f32 %v19790_v20, %v10608_v11  ;;  %v10607_v29 = vadd.f32 %v10591_v8, %v10511_v57  ;;  %v21829_v57 = vld [vmem:[#allocation20_spill] sm:$0xff] }
 0x5fd   :  { %11996 = vperm.xlu0 %15160, %v21815_v38   ;;  %v10379_v27 = vpop.permute.xlu1 %10378 }
 0x5fe   :  { %v10623_v31 = vadd.f32 %v19790_v20, %v10607_v29  ;;  %v10656_v60 = vmul.f32 0.2, %v10624_v25  ;;  %vm10640_vm6 = vcmp.gt.f32.partialorder %v10624_v25, 0.0  ;;  %v10417_v16 = vmul.f32 %v19856_v55, %v10379_v27 }
 0x5ff   :  { %v20228_v28 = vpop.permute.xlu0 %11295  ;;  %11251 = vperm.xlu1 %15158, %v21827_v48  }
 0x600   :  { %vm10639_vm5 = vcmp.gt.f32.partialorder %v10623_v31, 0.0  ;;  %v10655_v14 = vmul.f32 0.2, %v10623_v31  ;;  %v10672_v7 = vsel %vm10640_vm6, %v10624_v25, %v10656_v60  ;;  %v10513_v35 = vadd.f32 %v10497_v46, %v10417_v16  ;;  %v20273_v16 = vld [vmem:[%s21093_s12 + $0x60] sm:$0xff] }
 0x601   :  { %12000 = vperm.xlu0 %15160, %v21816_v13   ;;  %v10383_v37 = vpop.permute.xlu1 %10382  ;;  %v10594_v13 = vmul.f32 %v20190_v51, %v20086_v15  ;;  %14689 = vmatprep.subr.mxu0 %v20273_v16 }
 0x602   :  { %v10418_v38 = vmul.f32 %v19856_v55, %v10383_v37  ;;  %v10671_v18 = vsel %vm10639_vm5, %v10623_v31, %v10655_v14  ;;  %v20260_v31 = vld [vmem:[%s21088_s7] ss:$0 sm:$0xff] }
 0x603   :  { %v20236_v56 = vpop.permute.xlu0 %11127  ;;  %11347 = vperm.xlu1 %15158, %v21828_v52   ;;  %14726 = vmatprep.mubr.msk.f32.mxu1 %vm665_vm0, %v10671_v18 }
 0x604   :  { %v10514_v47 = vadd.f32 %v10498_v59, %v10418_v38  ;;  %14727 = vmatmul.mubr.msk.f32.gmra.mrb[214].mxu1 %vm665_vm0, %v10672_v7  ;;  %v21831_v59 = vld [vmem:[#allocation35_spill] sm:$0xff]  ;;  %v10596_v38 = vmul.f32 %v20190_v51, %v20139_v33 }
 0x605   :  { %12096 = vperm.xlu0 %15160, %v21819_v10   ;;  %v10555_v42 = vpop.permute.xlu1 %10554  ;;  %v21830_v10 = vld [vmem:[#allocation19_spill] sm:$0xff] }
 0x606   :  { %v10610_v19 = vadd.f32 %v10594_v13, %v10514_v47  ;;  %v10593_v30 = vmul.f32 %v20190_v51, %v10555_v42 }
 0x607   :  { %v20247_v21 = vpop.permute.xlu0 %11131  ;;  %11255 = vperm.xlu1 %15158, %v21829_v57  }
 0x608   :  { %v10626_v11 = vadd.f32 %v19790_v20, %v10610_v19  ;;  %v10609_v32 = vadd.f32 %v10593_v30, %v10513_v35  ;;  %v21832_v19 = vld [vmem:[#allocation6_spill] sm:$0xff] }
 0x609   :  { %12004 = vperm.xlu0 %15160, %v21820_v6   ;;  %v10387_v5 = vpop.permute.xlu1 %10386  ;;  %v10500_v6 = vmul.f32 %v20260_v31, %v20121_v24  ;;  %v10499_v24 = vmul.f32 %v20260_v31, %v20104_v26  ;;  %v20289_v26 = vld [vmem:[%s21090_s9] ss:$0 sm:$0xff] }
 0x60a   :  { %v10625_v15 = vadd.f32 %v19790_v20, %v10609_v32  ;;  %v10658_v25 = vmul.f32 0.2, %v10626_v11  ;;  %vm10642_vm8 = vcmp.gt.f32.partialorder %v10626_v11, 0.0  ;;  %v10419_v20 = vmul.f32 %v19856_v55, %v10387_v5 }
 0x60b   :  { %v20253_v8 = vpop.permute.xlu0 %11303  ;;  %11259 = vperm.xlu1 %15158, %v21830_v10  }
 0x60c   :  { %vm10641_vm7 = vcmp.gt.f32.partialorder %v10625_v15, 0.0  ;;  %v10657_v29 = vmul.f32 0.2, %v10625_v15  ;;  %v10515_v46 = vadd.f32 %v10499_v24, %v10419_v20 }
 0x60d   :  { %12008 = vperm.xlu0 %15160, %v21821_v63   ;;  %v10391_v27 = vpop.permute.xlu1 %10390  ;;  %v10674_v63 = vsel %vm10642_vm8, %v10626_v11, %v10658_v25 }
 0x60e   :  { %v10420_v60 = vmul.f32 %v19856_v55, %v10391_v27  ;;  %v10673_v14 = vsel %vm10641_vm7, %v10625_v15, %v10657_v29  ;;  %v10502_v15 = vmul.f32 %v20260_v31, %v20172_v50 }
 0x60f   :  { %v20266_v37 = vpop.permute.xlu0 %11135  ;;  %11355 = vperm.xlu1 %15158, %v21831_v59   ;;  %14729 = vmatprep.mubr.msk.f32.mxu1 %vm665_vm0, %v10673_v14 }
 0x610   :  { %v10516_v18 = vadd.f32 %v10500_v6, %v10420_v60  ;;  %14730 = vmatmul.mubr.msk.f32.gmra.mrb[216].mxu1 %vm665_vm0, %v10674_v63  ;;  %v21833_v60 = vld [vmem:[#allocation22_spill] sm:$0xff] }
 0x611   :  { %12104 = vperm.xlu0 %15160, %v21822_v22   ;;  %v10563_v7 = vpop.permute.xlu1 %10562 }
 0x612   :  { %v10612_v13 = vadd.f32 %v10596_v38, %v10516_v18  ;;  %v10595_v47 = vmul.f32 %v20190_v51, %v10563_v7  ;;  %v21834_v7 = vld [vmem:[#allocation38_spill] sm:$0xff] }
 0x613   :  { %v20283_v42 = vpop.permute.xlu0 %11139  ;;  %15161 = vset.pattern.permute.xlu1 %v15251_v0 }
 0x614   :  { %v10628_v33 = vadd.f32 %v20289_v26, %v10612_v13  ;;  %v10611_v35 = vadd.f32 %v10595_v47, %v10515_v46  ;;  %11972 = vperm.xlu1 %15161, %v21832_v19   ;;  %v21835_v47 = vld [vmem:[#allocation40_spill] sm:$0xff] }
 0x615   :  { %12012 = vperm.xlu0 %15160, %v21823_v39   ;;  %v10395_v22 = vpop.permute.xlu1 %10394 }
 0x616   :  { %v10627_v30 = vadd.f32 %v20289_v26, %v10611_v35  ;;  %v10660_v32 = vmul.f32 0.2, %v10628_v33  ;;  %vm10644_vm10 = vcmp.gt.f32.partialorder %v10628_v33, 0.0  ;;  %v10421_v25 = vmul.f32 %v19856_v55, %v10395_v22 }
 0x617   :  { %v20295_v11 = vpop.permute.xlu0 %11311  ;;  %v10504_v22 = vmul.f32 %v20260_v31, %v20203_v9  ;;  %v10503_v9 = vmul.f32 %v20260_v31, %v20197_v34 }
 0x618   :  { %11896 = vperm.xlu1 %15161, %v21773_v44   ;;  %vm10643_vm9 = vcmp.gt.f32.partialorder %v10627_v30, 0.0  ;;  %v10659_v0 = vmul.f32 0.2, %v10627_v30  ;;  %v10676_v6 = vsel %vm10644_vm10, %v10628_v33, %v10660_v32  ;;  %v10501_v44 = vmul.f32 %v20260_v31, %v20162_v17 }
 0x619   :  { %12016 = vperm.xlu0 %15160, %v21824_v12   ;;  %v10399_v5 = vpop.permute.xlu1 %10398  ;;  %v10598_v12 = vmul.f32 %v20190_v51, %v20181_v41 }
 0x61a   :  { %v10422_v39 = vmul.f32 %v19856_v55, %v10399_v5  ;;  %v10675_v29 = vsel %vm10643_vm9, %v10627_v30, %v10659_v0  ;;  %v10517_v14 = vadd.f32 %v10501_v44, %v10421_v25  ;;  %v13265_v0 = vld [vmem:[%s21083_s2 + $0x580] sm:$0xff]  ;;  %v21836_v44 = vld [vmem:[#allocation24_spill] sm:$0xff] }
 0x61b   :  { %v20303_v27 = vpop.permute.xlu0 %11143  ;;  %14732 = vmatprep.mubr.msk.f32.mxu1 %vm665_vm0, %v10675_v29 }
 0x61c   :  { %v10518_v20 = vadd.f32 %v10502_v15, %v10422_v39  ;;  %12068 = vperm.xlu1 %15161, %v21833_v60   ;;  %14733 = vmatmul.mubr.msk.f32.gmra.mrb[218].mxu1 %vm665_vm0, %v10676_v6  ;;  %v13266_v6 = vld [vmem:[%s21083_s2 + $0x588] sm:$0xff] }
 0x61d   :  { %12112 = vperm.xlu0 %15160, %v21825_v1   ;;  %v10571_v50 = vpop.permute.xlu1 %10570 }
 0x61e   :  { %v10614_v63 = vadd.f32 %v10598_v12, %v10518_v20  ;;  %v10597_v24 = vmul.f32 %v20190_v51, %v10571_v50 }
 0x61f   :  { %v20314_v38 = vpop.permute.xlu0 %11147 }
 0x620   :  { %v10630_v18 = vadd.f32 %v20289_v26, %v10614_v63  ;;  %v10613_v17 = vadd.f32 %v10597_v24, %v10517_v14  ;;  %11900 = vperm.xlu1 %15161, %v21834_v7  }
 0x621   :  { %12020 = vperm.xlu0 %15160, %v21826_v45   ;;  %v10403_v41 = vpop.permute.xlu1 %10402 }
 0x622   :  { %v10629_v46 = vadd.f32 %v20289_v26, %v10613_v17  ;;  %v10662_v1 = vmul.f32 0.2, %v10630_v18  ;;  %vm10646_vm12 = vcmp.gt.f32.partialorder %v10630_v18, 0.0  ;;  %v10423_v45 = vmul.f32 %v19856_v55, %v10403_v41 }
 0x623   :  { %v20320_v13 = vpop.permute.xlu0 %11319 }
 0x624   :  { %11904 = vperm.xlu1 %15161, %v21835_v47   ;;  %vm10645_vm11 = vcmp.gt.f32.partialorder %v10629_v46, 0.0  ;;  %v10661_v33 = vmul.f32 0.2, %v10629_v46  ;;  %v10678_v39 = vsel %vm10646_vm12, %v10630_v18, %v10662_v1  ;;  %v10519_v50 = vadd.f32 %v10503_v9, %v10423_v45  ;;  %v21837_v1 = vld [vmem:[#allocation41_spill] sm:$0xff] }
 0x625   :  { %12024 = vperm.xlu0 %15160, %v21827_v48   ;;  %v10407_v35 = vpop.permute.xlu1 %10406  ;;  %v14615_v19 = vpop.f32.mrb[176].mxu1  ;;  %v11262_v47 = vmul.f32 %v20260_v31, %v20222_v61 }
 0x626   :  { %v10424_v30 = vmul.f32 %v19856_v55, %v10407_v35  ;;  %v9249_v32 = vpop.f32.mrb[177].mxu1  ;;  %v10677_v5 = vsel %vm10645_vm11, %v10629_v46, %v10661_v33  ;;  %v9255_v15 = vadd.f32 %v20009_v3, %v14615_v19  ;;  %v10600_v55 = vmul.f32 %v20190_v51, %v20211_v58  ;;  %v13267_v58 = vld [vmem:[%s21083_s2 + $0x590] sm:$0xff]  ;;  %v13268_v46 = vld [vmem:[%s21083_s2 + $0x598] sm:$0xff] }
 0x627   :  { %v9250_v25 = vadd.f32 %v20009_v3, %v9249_v32  ;;  %v20333_v48 = vpop.permute.xlu0 %11151  ;;  %14735 = vmatprep.mubr.msk.f32.mxu1 %vm665_vm0, %v10677_v5  ;;  %v11358_v19 = vmul.f32 %v20190_v51, %v20228_v28  ;;  %v20378_v28 = vld [vmem:[%s21087_s6] ss:$0 sm:$0xff] }
 0x628   :  { %v10520_v29 = vadd.f32 %v10504_v22, %v10424_v30  ;;  %12076 = vperm.xlu1 %15161, %v21836_v44   ;;  %14736 = vmatmul.mubr.msk.f32.gmra.mrb[220].mxu1 %vm665_vm0, %v10678_v39  ;;  %v9346_v24 = vmul.f32 %v13266_v6, %v9255_v15 }
 0x629   :  { %v9345_v12 = vmul.f32 %v13265_v0, %v9250_v25  ;;  %12120 = vperm.xlu0 %15160, %v21828_v52   ;;  %v10579_v20 = vpop.permute.xlu1 %10578  ;;  %v14618_v60 = vpop.f32.mrb[178].mxu1  ;;  %v13269_v0 = vld [vmem:[%s21083_s2 + $0x5a0] sm:$0xff] }
 0x62a   :  { %v10616_v14 = vadd.f32 %v10600_v55, %v10520_v29  ;;  %v10599_v34 = vmul.f32 %v20190_v51, %v10579_v20  ;;  %v9259_v63 = vpop.f32.mrb[179].mxu1  ;;  %v9265_v18 = vadd.f32 %v20009_v3, %v14618_v60 }
 0x62b   :  { %v9260_v17 = vadd.f32 %v20009_v3, %v9259_v63  ;;  %v20352_v7 = vpop.permute.xlu0 %11155  ;;  %14639 = vmatprep.mubr.msk.f32.mxu0 %vm665_vm0, %v9345_v12  ;;  %v13272_v63 = vld [vmem:[%s21083_s2 + $0x5b8] sm:$0xff] }
 0x62c   :  { %v10632_v52 = vadd.f32 %v20289_v26, %v10616_v14  ;;  %v10615_v41 = vadd.f32 %v10599_v34, %v10519_v50  ;;  %11908 = vperm.xlu1 %15161, %v21837_v1   ;;  %14640 = vmatmul.mubr.msk.f32.vlgmr.msra.gmra.mrb[0].mxu0 %vm665_vm0, %v9346_v24  ;;  %v9348_v61 = vmul.f32 %v13268_v46, %v9265_v18  ;;  %v13271_v50 = vld [vmem:[%s21083_s2 + $0x5b0] sm:$0xff]  ;;  %v21839_v18 = vld [vmem:[#allocation26_spill] sm:$0xff] }
 0x62d   :  { %v9347_v33 = vmul.f32 %v13267_v58, %v9260_v17  ;;  %12028 = vperm.xlu0 %15160, %v21829_v57   ;;  %v14621_v35 = vpop.f32.mrb[180].mxu1  ;;  %14690 = vmatpush3.msra.mxu0 %v20273_v16  ;;  %v13270_v57 = vld [vmem:[%s21083_s2 + $0x5a8] sm:$0xff] }
 0x62e   :  { %v10631_v22 = vadd.f32 %v20289_v26, %v10615_v41  ;;  %v9275_v45 = vadd.f32 %v20009_v3, %v14621_v35  ;;  %v11120_v30 = vpop.permute.xlu1 %11119  ;;  %v9269_v32 = vpop.f32.mrb[181].mxu1  ;;  %v10664_v39 = vmul.f32 0.2, %v10632_v52  ;;  %v21838_v16 = vld [vmem:[#allocation42_spill] sm:$0xff]  ;;  %vm10648_vm14 = vcmp.gt.f32.partialorder %v10632_v52, 0.0 }
 0x62f   :  { %v11182_v5 = vmul.f32 %v20378_v28, %v11120_v30  ;;  %v9270_v15 = vadd.f32 %v20009_v3, %v9269_v32  ;;  %v20382_v25 = vpop.permute.xlu0 %11327  ;;  %14642 = vmatprep.mubr.msk.f32.mxu0 %vm665_vm0, %v9347_v33  ;;  %v13274_v30 = vld [vmem:[%s21083_s2 + $0x5c8] sm:$0xff]  ;;  %v21840_v32 = vld [vmem:[#allocation43_spill] sm:$0xff] }
 0x630   :  { %11912 = vperm.xlu1 %15161, %v21838_v16   ;;  %vm10647_vm13 = vcmp.gt.f32.partialorder %v10631_v22, 0.0  ;;  %v10663_v9 = vmul.f32 0.2, %v10631_v22  ;;  %14643 = vmatmul.mubr.msk.f32.gmra.mrb[2].mxu0 %vm665_vm0, %v9348_v61  ;;  %v9350_v44 = vmul.f32 %v13270_v57, %v9275_v45 }
 0x631   :  { %v11278_v55 = vadd.f32 %v11262_v47, %v11182_v5  ;;  %v9349_v29 = vmul.f32 %v13269_v0, %v9270_v15  ;;  %12032 = vperm.xlu0 %15160, %v21830_v10   ;;  %v14624_v6 = vpop.f32.mrb[182].mxu1  ;;  %v10680_v10 = vsel %vm10648_vm14, %v10632_v52, %v10664_v39  ;;  %v13273_v52 = vld [vmem:[%s21083_s2 + $0x5c0] sm:$0xff]  ;;  %v20424_v5 = vld [vmem:[%s21093_s12 + $0x68] sm:$0xff] }
 0x632   :  { %v9285_v12 = vadd.f32 %v20009_v3, %v14624_v6  ;;  %v11124_v20 = vpop.permute.xlu1 %11123  ;;  %v9279_v60 = vpop.f32.mrb[183].mxu1  ;;  %v10679_v14 = vsel %vm10647_vm13, %v10631_v22, %v10663_v9  ;;  %14741 = vmatprep.subr.mxu0 %v20424_v5 }
 0x633   :  { %v11374_v34 = vadd.f32 %v11358_v19, %v11278_v55  ;;  %v9280_v58 = vadd.f32 %v20009_v3, %v9279_v60  ;;  %v20396_v24 = vpop.permute.xlu0 %11159  ;;  %14645 = vmatprep.mubr.msk.f32.mxu0 %vm665_vm0, %v9349_v29  ;;  %14738 = vmatprep.mubr.msk.f32.mxu1 %vm665_vm0, %v10679_v14  ;;  %v11183_v0 = vmul.f32 %v20378_v28, %v11124_v20  ;;  %v21841_v20 = vld [vmem:[#allocation44_spill] sm:$0xff] }
 0x634   :  { %12084 = vperm.xlu1 %15161, %v21839_v18   ;;  %14739 = vmatmul.mubr.msk.f32.gmra.mrb[222].mxu1 %vm665_vm0, %v10680_v10  ;;  %v9352_v1 = vmul.f32 %v13272_v63, %v9285_v12  ;;  %v13275_v12 = vld [vmem:[%s21083_s2 + $0x5d0] sm:$0xff]  ;;  %v13276_v60 = vld [vmem:[%s21083_s2 + $0x5d8] sm:$0xff]  ;;  %v11184_v63 = vmul.f32 %v20378_v28, %v20236_v56 }
 0x635   :  { %v11390_v17 = vadd.f32 %v20289_v26, %v11374_v34  ;;  %v9351_v41 = vmul.f32 %v13271_v50, %v9280_v58  ;;  %14646 = vmatmul.mubr.msk.f32.gmra.mrb[4].mxu0 %vm665_vm0, %v9350_v44  ;;  %12128 = vperm.xlu0 %15160, %v21831_v59   ;;  %v14627_v46 = vpop.f32.mrb[184].mxu1  ;;  %v21842_v56 = vld [vmem:[#allocation28_spill] sm:$0xff] }
 0x636   :  { %v9295_v47 = vadd.f32 %v20009_v3, %v14627_v46  ;;  %v11204_v33 = vpop.permute.xlu1 %11203  ;;  %v9289_v35 = vpop.f32.mrb[185].mxu1  ;;  %v11360_v46 = vmul.f32 %v20190_v51, %v20253_v8 }
 0x637   :  { %v11263_v19 = vmul.f32 %v20260_v31, %v11204_v33  ;;  %v9290_v22 = vadd.f32 %v20009_v3, %v9289_v35  ;;  %v20412_v45 = vpop.permute.xlu0 %11163  ;;  %14648 = vmatprep.mubr.msk.f32.mxu0 %vm665_vm0, %v9351_v41  ;;  %vm11406_vm15 = vcmp.gt.f32.partialorder %v11390_v17, 0.0  ;;  %v11422_v59 = vmul.f32 0.2, %v11390_v17  ;;  %v13277_v35 = vld [vmem:[%s21083_s2 + $0x5e0] sm:$0xff] }
 0x638   :  { %11916 = vperm.xlu1 %15161, %v21840_v32   ;;  %v9354_v39 = vmul.f32 %v13274_v30, %v9295_v47 }
 0x639   :  { %v9353_v61 = vmul.f32 %v13273_v52, %v9290_v22  ;;  %14649 = vmatmul.mubr.msk.f32.gmra.mrb[6].mxu0 %vm665_vm0, %v9352_v1  ;;  %v11438_v57 = vsel %vm11406_vm15, %v11390_v17, %v11422_v59  ;;  %v11279_v16 = vadd.f32 %v11263_v19, %v11183_v0  ;;  %v13278_v19 = vld [vmem:[%s21083_s2 + $0x5e8] sm:$0xff] }
 0x63a   :  { %v11300_v15 = vpop.permute.xlu1 %11299  ;;  %14769 = vmatprep.mubr.msk.f32.mxu1 %vm665_vm0, %v11438_v57  ;;  %v14630_v9 = vpop.f32.mrb[186].mxu1 }
 0x63b   :  { %v11359_v55 = vmul.f32 %v20190_v51, %v11300_v15  ;;  %v20429_v29 = vpop.permute.xlu0 %11335  ;;  %14651 = vmatprep.mubr.msk.f32.mxu0 %vm665_vm0, %v9353_v61  ;;  %v9305_v6 = vadd.f32 %v20009_v3, %v14630_v9  ;;  %v9299_v44 = vpop.f32.mrb[187].mxu1 }
 0x63c   :  { %11920 = vperm.xlu1 %15161, %v21841_v20   ;;  %v9300_v14 = vadd.f32 %v20009_v3, %v9299_v44  ;;  %v21843_v44 = vld [vmem:[#allocation45_spill] sm:$0xff]  ;;  %v13280_v20 = vld [vmem:[%s21083_s2 + $0x5f8] sm:$0xff] }
 0x63d   :  { %v11375_v50 = vadd.f32 %v11359_v55, %v11279_v16  ;;  %14652 = vmatmul.mubr.msk.f32.gmra.mrb[8].mxu0 %vm665_vm0, %v9354_v39  ;;  %v9356_v1 = vmul.f32 %v13276_v60, %v9305_v6  ;;  %v11185_v39 = vmul.f32 %v20378_v28, %v20247_v21  ;;  %v13279_v6 = vld [vmem:[%s21083_s2 + $0x5f0] sm:$0xff]  ;;  %v15205_v60 = vld [vmem:[%s21091_s10] sm:$0xff] }
 0x63e   :  { %v11208_v34 = vpop.permute.xlu1 %11207  ;;  %v9355_v10 = vmul.f32 %v13275_v12, %v9300_v14  ;;  %v14633_v18 = vpop.f32.mrb[188].mxu1 }
 0x63f   :  { %v11391_v58 = vadd.f32 %v20289_v26, %v11375_v50  ;;  %v11264_v17 = vmul.f32 %v20260_v31, %v11208_v34  ;;  %v20446_v41 = vpop.permute.xlu0 %11167  ;;  %v9315_v47 = vadd.f32 %v20009_v3, %v14633_v18  ;;  %v9309_v33 = vpop.f32.mrb[189].mxu1 }
 0x640   :  { %12092 = vperm.xlu1 %15161, %v21842_v56   ;;  %v9310_v59 = vadd.f32 %v20009_v3, %v9309_v33  ;;  %14654 = vmatprep.mubr.msk.f32.mxu0 %vm665_vm0, %v9355_v10  ;;  %v11362_v56 = vmul.f32 %v20190_v51, %v20295_v11 }
 0x641   :  { %vm11407_vm1 = vcmp.gt.f32.partialorder %v11391_v58, 0.0  ;;  %v11423_v52 = vmul.f32 0.2, %v11391_v58  ;;  %v11280_v22 = vadd.f32 %v11264_v17, %v11184_v63  ;;  %14655 = vmatmul.mubr.msk.f32.gmra.mrb[10].mxu0 %vm665_vm0, %v9356_v1  ;;  %v9358_v16 = vmul.f32 %v13278_v19, %v9315_v47 }
 0x642   :  { %v11212_v8 = vpop.permute.xlu1 %11211  ;;  %v9357_v32 = vmul.f32 %v13277_v35, %v9310_v59  ;;  %v14636_v0 = vpop.f32.mrb[190].mxu1  ;;  %v11186_v47 = vmul.f32 %v20378_v28, %v20266_v37 }
 0x643   :  { %v11376_v30 = vadd.f32 %v11360_v46, %v11280_v22  ;;  %v11265_v61 = vmul.f32 %v20260_v31, %v11212_v8  ;;  %v20462_v57 = vpop.permute.xlu0 %11171  ;;  %v11439_v15 = vsel %vm11407_vm1, %v11391_v58, %v11423_v52  ;;  %v9325_v9 = vadd.f32 %v20009_v3, %v14636_v0  ;;  %v9319_v55 = vpop.f32.mrb[191].mxu1 }
 0x644   :  { %11924 = vperm.xlu1 %15161, %v21843_v44   ;;  %14770 = vmatmul.mubr.msk.f32.vlgmr.msra.gmra.mrb[224].mxu1 %vm665_vm0, %v11439_v15  ;;  %v9320_v21 = vadd.f32 %v20009_v3, %v9319_v55  ;;  %v21844_v3 = vld [vmem:[#allocation46_spill] sm:$0xff]  ;;  %v11364_v44 = vmul.f32 %v20190_v51, %v20320_v13 }
 0x645   :  { %v11392_v12 = vadd.f32 %v20289_v26, %v11376_v30  ;;  %14657 = vmatprep.mubr.msk.f32.mxu0 %vm665_vm0, %v9357_v32  ;;  %14820 = vmatpush3.msra.mxu1 %v15205_v60  ;;  %v11281_v50 = vadd.f32 %v11265_v61, %v11185_v39  ;;  %v9360_v18 = vmul.f32 %v13280_v20, %v9325_v9 }
 0x646   :  { %14658 = vmatmul.mubr.msk.f32.gmra.mrb[12].mxu0 %vm665_vm0, %v9358_v16  ;;  %v11308_v14 = vpop.permute.xlu1 %11307  ;;  %v9359_v34 = vmul.f32 %v13279_v6, %v9320_v21 }
 0x647   :  { %v11361_v63 = vmul.f32 %v20190_v51, %v11308_v14  ;;  %v20483_v58 = vpop.permute.xlu0 %11343  ;;  %vm11408_vm2 = vcmp.gt.f32.partialorder %v11392_v12, 0.0  ;;  %v11424_v10 = vmul.f32 0.2, %v11392_v12 }
 0x648   :  { %11928 = vperm.xlu1 %15161, %v21844_v3   ;;  %14660 = vmatprep.mubr.msk.f32.mxu0 %vm665_vm0, %v9359_v34 }
 0x649   :  { %v11377_v17 = vadd.f32 %v11361_v63, %v11281_v50  ;;  %v11440_v46 = vsel %vm11408_vm2, %v11392_v12, %v11424_v10 }
 0x64a   :  { %14661 = vmatmul.mubr.msk.f32.gmra.mrb[14].mxu0 %vm665_vm0, %v9360_v18  ;;  %v11216_v1 = vpop.permute.xlu1 %11215  ;;  %14772 = vmatprep.mubr.msk.f32.mxu1 %vm665_vm0, %v11440_v46 }
 0x64b   :  { %v11393_v33 = vadd.f32 %v20289_v26, %v11377_v17  ;;  %v11266_v35 = vmul.f32 %v20260_v31, %v11216_v1  ;;  %v20496_v19 = vpop.permute.xlu0 %11175 }
 0x64c   :  { %12100 = vperm.xlu1 %15161, %v21789_v4   ;;  %v11187_v4 = vmul.f32 %v20378_v28, %v20283_v42  ;;  %v11188_v42 = vmul.f32 %v20378_v28, %v20303_v27 }
 0x64d   :  { %v11282_v52 = vadd.f32 %v11266_v35, %v11186_v47  ;;  %vm11409_vm3 = vcmp.gt.f32.partialorder %v11393_v33, 0.0  ;;  %v11425_v22 = vmul.f32 0.2, %v11393_v33  ;;  %v11366_v47 = vmul.f32 %v20190_v51, %v20382_v25 }
 0x64e   :  { %v11220_v59 = vpop.permute.xlu1 %11219 }
 0x64f   :  { %v11378_v8 = vadd.f32 %v11362_v56, %v11282_v52  ;;  %v11267_v30 = vmul.f32 %v20260_v31, %v11220_v59  ;;  %v11441_v32 = vsel %vm11409_vm3, %v11393_v33, %v11425_v22  ;;  %v20504_v61 = vpop.permute.xlu0 %11179 }
 0x650   :  { %11932 = vperm.xlu1 %15161, %v21790_v54   ;;  %14773 = vmatmul.mubr.msk.f32.gmra.mrb[226].mxu1 %vm665_vm0, %v11441_v32 }
 0x651   :  { %v11394_v37 = vadd.f32 %v20289_v26, %v11378_v8  ;;  %v11283_v0 = vadd.f32 %v11267_v30, %v11187_v4 }
 0x652   :  { %v11316_v11 = vpop.permute.xlu1 %11315 }
 0x653   :  { %v11363_v15 = vmul.f32 %v20190_v51, %v11316_v11  ;;  %vm11410_vm4 = vcmp.gt.f32.partialorder %v11394_v37, 0.0  ;;  %v11426_v39 = vmul.f32 0.2, %v11394_v37  ;;  %v20516_v12 = vpop.permute.xlu0 %11351 }
 0x654   :  { %11936 = vperm.xlu1 %15161, %v21791_v53  }
 0x655   :  { %v11379_v16 = vadd.f32 %v11363_v15, %v11283_v0  ;;  %v11442_v9 = vsel %vm11410_vm4, %v11394_v37, %v11426_v39  ;;  %v11368_v39 = vmul.f32 %v20190_v51, %v20429_v29 }
 0x656   :  { %v11224_v54 = vpop.permute.xlu1 %11223  ;;  %14775 = vmatprep.mubr.msk.f32.mxu1 %vm665_vm0, %v11442_v9 }
 0x657   :  { %v11395_v55 = vadd.f32 %v20289_v26, %v11379_v16  ;;  %v11268_v6 = vmul.f32 %v20260_v31, %v11224_v54 }
 0x658   :  { %12108 = vperm.xlu1 %15161, %v21792_v23   ;;  %v11189_v23 = vmul.f32 %v20378_v28, %v20314_v38  ;;  %v20524_v34 = vpop.permute.xlu0 %11892  ;;  %v11190_v38 = vmul.f32 %v20378_v28, %v20333_v48 }
 0x659   :  { %v11284_v53 = vadd.f32 %v11268_v6, %v11188_v42  ;;  %vm11411_vm5 = vcmp.gt.f32.partialorder %v11395_v55, 0.0  ;;  %v11427_v20 = vmul.f32 0.2, %v11395_v55 }
 0x65a   :  { %v11228_v21 = vpop.permute.xlu1 %11227 }
 0x65b   :  { %v11380_v60 = vadd.f32 %v11364_v44, %v11284_v53  ;;  %v11269_v50 = vmul.f32 %v20260_v31, %v11228_v21  ;;  %v11443_v14 = vsel %vm11411_vm5, %v11395_v55, %v11427_v20 }
 0x65c   :  { %11940 = vperm.xlu1 %15161, %v21793_v43   ;;  %14776 = vmatmul.mubr.msk.f32.gmra.mrb[228].mxu1 %vm665_vm0, %v11443_v14  ;;  %v20536_v33 = vpop.permute.xlu0 %11976 }
 0x65d   :  { %v11396_v27 = vadd.f32 %v20289_v26, %v11380_v60  ;;  %v11285_v63 = vadd.f32 %v11269_v50, %v11189_v23  ;;  %v11194_v23 = vmul.f32 %v20378_v28, %v20446_v41  ;;  %v11195_v41 = vmul.f32 %v20378_v28, %v20462_v57 }
 0x65e   :  { %v11324_v13 = vpop.permute.xlu1 %11323 }
 0x65f   :  { %v11365_v10 = vmul.f32 %v20190_v51, %v11324_v13  ;;  %vm11412_vm6 = vcmp.gt.f32.partialorder %v11396_v27, 0.0  ;;  %v11428_v18 = vmul.f32 0.2, %v11396_v27  ;;  %v11370_v13 = vmul.f32 %v20190_v51, %v20483_v58 }
 0x660   :  { %11944 = vperm.xlu1 %15161, %v21794_v2   ;;  %v20544_v8 = vpop.permute.xlu0 %12072 }
 0x661   :  { %v11381_v3 = vadd.f32 %v11365_v10, %v11285_v63  ;;  %v11444_v17 = vsel %vm11412_vm6, %v11396_v27, %v11428_v18 }
 0x662   :  { %v11232_v43 = vpop.permute.xlu1 %11231  ;;  %14778 = vmatprep.mubr.msk.f32.mxu1 %vm665_vm0, %v11444_v17 }
 0x663   :  { %v11397_v46 = vadd.f32 %v20289_v26, %v11381_v3  ;;  %v11270_v1 = vmul.f32 %v20260_v31, %v11232_v43 }
 0x664   :  { %12116 = vperm.xlu1 %15161, %v21795_v62   ;;  %v11191_v62 = vmul.f32 %v20378_v28, %v20352_v7  ;;  %v11192_v7 = vmul.f32 %v20378_v28, %v20396_v24  ;;  %v20556_v16 = vpop.permute.xlu0 %11980  ;;  %v11193_v24 = vmul.f32 %v20378_v28, %v20412_v45 }
 0x665   :  { %v11286_v2 = vadd.f32 %v11270_v1, %v11190_v38  ;;  %vm11413_vm7 = vcmp.gt.f32.partialorder %v11397_v46, 0.0  ;;  %v11429_v35 = vmul.f32 0.2, %v11397_v46 }
 0x666   :  { %v11236_v56 = vpop.permute.xlu1 %11235 }
 0x667   :  { %v11382_v52 = vadd.f32 %v11366_v47, %v11286_v2  ;;  %v11271_v22 = vmul.f32 %v20260_v31, %v11236_v56  ;;  %v11445_v59 = vsel %vm11413_vm7, %v11397_v46, %v11429_v35 }
 0x668   :  { %11948 = vperm.xlu1 %15161, %v21796_v36   ;;  %14779 = vmatmul.mubr.msk.f32.gmra.mrb[230].mxu1 %vm665_vm0, %v11445_v59  ;;  %v20563_v53 = vpop.permute.xlu0 %11984  ;;  %v11196_v59 = vmul.f32 %v20378_v28, %v20496_v19 }
 0x669   :  { %v11398_v48 = vadd.f32 %v20289_v26, %v11382_v52  ;;  %v11287_v30 = vadd.f32 %v11271_v22, %v11191_v62 }
 0x66a   :  { %v11332_v25 = vpop.permute.xlu1 %11331 }
 0x66b   :  { %v11367_v32 = vmul.f32 %v20190_v51, %v11332_v25  ;;  %vm11414_vm8 = vcmp.gt.f32.partialorder %v11398_v48, 0.0  ;;  %v11430_v4 = vmul.f32 0.2, %v11398_v48 }
 0x66c   :  { %11952 = vperm.xlu1 %15161, %v21798_v40   ;;  %v20573_v63 = vpop.permute.xlu0 %12080 }
 0x66d   :  { %v11383_v37 = vadd.f32 %v11367_v32, %v11287_v30  ;;  %v11446_v11 = vsel %vm11414_vm8, %v11398_v48, %v11430_v4  ;;  %v11372_v48 = vmul.f32 %v20190_v51, %v20516_v12 }
 0x66e   :  { %v11240_v36 = vpop.permute.xlu1 %11239  ;;  %14781 = vmatprep.mubr.msk.f32.mxu1 %vm665_vm0, %v11446_v11 }
 0x66f   :  { %v11399_v0 = vadd.f32 %v20289_v26, %v11383_v37  ;;  %v11272_v15 = vmul.f32 %v20260_v31, %v11240_v36  ;;  %v20595_v37 = vld [vmem:[%s21092_s11] ss:$0 sm:$0xff] }
 0x670   :  { %12124 = vperm.xlu1 %15161, %v21814_v49   ;;  %v20580_v47 = vpop.permute.xlu0 %11988 }
 0x671   :  { %v11288_v40 = vadd.f32 %v11272_v15, %v11192_v7  ;;  %vm11415_vm9 = vcmp.gt.f32.partialorder %v11399_v0, 0.0  ;;  %v11431_v9 = vmul.f32 0.2, %v11399_v0  ;;  %v13314_v7 = vld [vmem:[%s21083_s2 + $0x600] sm:$0xff] }
 0x672   :  { %v11244_v54 = vpop.permute.xlu1 %11243 }
 0x673   :  { %v11384_v42 = vadd.f32 %v11368_v39, %v11288_v40  ;;  %v11273_v55 = vmul.f32 %v20260_v31, %v11244_v54  ;;  %v11447_v6 = vsel %vm11415_vm9, %v11399_v0, %v11431_v9  ;;  %v13315_v0 = vld [vmem:[%s21083_s2 + $0x608] sm:$0xff]  ;;  %v11197_v9 = vmul.f32 %v20378_v28, %v20504_v61  ;;  %v13317_v61 = vld [vmem:[%s21083_s2 + $0x618] sm:$0xff] }
 0x674   :  { %14782 = vmatmul.mubr.msk.f32.gmra.mrb[232].mxu1 %vm665_vm0, %v11447_v6  ;;  %v20590_v25 = vpop.permute.xlu0 %11992 }
 0x675   :  { %v11400_v49 = vadd.f32 %v20289_v26, %v11384_v42  ;;  %v11289_v29 = vadd.f32 %v11273_v55, %v11193_v24 }
 0x676   :  { %v11340_v44 = vpop.permute.xlu1 %11339 }
 0x677   :  { %v11369_v20 = vmul.f32 %v20190_v51, %v11340_v44  ;;  %vm11416_vm10 = vcmp.gt.f32.partialorder %v11400_v49, 0.0  ;;  %v11432_v21 = vmul.f32 0.2, %v11400_v49 }
 0x679   :  { %v11385_v60 = vadd.f32 %v11369_v20, %v11289_v29  ;;  %v11448_v50 = vsel %vm11416_vm10, %v11400_v49, %v11432_v21  ;;  %v13316_v20 = vld [vmem:[%s21083_s2 + $0x610] sm:$0xff] }
 0x67a   :  { %v11248_v14 = vpop.permute.xlu1 %11247  ;;  %14784 = vmatprep.mubr.msk.f32.mxu1 %vm665_vm0, %v11448_v50 }
 0x67b   :  { %v11401_v45 = vadd.f32 %v20289_v26, %v11385_v60  ;;  %v11274_v27 = vmul.f32 %v20260_v31, %v11248_v14  ;;  %v20620_v14 = vpop.permute.xlu0 %12088 }
 0x67d   :  { %v11290_v10 = vadd.f32 %v11274_v27, %v11194_v23  ;;  %vm11417_vm11 = vcmp.gt.f32.partialorder %v11401_v45, 0.0  ;;  %v11433_v18 = vmul.f32 0.2, %v11401_v45 }
 0x67e   :  { %v11252_v3 = vpop.permute.xlu1 %11251 }
 0x67f   :  { %v11386_v17 = vadd.f32 %v11370_v13, %v11290_v10  ;;  %v11275_v43 = vmul.f32 %v20260_v31, %v11252_v3  ;;  %v11449_v38 = vsel %vm11417_vm11, %v11401_v45, %v11433_v18  ;;  %v13318_v3 = vld [vmem:[%s21083_s2 + $0x620] sm:$0xff] }
 0x680   :  { %14785 = vmatmul.mubr.msk.f32.gmra.mrb[234].mxu1 %vm665_vm0, %v11449_v38 }
 0x681   :  { %v11402_v46 = vadd.f32 %v20289_v26, %v11386_v17  ;;  %v11291_v58 = vadd.f32 %v11275_v43, %v11195_v41  ;;  %v13319_v43 = vld [vmem:[%s21083_s2 + $0x628] sm:$0xff] }
 0x682   :  { %v11348_v1 = vpop.permute.xlu1 %11347 }
 0x683   :  { %v11371_v2 = vmul.f32 %v20190_v51, %v11348_v1  ;;  %vm11418_vm12 = vcmp.gt.f32.partialorder %v11402_v46, 0.0  ;;  %v11434_v35 = vmul.f32 0.2, %v11402_v46 }
 0x685   :  { %v11387_v56 = vadd.f32 %v11371_v2, %v11291_v58  ;;  %v11450_v52 = vsel %vm11418_vm12, %v11402_v46, %v11434_v35  ;;  %v20636_v58 = vpop.permute.xlu0 %11996 }
 0x686   :  { %v11256_v22 = vpop.permute.xlu1 %11255  ;;  %14787 = vmatprep.mubr.msk.f32.mxu1 %vm665_vm0, %v11450_v52  ;;  %v13320_v52 = vld [vmem:[%s21083_s2 + $0x630] sm:$0xff] }
 0x687   :  { %v11403_v57 = vadd.f32 %v20289_v26, %v11387_v56  ;;  %v11276_v62 = vmul.f32 %v20260_v31, %v11256_v22  ;;  %v13321_v22 = vld [vmem:[%s21083_s2 + $0x638] sm:$0xff] }
 0x689   :  { %v11292_v30 = vadd.f32 %v11276_v62, %v11196_v59  ;;  %v14667_v32 = vpop.f32.mrb[192].mxu1  ;;  %vm11419_vm13 = vcmp.gt.f32.partialorder %v11403_v57, 0.0  ;;  %v11435_v4 = vmul.f32 0.2, %v11403_v57 }
 0x68a   :  { %v10028_v19 = vadd.f32 %v20595_v37, %v14667_v32  ;;  %v11260_v11 = vpop.permute.xlu1 %11259  ;;  %v10022_v36 = vpop.f32.mrb[193].mxu1 }
 0x68b   :  { %v11388_v12 = vadd.f32 %v11372_v48, %v11292_v30  ;;  %v11277_v15 = vmul.f32 %v20260_v31, %v11260_v11  ;;  %v10023_v39 = vadd.f32 %v20595_v37, %v10022_v36  ;;  %v11451_v40 = vsel %vm11419_vm13, %v11403_v57, %v11435_v4  ;;  %v20658_v36 = vld [vmem:[%s21089_s8] ss:$0 sm:$0xff] }
 0x68c   :  { %14788 = vmatmul.mubr.msk.f32.gmra.mrb[236].mxu1 %vm665_vm0, %v11451_v40  ;;  %v10119_v6 = vmul.f32 %v13315_v0, %v10028_v19  ;;  %v12036_v48 = vmul.f32 %v20260_v31, %v20536_v33  ;;  %v11955_v4 = vmul.f32 %v20378_v28, %v20524_v34  ;;  %v12132_v33 = vmul.f32 %v20658_v36, %v20544_v8  ;;  %v13323_v34 = vld [vmem:[%s21083_s2 + $0x648] sm:$0xff]  ;;  %v20674_v8 = vld [vmem:[%s21093_s12 + $0x70] sm:$0xff] }
 0x68d   :  { %v11404_v54 = vadd.f32 %v20289_v26, %v11388_v12  ;;  %v10118_v42 = vmul.f32 %v13314_v7, %v10023_v39  ;;  %v14670_v55 = vpop.f32.mrb[194].mxu1  ;;  %v11293_v24 = vadd.f32 %v11277_v15, %v11197_v9  ;;  %v13322_v39 = vld [vmem:[%s21083_s2 + $0x640] sm:$0xff] }
 0x68e   :  { %v10038_v49 = vadd.f32 %v20595_v37, %v14670_v55  ;;  %v11356_v44 = vpop.permute.xlu1 %11355  ;;  %v10032_v29 = vpop.f32.mrb[195].mxu1 }
 0x68f   :  { %v11373_v21 = vmul.f32 %v20190_v51, %v11356_v44  ;;  %v10033_v60 = vadd.f32 %v20595_v37, %v10032_v29  ;;  %14691 = vmatprep.mubr.msk.f32.mxu0 %vm665_vm0, %v10118_v42  ;;  %vm11420_vm14 = vcmp.gt.f32.partialorder %v11404_v54, 0.0  ;;  %v11436_v50 = vmul.f32 0.2, %v11404_v54 }
 0x690   :  { %14692 = vmatmul.mubr.msk.f32.vlgmr.msra.gmra.mrb[0].mxu0 %vm665_vm0, %v10119_v6  ;;  %v10121_v10 = vmul.f32 %v13317_v61, %v10038_v49 }
 0x691   :  { %v11389_v23 = vadd.f32 %v11373_v21, %v11293_v24  ;;  %v10120_v45 = vmul.f32 %v13316_v20, %v10033_v60  ;;  %v14673_v27 = vpop.f32.mrb[196].mxu1  ;;  %v11452_v13 = vsel %vm11420_vm14, %v11404_v54, %v11436_v50  ;;  %14742 = vmatpush3.msra.mxu0 %v20424_v5  ;;  %v20676_v54 = vpop.permute.xlu0 %12000  ;;  %v13324_v60 = vld [vmem:[%s21083_s2 + $0x650] sm:$0xff] }
 0x692   :  { %v10048_v18 = vadd.f32 %v20595_v37, %v14673_v27  ;;  %v10042_v51 = vpop.f32.mrb[197].mxu1  ;;  %14790 = vmatprep.mubr.msk.f32.mxu1 %vm665_vm0, %v11452_v13  ;;  %14793 = vmatprep.subr.mxu0 %v20674_v8 }
 0x693   :  { %v11405_v17 = vadd.f32 %v20289_v26, %v11389_v23  ;;  %v10043_v38 = vadd.f32 %v20595_v37, %v10042_v51  ;;  %v11973_v41 = vpop.permute.xlu1 %11972  ;;  %14694 = vmatprep.mubr.msk.f32.mxu0 %vm665_vm0, %v10120_v45  ;;  %v13325_v45 = vld [vmem:[%s21083_s2 + $0x658] sm:$0xff] }
 0x694   :  { %14695 = vmatmul.mubr.msk.f32.gmra.mrb[2].mxu0 %vm665_vm0, %v10121_v10  ;;  %v10123_v2 = vmul.f32 %v13319_v43, %v10048_v18  ;;  %v12035_v30 = vmul.f32 %v20260_v31, %v11973_v41 }
 0x695   :  { %v10122_v5 = vmul.f32 %v13318_v3, %v10043_v38  ;;  %v14676_v46 = vpop.f32.mrb[198].mxu1  ;;  %vm11421_vm15 = vcmp.gt.f32.partialorder %v11405_v17, 0.0  ;;  %v11437_v1 = vmul.f32 0.2, %v11405_v17  ;;  %v20693_v10 = vpop.permute.xlu0 %12096 }
 0x696   :  { %v10058_v35 = vadd.f32 %v20595_v37, %v14676_v46  ;;  %v10052_v56 = vpop.f32.mrb[199].mxu1  ;;  %v12051_v42 = vadd.f32 %v12035_v30, %v11955_v4 }
 0x697   :  { %v10053_v59 = vadd.f32 %v20595_v37, %v10052_v56  ;;  %v11897_v57 = vpop.permute.xlu1 %11896  ;;  %14697 = vmatprep.mubr.msk.f32.mxu0 %vm665_vm0, %v10122_v5  ;;  %v11453_v62 = vsel %vm11421_vm15, %v11405_v17, %v11437_v1  ;;  %v12038_v17 = vmul.f32 %v20260_v31, %v20563_v53  ;;  %v13326_v5 = vld [vmem:[%s21083_s2 + $0x660] sm:$0xff] }
 0x698   :  { %v11956_v32 = vmul.f32 %v20378_v28, %v11897_v57  ;;  %14698 = vmatmul.mubr.msk.f32.gmra.mrb[4].mxu0 %vm665_vm0, %v10123_v2  ;;  %14791 = vmatmul.mubr.msk.f32.gmra.mrb[238].mxu1 %vm665_vm0, %v11453_v62  ;;  %v10125_v7 = vmul.f32 %v13321_v22, %v10058_v35  ;;  %v13327_v2 = vld [vmem:[%s21083_s2 + $0x668] sm:$0xff]  ;;  %v12037_v22 = vmul.f32 %v20260_v31, %v20556_v16  ;;  %v13329_v31 = vld [vmem:[%s21083_s2 + $0x678] sm:$0xff] }
 0x699   :  { %v10124_v19 = vmul.f32 %v13320_v52, %v10053_v59  ;;  %v14679_v11 = vpop.f32.mrb[200].mxu1  ;;  %v12134_v59 = vmul.f32 %v20658_v36, %v20573_v63 }
 0x69a   :  { %v12052_v12 = vadd.f32 %v12036_v48, %v11956_v32  ;;  %v10068_v0 = vadd.f32 %v20595_v37, %v14679_v11  ;;  %v10062_v15 = vpop.f32.mrb[201].mxu1 }
 0x69b   :  { %v10063_v40 = vadd.f32 %v20595_v37, %v10062_v15  ;;  %v12069_v9 = vpop.permute.xlu1 %12068  ;;  %14700 = vmatprep.mubr.msk.f32.mxu0 %vm665_vm0, %v10124_v19  ;;  %v13328_v19 = vld [vmem:[%s21083_s2 + $0x670] sm:$0xff] }
 0x69c   :  { %v12148_v55 = vadd.f32 %v12132_v33, %v12052_v12  ;;  %v12131_v6 = vmul.f32 %v20658_v36, %v12069_v9  ;;  %14701 = vmatmul.mubr.msk.f32.gmra.mrb[6].mxu0 %vm665_vm0, %v10125_v7  ;;  %v10127_v44 = vmul.f32 %v13323_v34, %v10068_v0  ;;  %v20725_v12 = vpop.permute.xlu0 %12004 }
 0x69d   :  { %v10126_v24 = vmul.f32 %v13322_v39, %v10063_v40  ;;  %v14682_v20 = vpop.f32.mrb[202].mxu1 }
 0x69e   :  { %v12164_v49 = vadd.f32 %v20289_v26, %v12148_v55  ;;  %v12147_v29 = vadd.f32 %v12131_v6, %v12051_v42  ;;  %v10078_v61 = vadd.f32 %v20595_v37, %v14682_v20  ;;  %v10072_v21 = vpop.f32.mrb[203].mxu1 }
 0x69f   :  { %v11901_v50 = vpop.permute.xlu1 %11900  ;;  %14703 = vmatprep.mubr.msk.f32.mxu0 %vm665_vm0, %v10126_v24  ;;  %v10073_v27 = vadd.f32 %v20595_v37, %v10072_v21 }
 0x6a0   :  { %v12163_v23 = vadd.f32 %v20289_v26, %v12147_v29  ;;  %14704 = vmatmul.mubr.msk.f32.gmra.mrb[8].mxu0 %vm665_vm0, %v10127_v44  ;;  %v12196_v13 = vmul.f32 0.2, %v12164_v49  ;;  %vm12180_vm2 = vcmp.gt.f32.partialorder %v12164_v49, 0.0  ;;  %v10129_v43 = vmul.f32 %v13325_v45, %v10078_v61  ;;  %v20732_v6 = vpop.permute.xlu0 %12008 }
 0x6a1   :  { %v10128_v18 = vmul.f32 %v13324_v60, %v10073_v27  ;;  %v14685_v51 = vpop.f32.mrb[204].mxu1  ;;  %v11957_v1 = vmul.f32 %v20378_v28, %v11901_v50  ;;  %v12136_v60 = vmul.f32 %v20658_v36, %v20620_v14  ;;  %v20759_v14 = vld [vmem:[%s21090_s9] ss:$0 sm:$0xff] }
 0x6a2   :  { %vm12179_vm1 = vcmp.gt.f32.partialorder %v12163_v23, 0.0  ;;  %v12195_v3 = vmul.f32 0.2, %v12163_v23  ;;  %v10088_v38 = vadd.f32 %v20595_v37, %v14685_v51  ;;  %v10082_v41 = vpop.f32.mrb[205].mxu1  ;;  %v12212_v52 = vsel %vm12180_vm2, %v12164_v49, %v12196_v13  ;;  %v20737_v49 = vld [vmem:[%s21088_s7] ss:$0 sm:$0xff] }
 0x6a3   :  { %v11905_v46 = vpop.permute.xlu1 %11904  ;;  %v10083_v35 = vadd.f32 %v20595_v37, %v10082_v41  ;;  %14706 = vmatprep.mubr.msk.f32.mxu0 %vm665_vm0, %v10128_v18  ;;  %v12053_v33 = vadd.f32 %v12037_v22, %v11957_v1  ;;  %v12040_v44 = vmul.f32 %v20737_v49, %v20590_v25  ;;  %v12039_v21 = vmul.f32 %v20737_v49, %v20580_v47  ;;  %v13363_v47 = vld [vmem:[%s21083_s2 + $0x680] sm:$0xff] }
 0x6a4   :  { %v11958_v56 = vmul.f32 %v20378_v28, %v11905_v46  ;;  %v12211_v53 = vsel %vm12179_vm1, %v12163_v23, %v12195_v3  ;;  %14707 = vmatmul.mubr.msk.f32.gmra.mrb[10].mxu0 %vm665_vm0, %v10129_v43  ;;  %v10131_v30 = vmul.f32 %v13327_v2, %v10088_v38  ;;  %v20750_v18 = vpop.permute.xlu0 %12104  ;;  %v13364_v38 = vld [vmem:[%s21083_s2 + $0x688] sm:$0xff]  ;;  %v12042_v22 = vmul.f32 %v20737_v49, %v20676_v54 }
 0x6a5   :  { %14821 = vmatprep.mubr.msk.f32.mxu1 %vm665_vm0, %v12211_v53  ;;  %v10130_v57 = vmul.f32 %v13326_v5, %v10083_v35  ;;  %v14688_v48 = vpop.f32.mrb[206].mxu1 }
 0x6a6   :  { %v12054_v62 = vadd.f32 %v12038_v17, %v11958_v56  ;;  %14822 = vmatmul.mubr.msk.f32.vlgmr.msra.gmra.mrb[240].mxu1 %vm665_vm0, %v12212_v52  ;;  %v10098_v32 = vadd.f32 %v20595_v37, %v14688_v48  ;;  %v10092_v4 = vpop.f32.mrb[207].mxu1 }
 0x6a7   :  { %v12077_v11 = vpop.permute.xlu1 %12076  ;;  %v10093_v16 = vadd.f32 %v20595_v37, %v10092_v4  ;;  %14709 = vmatprep.mubr.msk.f32.mxu0 %vm665_vm0, %v10130_v57 }
 0x6a8   :  { %v12150_v7 = vadd.f32 %v12134_v59, %v12054_v62  ;;  %v12133_v63 = vmul.f32 %v20658_v36, %v12077_v11  ;;  %14710 = vmatmul.mubr.msk.f32.gmra.mrb[12].mxu0 %vm665_vm0, %v10131_v30  ;;  %v10133_v34 = vmul.f32 %v13329_v31, %v10098_v32  ;;  %v20768_v53 = vpop.permute.xlu0 %12012  ;;  %v12041_v30 = vmul.f32 %v20737_v49, %v20636_v58 }
 0x6a9   :  { %v10132_v15 = vmul.f32 %v13328_v19, %v10093_v16  ;;  %v12138_v32 = vmul.f32 %v20658_v36, %v20693_v10  ;;  %v13365_v16 = vld [vmem:[%s21083_s2 + $0x690] sm:$0xff]  ;;  %v13366_v10 = vld [vmem:[%s21083_s2 + $0x698] sm:$0xff] }
 0x6aa   :  { %v12166_v0 = vadd.f32 %v20289_v26, %v12150_v7  ;;  %v12149_v39 = vadd.f32 %v12133_v63, %v12053_v33 }
 0x6ab   :  { %v11909_v40 = vpop.permute.xlu1 %11908  ;;  %14712 = vmatprep.mubr.msk.f32.mxu0 %vm665_vm0, %v10132_v15 }
 0x6ac   :  { %v12165_v9 = vadd.f32 %v20289_v26, %v12149_v39  ;;  %14713 = vmatmul.mubr.msk.f32.gmra.mrb[14].mxu0 %vm665_vm0, %v10133_v34  ;;  %v12198_v42 = vmul.f32 0.2, %v12166_v0  ;;  %vm12182_vm4 = vcmp.gt.f32.partialorder %v12166_v0, 0.0  ;;  %v11959_v26 = vmul.f32 %v20378_v28, %v11909_v40  ;;  %v12017_v58 = vpop.permute.xlu0 %12016 }
 0x6ae   :  { %vm12181_vm3 = vcmp.gt.f32.partialorder %v12165_v9, 0.0  ;;  %v12197_v55 = vmul.f32 0.2, %v12165_v9  ;;  %v12214_v61 = vsel %vm12182_vm4, %v12166_v0, %v12198_v42  ;;  %v12055_v45 = vadd.f32 %v12039_v21, %v11959_v26 }
 0x6af   :  { %v11913_v24 = vpop.permute.xlu1 %11912  ;;  %v12044_v26 = vmul.f32 %v20737_v49, %v20732_v6 }
 0x6b0   :  { %v11960_v29 = vmul.f32 %v20378_v28, %v11913_v24  ;;  %v12213_v20 = vsel %vm12181_vm3, %v12165_v9, %v12197_v55  ;;  %v12113_v24 = vpop.permute.xlu0 %12112 }
 0x6b1   :  { %14824 = vmatprep.mubr.msk.f32.mxu1 %vm665_vm0, %v12213_v20 }
 0x6b2   :  { %v12056_v50 = vadd.f32 %v12040_v44, %v11960_v29  ;;  %14825 = vmatmul.mubr.msk.f32.gmra.mrb[242].mxu1 %vm665_vm0, %v12214_v61 }
 0x6b3   :  { %v12085_v23 = vpop.permute.xlu1 %12084  ;;  %v14719_v13 = vpop.f32.mrb[208].mxu1 }
 0x6b4   :  { %v12152_v25 = vadd.f32 %v12136_v60, %v12056_v50  ;;  %v12135_v27 = vmul.f32 %v20658_v36, %v12085_v23  ;;  %v10801_v51 = vadd.f32 %v20595_v37, %v14719_v13  ;;  %v10795_v3 = vpop.f32.mrb[209].mxu1  ;;  %v12043_v60 = vmul.f32 %v20737_v49, %v20725_v12  ;;  %v12021_v12 = vpop.permute.xlu0 %12020 }
 0x6b5   :  { %v10796_v41 = vadd.f32 %v20595_v37, %v10795_v3  ;;  %v12140_v50 = vmul.f32 %v20658_v36, %v20750_v18  ;;  %v13367_v3 = vld [vmem:[%s21083_s2 + $0x6a0] sm:$0xff]  ;;  %v13368_v18 = vld [vmem:[%s21083_s2 + $0x6a8] sm:$0xff] }
 0x6b6   :  { %v12168_v17 = vadd.f32 %v20759_v14, %v12152_v25  ;;  %v12151_v43 = vadd.f32 %v12135_v27, %v12055_v45  ;;  %v10892_v2 = vmul.f32 %v13364_v38, %v10801_v51 }
 0x6b7   :  { %v11917_v5 = vpop.permute.xlu1 %11916  ;;  %v10891_v1 = vmul.f32 %v13363_v47, %v10796_v41 }
 0x6b8   :  { %v12167_v46 = vadd.f32 %v20759_v14, %v12151_v43  ;;  %v12200_v35 = vmul.f32 0.2, %v12168_v17  ;;  %vm12184_vm6 = vcmp.gt.f32.partialorder %v12168_v17, 0.0  ;;  %v11961_v59 = vmul.f32 %v20378_v28, %v11917_v5 }
 0x6b9   :  { %14743 = vmatprep.mubr.msk.f32.mxu0 %vm665_vm0, %v10891_v1 }
 0x6ba   :  { %vm12183_vm5 = vcmp.gt.f32.partialorder %v12167_v46, 0.0  ;;  %v12199_v56 = vmul.f32 0.2, %v12167_v46  ;;  %14744 = vmatmul.mubr.msk.f32.vlgmr.msra.gmra.mrb[0].mxu0 %vm665_vm0, %v10892_v2  ;;  %v12216_v48 = vsel %vm12184_vm6, %v12168_v17, %v12200_v35  ;;  %v12057_v11 = vadd.f32 %v12041_v30, %v11961_v59  ;;  %v12025_v35 = vpop.permute.xlu0 %12024 }
 0x6bb   :  { %v11921_v52 = vpop.permute.xlu1 %11920  ;;  %14794 = vmatpush3.msra.mxu0 %v20674_v8  ;;  %v12045_v30 = vmul.f32 %v20737_v49, %v20768_v53  ;;  %v13370_v53 = vld [vmem:[%s21083_s2 + $0x6b8] sm:$0xff] }
 0x6bc   :  { %v11962_v57 = vmul.f32 %v20378_v28, %v11921_v52  ;;  %v12215_v62 = vsel %vm12183_vm5, %v12167_v46, %v12199_v56  ;;  %v12046_v52 = vmul.f32 %v20737_v49, %v12017_v58 }
 0x6bd   :  { %14827 = vmatprep.mubr.msk.f32.mxu1 %vm665_vm0, %v12215_v62 }
 0x6be   :  { %v12058_v4 = vadd.f32 %v12042_v22, %v11962_v57  ;;  %14828 = vmatmul.mubr.msk.f32.gmra.mrb[244].mxu1 %vm665_vm0, %v12216_v48  ;;  %v20822_v22 = vld [vmem:[%s21087_s6] ss:$0 sm:$0xff]  ;;  %v12121_v58 = vpop.permute.xlu0 %12120 }
 0x6bf   :  { %v12093_v54 = vpop.permute.xlu1 %12092  ;;  %v14722_v19 = vpop.f32.mrb[210].mxu1 }
 0x6c0   :  { %v12154_v33 = vadd.f32 %v12138_v32, %v12058_v4  ;;  %v12137_v7 = vmul.f32 %v20658_v36, %v12093_v54  ;;  %v10811_v8 = vadd.f32 %v20595_v37, %v14722_v19  ;;  %v10805_v31 = vpop.f32.mrb[211].mxu1  ;;  %v12142_v32 = vmul.f32 %v20658_v36, %v12113_v24 }
 0x6c1   :  { %v10806_v63 = vadd.f32 %v20595_v37, %v10805_v31 }
 0x6c2   :  { %v12170_v0 = vadd.f32 %v20759_v14, %v12154_v33  ;;  %v12153_v15 = vadd.f32 %v12137_v7, %v12057_v11  ;;  %v10894_v9 = vmul.f32 %v13366_v10, %v10811_v8 }
 0x6c3   :  { %v10893_v39 = vmul.f32 %v13365_v16, %v10806_v63  ;;  %v11925_v34 = vpop.permute.xlu1 %11924  ;;  %v13369_v16 = vld [vmem:[%s21083_s2 + $0x6b0] sm:$0xff] }
 0x6c4   :  { %v12169_v40 = vadd.f32 %v20759_v14, %v12153_v15  ;;  %v12202_v42 = vmul.f32 0.2, %v12170_v0  ;;  %vm12186_vm8 = vcmp.gt.f32.partialorder %v12170_v0, 0.0  ;;  %v11963_v29 = vmul.f32 %v20378_v28, %v11925_v34 }
 0x6c5   :  { %14746 = vmatprep.mubr.msk.f32.mxu0 %vm665_vm0, %v10893_v39 }
 0x6c6   :  { %14747 = vmatmul.mubr.msk.f32.gmra.mrb[2].mxu0 %vm665_vm0, %v10894_v9  ;;  %vm12185_vm7 = vcmp.gt.f32.partialorder %v12169_v40, 0.0  ;;  %v12201_v55 = vmul.f32 0.2, %v12169_v40  ;;  %v12218_v21 = vsel %vm12186_vm8, %v12170_v0, %v12202_v42  ;;  %v12059_v6 = vadd.f32 %v12043_v60, %v11963_v29 }
 0x6c7   :  { %v11929_v44 = vpop.permute.xlu1 %11928  ;;  %v12144_v60 = vmul.f32 %v20658_v36, %v12121_v58 }
 0x6c8   :  { %v11964_v20 = vmul.f32 %v20378_v28, %v11929_v44  ;;  %v12217_v61 = vsel %vm12185_vm7, %v12169_v40, %v12201_v55  ;;  %v12029_v55 = vpop.permute.xlu0 %12028  ;;  %v12048_v44 = vmul.f32 %v20737_v49, %v12025_v35 }
 0x6c9   :  { %14830 = vmatprep.mubr.msk.f32.mxu1 %vm665_vm0, %v12217_v61 }
 0x6ca   :  { %v12060_v23 = vadd.f32 %v12044_v26, %v11964_v20  ;;  %14831 = vmatmul.mubr.msk.f32.gmra.mrb[246].mxu1 %vm665_vm0, %v12218_v21  ;;  %v12047_v21 = vmul.f32 %v20737_v49, %v12021_v12  ;;  %v13372_v12 = vld [vmem:[%s21083_s2 + $0x6c8] sm:$0xff] }
 0x6cb   :  { %v12101_v45 = vpop.permute.xlu1 %12100  ;;  %v14725_v25 = vpop.f32.mrb[212].mxu1 }
 0x6cc   :  { %v12156_v27 = vadd.f32 %v12140_v50, %v12060_v23  ;;  %v12139_v13 = vmul.f32 %v20658_v36, %v12101_v45  ;;  %v10821_v28 = vadd.f32 %v20595_v37, %v14725_v25  ;;  %v10815_v51 = vpop.f32.mrb[213].mxu1 }
 0x6cd   :  { %v10816_v47 = vadd.f32 %v20595_v37, %v10815_v51  ;;  %v13371_v51 = vld [vmem:[%s21083_s2 + $0x6c0] sm:$0xff] }
 0x6ce   :  { %v12172_v17 = vadd.f32 %v20759_v14, %v12156_v27  ;;  %v12155_v43 = vadd.f32 %v12139_v13, %v12059_v6  ;;  %v10896_v46 = vmul.f32 %v13368_v18, %v10821_v28 }
 0x6cf   :  { %v10895_v38 = vmul.f32 %v13367_v3, %v10816_v47  ;;  %v11933_v41 = vpop.permute.xlu1 %11932  ;;  %v12033_v3 = vpop.permute.xlu0 %12032 }
 0x6d0   :  { %v12171_v5 = vadd.f32 %v20759_v14, %v12155_v43  ;;  %v12204_v1 = vmul.f32 0.2, %v12172_v17  ;;  %vm12188_vm10 = vcmp.gt.f32.partialorder %v12172_v17, 0.0  ;;  %v11965_v59 = vmul.f32 %v20822_v22, %v11933_v41 }
 0x6d1   :  { %14749 = vmatprep.mubr.msk.f32.mxu0 %vm665_vm0, %v10895_v38 }
 0x6d2   :  { %14750 = vmatmul.mubr.msk.f32.gmra.mrb[4].mxu0 %vm665_vm0, %v10896_v46  ;;  %vm12187_vm9 = vcmp.gt.f32.partialorder %v12171_v5, 0.0  ;;  %v12203_v2 = vmul.f32 0.2, %v12171_v5  ;;  %v12220_v48 = vsel %vm12188_vm10, %v12172_v17, %v12204_v1  ;;  %v12061_v11 = vadd.f32 %v12045_v30, %v11965_v59 }
 0x6d3   :  { %v11937_v56 = vpop.permute.xlu1 %11936 }
 0x6d4   :  { %v11966_v57 = vmul.f32 %v20822_v22, %v11937_v56  ;;  %v12219_v62 = vsel %vm12187_vm9, %v12171_v5, %v12203_v2  ;;  %v12129_v2 = vpop.permute.xlu0 %12128  ;;  %v12050_v56 = vmul.f32 %v20737_v49, %v12033_v3 }
 0x6d5   :  { %14833 = vmatprep.mubr.msk.f32.mxu1 %vm665_vm0, %v12219_v62  ;;  %v12146_v30 = vmul.f32 %v20658_v36, %v12129_v2 }
 0x6d6   :  { %v12062_v4 = vadd.f32 %v12046_v52, %v11966_v57  ;;  %14834 = vmatmul.mubr.msk.f32.gmra.mrb[248].mxu1 %vm665_vm0, %v12220_v48  ;;  %v12049_v48 = vmul.f32 %v20737_v49, %v12029_v55  ;;  %v13374_v49 = vld [vmem:[%s21083_s2 + $0x6d8] sm:$0xff] }
 0x6d7   :  { %v12109_v54 = vpop.permute.xlu1 %12108  ;;  %v14728_v19 = vpop.f32.mrb[214].mxu1 }
 0x6d8   :  { %v12158_v33 = vadd.f32 %v12142_v32, %v12062_v4  ;;  %v12141_v7 = vmul.f32 %v20658_v36, %v12109_v54  ;;  %v10831_v8 = vadd.f32 %v20595_v37, %v14728_v19  ;;  %v10825_v31 = vpop.f32.mrb[215].mxu1 }
 0x6d9   :  { %v10826_v10 = vadd.f32 %v20595_v37, %v10825_v31 }
 0x6da   :  { %v12174_v63 = vadd.f32 %v20759_v14, %v12158_v33  ;;  %v12157_v0 = vadd.f32 %v12141_v7, %v12061_v11  ;;  %v10898_v40 = vmul.f32 %v13370_v53, %v10831_v8  ;;  %v13373_v8 = vld [vmem:[%s21083_s2 + $0x6d0] sm:$0xff] }
 0x6db   :  { %v10897_v15 = vmul.f32 %v13369_v16, %v10826_v10  ;;  %v11941_v39 = vpop.permute.xlu1 %11940 }
 0x6dc   :  { %v12173_v34 = vadd.f32 %v20759_v14, %v12157_v0  ;;  %v12206_v9 = vmul.f32 0.2, %v12174_v63  ;;  %vm12190_vm12 = vcmp.gt.f32.partialorder %v12174_v63, 0.0  ;;  %v11967_v26 = vmul.f32 %v20822_v22, %v11941_v39 }
 0x6dd   :  { %14752 = vmatprep.mubr.msk.f32.mxu0 %vm665_vm0, %v10897_v15 }
 0x6de   :  { %14753 = vmatmul.mubr.msk.f32.gmra.mrb[6].mxu0 %vm665_vm0, %v10898_v40  ;;  %vm12189_vm11 = vcmp.gt.f32.partialorder %v12173_v34, 0.0  ;;  %v12205_v42 = vmul.f32 0.2, %v12173_v34  ;;  %v12222_v61 = vsel %vm12190_vm12, %v12174_v63, %v12206_v9  ;;  %v12063_v25 = vadd.f32 %v12047_v21, %v11967_v26  ;;  %v13377_v21 = vld [vmem:[%s21083_s2 + $0x6f0] sm:$0xff] }
 0x6df   :  { %v11945_v24 = vpop.permute.xlu1 %11944 }
 0x6e0   :  { %v11968_v29 = vmul.f32 %v20822_v22, %v11945_v24  ;;  %v12221_v20 = vsel %vm12189_vm11, %v12173_v34, %v12205_v42  ;;  %v13376_v42 = vld [vmem:[%s21083_s2 + $0x6e8] sm:$0xff]  ;;  %v13477_v24 = vld [vmem:[%s21093_s12 + $0x78] sm:$0xff] }
 0x6e1   :  { %14836 = vmatprep.mubr.msk.f32.mxu1 %vm665_vm0, %v12221_v20  ;;  %14845 = vmatprep.subr.mxu0 %v13477_v24 }
 0x6e2   :  { %v12064_v50 = vadd.f32 %v12048_v44, %v11968_v29  ;;  %14837 = vmatmul.mubr.msk.f32.gmra.mrb[250].mxu1 %vm665_vm0, %v12222_v61 }
 0x6e3   :  { %v12117_v23 = vpop.permute.xlu1 %12116  ;;  %v14731_v45 = vpop.f32.mrb[216].mxu1 }
 0x6e4   :  { %v12160_v6 = vadd.f32 %v12144_v60, %v12064_v50  ;;  %v12143_v27 = vmul.f32 %v20658_v36, %v12117_v23  ;;  %v10841_v13 = vadd.f32 %v20595_v37, %v14731_v45  ;;  %v10835_v28 = vpop.f32.mrb[217].mxu1  ;;  %v13378_v60 = vld [vmem:[%s21083_s2 + $0x6f8] sm:$0xff] }
 0x6e5   :  { %v10836_v18 = vadd.f32 %v20595_v37, %v10835_v28  ;;  %v13413_v28 = vld [vmem:[%s21083_s2 + $0x708] sm:$0xff] }
 0x6e6   :  { %v12176_v47 = vadd.f32 %v20759_v14, %v12160_v6  ;;  %v12159_v17 = vadd.f32 %v12143_v27, %v12063_v25  ;;  %v10900_v5 = vmul.f32 %v13372_v12, %v10841_v13  ;;  %v13412_v13 = vld [vmem:[%s21083_s2 + $0x700] sm:$0xff] }
 0x6e7   :  { %v10899_v43 = vmul.f32 %v13371_v51, %v10836_v18  ;;  %v11949_v38 = vpop.permute.xlu1 %11948 }
 0x6e8   :  { %v12175_v41 = vadd.f32 %v20759_v14, %v12159_v17  ;;  %v12208_v46 = vmul.f32 0.2, %v12176_v47  ;;  %vm12192_vm14 = vcmp.gt.f32.partialorder %v12176_v47, 0.0  ;;  %v11969_v52 = vmul.f32 %v20822_v22, %v11949_v38  ;;  %v13415_v38 = vld [vmem:[%s21083_s2 + $0x718] sm:$0xff] }
 0x6e9   :  { %14755 = vmatprep.mubr.msk.f32.mxu0 %vm665_vm0, %v10899_v43  ;;  %v13414_v43 = vld [vmem:[%s21083_s2 + $0x710] sm:$0xff] }
 0x6ea   :  { %14756 = vmatmul.mubr.msk.f32.gmra.mrb[8].mxu0 %vm665_vm0, %v10900_v5  ;;  %vm12191_vm13 = vcmp.gt.f32.partialorder %v12175_v41, 0.0  ;;  %v12207_v1 = vmul.f32 0.2, %v12175_v41  ;;  %v12224_v62 = vsel %vm12192_vm14, %v12176_v47, %v12208_v46  ;;  %v12065_v19 = vadd.f32 %v12049_v48, %v11969_v52  ;;  %v13417_v52 = vld [vmem:[%s21083_s2 + $0x728] sm:$0xff] }
 0x6eb   :  { %v11953_v35 = vpop.permute.xlu1 %11952 }
 0x6ec   :  { %v11970_v59 = vmul.f32 %v20822_v22, %v11953_v35  ;;  %v12223_v57 = vsel %vm12191_vm13, %v12175_v41, %v12207_v1 }
 0x6ed   :  { %14839 = vmatprep.mubr.msk.f32.mxu1 %vm665_vm0, %v12223_v57 }
 0x6ee   :  { %v12066_v32 = vadd.f32 %v12050_v56, %v11970_v59  ;;  %14840 = vmatmul.mubr.msk.f32.gmra.mrb[252].mxu1 %vm665_vm0, %v12224_v62  ;;  %v13416_v56 = vld [vmem:[%s21083_s2 + $0x720] sm:$0xff] }
 0x6ef   :  { %v12125_v4 = vpop.permute.xlu1 %12124  ;;  %v14734_v54 = vpop.f32.mrb[218].mxu1 }
 0x6f0   :  { %v12162_v11 = vadd.f32 %v12146_v30, %v12066_v32  ;;  %v12145_v33 = vmul.f32 %v20658_v36, %v12125_v4  ;;  %v10851_v7 = vadd.f32 %v20595_v37, %v14734_v54  ;;  %v10845_v22 = vpop.f32.mrb[219].mxu1  ;;  %v13418_v4 = vld [vmem:[%s21083_s2 + $0x730] sm:$0xff]  ;;  %v13419_v54 = vld [vmem:[%s21083_s2 + $0x738] sm:$0xff] }
 0x6f1   :  { %v10846_v31 = vadd.f32 %v20595_v37, %v10845_v22 }
 0x6f2   :  { %v12178_v16 = vadd.f32 %v20759_v14, %v12162_v11  ;;  %v12161_v58 = vadd.f32 %v12145_v33, %v12065_v19  ;;  %v10902_v36 = vmul.f32 %v13374_v49, %v10851_v7  ;;  %v13420_v49 = vld [vmem:[%s21083_s2 + $0x740] sm:$0xff] }
 0x6f3   :  { %v10901_v53 = vmul.f32 %v13373_v8, %v10846_v31  ;;  %v13421_v31 = vld [vmem:[%s21083_s2 + $0x748] sm:$0xff] }
 0x6f4   :  { %v12177_v10 = vadd.f32 %v20759_v14, %v12161_v58  ;;  %v12210_v63 = vmul.f32 0.2, %v12178_v16  ;;  %vm12194_vm1 = vcmp.gt.f32.partialorder %v12178_v16, 0.0  ;;  %v13375_v14 = vld [vmem:[%s21083_s2 + $0x6e0] sm:$0xff] }
 0x6f5   :  { %14758 = vmatprep.mubr.msk.f32.mxu0 %vm665_vm0, %v10901_v53 }
 0x6f6   :  { %14759 = vmatmul.mubr.msk.f32.gmra.mrb[10].mxu0 %vm665_vm0, %v10902_v36  ;;  %vm12193_vm15 = vcmp.gt.f32.partialorder %v12177_v10, 0.0  ;;  %v12209_v0 = vmul.f32 0.2, %v12177_v10  ;;  %v12226_v39 = vsel %vm12194_vm1, %v12178_v16, %v12210_v63 }
 0x6f8   :  { %v12225_v15 = vsel %vm12193_vm15, %v12177_v10, %v12209_v0  ;;  %v13422_v0 = vld [vmem:[%s21083_s2 + $0x750] sm:$0xff] }
 0x6f9   :  { %14842 = vmatprep.mubr.msk.f32.mxu1 %vm665_vm0, %v12225_v15  ;;  %v13423_v15 = vld [vmem:[%s21083_s2 + $0x758] sm:$0xff] }
 0x6fa   :  { %14843 = vmatmul.mubr.msk.f32.gmra.mrb[254].mxu1 %vm665_vm0, %v12226_v39 }
 0x6fb   :  { %v14737_v34 = vpop.f32.mrb[220].mxu1 }
 0x6fc   :  { %v10861_v40 = vadd.f32 %v20595_v37, %v14737_v34  ;;  %v10855_v9 = vpop.f32.mrb[221].mxu1 }
 0x6fd   :  { %v10856_v55 = vadd.f32 %v20595_v37, %v10855_v9 }
 0x6fe   :  { %v10904_v26 = vmul.f32 %v13376_v42, %v10861_v40 }
 0x6ff   :  { %v10903_v44 = vmul.f32 %v13375_v14, %v10856_v55  ;;  %v13424_v55 = vld [vmem:[%s21083_s2 + $0x760] sm:$0xff] }
 0x701   :  { %14761 = vmatprep.mubr.msk.f32.mxu0 %vm665_vm0, %v10903_v44 }
 0x702   :  { %14762 = vmatmul.mubr.msk.f32.gmra.mrb[12].mxu0 %vm665_vm0, %v10904_v26 }
 0x707   :  { %v14740_v29 = vpop.f32.mrb[222].mxu1 }
 0x708   :  { %v10871_v20 = vadd.f32 %v20595_v37, %v14740_v29  ;;  %v10865_v61 = vpop.f32.mrb[223].mxu1 }
 0x709   :  { %v10866_v50 = vadd.f32 %v20595_v37, %v10865_v61 }
 0x70a   :  { %v10906_v45 = vmul.f32 %v13378_v60, %v10871_v20  ;;  %v13426_v60 = vld [vmem:[%s21083_s2 + $0x770] sm:$0xff] }
 0x70b   :  { %v10905_v23 = vmul.f32 %v13377_v21, %v10866_v50  ;;  %v13427_v50 = vld [vmem:[%s21083_s2 + $0x778] sm:$0xff] }
 0x70d   :  { %14764 = vmatprep.mubr.msk.f32.mxu0 %vm665_vm0, %v10905_v23 }
 0x70e   :  { %14765 = vmatmul.mubr.msk.f32.gmra.mrb[14].mxu0 %vm665_vm0, %v10906_v45 }
 0x717   :  { %v14771_v25 = vpop.f32.mrb[224].mxu1 }
 0x718   :  { %v11574_v6 = vadd.f32 %v20595_v37, %v14771_v25  ;;  %v11568_v27 = vpop.f32.mrb[225].mxu1 }
 0x719   :  { %v11569_v51 = vadd.f32 %v20595_v37, %v11568_v27 }
 0x71a   :  { %v11665_v12 = vmul.f32 %v13413_v28, %v11574_v6  ;;  %v13461_v28 = vld [vmem:[%s21083_s2 + $0x780] sm:$0xff] }
 0x71b   :  { %v11664_v3 = vmul.f32 %v13412_v13, %v11569_v51  ;;  %v13462_v51 = vld [vmem:[%s21083_s2 + $0x788] sm:$0xff] }
 0x71d   :  { %14795 = vmatprep.mubr.msk.f32.mxu0 %vm665_vm0, %v11664_v3 }
 0x71e   :  { %14796 = vmatmul.mubr.msk.f32.vlgmr.msra.gmra.mrb[0].mxu0 %vm665_vm0, %v11665_v12 }
 0x71f   :  { %14846 = vmatpush3.msra.mxu0 %v13477_v24  ;;  %v13425_v24 = vld [vmem:[%s21083_s2 + $0x768] sm:$0xff] }
 0x723   :  { %v14774_v18 = vpop.f32.mrb[226].mxu1 }
 0x724   :  { %v11584_v47 = vadd.f32 %v20595_v37, %v14774_v18  ;;  %v11578_v17 = vpop.f32.mrb[227].mxu1 }
 0x725   :  { %v11579_v41 = vadd.f32 %v20595_v37, %v11578_v17 }
 0x726   :  { %v11667_v46 = vmul.f32 %v13415_v38, %v11584_v47  ;;  %v13463_v38 = vld [vmem:[%s21083_s2 + $0x790] sm:$0xff] }
 0x727   :  { %v11666_v5 = vmul.f32 %v13414_v43, %v11579_v41  ;;  %v13464_v41 = vld [vmem:[%s21083_s2 + $0x798] sm:$0xff] }
 0x729   :  { %14798 = vmatprep.mubr.msk.f32.mxu0 %vm665_vm0, %v11666_v5 }
 0x72a   :  { %14799 = vmatmul.mubr.msk.f32.gmra.mrb[2].mxu0 %vm665_vm0, %v11667_v46 }
 0x72f   :  { %v14777_v1 = vpop.f32.mrb[228].mxu1 }
 0x730   :  { %v11594_v2 = vadd.f32 %v20595_v37, %v14777_v1  ;;  %v11588_v35 = vpop.f32.mrb[229].mxu1 }
 0x731   :  { %v11589_v59 = vadd.f32 %v20595_v37, %v11588_v35 }
 0x732   :  { %v11669_v62 = vmul.f32 %v13417_v52, %v11594_v2  ;;  %v13465_v52 = vld [vmem:[%s21083_s2 + $0x7a0] sm:$0xff] }
 0x733   :  { %v11668_v57 = vmul.f32 %v13416_v56, %v11589_v59  ;;  %v13466_v59 = vld [vmem:[%s21083_s2 + $0x7a8] sm:$0xff] }
 0x735   :  { %14801 = vmatprep.mubr.msk.f32.mxu0 %vm665_vm0, %v11668_v57 }
 0x736   :  { %14802 = vmatmul.mubr.msk.f32.gmra.mrb[4].mxu0 %vm665_vm0, %v11669_v62 }
 0x73b   :  { %v14780_v48 = vpop.f32.mrb[230].mxu1 }
 0x73c   :  { %v11604_v30 = vadd.f32 %v20595_v37, %v14780_v48  ;;  %v11598_v32 = vpop.f32.mrb[231].mxu1 }
 0x73d   :  { %v11599_v19 = vadd.f32 %v20595_v37, %v11598_v32 }
 0x73e   :  { %v11671_v33 = vmul.f32 %v13419_v54, %v11604_v30  ;;  %v13467_v54 = vld [vmem:[%s21083_s2 + $0x7b0] sm:$0xff] }
 0x73f   :  { %v11670_v11 = vmul.f32 %v13418_v4, %v11599_v19  ;;  %v13468_v19 = vld [vmem:[%s21083_s2 + $0x7b8] sm:$0xff] }
 0x741   :  { %14804 = vmatprep.mubr.msk.f32.mxu0 %vm665_vm0, %v11670_v11 }
 0x742   :  { %14805 = vmatmul.mubr.msk.f32.gmra.mrb[6].mxu0 %vm665_vm0, %v11671_v33 }
 0x747   :  { %v14783_v7 = vpop.f32.mrb[232].mxu1 }
 0x748   :  { %v11614_v22 = vadd.f32 %v20595_v37, %v14783_v7  ;;  %v11608_v8 = vpop.f32.mrb[233].mxu1 }
 0x749   :  { %v11609_v16 = vadd.f32 %v20595_v37, %v11608_v8 }
 0x74a   :  { %v11673_v53 = vmul.f32 %v13421_v31, %v11614_v22  ;;  %v13469_v31 = vld [vmem:[%s21083_s2 + $0x7c0] sm:$0xff] }
 0x74b   :  { %v11672_v58 = vmul.f32 %v13420_v49, %v11609_v16  ;;  %v13470_v16 = vld [vmem:[%s21083_s2 + $0x7c8] sm:$0xff] }
 0x74d   :  { %14807 = vmatprep.mubr.msk.f32.mxu0 %vm665_vm0, %v11672_v58 }
 0x74e   :  { %14808 = vmatmul.mubr.msk.f32.gmra.mrb[8].mxu0 %vm665_vm0, %v11673_v53 }
 0x753   :  { %v14786_v10 = vpop.f32.mrb[234].mxu1 }
 0x754   :  { %v11624_v36 = vadd.f32 %v20595_v37, %v14786_v10  ;;  %v11618_v63 = vpop.f32.mrb[235].mxu1 }
 0x755   :  { %v11619_v39 = vadd.f32 %v20595_v37, %v11618_v63  ;;  %v15211_v63 = vld [vmem:[%s21092_s11] ss:$0 sm:$0xff] }
 0x756   :  { %v11675_v40 = vmul.f32 %v13423_v15, %v11624_v36 }
 0x757   :  { %v11674_v34 = vmul.f32 %v13422_v0, %v11619_v39  ;;  %v13471_v39 = vld [vmem:[%s21083_s2 + $0x7d0] sm:$0xff] }
 0x759   :  { %14810 = vmatprep.mubr.msk.f32.mxu0 %vm665_vm0, %v11674_v34 }
 0x75a   :  { %14811 = vmatmul.mubr.msk.f32.gmra.mrb[10].mxu0 %vm665_vm0, %v11675_v40 }
 0x75f   :  { %v14789_v9 = vpop.f32.mrb[236].mxu1 }
 0x760   :  { %v11634_v14 = vadd.f32 %v20595_v37, %v14789_v9  ;;  %v11628_v42 = vpop.f32.mrb[237].mxu1 }
 0x761   :  { %v11629_v44 = vadd.f32 %v20595_v37, %v11628_v42 }
 0x762   :  { %v11677_v29 = vmul.f32 %v13425_v24, %v11634_v14  ;;  %v13473_v24 = vld [vmem:[%s21083_s2 + $0x7e0] sm:$0xff] }
 0x763   :  { %v11676_v26 = vmul.f32 %v13424_v55, %v11629_v44  ;;  %v13474_v44 = vld [vmem:[%s21083_s2 + $0x7e8] sm:$0xff] }
 0x765   :  { %14813 = vmatprep.mubr.msk.f32.mxu0 %vm665_vm0, %v11676_v26 }
 0x766   :  { %14814 = vmatmul.mubr.msk.f32.gmra.mrb[12].mxu0 %vm665_vm0, %v11677_v29 }
 0x76b   :  { %v14792_v20 = vpop.f32.mrb[238].mxu1 }
 0x76c   :  { %v11644_v61 = vadd.f32 %v20595_v37, %v14792_v20  ;;  %v11638_v21 = vpop.f32.mrb[239].mxu1 }
 0x76d   :  { %v11639_v23 = vadd.f32 %v20595_v37, %v11638_v21 }
 0x76e   :  { %v11679_v25 = vmul.f32 %v13427_v50, %v11644_v61  ;;  %v13475_v50 = vld [vmem:[%s21083_s2 + $0x7f0] sm:$0xff] }
 0x76f   :  { %v11678_v45 = vmul.f32 %v13426_v60, %v11639_v23  ;;  %v13476_v23 = vld [vmem:[%s21083_s2 + $0x7f8] sm:$0xff] }
 0x771   :  { %14816 = vmatprep.mubr.msk.f32.mxu0 %vm665_vm0, %v11678_v45 }
 0x772   :  { %14817 = vmatmul.mubr.msk.f32.gmra.mrb[14].mxu0 %vm665_vm0, %v11679_v25 }
 0x779   :  { %v14823_v6 = vpop.f32.mrb[240].mxu1 }
 0x77a   :  { %v12347_v27 = vadd.f32 %v20595_v37, %v14823_v6  ;;  %v12341_v13 = vpop.f32.mrb[241].mxu1 }
 0x77b   :  { %v12342_v3 = vadd.f32 %v20595_v37, %v12341_v13 }
 0x77c   :  { %v12438_v18 = vmul.f32 %v13462_v51, %v12347_v27  ;;  %v13494_v27 = vld [vmem:[%s21094_s13] ss:$0 sm:$0xff] }
 0x77d   :  { %v12437_v12 = vmul.f32 %v13461_v28, %v12342_v3 }
 0x77f   :  { %14847 = vmatprep.mubr.msk.f32.mxu0 %vm665_vm0, %v12437_v12 }
 0x780   :  { %14848 = vmatmul.mubr.msk.f32.vlgmr.msra.gmra.mrb[0].mxu0 %vm665_vm0, %v12438_v18 }
 0x785   :  { %v14826_v47 = vpop.f32.mrb[242].mxu1 }
 0x786   :  { %v12357_v17 = vadd.f32 %v20595_v37, %v14826_v47  ;;  %v12351_v43 = vpop.f32.mrb[243].mxu1 }
 0x787   :  { %v12352_v5 = vadd.f32 %v20595_v37, %v12351_v43 }
 0x788   :  { %v12440_v1 = vmul.f32 %v13464_v41, %v12357_v17 }
 0x789   :  { %v12439_v46 = vmul.f32 %v13463_v38, %v12352_v5 }
 0x78b   :  { %14850 = vmatprep.mubr.msk.f32.mxu0 %vm665_vm0, %v12439_v46 }
 0x78c   :  { %14851 = vmatmul.mubr.msk.f32.gmra.mrb[2].mxu0 %vm665_vm0, %v12440_v1 }
 0x791   :  { %v14829_v2 = vpop.f32.mrb[244].mxu1 }
 0x792   :  { %v12367_v35 = vadd.f32 %v20595_v37, %v14829_v2  ;;  %v12361_v56 = vpop.f32.mrb[245].mxu1 }
 0x793   :  { %v12362_v57 = vadd.f32 %v20595_v37, %v12361_v56 }
 0x794   :  { %v12442_v48 = vmul.f32 %v13466_v59, %v12367_v35 }
 0x795   :  { %v12441_v62 = vmul.f32 %v13465_v52, %v12362_v57 }
 0x797   :  { %14853 = vmatprep.mubr.msk.f32.mxu0 %vm665_vm0, %v12441_v62 }
 0x798   :  { %14854 = vmatmul.mubr.msk.f32.gmra.mrb[4].mxu0 %vm665_vm0, %v12442_v48 }
 0x79d   :  { %v14832_v30 = vpop.f32.mrb[246].mxu1 }
 0x79e   :  { %v12377_v32 = vadd.f32 %v20595_v37, %v14832_v30  ;;  %v12371_v4 = vpop.f32.mrb[247].mxu1 }
 0x79f   :  { %v12372_v11 = vadd.f32 %v20595_v37, %v12371_v4 }
 0x7a0   :  { %v12444_v7 = vmul.f32 %v13468_v19, %v12377_v32 }
 0x7a1   :  { %v12443_v33 = vmul.f32 %v13467_v54, %v12372_v11 }
 0x7a3   :  { %14856 = vmatprep.mubr.msk.f32.mxu0 %vm665_vm0, %v12443_v33 }
 0x7a4   :  { %14857 = vmatmul.mubr.msk.f32.gmra.mrb[6].mxu0 %vm665_vm0, %v12444_v7 }
 0x7a9   :  { %v14835_v22 = vpop.f32.mrb[248].mxu1 }
 0x7aa   :  { %v12387_v8 = vadd.f32 %v20595_v37, %v14835_v22  ;;  %v12381_v49 = vpop.f32.mrb[249].mxu1 }
 0x7ab   :  { %v12382_v58 = vadd.f32 %v20595_v37, %v12381_v49  ;;  %v13472_v37 = vld [vmem:[%s21083_s2 + $0x7d8] sm:$0xff]  ;;  %s15252_s2 = smov [#allocation2]  }
 0x7ac   :  { %v12446_v10 = vmul.f32 %v13470_v16, %v12387_v8  ;;  %s12708_s13 = sshll.u32 %s15252_s2, 4  ;;  %s12709_s13 = int_to_ptr.vmem [resolvable:$true] %s12708_s13 }
 0x7ad   :  { %v12445_v53 = vmul.f32 %v13469_v31, %v12382_v58  ;;  %s15212_s29 = scalar_lea.vmem %s12709_s13, 2048  ;;  %p15217_p1 = scmp.lt.s32.totalorder %s12709_s13, %s12709_s13 }
 0x7ae   :  { %p15213_p0 = scmp.ne.s32.totalorder %s12709_s13, %s15212_s29  ;;  %p15218_p2 = scmp.lt.s32.totalorder %s15212_s29, %s15212_s29 }
 0x7af   :  { %14859 = vmatprep.mubr.msk.f32.mxu0 %vm665_vm0, %v12445_v53 }
 0x7b0   :  { %14860 = vmatmul.mubr.msk.f32.gmra.mrb[8].mxu0 %vm665_vm0, %v12446_v10  ;;  %p15219_p3 = por %p15218_p2, %p15217_p1 }
 0x7b2   :  { %p15220_p4 = pnand %p15219_p3, %p15213_p0 }
 0x7b5   :  { %v14838_v36 = vpop.f32.mrb[250].mxu1 }
 0x7b6   :  { %v12397_v0 = vadd.f32 %v15211_v63, %v14838_v36  ;;  %v12391_v15 = vpop.f32.mrb[251].mxu1 }
 0x7b7   :  { %v12392_v34 = vadd.f32 %v15211_v63, %v12391_v15 }
 0x7b8   :  { %v12448_v9 = vmul.f32 %v13472_v37, %v12397_v0 }
 0x7b9   :  { %v12447_v40 = vmul.f32 %v13471_v39, %v12392_v34 }
 0x7bb   :  { %14862 = vmatprep.mubr.msk.f32.mxu0 %vm665_vm0, %v12447_v40 }
 0x7bc   :  { %14863 = vmatmul.mubr.msk.f32.gmra.mrb[10].mxu0 %vm665_vm0, %v12448_v9 }
 0x7c1   :  { %v14841_v14 = vpop.f32.mrb[252].mxu1 }
 0x7c2   :  { %v12407_v42 = vadd.f32 %v15211_v63, %v14841_v14  ;;  %v12401_v55 = vpop.f32.mrb[253].mxu1 }
 0x7c3   :  { %v12402_v26 = vadd.f32 %v15211_v63, %v12401_v55 }
 0x7c4   :  { %v12450_v20 = vmul.f32 %v13474_v44, %v12407_v42 }
 0x7c5   :  { %v12449_v29 = vmul.f32 %v13473_v24, %v12402_v26 }
 0x7c7   :  { %14865 = vmatprep.mubr.msk.f32.mxu0 %vm665_vm0, %v12449_v29 }
 0x7c8   :  { %14866 = vmatmul.mubr.msk.f32.gmra.mrb[12].mxu0 %vm665_vm0, %v12450_v20 }
 0x7cd   :  { %v14844_v61 = vpop.f32.mrb[254].mxu1 }
 0x7ce   :  { %v12417_v21 = vadd.f32 %v15211_v63, %v14844_v61  ;;  %v12411_v60 = vpop.f32.mrb[255].mxu1 }
 0x7cf   :  { %v12412_v45 = vadd.f32 %v15211_v63, %v12411_v60 }
 0x7d0   :  { %v12452_v6 = vmul.f32 %v13476_v23, %v12417_v21 }
 0x7d1   :  { %v12451_v25 = vmul.f32 %v13475_v50, %v12412_v45 }
 0x7d3   :  { %14868 = vmatprep.mubr.msk.f32.mxu0 %vm665_vm0, %v12451_v25 }
 0x7d4   :  { %14869 = vmatmul.mubr.msk.f32.gmra.mrb[14].mxu0 %vm665_vm0, %v12452_v6 }
 0x853   :  { %v14849_v13 = vpop.f32.mrb[0].mxu0 }
 0x854   :  { %v12672_v28 = vadd.f32 %v14849_v13, %v13494_v27  ;;  %v12569_v51 = vpop.f32.mrb[1].mxu0 }
 0x855   :  { %v12671_v3 = vadd.f32 %v13494_v27, %v12569_v51 }
 0x856   :  { %12688 = vst [vmem:[#allocation2 + $0x8] sm:$0xff] %v12672_v28 }
 0x857   :  { %12687 = vst [vmem:[#allocation2] sm:$0xff] %v12671_v3 }
 0x85f   :  { %v14852_v12 = vpop.f32.mrb[2].mxu0 }
 0x860   :  { %v12674_v18 = vadd.f32 %v14852_v12, %v13494_v27  ;;  %v12579_v47 = vpop.f32.mrb[3].mxu0 }
 0x861   :  { %v12673_v17 = vadd.f32 %v13494_v27, %v12579_v47 }
 0x862   :  { %12690 = vst [vmem:[#allocation2 + $0x18] sm:$0xff] %v12674_v18 }
 0x863   :  { %12689 = vst [vmem:[#allocation2 + $0x10] sm:$0xff] %v12673_v17 }
 0x86b   :  { %v14855_v43 = vpop.f32.mrb[4].mxu0 }
 0x86c   :  { %v12676_v38 = vadd.f32 %v14855_v43, %v13494_v27  ;;  %v12589_v41 = vpop.f32.mrb[5].mxu0 }
 0x86d   :  { %v12675_v5 = vadd.f32 %v13494_v27, %v12589_v41 }
 0x86e   :  { %12692 = vst [vmem:[#allocation2 + $0x28] sm:$0xff] %v12676_v38 }
 0x86f   :  { %12691 = vst [vmem:[#allocation2 + $0x20] sm:$0xff] %v12675_v5 }
 0x877   :  { %v14858_v46 = vpop.f32.mrb[6].mxu0 }
 0x878   :  { %v12678_v1 = vadd.f32 %v14858_v46, %v13494_v27  ;;  %v12599_v2 = vpop.f32.mrb[7].mxu0 }
 0x879   :  { %v12677_v35 = vadd.f32 %v13494_v27, %v12599_v2 }
 0x87a   :  { %12694 = vst [vmem:[#allocation2 + $0x38] sm:$0xff] %v12678_v1 }
 0x87b   :  { %12693 = vst [vmem:[#allocation2 + $0x30] sm:$0xff] %v12677_v35 }
 0x883   :  { %v14861_v56 = vpop.f32.mrb[8].mxu0 }
 0x884   :  { %v12680_v52 = vadd.f32 %v14861_v56, %v13494_v27  ;;  %v12609_v59 = vpop.f32.mrb[9].mxu0 }
 0x885   :  { %v12679_v57 = vadd.f32 %v13494_v27, %v12609_v59 }
 0x886   :  { %12696 = vst [vmem:[#allocation2 + $0x48] sm:$0xff] %v12680_v52 }
 0x887   :  { %12695 = vst [vmem:[#allocation2 + $0x40] sm:$0xff] %v12679_v57 }
 0x88f   :  { %v14864_v62 = vpop.f32.mrb[10].mxu0 }
 0x890   :  { %v12682_v48 = vadd.f32 %v14864_v62, %v13494_v27  ;;  %v12619_v30 = vpop.f32.mrb[11].mxu0 }
 0x891   :  { %v12681_v32 = vadd.f32 %v13494_v27, %v12619_v30 }
 0x892   :  { %12698 = vst [vmem:[#allocation2 + $0x58] sm:$0xff] %v12682_v48 }
 0x893   :  { %12697 = vst [vmem:[#allocation2 + $0x50] sm:$0xff] %v12681_v32 }
 0x89b   :  { %v14867_v4 = vpop.f32.mrb[12].mxu0 }
 0x89c   :  { %v12684_v54 = vadd.f32 %v14867_v4, %v13494_v27  ;;  %v12629_v19 = vpop.f32.mrb[13].mxu0 }
 0x89d   :  { %v12683_v11 = vadd.f32 %v13494_v27, %v12629_v19 }
 0x89e   :  { %12700 = vst [vmem:[#allocation2 + $0x68] sm:$0xff] %v12684_v54 }
 0x89f   :  { %12699 = vst [vmem:[#allocation2 + $0x60] sm:$0xff] %v12683_v11 }
 0x8a7   :  { %v14870_v33 = vpop.f32.mrb[14].mxu0 }
 0x8a8   :  { %v12686_v7 = vadd.f32 %v14870_v33, %v13494_v27  ;;  %v12639_v22 = vpop.f32.mrb[15].mxu0 }
 0x8a9   :  { %v12685_v8 = vadd.f32 %v13494_v27, %v12639_v22 }
 0x8aa   :  { %12702 = vst [vmem:[#allocation2 + $0x78] sm:$0xff] %v12686_v7 }
 0x8ab   :  { %12701 = vst [vmem:[#allocation2 + $0x70] sm:$0xff] %v12685_v8 }
 0x8ac   :  { %15223 = shalt.err (!%p15220_p4)
}
 0x8ad   :  { %s15224_s15 = scalar_lea.hbm %s21095_s14, 2048 }
 0x8ae   :  { %p15225_p5 = scmp.ne.s32.totalorder %s21095_s14, %s15224_s15  ;;  %p15228_p6 = scmp.lt.u32.totalorder %s15224_s15, %s21095_s14 }
 0x8b0   :  { %p15230_p7 = pnand %p15228_p6, %p15225_p5 }
 0x8b2   :  { %15233 = shalt.err (!%p15230_p7)
}
 0x8b3   :  { %s15253_s9 = smov 128   ;;  %s15254_s10 = smov 8  }
 0x8b4   :  { %12714 = dma.vmem_to_hbm [thread:$0]  %s12709_s13, 2048, %s21095_s14, [#allocation3], %s15253_s9, %s15253_s9, %s15254_s10  }
 0x8b5   :  { %15234 = dma.done.wait [#allocation3], 2048  }
 0x8b6   :  { %15235 = vsyncadd [#allocation3], 4294965248 }
 0x8b7   :  { %12718 = vsyncpa [#allocation3], 1 }

</bundles_post_ra>
